<compile_context>
chip_gen: v7x
topology: tpu7x:2x2x1
jax: 0.10.0
libtpu: 0.0.40
codegen_flags: <defaults>
</compile_context>

<pallas_src>
import jax
import jax.numpy as jnp
from jax.experimental import pallas as pl
from jax.experimental.pallas import tpu as pltpu


_LAYER_DIMS = ((1, 128), (128, 128), (128, 256), (256, 256), (256, 128), (128, 128))
_FC_IN, _FC_OUT, _OUT_PAD = 128, 64, 128


def lstm_embedding_kernel(x_ref,
                          wih0, whh0, b0, wih1, whh1, b1,
                          wih2, whh2, b2, wih3, whh3, b3,
                          wih4, whh4, b4, wih5, whh5, b5,
                          wfc_ref, bfc_ref,
                          out_ref,
                          seq128_a, seq128_b, seq256_a, seq256_b):
    T, TB = x_ref.shape[0], x_ref.shape[1]

    def sigmoid(z):
        return 1.0 / (1.0 + jnp.exp(-z))

    def run_lstm_layer(get_xt, wih_r, whh_r, b_r, out_buf, hidden):
        w_ih = wih_r[...]            # (Din, 4H), gate order [i|f|g|o]
        w_hh = whh_r[...]            # (H,   4H)
        bias = b_r[...]              # (1,   4H)  (b_ih + b_hh, BN already folded in)
        din_is_one = w_ih.shape[0] == 1

        def step(t, carry):
            h, c = carry
            xt = get_xt(t)           # (TB, Din)
            if din_is_one:
                gx = xt * w_ih       # (TB,1)*(1,4H) broadcast -- avoids a K=1 matmul
            else:
                gx = jnp.dot(xt, w_ih, preferred_element_type=jnp.float32)
            gates = gx + jnp.dot(h, w_hh, preferred_element_type=jnp.float32) + bias
            i_g = sigmoid(gates[:, 0 * hidden:1 * hidden])
            f_g = sigmoid(gates[:, 1 * hidden:2 * hidden])
            g_g = jnp.tanh(gates[:, 2 * hidden:3 * hidden])
            o_g = sigmoid(gates[:, 3 * hidden:4 * hidden])
            c_new = f_g * c + i_g * g_g
            h_new = o_g * jnp.tanh(c_new)
            if out_buf is not None:
                out_buf[t] = h_new   # (T, TB, H) scratch, dynamic first-axis store
            return h_new, c_new

        h0 = jnp.zeros((TB, hidden), jnp.float32)
        c0 = jnp.zeros((TB, hidden), jnp.float32)
        h_last, _ = jax.lax.fori_loop(0, T, step, (h0, c0))
        return h_last

    # LSTM block 1 (1 -> 128, 2 layers)
    run_lstm_layer(lambda t: x_ref[t], wih0, whh0, b0, seq128_a, 128)
    run_lstm_layer(lambda t: seq128_a[t], wih1, whh1, b1, seq128_b, 128)
    # BatchNorm1d(128): folded into wih2 / b2 at param-prep time.

    # LSTM block 2 (128 -> 256, 2 layers)
    run_lstm_layer(lambda t: seq128_b[t], wih2, whh2, b2, seq256_a, 256)
    run_lstm_layer(lambda t: seq256_a[t], wih3, whh3, b3, seq256_b, 256)
    # BatchNorm1d(256): folded into wih4 / b4.

    # LSTM block 3 (256 -> 128, 2 layers); only the final hidden state of the top layer is used.
    run_lstm_layer(lambda t: seq256_b[t], wih4, whh4, b4, seq128_a, 128)
    h_last = run_lstm_layer(lambda t: seq128_a[t], wih5, whh5, b5, None, 128)

    # fc: Linear(128, 64), zero-padded to a lane-dense 128-wide output slab.
    out_ref[...] = (jnp.dot(h_last, wfc_ref[...], preferred_element_type=jnp.float32)
                    + bfc_ref[...])


def init_raw_params(key):
    """Deterministic parameters in PyTorch layout (w_ih (4H,Din), w_hh (4H,H), biases (4H,))."""
    keys = iter(jax.random.split(key, 40))

    def uniform(shape, bound):
        return jax.random.uniform(next(keys), shape, jnp.float32, -bound, bound)

    layers = []
    for d_in, h in _LAYER_DIMS:
        bound = 1.0 / (h ** 0.5)
        layers.append(dict(w_ih=uniform((4 * h, d_in), bound),
                           w_hh=uniform((4 * h, h), bound),
                           b_ih=uniform((4 * h,), bound),
                           b_hh=uniform((4 * h,), bound)))

    def batchnorm(n):
        return dict(gamma=1.0 + 0.1 * jax.random.normal(next(keys), (n,), jnp.float32),
                    beta=0.1 * jax.random.normal(next(keys), (n,), jnp.float32),
                    mean=0.1 * jax.random.normal(next(keys), (n,), jnp.float32),
                    var=1.0 + 0.1 * jax.random.uniform(next(keys), (n,), jnp.float32))

    fc_bound = 1.0 / (_FC_IN ** 0.5)
    return dict(layers=layers,
                bn1=batchnorm(128),
                bn2=batchnorm(256),
                fc=dict(w=uniform((_FC_OUT, _FC_IN), fc_bound),
                        b=uniform((_FC_OUT,), fc_bound)))


def pack_params(raw, eps=1e-5):
    """Convert to kernel layout and exactly fold the eval-mode BatchNorms forward into the
    next LSTM layer's input projection. Returns the flat arg list for the kernel."""
    def bn_scale_shift(bn):
        s = bn["gamma"] / jnp.sqrt(bn["var"] + eps)
        return s, bn["beta"] - bn["mean"] * s

    s1, t1 = bn_scale_shift(raw["bn1"])
    s2, t2 = bn_scale_shift(raw["bn2"])
    folds = {2: (s1, t1), 4: (s2, t2)}          # BN1 -> block2 layer0, BN2 -> block3 layer0

    packed = []
    for idx, lp in enumerate(raw["layers"]):
        w_ih_t = lp["w_ih"].T                    # (Din, 4H)
        bias = (lp["b_ih"] + lp["b_hh"])[None, :]
        if idx in folds:
            s, t = folds[idx]
            bias = bias + t[None, :] @ w_ih_t    # b' = b + t @ W
            w_ih_t = s[:, None] * w_ih_t         # W' = diag(s) @ W
        packed += [w_ih_t, lp["w_hh"].T, bias]

    w_fc = jnp.pad(raw["fc"]["w"].T, ((0, 0), (0, _OUT_PAD - _FC_OUT)))     # (128, 128)
    b_fc = jnp.pad(raw["fc"]["b"][None, :], ((0, 0), (0, _OUT_PAD - _FC_OUT)))
    packed += [w_fc, b_fc]
    return packed


def lstm_embedding_forward(x, packed_params, *, batch_tile=8):
    """x: (B, T) float32 -> (B, 64) float32."""
    B, T = x.shape
    tb = batch_tile
    b_pad = pl.cdiv(B, tb) * tb
    if b_pad != B:
        x = jnp.pad(x, ((0, b_pad - B), (0, 0)))
    # Time-major with a trailing Din=1 axis so the kernel reads one (TB, 1) slab per step.
    x_tm = jnp.transpose(x, (1, 0))[:, :, None]            # (T, B_pad, 1)

    in_specs = [pl.BlockSpec((T, tb, 1), lambda i: (0, i, 0))]
    in_specs += [pl.BlockSpec(p.shape, lambda i: (0, 0)) for p in packed_params]

    # Advisory cost estimate for XLA scheduling.
    flops = 2 * b_pad * _FC_IN * _OUT_PAD
    transcend = 0
    for d_in, h in _LAYER_DIMS:
        flops += 2 * b_pad * T * (d_in * 4 * h + h * 4 * h)
        transcend += b_pad * T * 5 * h
    param_bytes = sum(int(p.size) * 4 for p in packed_params)
    bytes_accessed = 4 * b_pad * T + 4 * b_pad * _OUT_PAD + param_bytes

    out = pl.pallas_call(
        lstm_embedding_kernel,
        out_shape=jax.ShapeDtypeStruct((b_pad, _OUT_PAD), jnp.float32),
        grid=(b_pad // tb,),
        in_specs=in_specs,
        out_specs=pl.BlockSpec((tb, _OUT_PAD), lambda i: (i, 0)),
        scratch_shapes=[pltpu.VMEM((T, tb, 128), jnp.float32),
                        pltpu.VMEM((T, tb, 128), jnp.float32),
                        pltpu.VMEM((T, tb, 256), jnp.float32),
                        pltpu.VMEM((T, tb, 256), jnp.float32)],
        compiler_params=pltpu.CompilerParams(dimension_semantics=("parallel",)),
        cost_estimate=pl.CostEstimate(flops=int(flops), transcendentals=int(transcend),
                                      bytes_accessed=int(bytes_accessed)),
    )(x_tm, *packed_params)
    return out[:B, :_FC_OUT]


if __name__ == "__main__":
    key = jax.random.PRNGKey(0)
    k_x, k_p = jax.random.split(key)

    B, T = 4, 16                      # small demo shapes (1-D sequences of length T)
    x = jax.random.normal(k_x, (B, T), jnp.float32)
    params = pack_params(init_raw_params(k_p))

    out = lstm_embedding_forward(x, params, batch_tile=8)
    out = jax.block_until_ready(out)
    assert out.shape == (B, _FC_OUT)
    assert bool(jnp.all(jnp.isfinite(out)))
    print("KERNEL_OK")
</pallas_src>

<mosaic_0001>
module attributes {stable_mosaic.version = 11 : i64} {
  func.func @lstm_embedding_kernel(%arg0: i32, %arg1: memref<16x8x1xf32, #tpu.memory_space<vmem>>, %arg2: memref<1x512xf32, #tpu.memory_space<vmem>>, %arg3: memref<128x512xf32, #tpu.memory_space<vmem>>, %arg4: memref<1x512xf32, #tpu.memory_space<vmem>>, %arg5: memref<128x512xf32, #tpu.memory_space<vmem>>, %arg6: memref<128x512xf32, #tpu.memory_space<vmem>>, %arg7: memref<1x512xf32, #tpu.memory_space<vmem>>, %arg8: memref<128x1024xf32, #tpu.memory_space<vmem>>, %arg9: memref<256x1024xf32, #tpu.memory_space<vmem>>, %arg10: memref<1x1024xf32, #tpu.memory_space<vmem>>, %arg11: memref<256x1024xf32, #tpu.memory_space<vmem>>, %arg12: memref<256x1024xf32, #tpu.memory_space<vmem>>, %arg13: memref<1x1024xf32, #tpu.memory_space<vmem>>, %arg14: memref<256x512xf32, #tpu.memory_space<vmem>>, %arg15: memref<128x512xf32, #tpu.memory_space<vmem>>, %arg16: memref<1x512xf32, #tpu.memory_space<vmem>>, %arg17: memref<128x512xf32, #tpu.memory_space<vmem>>, %arg18: memref<128x512xf32, #tpu.memory_space<vmem>>, %arg19: memref<1x512xf32, #tpu.memory_space<vmem>>, %arg20: memref<128x128xf32, #tpu.memory_space<vmem>>, %arg21: memref<1x128xf32, #tpu.memory_space<vmem>>, %arg22: memref<8x128xf32, #tpu.memory_space<vmem>>, %arg23: memref<16x8x128xf32, #tpu.memory_space<vmem>>, %arg24: memref<16x8x128xf32, #tpu.memory_space<vmem>>, %arg25: memref<16x8x256xf32, #tpu.memory_space<vmem>>, %arg26: memref<16x8x256xf32, #tpu.memory_space<vmem>>) attributes {dimension_semantics = [#tpu.dimension_semantics<parallel>], iteration_bounds = array<i64: 1>, scalar_prefetch = 0 : i64, scratch_operands = 4 : i64, tpu.core_type = #tpu.core_type<tc>, window_params = [{transform_indices = @transform_0, window_bounds = array<i64: 16, 8, 1>}, {pipeline_mode = #tpu.pipeline_mode<synchronous>, transform_indices = @transform_1, window_bounds = array<i64: 1, 512>}, {pipeline_mode = #tpu.pipeline_mode<synchronous>, transform_indices = @transform_2, window_bounds = array<i64: 128, 512>}, {pipeline_mode = #tpu.pipeline_mode<synchronous>, transform_indices = @transform_3, window_bounds = array<i64: 1, 512>}, {pipeline_mode = #tpu.pipeline_mode<synchronous>, transform_indices = @transform_4, window_bounds = array<i64: 128, 512>}, {pipeline_mode = #tpu.pipeline_mode<synchronous>, transform_indices = @transform_5, window_bounds = array<i64: 128, 512>}, {pipeline_mode = #tpu.pipeline_mode<synchronous>, transform_indices = @transform_6, window_bounds = array<i64: 1, 512>}, {pipeline_mode = #tpu.pipeline_mode<synchronous>, transform_indices = @transform_7, window_bounds = array<i64: 128, 1024>}, {pipeline_mode = #tpu.pipeline_mode<synchronous>, transform_indices = @transform_8, window_bounds = array<i64: 256, 1024>}, {pipeline_mode = #tpu.pipeline_mode<synchronous>, transform_indices = @transform_9, window_bounds = array<i64: 1, 1024>}, {pipeline_mode = #tpu.pipeline_mode<synchronous>, transform_indices = @transform_10, window_bounds = array<i64: 256, 1024>}, {pipeline_mode = #tpu.pipeline_mode<synchronous>, transform_indices = @transform_11, window_bounds = array<i64: 256, 1024>}, {pipeline_mode = #tpu.pipeline_mode<synchronous>, transform_indices = @transform_12, window_bounds = array<i64: 1, 1024>}, {pipeline_mode = #tpu.pipeline_mode<synchronous>, transform_indices = @transform_13, window_bounds = array<i64: 256, 512>}, {pipeline_mode = #tpu.pipeline_mode<synchronous>, transform_indices = @transform_14, window_bounds = array<i64: 128, 512>}, {pipeline_mode = #tpu.pipeline_mode<synchronous>, transform_indices = @transform_15, window_bounds = array<i64: 1, 512>}, {pipeline_mode = #tpu.pipeline_mode<synchronous>, transform_indices = @transform_16, window_bounds = array<i64: 128, 512>}, {pipeline_mode = #tpu.pipeline_mode<synchronous>, transform_indices = @transform_17, window_bounds = array<i64: 128, 512>}, {pipeline_mode = #tpu.pipeline_mode<synchronous>, transform_indices = @transform_18, window_bounds = array<i64: 1, 512>}, {pipeline_mode = #tpu.pipeline_mode<synchronous>, transform_indices = @transform_19, window_bounds = array<i64: 128, 128>}, {pipeline_mode = #tpu.pipeline_mode<synchronous>, transform_indices = @transform_20, window_bounds = array<i64: 1, 128>}, {transform_indices = @transform_21, window_bounds = array<i64: 8, 128>}]} {
    %c0 = arith.constant 0 : index
    %c0_0 = arith.constant 0 : index
    %0 = vector.load %arg2[%c0, %c0_0] : memref<1x512xf32, #tpu.memory_space<vmem>>, vector<1x512xf32>
    %c0_1 = arith.constant 0 : index
    %c0_2 = arith.constant 0 : index
    %1 = vector.load %arg3[%c0_1, %c0_2] : memref<128x512xf32, #tpu.memory_space<vmem>>, vector<128x512xf32>
    %c0_3 = arith.constant 0 : index
    %c0_4 = arith.constant 0 : index
    %2 = vector.load %arg4[%c0_3, %c0_4] : memref<1x512xf32, #tpu.memory_space<vmem>>, vector<1x512xf32>
    %cst = arith.constant 0.000000e+00 : f32
    %3 = vector.broadcast %cst : f32 to vector<8x128xf32>
    %cst_5 = arith.constant 0.000000e+00 : f32
    %4 = vector.broadcast %cst_5 : f32 to vector<8x128xf32>
    %c0_i32 = arith.constant 0 : i32
    %c16_i32 = arith.constant 16 : i32
    %5 = arith.addi %c0_i32, %c16_i32 : i32
    %c1_i32 = arith.constant 1 : i32
    %6:2 = scf.for %arg27 = %c0_i32 to %5 step %c1_i32 iter_args(%arg28 = %3, %arg29 = %4) -> (vector<8x128xf32>, vector<8x128xf32>)  : i32 {
      %48 = arith.index_cast %arg27 : i32 to index
      %c0_74 = arith.constant 0 : index
      %c0_75 = arith.constant 0 : index
      %49 = vector.load %arg1[%48, %c0_74, %c0_75] : memref<16x8x1xf32, #tpu.memory_space<vmem>>, vector<1x8x1xf32>
      %50 = vector.shape_cast %49 : vector<1x8x1xf32> to vector<8x1xf32>
      %51 = vector.broadcast %50 : vector<8x1xf32> to vector<8x512xf32>
      %52 = vector.broadcast %0 : vector<1x512xf32> to vector<8x512xf32>
      %53 = arith.mulf %51, %52 : vector<8x512xf32>
      %cst_76 = arith.constant dense<0.000000e+00> : vector<8x512xf32>
      %54 = tpu.matmul %arg28, %1, %cst_76 {dimension_numbers = #tpu.dot_dimension_numbers<[1], [0], [0], [1], [0, 0, 1, 1], [], []>} : vector<8x128xf32>, vector<128x512xf32>, vector<8x512xf32> -> vector<8x512xf32>
      %55 = arith.addf %53, %54 : vector<8x512xf32>
      %56 = vector.broadcast %2 : vector<1x512xf32> to vector<8x512xf32>
      %57 = arith.addf %55, %56 : vector<8x512xf32>
      %58 = vector.extract_strided_slice %57 {offsets = [0, 0], sizes = [8, 128], strides = [1, 1]} : vector<8x512xf32> to vector<8x128xf32>
      %cst_77 = arith.constant 0.000000e+00 : f32
      %59 = vector.broadcast %cst_77 : f32 to vector<8x128xf32>
      %60 = arith.subf %59, %58 : vector<8x128xf32>
      %61 = math.exp %60 : vector<8x128xf32>
      %cst_78 = arith.constant 1.000000e+00 : f32
      %62 = vector.broadcast %cst_78 : f32 to vector<8x128xf32>
      %63 = arith.addf %62, %61 : vector<8x128xf32>
      %cst_79 = arith.constant 1.000000e+00 : f32
      %64 = vector.broadcast %cst_79 : f32 to vector<8x128xf32>
      %65 = arith.divf %64, %63 : vector<8x128xf32>
      %66 = vector.extract_strided_slice %57 {offsets = [0, 128], sizes = [8, 128], strides = [1, 1]} : vector<8x512xf32> to vector<8x128xf32>
      %cst_80 = arith.constant 0.000000e+00 : f32
      %67 = vector.broadcast %cst_80 : f32 to vector<8x128xf32>
      %68 = arith.subf %67, %66 : vector<8x128xf32>
      %69 = math.exp %68 : vector<8x128xf32>
      %cst_81 = arith.constant 1.000000e+00 : f32
      %70 = vector.broadcast %cst_81 : f32 to vector<8x128xf32>
      %71 = arith.addf %70, %69 : vector<8x128xf32>
      %cst_82 = arith.constant 1.000000e+00 : f32
      %72 = vector.broadcast %cst_82 : f32 to vector<8x128xf32>
      %73 = arith.divf %72, %71 : vector<8x128xf32>
      %74 = vector.extract_strided_slice %57 {offsets = [0, 256], sizes = [8, 128], strides = [1, 1]} : vector<8x512xf32> to vector<8x128xf32>
      %75 = math.tanh %74 : vector<8x128xf32>
      %76 = vector.extract_strided_slice %57 {offsets = [0, 384], sizes = [8, 128], strides = [1, 1]} : vector<8x512xf32> to vector<8x128xf32>
      %cst_83 = arith.constant 0.000000e+00 : f32
      %77 = vector.broadcast %cst_83 : f32 to vector<8x128xf32>
      %78 = arith.subf %77, %76 : vector<8x128xf32>
      %79 = math.exp %78 : vector<8x128xf32>
      %cst_84 = arith.constant 1.000000e+00 : f32
      %80 = vector.broadcast %cst_84 : f32 to vector<8x128xf32>
      %81 = arith.addf %80, %79 : vector<8x128xf32>
      %cst_85 = arith.constant 1.000000e+00 : f32
      %82 = vector.broadcast %cst_85 : f32 to vector<8x128xf32>
      %83 = arith.divf %82, %81 : vector<8x128xf32>
      %84 = arith.mulf %73, %arg29 : vector<8x128xf32>
      %85 = arith.mulf %65, %75 : vector<8x128xf32>
      %86 = arith.addf %84, %85 : vector<8x128xf32>
      %87 = math.tanh %86 : vector<8x128xf32>
      %88 = arith.mulf %83, %87 : vector<8x128xf32>
      %89 = arith.index_cast %arg27 : i32 to index
      %c0_86 = arith.constant 0 : index
      %c0_87 = arith.constant 0 : index
      %90 = vector.load %arg23[%89, %c0_86, %c0_87] : memref<16x8x128xf32, #tpu.memory_space<vmem>>, vector<1x8x128xf32>
      %91 = vector.shape_cast %90 : vector<1x8x128xf32> to vector<8x128xf32>
      %92 = vector.shape_cast %88 : vector<8x128xf32> to vector<1x8x128xf32>
      tpu.vector_store %arg23[%89, %c0_86, %c0_87], %92 {strides = array<i32>} : memref<16x8x128xf32, #tpu.memory_space<vmem>>, vector<1x8x128xf32>,
      scf.yield %88, %86 : vector<8x128xf32>, vector<8x128xf32>
    }
    %c16_i32_6 = arith.constant 16 : i32
    %c0_7 = arith.constant 0 : index
    %c0_8 = arith.constant 0 : index
    %7 = vector.load %arg5[%c0_7, %c0_8] : memref<128x512xf32, #tpu.memory_space<vmem>>, vector<128x512xf32>
    %c0_9 = arith.constant 0 : index
    %c0_10 = arith.constant 0 : index
    %8 = vector.load %arg6[%c0_9, %c0_10] : memref<128x512xf32, #tpu.memory_space<vmem>>, vector<128x512xf32>
    %c0_11 = arith.constant 0 : index
    %c0_12 = arith.constant 0 : index
    %9 = vector.load %arg7[%c0_11, %c0_12] : memref<1x512xf32, #tpu.memory_space<vmem>>, vector<1x512xf32>
    %cst_13 = arith.constant 0.000000e+00 : f32
    %10 = vector.broadcast %cst_13 : f32 to vector<8x128xf32>
    %cst_14 = arith.constant 0.000000e+00 : f32
    %11 = vector.broadcast %cst_14 : f32 to vector<8x128xf32>
    %c0_i32_15 = arith.constant 0 : i32
    %c16_i32_16 = arith.constant 16 : i32
    %12 = arith.addi %c0_i32_15, %c16_i32_16 : i32
    %c1_i32_17 = arith.constant 1 : i32
    %13:2 = scf.for %arg27 = %c0_i32_15 to %12 step %c1_i32_17 iter_args(%arg28 = %10, %arg29 = %11) -> (vector<8x128xf32>, vector<8x128xf32>)  : i32 {
      %48 = arith.index_cast %arg27 : i32 to index
      %c0_74 = arith.constant 0 : index
      %c0_75 = arith.constant 0 : index
      %49 = vector.load %arg23[%48, %c0_74, %c0_75] : memref<16x8x128xf32, #tpu.memory_space<vmem>>, vector<1x8x128xf32>
      %50 = vector.shape_cast %49 : vector<1x8x128xf32> to vector<8x128xf32>
      %cst_76 = arith.constant dense<0.000000e+00> : vector<8x512xf32>
      %51 = tpu.matmul %50, %7, %cst_76 {dimension_numbers = #tpu.dot_dimension_numbers<[1], [0], [0], [1], [0, 0, 1, 1], [], []>} : vector<8x128xf32>, vector<128x512xf32>, vector<8x512xf32> -> vector<8x512xf32>
      %cst_77 = arith.constant dense<0.000000e+00> : vector<8x512xf32>
      %52 = tpu.matmul %arg28, %8, %cst_77 {dimension_numbers = #tpu.dot_dimension_numbers<[1], [0], [0], [1], [0, 0, 1, 1], [], []>} : vector<8x128xf32>, vector<128x512xf32>, vector<8x512xf32> -> vector<8x512xf32>
      %53 = arith.addf %51, %52 : vector<8x512xf32>
      %54 = vector.broadcast %9 : vector<1x512xf32> to vector<8x512xf32>
      %55 = arith.addf %53, %54 : vector<8x512xf32>
      %56 = vector.extract_strided_slice %55 {offsets = [0, 0], sizes = [8, 128], strides = [1, 1]} : vector<8x512xf32> to vector<8x128xf32>
      %cst_78 = arith.constant 0.000000e+00 : f32
      %57 = vector.broadcast %cst_78 : f32 to vector<8x128xf32>
      %58 = arith.subf %57, %56 : vector<8x128xf32>
      %59 = math.exp %58 : vector<8x128xf32>
      %cst_79 = arith.constant 1.000000e+00 : f32
      %60 = vector.broadcast %cst_79 : f32 to vector<8x128xf32>
      %61 = arith.addf %60, %59 : vector<8x128xf32>
      %cst_80 = arith.constant 1.000000e+00 : f32
      %62 = vector.broadcast %cst_80 : f32 to vector<8x128xf32>
      %63 = arith.divf %62, %61 : vector<8x128xf32>
      %64 = vector.extract_strided_slice %55 {offsets = [0, 128], sizes = [8, 128], strides = [1, 1]} : vector<8x512xf32> to vector<8x128xf32>
      %cst_81 = arith.constant 0.000000e+00 : f32
      %65 = vector.broadcast %cst_81 : f32 to vector<8x128xf32>
      %66 = arith.subf %65, %64 : vector<8x128xf32>
      %67 = math.exp %66 : vector<8x128xf32>
      %cst_82 = arith.constant 1.000000e+00 : f32
      %68 = vector.broadcast %cst_82 : f32 to vector<8x128xf32>
      %69 = arith.addf %68, %67 : vector<8x128xf32>
      %cst_83 = arith.constant 1.000000e+00 : f32
      %70 = vector.broadcast %cst_83 : f32 to vector<8x128xf32>
      %71 = arith.divf %70, %69 : vector<8x128xf32>
      %72 = vector.extract_strided_slice %55 {offsets = [0, 256], sizes = [8, 128], strides = [1, 1]} : vector<8x512xf32> to vector<8x128xf32>
      %73 = math.tanh %72 : vector<8x128xf32>
      %74 = vector.extract_strided_slice %55 {offsets = [0, 384], sizes = [8, 128], strides = [1, 1]} : vector<8x512xf32> to vector<8x128xf32>
      %cst_84 = arith.constant 0.000000e+00 : f32
      %75 = vector.broadcast %cst_84 : f32 to vector<8x128xf32>
      %76 = arith.subf %75, %74 : vector<8x128xf32>
      %77 = math.exp %76 : vector<8x128xf32>
      %cst_85 = arith.constant 1.000000e+00 : f32
      %78 = vector.broadcast %cst_85 : f32 to vector<8x128xf32>
      %79 = arith.addf %78, %77 : vector<8x128xf32>
      %cst_86 = arith.constant 1.000000e+00 : f32
      %80 = vector.broadcast %cst_86 : f32 to vector<8x128xf32>
      %81 = arith.divf %80, %79 : vector<8x128xf32>
      %82 = arith.mulf %71, %arg29 : vector<8x128xf32>
      %83 = arith.mulf %63, %73 : vector<8x128xf32>
      %84 = arith.addf %82, %83 : vector<8x128xf32>
      %85 = math.tanh %84 : vector<8x128xf32>
      %86 = arith.mulf %81, %85 : vector<8x128xf32>
      %87 = arith.index_cast %arg27 : i32 to index
      %c0_87 = arith.constant 0 : index
      %c0_88 = arith.constant 0 : index
      %88 = vector.load %arg24[%87, %c0_87, %c0_88] : memref<16x8x128xf32, #tpu.memory_space<vmem>>, vector<1x8x128xf32>
      %89 = vector.shape_cast %88 : vector<1x8x128xf32> to vector<8x128xf32>
      %90 = vector.shape_cast %86 : vector<8x128xf32> to vector<1x8x128xf32>
      tpu.vector_store %arg24[%87, %c0_87, %c0_88], %90 {strides = array<i32>} : memref<16x8x128xf32, #tpu.memory_space<vmem>>, vector<1x8x128xf32>,
      scf.yield %86, %84 : vector<8x128xf32>, vector<8x128xf32>
    }
    %c16_i32_18 = arith.constant 16 : i32
    %c0_19 = arith.constant 0 : index
    %c0_20 = arith.constant 0 : index
    %14 = vector.load %arg8[%c0_19, %c0_20] : memref<128x1024xf32, #tpu.memory_space<vmem>>, vector<128x1024xf32>
    %c0_21 = arith.constant 0 : index
    %c0_22 = arith.constant 0 : index
    %15 = vector.load %arg9[%c0_21, %c0_22] : memref<256x1024xf32, #tpu.memory_space<vmem>>, vector<256x1024xf32>
    %c0_23 = arith.constant 0 : index
    %c0_24 = arith.constant 0 : index
    %16 = vector.load %arg10[%c0_23, %c0_24] : memref<1x1024xf32, #tpu.memory_space<vmem>>, vector<1x1024xf32>
    %cst_25 = arith.constant 0.000000e+00 : f32
    %17 = vector.broadcast %cst_25 : f32 to vector<8x256xf32>
    %cst_26 = arith.constant 0.000000e+00 : f32
    %18 = vector.broadcast %cst_26 : f32 to vector<8x256xf32>
    %c0_i32_27 = arith.constant 0 : i32
    %c16_i32_28 = arith.constant 16 : i32
    %19 = arith.addi %c0_i32_27, %c16_i32_28 : i32
    %c1_i32_29 = arith.constant 1 : i32
    %20:2 = scf.for %arg27 = %c0_i32_27 to %19 step %c1_i32_29 iter_args(%arg28 = %17, %arg29 = %18) -> (vector<8x256xf32>, vector<8x256xf32>)  : i32 {
      %48 = arith.index_cast %arg27 : i32 to index
      %c0_74 = arith.constant 0 : index
      %c0_75 = arith.constant 0 : index
      %49 = vector.load %arg24[%48, %c0_74, %c0_75] : memref<16x8x128xf32, #tpu.memory_space<vmem>>, vector<1x8x128xf32>
      %50 = vector.shape_cast %49 : vector<1x8x128xf32> to vector<8x128xf32>
      %cst_76 = arith.constant dense<0.000000e+00> : vector<8x1024xf32>
      %51 = tpu.matmul %50, %14, %cst_76 {dimension_numbers = #tpu.dot_dimension_numbers<[1], [0], [0], [1], [0, 0, 1, 1], [], []>} : vector<8x128xf32>, vector<128x1024xf32>, vector<8x1024xf32> -> vector<8x1024xf32>
      %cst_77 = arith.constant dense<0.000000e+00> : vector<8x1024xf32>
      %52 = tpu.matmul %arg28, %15, %cst_77 {dimension_numbers = #tpu.dot_dimension_numbers<[1], [0], [0], [1], [0, 0, 1, 1], [], []>} : vector<8x256xf32>, vector<256x1024xf32>, vector<8x1024xf32> -> vector<8x1024xf32>
      %53 = arith.addf %51, %52 : vector<8x1024xf32>
      %54 = vector.broadcast %16 : vector<1x1024xf32> to vector<8x1024xf32>
      %55 = arith.addf %53, %54 : vector<8x1024xf32>
      %56 = vector.extract_strided_slice %55 {offsets = [0, 0], sizes = [8, 256], strides = [1, 1]} : vector<8x1024xf32> to vector<8x256xf32>
      %cst_78 = arith.constant 0.000000e+00 : f32
      %57 = vector.broadcast %cst_78 : f32 to vector<8x256xf32>
      %58 = arith.subf %57, %56 : vector<8x256xf32>
      %59 = math.exp %58 : vector<8x256xf32>
      %cst_79 = arith.constant 1.000000e+00 : f32
      %60 = vector.broadcast %cst_79 : f32 to vector<8x256xf32>
      %61 = arith.addf %60, %59 : vector<8x256xf32>
      %cst_80 = arith.constant 1.000000e+00 : f32
      %62 = vector.broadcast %cst_80 : f32 to vector<8x256xf32>
      %63 = arith.divf %62, %61 : vector<8x256xf32>
      %64 = vector.extract_strided_slice %55 {offsets = [0, 256], sizes = [8, 256], strides = [1, 1]} : vector<8x1024xf32> to vector<8x256xf32>
      %cst_81 = arith.constant 0.000000e+00 : f32
      %65 = vector.broadcast %cst_81 : f32 to vector<8x256xf32>
      %66 = arith.subf %65, %64 : vector<8x256xf32>
      %67 = math.exp %66 : vector<8x256xf32>
      %cst_82 = arith.constant 1.000000e+00 : f32
      %68 = vector.broadcast %cst_82 : f32 to vector<8x256xf32>
      %69 = arith.addf %68, %67 : vector<8x256xf32>
      %cst_83 = arith.constant 1.000000e+00 : f32
      %70 = vector.broadcast %cst_83 : f32 to vector<8x256xf32>
      %71 = arith.divf %70, %69 : vector<8x256xf32>
      %72 = vector.extract_strided_slice %55 {offsets = [0, 512], sizes = [8, 256], strides = [1, 1]} : vector<8x1024xf32> to vector<8x256xf32>
      %73 = math.tanh %72 : vector<8x256xf32>
      %74 = vector.extract_strided_slice %55 {offsets = [0, 768], sizes = [8, 256], strides = [1, 1]} : vector<8x1024xf32> to vector<8x256xf32>
      %cst_84 = arith.constant 0.000000e+00 : f32
      %75 = vector.broadcast %cst_84 : f32 to vector<8x256xf32>
      %76 = arith.subf %75, %74 : vector<8x256xf32>
      %77 = math.exp %76 : vector<8x256xf32>
      %cst_85 = arith.constant 1.000000e+00 : f32
      %78 = vector.broadcast %cst_85 : f32 to vector<8x256xf32>
      %79 = arith.addf %78, %77 : vector<8x256xf32>
      %cst_86 = arith.constant 1.000000e+00 : f32
      %80 = vector.broadcast %cst_86 : f32 to vector<8x256xf32>
      %81 = arith.divf %80, %79 : vector<8x256xf32>
      %82 = arith.mulf %71, %arg29 : vector<8x256xf32>
      %83 = arith.mulf %63, %73 : vector<8x256xf32>
      %84 = arith.addf %82, %83 : vector<8x256xf32>
      %85 = math.tanh %84 : vector<8x256xf32>
      %86 = arith.mulf %81, %85 : vector<8x256xf32>
      %87 = arith.index_cast %arg27 : i32 to index
      %c0_87 = arith.constant 0 : index
      %c0_88 = arith.constant 0 : index
      %88 = vector.load %arg25[%87, %c0_87, %c0_88] : memref<16x8x256xf32, #tpu.memory_space<vmem>>, vector<1x8x256xf32>
      %89 = vector.shape_cast %88 : vector<1x8x256xf32> to vector<8x256xf32>
      %90 = vector.shape_cast %86 : vector<8x256xf32> to vector<1x8x256xf32>
      tpu.vector_store %arg25[%87, %c0_87, %c0_88], %90 {strides = array<i32>} : memref<16x8x256xf32, #tpu.memory_space<vmem>>, vector<1x8x256xf32>,
      scf.yield %86, %84 : vector<8x256xf32>, vector<8x256xf32>
    }
    %c16_i32_30 = arith.constant 16 : i32
    %c0_31 = arith.constant 0 : index
    %c0_32 = arith.constant 0 : index
    %21 = vector.load %arg11[%c0_31, %c0_32] : memref<256x1024xf32, #tpu.memory_space<vmem>>, vector<256x1024xf32>
    %c0_33 = arith.constant 0 : index
    %c0_34 = arith.constant 0 : index
    %22 = vector.load %arg12[%c0_33, %c0_34] : memref<256x1024xf32, #tpu.memory_space<vmem>>, vector<256x1024xf32>
    %c0_35 = arith.constant 0 : index
    %c0_36 = arith.constant 0 : index
    %23 = vector.load %arg13[%c0_35, %c0_36] : memref<1x1024xf32, #tpu.memory_space<vmem>>, vector<1x1024xf32>
    %cst_37 = arith.constant 0.000000e+00 : f32
    %24 = vector.broadcast %cst_37 : f32 to vector<8x256xf32>
    %cst_38 = arith.constant 0.000000e+00 : f32
    %25 = vector.broadcast %cst_38 : f32 to vector<8x256xf32>
    %c0_i32_39 = arith.constant 0 : i32
    %c16_i32_40 = arith.constant 16 : i32
    %26 = arith.addi %c0_i32_39, %c16_i32_40 : i32
    %c1_i32_41 = arith.constant 1 : i32
    %27:2 = scf.for %arg27 = %c0_i32_39 to %26 step %c1_i32_41 iter_args(%arg28 = %24, %arg29 = %25) -> (vector<8x256xf32>, vector<8x256xf32>)  : i32 {
      %48 = arith.index_cast %arg27 : i32 to index
      %c0_74 = arith.constant 0 : index
      %c0_75 = arith.constant 0 : index
      %49 = vector.load %arg25[%48, %c0_74, %c0_75] : memref<16x8x256xf32, #tpu.memory_space<vmem>>, vector<1x8x256xf32>
      %50 = vector.shape_cast %49 : vector<1x8x256xf32> to vector<8x256xf32>
      %cst_76 = arith.constant dense<0.000000e+00> : vector<8x1024xf32>
      %51 = tpu.matmul %50, %21, %cst_76 {dimension_numbers = #tpu.dot_dimension_numbers<[1], [0], [0], [1], [0, 0, 1, 1], [], []>} : vector<8x256xf32>, vector<256x1024xf32>, vector<8x1024xf32> -> vector<8x1024xf32>
      %cst_77 = arith.constant dense<0.000000e+00> : vector<8x1024xf32>
      %52 = tpu.matmul %arg28, %22, %cst_77 {dimension_numbers = #tpu.dot_dimension_numbers<[1], [0], [0], [1], [0, 0, 1, 1], [], []>} : vector<8x256xf32>, vector<256x1024xf32>, vector<8x1024xf32> -> vector<8x1024xf32>
      %53 = arith.addf %51, %52 : vector<8x1024xf32>
      %54 = vector.broadcast %23 : vector<1x1024xf32> to vector<8x1024xf32>
      %55 = arith.addf %53, %54 : vector<8x1024xf32>
      %56 = vector.extract_strided_slice %55 {offsets = [0, 0], sizes = [8, 256], strides = [1, 1]} : vector<8x1024xf32> to vector<8x256xf32>
      %cst_78 = arith.constant 0.000000e+00 : f32
      %57 = vector.broadcast %cst_78 : f32 to vector<8x256xf32>
      %58 = arith.subf %57, %56 : vector<8x256xf32>
      %59 = math.exp %58 : vector<8x256xf32>
      %cst_79 = arith.constant 1.000000e+00 : f32
      %60 = vector.broadcast %cst_79 : f32 to vector<8x256xf32>
      %61 = arith.addf %60, %59 : vector<8x256xf32>
      %cst_80 = arith.constant 1.000000e+00 : f32
      %62 = vector.broadcast %cst_80 : f32 to vector<8x256xf32>
      %63 = arith.divf %62, %61 : vector<8x256xf32>
      %64 = vector.extract_strided_slice %55 {offsets = [0, 256], sizes = [8, 256], strides = [1, 1]} : vector<8x1024xf32> to vector<8x256xf32>
      %cst_81 = arith.constant 0.000000e+00 : f32
      %65 = vector.broadcast %cst_81 : f32 to vector<8x256xf32>
      %66 = arith.subf %65, %64 : vector<8x256xf32>
      %67 = math.exp %66 : vector<8x256xf32>
      %cst_82 = arith.constant 1.000000e+00 : f32
      %68 = vector.broadcast %cst_82 : f32 to vector<8x256xf32>
      %69 = arith.addf %68, %67 : vector<8x256xf32>
      %cst_83 = arith.constant 1.000000e+00 : f32
      %70 = vector.broadcast %cst_83 : f32 to vector<8x256xf32>
      %71 = arith.divf %70, %69 : vector<8x256xf32>
      %72 = vector.extract_strided_slice %55 {offsets = [0, 512], sizes = [8, 256], strides = [1, 1]} : vector<8x1024xf32> to vector<8x256xf32>
      %73 = math.tanh %72 : vector<8x256xf32>
      %74 = vector.extract_strided_slice %55 {offsets = [0, 768], sizes = [8, 256], strides = [1, 1]} : vector<8x1024xf32> to vector<8x256xf32>
      %cst_84 = arith.constant 0.000000e+00 : f32
      %75 = vector.broadcast %cst_84 : f32 to vector<8x256xf32>
      %76 = arith.subf %75, %74 : vector<8x256xf32>
      %77 = math.exp %76 : vector<8x256xf32>
      %cst_85 = arith.constant 1.000000e+00 : f32
      %78 = vector.broadcast %cst_85 : f32 to vector<8x256xf32>
      %79 = arith.addf %78, %77 : vector<8x256xf32>
      %cst_86 = arith.constant 1.000000e+00 : f32
      %80 = vector.broadcast %cst_86 : f32 to vector<8x256xf32>
      %81 = arith.divf %80, %79 : vector<8x256xf32>
      %82 = arith.mulf %71, %arg29 : vector<8x256xf32>
      %83 = arith.mulf %63, %73 : vector<8x256xf32>
      %84 = arith.addf %82, %83 : vector<8x256xf32>
      %85 = math.tanh %84 : vector<8x256xf32>
      %86 = arith.mulf %81, %85 : vector<8x256xf32>
      %87 = arith.index_cast %arg27 : i32 to index
      %c0_87 = arith.constant 0 : index
      %c0_88 = arith.constant 0 : index
      %88 = vector.load %arg26[%87, %c0_87, %c0_88] : memref<16x8x256xf32, #tpu.memory_space<vmem>>, vector<1x8x256xf32>
      %89 = vector.shape_cast %88 : vector<1x8x256xf32> to vector<8x256xf32>
      %90 = vector.shape_cast %86 : vector<8x256xf32> to vector<1x8x256xf32>
      tpu.vector_store %arg26[%87, %c0_87, %c0_88], %90 {strides = array<i32>} : memref<16x8x256xf32, #tpu.memory_space<vmem>>, vector<1x8x256xf32>,
      scf.yield %86, %84 : vector<8x256xf32>, vector<8x256xf32>
    }
    %c16_i32_42 = arith.constant 16 : i32
    %c0_43 = arith.constant 0 : index
    %c0_44 = arith.constant 0 : index
    %28 = vector.load %arg14[%c0_43, %c0_44] : memref<256x512xf32, #tpu.memory_space<vmem>>, vector<256x512xf32>
    %c0_45 = arith.constant 0 : index
    %c0_46 = arith.constant 0 : index
    %29 = vector.load %arg15[%c0_45, %c0_46] : memref<128x512xf32, #tpu.memory_space<vmem>>, vector<128x512xf32>
    %c0_47 = arith.constant 0 : index
    %c0_48 = arith.constant 0 : index
    %30 = vector.load %arg16[%c0_47, %c0_48] : memref<1x512xf32, #tpu.memory_space<vmem>>, vector<1x512xf32>
    %cst_49 = arith.constant 0.000000e+00 : f32
    %31 = vector.broadcast %cst_49 : f32 to vector<8x128xf32>
    %cst_50 = arith.constant 0.000000e+00 : f32
    %32 = vector.broadcast %cst_50 : f32 to vector<8x128xf32>
    %c0_i32_51 = arith.constant 0 : i32
    %c16_i32_52 = arith.constant 16 : i32
    %33 = arith.addi %c0_i32_51, %c16_i32_52 : i32
    %c1_i32_53 = arith.constant 1 : i32
    %34:2 = scf.for %arg27 = %c0_i32_51 to %33 step %c1_i32_53 iter_args(%arg28 = %31, %arg29 = %32) -> (vector<8x128xf32>, vector<8x128xf32>)  : i32 {
      %48 = arith.index_cast %arg27 : i32 to index
      %c0_74 = arith.constant 0 : index
      %c0_75 = arith.constant 0 : index
      %49 = vector.load %arg26[%48, %c0_74, %c0_75] : memref<16x8x256xf32, #tpu.memory_space<vmem>>, vector<1x8x256xf32>
      %50 = vector.shape_cast %49 : vector<1x8x256xf32> to vector<8x256xf32>
      %cst_76 = arith.constant dense<0.000000e+00> : vector<8x512xf32>
      %51 = tpu.matmul %50, %28, %cst_76 {dimension_numbers = #tpu.dot_dimension_numbers<[1], [0], [0], [1], [0, 0, 1, 1], [], []>} : vector<8x256xf32>, vector<256x512xf32>, vector<8x512xf32> -> vector<8x512xf32>
      %cst_77 = arith.constant dense<0.000000e+00> : vector<8x512xf32>
      %52 = tpu.matmul %arg28, %29, %cst_77 {dimension_numbers = #tpu.dot_dimension_numbers<[1], [0], [0], [1], [0, 0, 1, 1], [], []>} : vector<8x128xf32>, vector<128x512xf32>, vector<8x512xf32> -> vector<8x512xf32>
      %53 = arith.addf %51, %52 : vector<8x512xf32>
      %54 = vector.broadcast %30 : vector<1x512xf32> to vector<8x512xf32>
      %55 = arith.addf %53, %54 : vector<8x512xf32>
      %56 = vector.extract_strided_slice %55 {offsets = [0, 0], sizes = [8, 128], strides = [1, 1]} : vector<8x512xf32> to vector<8x128xf32>
      %cst_78 = arith.constant 0.000000e+00 : f32
      %57 = vector.broadcast %cst_78 : f32 to vector<8x128xf32>
      %58 = arith.subf %57, %56 : vector<8x128xf32>
      %59 = math.exp %58 : vector<8x128xf32>
      %cst_79 = arith.constant 1.000000e+00 : f32
      %60 = vector.broadcast %cst_79 : f32 to vector<8x128xf32>
      %61 = arith.addf %60, %59 : vector<8x128xf32>
      %cst_80 = arith.constant 1.000000e+00 : f32
      %62 = vector.broadcast %cst_80 : f32 to vector<8x128xf32>
      %63 = arith.divf %62, %61 : vector<8x128xf32>
      %64 = vector.extract_strided_slice %55 {offsets = [0, 128], sizes = [8, 128], strides = [1, 1]} : vector<8x512xf32> to vector<8x128xf32>
      %cst_81 = arith.constant 0.000000e+00 : f32
      %65 = vector.broadcast %cst_81 : f32 to vector<8x128xf32>
      %66 = arith.subf %65, %64 : vector<8x128xf32>
      %67 = math.exp %66 : vector<8x128xf32>
      %cst_82 = arith.constant 1.000000e+00 : f32
      %68 = vector.broadcast %cst_82 : f32 to vector<8x128xf32>
      %69 = arith.addf %68, %67 : vector<8x128xf32>
      %cst_83 = arith.constant 1.000000e+00 : f32
      %70 = vector.broadcast %cst_83 : f32 to vector<8x128xf32>
      %71 = arith.divf %70, %69 : vector<8x128xf32>
      %72 = vector.extract_strided_slice %55 {offsets = [0, 256], sizes = [8, 128], strides = [1, 1]} : vector<8x512xf32> to vector<8x128xf32>
      %73 = math.tanh %72 : vector<8x128xf32>
      %74 = vector.extract_strided_slice %55 {offsets = [0, 384], sizes = [8, 128], strides = [1, 1]} : vector<8x512xf32> to vector<8x128xf32>
      %cst_84 = arith.constant 0.000000e+00 : f32
      %75 = vector.broadcast %cst_84 : f32 to vector<8x128xf32>
      %76 = arith.subf %75, %74 : vector<8x128xf32>
      %77 = math.exp %76 : vector<8x128xf32>
      %cst_85 = arith.constant 1.000000e+00 : f32
      %78 = vector.broadcast %cst_85 : f32 to vector<8x128xf32>
      %79 = arith.addf %78, %77 : vector<8x128xf32>
      %cst_86 = arith.constant 1.000000e+00 : f32
      %80 = vector.broadcast %cst_86 : f32 to vector<8x128xf32>
      %81 = arith.divf %80, %79 : vector<8x128xf32>
      %82 = arith.mulf %71, %arg29 : vector<8x128xf32>
      %83 = arith.mulf %63, %73 : vector<8x128xf32>
      %84 = arith.addf %82, %83 : vector<8x128xf32>
      %85 = math.tanh %84 : vector<8x128xf32>
      %86 = arith.mulf %81, %85 : vector<8x128xf32>
      %87 = arith.index_cast %arg27 : i32 to index
      %c0_87 = arith.constant 0 : index
      %c0_88 = arith.constant 0 : index
      %88 = vector.load %arg23[%87, %c0_87, %c0_88] : memref<16x8x128xf32, #tpu.memory_space<vmem>>, vector<1x8x128xf32>
      %89 = vector.shape_cast %88 : vector<1x8x128xf32> to vector<8x128xf32>
      %90 = vector.shape_cast %86 : vector<8x128xf32> to vector<1x8x128xf32>
      tpu.vector_store %arg23[%87, %c0_87, %c0_88], %90 {strides = array<i32>} : memref<16x8x128xf32, #tpu.memory_space<vmem>>, vector<1x8x128xf32>,
      scf.yield %86, %84 : vector<8x128xf32>, vector<8x128xf32>
    }
    %c16_i32_54 = arith.constant 16 : i32
    %c0_55 = arith.constant 0 : index
    %c0_56 = arith.constant 0 : index
    %35 = vector.load %arg17[%c0_55, %c0_56] : memref<128x512xf32, #tpu.memory_space<vmem>>, vector<128x512xf32>
    %c0_57 = arith.constant 0 : index
    %c0_58 = arith.constant 0 : index
    %36 = vector.load %arg18[%c0_57, %c0_58] : memref<128x512xf32, #tpu.memory_space<vmem>>, vector<128x512xf32>
    %c0_59 = arith.constant 0 : index
    %c0_60 = arith.constant 0 : index
    %37 = vector.load %arg19[%c0_59, %c0_60] : memref<1x512xf32, #tpu.memory_space<vmem>>, vector<1x512xf32>
    %cst_61 = arith.constant 0.000000e+00 : f32
    %38 = vector.broadcast %cst_61 : f32 to vector<8x128xf32>
    %cst_62 = arith.constant 0.000000e+00 : f32
    %39 = vector.broadcast %cst_62 : f32 to vector<8x128xf32>
    %c0_i32_63 = arith.constant 0 : i32
    %c16_i32_64 = arith.constant 16 : i32
    %40 = arith.addi %c0_i32_63, %c16_i32_64 : i32
    %c1_i32_65 = arith.constant 1 : i32
    %41:2 = scf.for %arg27 = %c0_i32_63 to %40 step %c1_i32_65 iter_args(%arg28 = %38, %arg29 = %39) -> (vector<8x128xf32>, vector<8x128xf32>)  : i32 {
      %48 = arith.index_cast %arg27 : i32 to index
      %c0_74 = arith.constant 0 : index
      %c0_75 = arith.constant 0 : index
      %49 = vector.load %arg23[%48, %c0_74, %c0_75] : memref<16x8x128xf32, #tpu.memory_space<vmem>>, vector<1x8x128xf32>
      %50 = vector.shape_cast %49 : vector<1x8x128xf32> to vector<8x128xf32>
      %cst_76 = arith.constant dense<0.000000e+00> : vector<8x512xf32>
      %51 = tpu.matmul %50, %35, %cst_76 {dimension_numbers = #tpu.dot_dimension_numbers<[1], [0], [0], [1], [0, 0, 1, 1], [], []>} : vector<8x128xf32>, vector<128x512xf32>, vector<8x512xf32> -> vector<8x512xf32>
      %cst_77 = arith.constant dense<0.000000e+00> : vector<8x512xf32>
      %52 = tpu.matmul %arg28, %36, %cst_77 {dimension_numbers = #tpu.dot_dimension_numbers<[1], [0], [0], [1], [0, 0, 1, 1], [], []>} : vector<8x128xf32>, vector<128x512xf32>, vector<8x512xf32> -> vector<8x512xf32>
      %53 = arith.addf %51, %52 : vector<8x512xf32>
      %54 = vector.broadcast %37 : vector<1x512xf32> to vector<8x512xf32>
      %55 = arith.addf %53, %54 : vector<8x512xf32>
      %56 = vector.extract_strided_slice %55 {offsets = [0, 0], sizes = [8, 128], strides = [1, 1]} : vector<8x512xf32> to vector<8x128xf32>
      %cst_78 = arith.constant 0.000000e+00 : f32
      %57 = vector.broadcast %cst_78 : f32 to vector<8x128xf32>
      %58 = arith.subf %57, %56 : vector<8x128xf32>
      %59 = math.exp %58 : vector<8x128xf32>
      %cst_79 = arith.constant 1.000000e+00 : f32
      %60 = vector.broadcast %cst_79 : f32 to vector<8x128xf32>
      %61 = arith.addf %60, %59 : vector<8x128xf32>
      %cst_80 = arith.constant 1.000000e+00 : f32
      %62 = vector.broadcast %cst_80 : f32 to vector<8x128xf32>
      %63 = arith.divf %62, %61 : vector<8x128xf32>
      %64 = vector.extract_strided_slice %55 {offsets = [0, 128], sizes = [8, 128], strides = [1, 1]} : vector<8x512xf32> to vector<8x128xf32>
      %cst_81 = arith.constant 0.000000e+00 : f32
      %65 = vector.broadcast %cst_81 : f32 to vector<8x128xf32>
      %66 = arith.subf %65, %64 : vector<8x128xf32>
      %67 = math.exp %66 : vector<8x128xf32>
      %cst_82 = arith.constant 1.000000e+00 : f32
      %68 = vector.broadcast %cst_82 : f32 to vector<8x128xf32>
      %69 = arith.addf %68, %67 : vector<8x128xf32>
      %cst_83 = arith.constant 1.000000e+00 : f32
      %70 = vector.broadcast %cst_83 : f32 to vector<8x128xf32>
      %71 = arith.divf %70, %69 : vector<8x128xf32>
      %72 = vector.extract_strided_slice %55 {offsets = [0, 256], sizes = [8, 128], strides = [1, 1]} : vector<8x512xf32> to vector<8x128xf32>
      %73 = math.tanh %72 : vector<8x128xf32>
      %74 = vector.extract_strided_slice %55 {offsets = [0, 384], sizes = [8, 128], strides = [1, 1]} : vector<8x512xf32> to vector<8x128xf32>
      %cst_84 = arith.constant 0.000000e+00 : f32
      %75 = vector.broadcast %cst_84 : f32 to vector<8x128xf32>
      %76 = arith.subf %75, %74 : vector<8x128xf32>
      %77 = math.exp %76 : vector<8x128xf32>
      %cst_85 = arith.constant 1.000000e+00 : f32
      %78 = vector.broadcast %cst_85 : f32 to vector<8x128xf32>
      %79 = arith.addf %78, %77 : vector<8x128xf32>
      %cst_86 = arith.constant 1.000000e+00 : f32
      %80 = vector.broadcast %cst_86 : f32 to vector<8x128xf32>
      %81 = arith.divf %80, %79 : vector<8x128xf32>
      %82 = arith.mulf %71, %arg29 : vector<8x128xf32>
      %83 = arith.mulf %63, %73 : vector<8x128xf32>
      %84 = arith.addf %82, %83 : vector<8x128xf32>
      %85 = math.tanh %84 : vector<8x128xf32>
      %86 = arith.mulf %81, %85 : vector<8x128xf32>
      scf.yield %86, %84 : vector<8x128xf32>, vector<8x128xf32>
    }
    %c16_i32_66 = arith.constant 16 : i32
    %c0_67 = arith.constant 0 : index
    %c0_68 = arith.constant 0 : index
    %42 = vector.load %arg20[%c0_67, %c0_68] : memref<128x128xf32, #tpu.memory_space<vmem>>, vector<128x128xf32>
    %cst_69 = arith.constant dense<0.000000e+00> : vector<8x128xf32>
    %43 = tpu.matmul %41#0, %42, %cst_69 {dimension_numbers = #tpu.dot_dimension_numbers<[1], [0], [0], [1], [0, 0, 1, 1], [], []>} : vector<8x128xf32>, vector<128x128xf32>, vector<8x128xf32> -> vector<8x128xf32>
    %c0_70 = arith.constant 0 : index
    %c0_71 = arith.constant 0 : index
    %44 = vector.load %arg21[%c0_70, %c0_71] : memref<1x128xf32, #tpu.memory_space<vmem>>, vector<1x128xf32>
    %45 = vector.broadcast %44 : vector<1x128xf32> to vector<8x128xf32>
    %46 = arith.addf %43, %45 : vector<8x128xf32>
    %c0_72 = arith.constant 0 : index
    %c0_73 = arith.constant 0 : index
    %47 = vector.load %arg22[%c0_72, %c0_73] : memref<8x128xf32, #tpu.memory_space<vmem>>, vector<8x128xf32>
    tpu.vector_store %arg22[%c0_72, %c0_73], %46 {strides = array<i32>} : memref<8x128xf32, #tpu.memory_space<vmem>>, vector<8x128xf32>,
    return
  }
  func.func @transform_0(%arg0: i32) -> (i32, i32, i32) {
    %c0_i32 = arith.constant 0 : i32
    %c0_i32_0 = arith.constant 0 : i32
    %c0_i32_1 = arith.constant 0 : i32
    return %c0_i32, %arg0, %c0_i32_0 : i32, i32, i32
  }
  func.func @transform_1(%arg0: i32) -> (i32, i32) {
    %c0_i32 = arith.constant 0 : i32
    %c0_i32_0 = arith.constant 0 : i32
    %c0_i32_1 = arith.constant 0 : i32
    return %c0_i32, %c0_i32_0 : i32, i32
  }
  func.func @transform_2(%arg0: i32) -> (i32, i32) {
    %c0_i32 = arith.constant 0 : i32
    %c0_i32_0 = arith.constant 0 : i32
    %c0_i32_1 = arith.constant 0 : i32
    return %c0_i32, %c0_i32_0 : i32, i32
  }
  func.func @transform_3(%arg0: i32) -> (i32, i32) {
    %c0_i32 = arith.constant 0 : i32
    %c0_i32_0 = arith.constant 0 : i32
    %c0_i32_1 = arith.constant 0 : i32
    return %c0_i32, %c0_i32_0 : i32, i32
  }
  func.func @transform_4(%arg0: i32) -> (i32, i32) {
    %c0_i32 = arith.constant 0 : i32
    %c0_i32_0 = arith.constant 0 : i32
    %c0_i32_1 = arith.constant 0 : i32
    return %c0_i32, %c0_i32_0 : i32, i32
  }
  func.func @transform_5(%arg0: i32) -> (i32, i32) {
    %c0_i32 = arith.constant 0 : i32
    %c0_i32_0 = arith.constant 0 : i32
    %c0_i32_1 = arith.constant 0 : i32
    return %c0_i32, %c0_i32_0 : i32, i32
  }
  func.func @transform_6(%arg0: i32) -> (i32, i32) {
    %c0_i32 = arith.constant 0 : i32
    %c0_i32_0 = arith.constant 0 : i32
    %c0_i32_1 = arith.constant 0 : i32
    return %c0_i32, %c0_i32_0 : i32, i32
  }
  func.func @transform_7(%arg0: i32) -> (i32, i32) {
    %c0_i32 = arith.constant 0 : i32
    %c0_i32_0 = arith.constant 0 : i32
    %c0_i32_1 = arith.constant 0 : i32
    return %c0_i32, %c0_i32_0 : i32, i32
  }
  func.func @transform_8(%arg0: i32) -> (i32, i32) {
    %c0_i32 = arith.constant 0 : i32
    %c0_i32_0 = arith.constant 0 : i32
    %c0_i32_1 = arith.constant 0 : i32
    return %c0_i32, %c0_i32_0 : i32, i32
  }
  func.func @transform_9(%arg0: i32) -> (i32, i32) {
    %c0_i32 = arith.constant 0 : i32
    %c0_i32_0 = arith.constant 0 : i32
    %c0_i32_1 = arith.constant 0 : i32
    return %c0_i32, %c0_i32_0 : i32, i32
  }
  func.func @transform_10(%arg0: i32) -> (i32, i32) {
    %c0_i32 = arith.constant 0 : i32
    %c0_i32_0 = arith.constant 0 : i32
    %c0_i32_1 = arith.constant 0 : i32
    return %c0_i32, %c0_i32_0 : i32, i32
  }
  func.func @transform_11(%arg0: i32) -> (i32, i32) {
    %c0_i32 = arith.constant 0 : i32
    %c0_i32_0 = arith.constant 0 : i32
    %c0_i32_1 = arith.constant 0 : i32
    return %c0_i32, %c0_i32_0 : i32, i32
  }
  func.func @transform_12(%arg0: i32) -> (i32, i32) {
    %c0_i32 = arith.constant 0 : i32
    %c0_i32_0 = arith.constant 0 : i32
    %c0_i32_1 = arith.constant 0 : i32
    return %c0_i32, %c0_i32_0 : i32, i32
  }
  func.func @transform_13(%arg0: i32) -> (i32, i32) {
    %c0_i32 = arith.constant 0 : i32
    %c0_i32_0 = arith.constant 0 : i32
    %c0_i32_1 = arith.constant 0 : i32
    return %c0_i32, %c0_i32_0 : i32, i32
  }
  func.func @transform_14(%arg0: i32) -> (i32, i32) {
    %c0_i32 = arith.constant 0 : i32
    %c0_i32_0 = arith.constant 0 : i32
    %c0_i32_1 = arith.constant 0 : i32
    return %c0_i32, %c0_i32_0 : i32, i32
  }
  func.func @transform_15(%arg0: i32) -> (i32, i32) {
    %c0_i32 = arith.constant 0 : i32
    %c0_i32_0 = arith.constant 0 : i32
    %c0_i32_1 = arith.constant 0 : i32
    return %c0_i32, %c0_i32_0 : i32, i32
  }
  func.func @transform_16(%arg0: i32) -> (i32, i32) {
    %c0_i32 = arith.constant 0 : i32
    %c0_i32_0 = arith.constant 0 : i32
    %c0_i32_1 = arith.constant 0 : i32
    return %c0_i32, %c0_i32_0 : i32, i32
  }
  func.func @transform_17(%arg0: i32) -> (i32, i32) {
    %c0_i32 = arith.constant 0 : i32
    %c0_i32_0 = arith.constant 0 : i32
    %c0_i32_1 = arith.constant 0 : i32
    return %c0_i32, %c0_i32_0 : i32, i32
  }
  func.func @transform_18(%arg0: i32) -> (i32, i32) {
    %c0_i32 = arith.constant 0 : i32
    %c0_i32_0 = arith.constant 0 : i32
    %c0_i32_1 = arith.constant 0 : i32
    return %c0_i32, %c0_i32_0 : i32, i32
  }
  func.func @transform_19(%arg0: i32) -> (i32, i32) {
    %c0_i32 = arith.constant 0 : i32
    %c0_i32_0 = arith.constant 0 : i32
    %c0_i32_1 = arith.constant 0 : i32
    return %c0_i32, %c0_i32_0 : i32, i32
  }
  func.func @transform_20(%arg0: i32) -> (i32, i32) {
    %c0_i32 = arith.constant 0 : i32
    %c0_i32_0 = arith.constant 0 : i32
    %c0_i32_1 = arith.constant 0 : i32
    return %c0_i32, %c0_i32_0 : i32, i32
  }
  func.func @transform_21(%arg0: i32) -> (i32, i32) {
    %c0_i32 = arith.constant 0 : i32
    %c0_i32_0 = arith.constant 0 : i32
    return %arg0, %c0_i32 : i32, i32
  }
}

</mosaic_0001>

<bundles_post_ra>
// kernel: tpu_custom_call.1
= control target key start
LH: loop header
LB: loop body
LE: loop exit
PB: predicated region body
PF: predicated region fallthrough
CT: control target
= control target key end

     0   :  { %s11812_s0 = inlined_call_operand.vmem [shape: f32[16,8,1], index: 0, kind: input, shape index: {}]   ;;  %s11813_s1 = inlined_call_operand.vmem [shape: f32[1,512], index: 1, kind: input, shape index: {}]   ;;  %s11814_s2 = inlined_call_operand.hbm [shape: f32[128,512], index: 2, kind: input, shape index: {}]   ;;  %s11815_s3 = inlined_call_operand.vmem [shape: f32[1,512], index: 3, kind: input, shape index: {}]   ;;  %s11816_s4 = inlined_call_operand.hbm [shape: f32[128,512], index: 4, kind: input, shape index: {}]   ;;  %s11817_s5 = inlined_call_operand.hbm [shape: f32[128,512], index: 5, kind: input, shape index: {}]   ;;  %s11818_s6 = inlined_call_operand.vmem [shape: f32[1,512], index: 6, kind: input, shape index: {}]   ;;  %s11819_s7 = inlined_call_operand.hbm [shape: f32[128,1024], index: 7, kind: input, shape index: {}]   ;;  %s11820_s8 = inlined_call_operand.hbm [shape: f32[256,1024], index: 8, kind: input, shape index: {}]   ;;  %s11821_s9 = inlined_call_operand.vmem [shape: f32[1,1024], index: 9, kind: input, shape index: {}]   ;;  %s11822_s10 = inlined_call_operand.hbm [shape: f32[256,1024], index: 10, kind: input, shape index: {}]   ;;  %s11823_s11 = inlined_call_operand.hbm [shape: f32[256,1024], index: 11, kind: input, shape index: {}]   ;;  %s11824_s12 = inlined_call_operand.vmem [shape: f32[1,1024], index: 12, kind: input, shape index: {}]   ;;  %s11825_s13 = inlined_call_operand.hbm [shape: f32[256,512], index: 13, kind: input, shape index: {}]   ;;  %s11826_s14 = inlined_call_operand.hbm [shape: f32[128,512], index: 14, kind: input, shape index: {}]   ;;  %s11827_s15 = inlined_call_operand.vmem [shape: f32[1,512], index: 15, kind: input, shape index: {}]   ;;  %s11828_s16 = inlined_call_operand.hbm [shape: f32[128,512], index: 16, kind: input, shape index: {}]   ;;  %s11829_s17 = inlined_call_operand.hbm [shape: f32[128,512], index: 17, kind: input, shape index: {}]   ;;  %s11830_s18 = inlined_call_operand.vmem [shape: f32[1,512], index: 18, kind: input, shape index: {}]   ;;  %s11831_s19 = inlined_call_operand.vmem [shape: f32[128,128], index: 19, kind: input, shape index: {}]   ;;  %s11832_s20 = inlined_call_operand.vmem [shape: f32[1,128], index: 20, kind: input, shape index: {}]   ;;  %s11833_s21 = inlined_call_operand.hbm [shape: f32[8,128], index: 21, kind: output, shape index: {}]  }
   0x1   :  { %11868 = sst [smem:[#allocation523_spill]] %s11812_s0 }
   0x2   :  { %11869 = sst [smem:[#allocation524_spill]] %s11813_s1 }
   0x3   :  { %11870 = sst [smem:[#allocation525_spill]] %s11814_s2 }
   0x4   :  { %11871 = sst [smem:[#allocation526_spill]] %s11815_s3 }
   0x5   :  { %11872 = sst [smem:[#allocation527_spill]] %s11816_s4 }
   0x6   :  { %11873 = sst [smem:[#allocation528_spill]] %s11817_s5 }
   0x7   :  { %11874 = sst [smem:[#allocation529_spill]] %s11833_s21 }
   0x8   :  { %26 = vsyncpa [#allocation7], 0 }
   0x9   :  { %27 = vsyncpa [#allocation10], 0 }
   0xa   :  { %28 = vsyncpa [#allocation13], 0 }
   0xb   :  { %29 = vsyncpa [#allocation16], 0 }
   0xc   :  { %30 = vsyncpa [#allocation19], 0 }
   0xd   :  { %31 = vsyncpa [#allocation22], 0 }
   0xe   :  { %32 = vsyncpa [#allocation8], 0  ;;  %s6804_s2 = smov [#allocation9]   ;;  %s6805_s26 = smov [#allocation12]  }
   0xf   :  { %s56_s25 = sshll.u32 %s6804_s2, 4  ;;  %s82_s27 = sshll.u32 %s6805_s26, 4  ;;  %s57_s25 = int_to_ptr.vmem [resolvable:$true] %s56_s25  ;;  %s6939_s27 = int_to_ptr.vmem [resolvable:$true] %s82_s27 }
  0x10   :  { %s11875_s29 = sld [smem:[#allocation527_spill]] }
  0x16   :  { %s6350_s0 = scalar_lea.hbm %s11875_s29, 8192 }
  0x17   :  { %p6351_p0 = scmp.ne.s32.totalorder %s11875_s29, %s6350_s0  ;;  %p6354_p1 = scmp.lt.u32.totalorder %s6350_s0, %s11875_s29 }
  0x19   :  { %p6356_p2 = pnand %p6354_p1, %p6351_p0 }
  0x1b   :  { %6359 = shalt.err (!%p6356_p2)
}
  0x1c   :  { %s6360_s23 = scalar_lea.vmem %s57_s25, 8192  ;;  %p6365_p4 = scmp.lt.s32.totalorder %s57_s25, %s57_s25 }
  0x1d   :  { %p6361_p3 = scmp.ne.s32.totalorder %s57_s25, %s6360_s23  ;;  %p6366_p5 = scmp.lt.s32.totalorder %s6360_s23, %s6360_s23 }
  0x1f   :  { %p6367_p6 = por %p6366_p5, %p6365_p4 }
  0x21   :  { %p6368_p7 = pnand %p6367_p6, %p6361_p3 }
  0x23   :  { %6371 = shalt.err (!%p6368_p7)
}
  0x24   :  { %s11837_s1 = smov 512   ;;  %s11839_s24 = smov 32  }
  0x25   :  { %62 = dma.hbm_to_vmem [thread:$0]  %s11875_s29, 8192, %s57_s25, [#allocation10], %s11837_s1, %s11837_s1, %s11839_s24  }
  0x26   :  { %s6372_s0 = scalar_lea.hbm %s11819_s7, 16384 }
  0x27   :  { %p6373_p8 = scmp.ne.s32.totalorder %s11819_s7, %s6372_s0  ;;  %p6376_p9 = scmp.lt.u32.totalorder %s6372_s0, %s11819_s7 }
  0x29   :  { %p6378_p10 = pnand %p6376_p9, %p6373_p8 }
  0x2b   :  { %6381 = shalt.err (!%p6378_p10)
}
  0x2c   :  { %s6382_s23 = scalar_lea.vmem %s6939_s27, 16384  ;;  %p6387_p12 = scmp.lt.s32.totalorder %s6939_s27, %s6939_s27 }
  0x2d   :  { %p6383_p11 = scmp.ne.s32.totalorder %s6939_s27, %s6382_s23  ;;  %p6388_p13 = scmp.lt.s32.totalorder %s6382_s23, %s6382_s23 }
  0x2f   :  { %p6389_p0 = por %p6388_p13, %p6387_p12 }
  0x31   :  { %p6390_p1 = pnand %p6389_p0, %p6383_p11 }
  0x33   :  { %6393 = shalt.err (!%p6390_p1)
}
  0x34   :  { %s6808_s25 = smov 1024   ;;  %s6809_s29 = smov 64  }
  0x35   :  { %88 = dma.hbm_to_vmem [thread:$0]  %s11819_s7, 16384, %s6939_s27, [#allocation13], %s6808_s25, %s6808_s25, %s6809_s29  }
  0x36   :  { %s6810_s3 = smov [#allocation15]   ;;  %s6811_s0 = smov [#allocation18]  }
  0x37   :  { %s108_s28 = sshll.u32 %s6810_s3, 4  ;;  %s134_s4 = sshll.u32 %s6811_s0, 4  ;;  %s109_s28 = int_to_ptr.vmem [resolvable:$true] %s108_s28  ;;  %s6976_s4 = int_to_ptr.vmem [resolvable:$true] %s134_s4 }
  0x38   :  { %s6394_s22 = scalar_lea.hbm %s11822_s10, 32768 }
  0x39   :  { %p6395_p2 = scmp.ne.s32.totalorder %s11822_s10, %s6394_s22  ;;  %p6398_p3 = scmp.lt.u32.totalorder %s6394_s22, %s11822_s10 }
  0x3b   :  { %p6400_p4 = pnand %p6398_p3, %p6395_p2 }
  0x3d   :  { %6403 = shalt.err (!%p6400_p4)
}
  0x3e   :  { %s6404_s7 = scalar_lea.vmem %s109_s28, 32768  ;;  %p6409_p6 = scmp.lt.s32.totalorder %s109_s28, %s109_s28 }
  0x3f   :  { %p6405_p5 = scmp.ne.s32.totalorder %s109_s28, %s6404_s7  ;;  %p6410_p7 = scmp.lt.s32.totalorder %s6404_s7, %s6404_s7 }
  0x41   :  { %p6411_p8 = por %p6410_p7, %p6409_p6 }
  0x43   :  { %p6412_p9 = pnand %p6411_p8, %p6405_p5 }
  0x45   :  { %6415 = shalt.err (!%p6412_p9)
}
  0x46   :  { %114 = dma.hbm_to_vmem [thread:$0]  %s11822_s10, 32768, %s109_s28, [#allocation16], %s6808_s25, %s6808_s25, %s6809_s29  }
  0x47   :  { %s6416_s21 = scalar_lea.hbm %s11825_s13, 16384 }
  0x48   :  { %p6417_p10 = scmp.ne.s32.totalorder %s11825_s13, %s6416_s21  ;;  %p6420_p11 = scmp.lt.u32.totalorder %s6416_s21, %s11825_s13 }
  0x4a   :  { %p6422_p12 = pnand %p6420_p11, %p6417_p10 }
  0x4c   :  { %6425 = shalt.err (!%p6422_p12)
}
  0x4d   :  { %s6426_s5 = scalar_lea.vmem %s6976_s4, 16384  ;;  %p6431_p0 = scmp.lt.s32.totalorder %s6976_s4, %s6976_s4 }
  0x4e   :  { %p6427_p13 = scmp.ne.s32.totalorder %s6976_s4, %s6426_s5  ;;  %p6432_p1 = scmp.lt.s32.totalorder %s6426_s5, %s6426_s5 }
  0x50   :  { %p6433_p2 = por %p6432_p1, %p6431_p0 }
  0x52   :  { %p6434_p3 = pnand %p6433_p2, %p6427_p13 }
  0x54   :  { %6437 = shalt.err (!%p6434_p3)
}
  0x55   :  { %s11876_s10 = smov 32   ;;  %s11877_s28 = smov 512  }
  0x56   :  { %140 = dma.hbm_to_vmem [thread:$0]  %s11825_s13, 16384, %s6976_s4, [#allocation19], %s11877_s28, %s11877_s28, %s11876_s10  }
  0x57   :  { %s6812_s7 = smov [#allocation21]   ;;  %s6813_s2 = smov [#allocation6]  }
  0x58   :  { %s160_s27 = sshll.u32 %s6812_s7, 4  ;;  %s42_s1 = sshll.u32 %s6813_s2, 4  ;;  %s161_s27 = int_to_ptr.vmem [resolvable:$true] %s160_s27  ;;  %s7013_s1 = int_to_ptr.vmem [resolvable:$true] %s42_s1 }
  0x59   :  { %s6438_s24 = scalar_lea.hbm %s11828_s16, 8192 }
  0x5a   :  { %p6439_p4 = scmp.ne.s32.totalorder %s11828_s16, %s6438_s24  ;;  %p6442_p5 = scmp.lt.u32.totalorder %s6438_s24, %s11828_s16 }
  0x5c   :  { %p6444_p6 = pnand %p6442_p5, %p6439_p4 }
  0x5e   :  { %6447 = shalt.err (!%p6444_p6)
}
  0x5f   :  { %s6448_s13 = scalar_lea.vmem %s161_s27, 8192  ;;  %p6453_p8 = scmp.lt.s32.totalorder %s161_s27, %s161_s27 }
  0x60   :  { %p6449_p7 = scmp.ne.s32.totalorder %s161_s27, %s6448_s13  ;;  %p6454_p9 = scmp.lt.s32.totalorder %s6448_s13, %s6448_s13 }
  0x62   :  { %p6455_p10 = por %p6454_p9, %p6453_p8 }
  0x64   :  { %p6456_p11 = pnand %p6455_p10, %p6449_p7 }
  0x66   :  { %6459 = shalt.err (!%p6456_p11)
}
  0x67   :  { %166 = dma.hbm_to_vmem [thread:$0]  %s11828_s16, 8192, %s161_s27, [#allocation22], %s11877_s28, %s11877_s28, %s11876_s10  }
  0x68   :  { %s11878_s2 = sld [smem:[#allocation525_spill]] }
  0x6e   :  { %s6460_s26 = scalar_lea.hbm %s11878_s2, 8192 }
  0x6f   :  { %p6461_p12 = scmp.ne.s32.totalorder %s11878_s2, %s6460_s26  ;;  %p6464_p13 = scmp.lt.u32.totalorder %s6460_s26, %s11878_s2 }
  0x71   :  { %p6466_p0 = pnand %p6464_p13, %p6461_p12 }
  0x73   :  { %6469 = shalt.err (!%p6466_p0)
}
  0x74   :  { %s6470_s30 = scalar_lea.vmem %s7013_s1, 8192  ;;  %p6475_p2 = scmp.lt.s32.totalorder %s7013_s1, %s7013_s1 }
  0x75   :  { %p6471_p1 = scmp.ne.s32.totalorder %s7013_s1, %s6470_s30  ;;  %p6476_p3 = scmp.lt.s32.totalorder %s6470_s30, %s6470_s30 }
  0x77   :  { %p6477_p4 = por %p6476_p3, %p6475_p2 }
  0x79   :  { %p6478_p5 = pnand %p6477_p4, %p6471_p1 }
  0x7b   :  { %6481 = shalt.err (!%p6478_p5)
}
  0x7c   :  { %48 = dma.hbm_to_vmem [thread:$0]  %s11878_s2, 8192, %s7013_s1, [#allocation7], %s11877_s28, %s11877_s28, %s11876_s10  }
  0x7d   :  { %s6814_s5 = smov [#allocation11]   ;;  %s6815_s4 = smov [#allocation14]  }
  0x7e   :  { %s68_s13 = sshll.u32 %s6814_s5, 4  ;;  %s94_s22 = sshll.u32 %s6815_s4, 4  ;;  %s69_s13 = int_to_ptr.vmem [resolvable:$true] %s68_s13  ;;  %s7050_s22 = int_to_ptr.vmem [resolvable:$true] %s94_s22 }
  0x7f   :  { %s11879_s26 = sld [smem:[#allocation528_spill]] }
  0x85   :  { %s6482_s21 = scalar_lea.hbm %s11879_s26, 8192 }
  0x86   :  { %p6483_p6 = scmp.ne.s32.totalorder %s11879_s26, %s6482_s21  ;;  %p6486_p7 = scmp.lt.u32.totalorder %s6482_s21, %s11879_s26 }
  0x88   :  { %p6488_p8 = pnand %p6486_p7, %p6483_p6 }
  0x8a   :  { %6491 = shalt.err (!%p6488_p8)
}
  0x8b   :  { %s6492_s1 = scalar_lea.vmem %s69_s13, 8192  ;;  %p6497_p10 = scmp.lt.s32.totalorder %s69_s13, %s69_s13 }
  0x8c   :  { %p6493_p9 = scmp.ne.s32.totalorder %s69_s13, %s6492_s1  ;;  %p6498_p11 = scmp.lt.s32.totalorder %s6492_s1, %s6492_s1 }
  0x8e   :  { %p6499_p12 = por %p6498_p11, %p6497_p10 }
  0x90   :  { %p6500_p13 = pnand %p6499_p12, %p6493_p9 }
  0x92   :  { %6503 = shalt.err (!%p6500_p13)
}
  0x93   :  { %74 = dma.hbm_to_vmem [thread:$0]  %s11879_s26, 8192, %s69_s13, [#allocation10], %s11877_s28, %s11877_s28, %s11876_s10  }
  0x94   :  { %s6504_s4 = scalar_lea.hbm %s11820_s8, 32768 }
  0x95   :  { %p6505_p0 = scmp.ne.s32.totalorder %s11820_s8, %s6504_s4  ;;  %p6508_p1 = scmp.lt.u32.totalorder %s6504_s4, %s11820_s8 }
  0x97   :  { %p6510_p2 = pnand %p6508_p1, %p6505_p0 }
  0x99   :  { %6513 = shalt.err (!%p6510_p2)
}
  0x9a   :  { %s6514_s3 = scalar_lea.vmem %s7050_s22, 32768  ;;  %p6519_p4 = scmp.lt.s32.totalorder %s7050_s22, %s7050_s22 }
  0x9b   :  { %p6515_p3 = scmp.ne.s32.totalorder %s7050_s22, %s6514_s3  ;;  %p6520_p5 = scmp.lt.s32.totalorder %s6514_s3, %s6514_s3 }
  0x9d   :  { %p6521_p6 = por %p6520_p5, %p6519_p4 }
  0x9f   :  { %p6522_p7 = pnand %p6521_p6, %p6515_p3 }
  0xa1   :  { %6525 = shalt.err (!%p6522_p7)
}
  0xa2   :  { %100 = dma.hbm_to_vmem [thread:$0]  %s11820_s8, 32768, %s7050_s22, [#allocation13], %s6808_s25, %s6808_s25, %s6809_s29  }
  0xa3   :  { %s6816_s0 = smov [#allocation17]   ;;  %s6817_s1 = smov [#allocation20]  }
  0xa4   :  { %s120_s30 = sshll.u32 %s6816_s0, 4  ;;  %s146_s2 = sshll.u32 %s6817_s1, 4  ;;  %s121_s30 = int_to_ptr.vmem [resolvable:$true] %s120_s30  ;;  %s7087_s2 = int_to_ptr.vmem [resolvable:$true] %s146_s2 }
  0xa5   :  { %s6526_s5 = scalar_lea.hbm %s11823_s11, 32768 }
  0xa6   :  { %p6527_p8 = scmp.ne.s32.totalorder %s11823_s11, %s6526_s5  ;;  %p6530_p9 = scmp.lt.u32.totalorder %s6526_s5, %s11823_s11 }
  0xa8   :  { %p6532_p10 = pnand %p6530_p9, %p6527_p8 }
  0xaa   :  { %6535 = shalt.err (!%p6532_p10)
}
  0xab   :  { %s6536_s8 = scalar_lea.vmem %s121_s30, 32768  ;;  %p6541_p12 = scmp.lt.s32.totalorder %s121_s30, %s121_s30 }
  0xac   :  { %p6537_p11 = scmp.ne.s32.totalorder %s121_s30, %s6536_s8  ;;  %p6542_p13 = scmp.lt.s32.totalorder %s6536_s8, %s6536_s8 }
  0xae   :  { %p6543_p0 = por %p6542_p13, %p6541_p12 }
  0xb0   :  { %p6544_p1 = pnand %p6543_p0, %p6537_p11 }
  0xb2   :  { %6547 = shalt.err (!%p6544_p1)
}
  0xb3   :  { %126 = dma.hbm_to_vmem [thread:$0]  %s11823_s11, 32768, %s121_s30, [#allocation16], %s6808_s25, %s6808_s25, %s6809_s29  }
  0xb4   :  { %s6548_s26 = scalar_lea.hbm %s11826_s14, 8192 }
  0xb5   :  { %p6549_p2 = scmp.ne.s32.totalorder %s11826_s14, %s6548_s26  ;;  %p6552_p3 = scmp.lt.u32.totalorder %s6548_s26, %s11826_s14 }
  0xb7   :  { %p6554_p4 = pnand %p6552_p3, %p6549_p2 }
  0xb9   :  { %6557 = shalt.err (!%p6554_p4)
}
  0xba   :  { %s6558_s5 = scalar_lea.vmem %s7087_s2, 8192  ;;  %p6563_p6 = scmp.lt.s32.totalorder %s7087_s2, %s7087_s2 }
  0xbb   :  { %p6559_p5 = scmp.ne.s32.totalorder %s7087_s2, %s6558_s5  ;;  %p6564_p7 = scmp.lt.s32.totalorder %s6558_s5, %s6558_s5 }
  0xbd   :  { %p6565_p8 = por %p6564_p7, %p6563_p6 }
  0xbf   :  { %p6566_p9 = pnand %p6565_p8, %p6559_p5 }
  0xc1   :  { %6569 = shalt.err (!%p6566_p9)
}
  0xc2   :  { %152 = dma.hbm_to_vmem [thread:$0]  %s11826_s14, 8192, %s7087_s2, [#allocation19], %s11877_s28, %s11877_s28, %s11876_s10  }
  0xc3   :  { %s6818_s29 = smov [#allocation23]   ;;  %s6570_s7 = scalar_lea.hbm %s11829_s17, 8192 }
  0xc4   :  { %s172_s30 = sshll.u32 %s6818_s29, 4  ;;  %p6571_p10 = scmp.ne.s32.totalorder %s11829_s17, %s6570_s7  ;;  %s173_s30 = int_to_ptr.vmem [resolvable:$true] %s172_s30 }
  0xc5   :  { %p6574_p11 = scmp.lt.u32.totalorder %s6570_s7, %s11829_s17 }
  0xc7   :  { %p6576_p12 = pnand %p6574_p11, %p6571_p10 }
  0xc9   :  { %6579 = shalt.err (!%p6576_p12)
}
  0xca   :  { %s6580_s3 = scalar_lea.vmem %s173_s30, 8192  ;;  %p6585_p0 = scmp.lt.s32.totalorder %s173_s30, %s173_s30 }
  0xcb   :  { %p6581_p13 = scmp.ne.s32.totalorder %s173_s30, %s6580_s3  ;;  %p6586_p1 = scmp.lt.s32.totalorder %s6580_s3, %s6580_s3 }
  0xcd   :  { %p6587_p2 = por %p6586_p1, %p6585_p0 }
  0xcf   :  { %p6588_p3 = pnand %p6587_p2, %p6581_p13 }
  0xd1   :  { %6591 = shalt.err (!%p6588_p3)
}
  0xd2   :  { %178 = dma.hbm_to_vmem [thread:$0]  %s11829_s17, 8192, %s173_s30, [#allocation22], %s11877_s28, %s11877_s28, %s11876_s10  }
  0xd3   :  { %6702 = dma.done.wait [#allocation7], 8192  }
  0xd4   :  { %6703 = vsyncadd [#allocation7], 4294959104 }
  0xd5   :  { %6704 = dma.done.wait [#allocation10], 16384  }
  0xd6   :  { %6705 = vsyncadd [#allocation10], 4294950912 }
  0xd7   :  { %6706 = dma.done.wait [#allocation13], 49152  }
  0xd8   :  { %6707 = vsyncadd [#allocation13], 4294918144 }
  0xd9   :  { %6708 = dma.done.wait [#allocation16], 65536  }
  0xda   :  { %6709 = vsyncadd [#allocation16], 4294901760 }
  0xdb   :  { %6710 = dma.done.wait [#allocation19], 24576  }
  0xdc   :  { %6711 = vsyncadd [#allocation19], 4294942720 }
  0xdd   :  { %6712 = dma.done.wait [#allocation22], 16384  }
  0xde   :  { %6713 = vsyncadd [#allocation22], 4294950912  ;;  %s11880_s0 = sld [smem:[#allocation524_spill]]  ;;  %v7144_v1 = vld [vmem:[#allocation6] sm:$0xff]  ;;  %v7146_v2 = vld [vmem:[#allocation6 + $0x8] sm:$0xff]  ;;  %s11912_s28 = sld [smem:[#allocation526_spill]] }
  0xdf   :  { %11882 = vst [vmem:[#allocation33_spill] sm:$0xff] %v7144_v1  ;;  %11883 = vst [vmem:[#allocation34_spill] sm:$0xff] %v7146_v2  ;;  %v7148_v3 = vld [vmem:[#allocation6 + $0x10] sm:$0xff]  ;;  %v7150_v4 = vld [vmem:[#allocation6 + $0x18] sm:$0xff]  ;;  %s7281_s1 = smov 0  }
  0xe0   :  { %11884 = vst [vmem:[#allocation35_spill] sm:$0xff] %v7148_v3  ;;  %11885 = vst [vmem:[#allocation36_spill] sm:$0xff] %v7150_v4  ;;  %v7152_v5 = vld [vmem:[#allocation6 + $0x20] sm:$0xff]  ;;  %v7154_v6 = vld [vmem:[#allocation6 + $0x28] sm:$0xff] }
  0xe1   :  { %11886 = vst [vmem:[#allocation37_spill] sm:$0xff] %v7152_v5  ;;  %11887 = vst [vmem:[#allocation38_spill] sm:$0xff] %v7154_v6  ;;  %v7156_v7 = vld [vmem:[#allocation6 + $0x30] sm:$0xff]  ;;  %v7158_v8 = vld [vmem:[#allocation6 + $0x38] sm:$0xff] }
  0xe2   :  { %11888 = vst [vmem:[#allocation39_spill] sm:$0xff] %v7156_v7  ;;  %11889 = vst [vmem:[#allocation40_spill] sm:$0xff] %v7158_v8  ;;  %v7160_v9 = vld [vmem:[#allocation6 + $0x40] sm:$0xff]  ;;  %v7162_v10 = vld [vmem:[#allocation6 + $0x48] sm:$0xff] }
  0xe3   :  { %11890 = vst [vmem:[#allocation41_spill] sm:$0xff] %v7160_v9  ;;  %11891 = vst [vmem:[#allocation42_spill] sm:$0xff] %v7162_v10  ;;  %v7164_v11 = vld [vmem:[#allocation6 + $0x50] sm:$0xff]  ;;  %v7166_v12 = vld [vmem:[#allocation6 + $0x58] sm:$0xff] }
  0xe4   :  { %v7142_v0 = vld [vmem:[%s11880_s0] sm:$0xf]  ;;  %11892 = vst [vmem:[#allocation43_spill] sm:$0xff] %v7164_v11  ;;  %11893 = vst [vmem:[#allocation44_spill] sm:$0xff] %v7166_v12  ;;  %v7168_v13 = vld [vmem:[#allocation6 + $0x60] sm:$0xff] }
  0xe5   :  { %11881 = vst [vmem:[#allocation32_spill] sm:$0xff] %v7142_v0  ;;  %11894 = vst [vmem:[#allocation45_spill] sm:$0xff] %v7168_v13  ;;  %v7170_v14 = vld [vmem:[#allocation6 + $0x68] sm:$0xff]  ;;  %v7172_v15 = vld [vmem:[#allocation6 + $0x70] sm:$0xff] }
  0xe6   :  { %11895 = vst [vmem:[#allocation46_spill] sm:$0xff] %v7170_v14  ;;  %11896 = vst [vmem:[#allocation47_spill] sm:$0xff] %v7172_v15  ;;  %v7174_v16 = vld [vmem:[#allocation6 + $0x78] sm:$0xff]  ;;  %v7176_v17 = vld [vmem:[#allocation6 + $0x80] sm:$0xff] }
  0xe7   :  { %11897 = vst [vmem:[#allocation48_spill] sm:$0xff] %v7174_v16  ;;  %11898 = vst [vmem:[#allocation49_spill] sm:$0xff] %v7176_v17  ;;  %v7178_v18 = vld [vmem:[#allocation6 + $0x88] sm:$0xff]  ;;  %v7180_v19 = vld [vmem:[#allocation6 + $0x90] sm:$0xff] }
  0xe8   :  { %11899 = vst [vmem:[#allocation50_spill] sm:$0xff] %v7178_v18  ;;  %11900 = vst [vmem:[#allocation51_spill] sm:$0xff] %v7180_v19  ;;  %v7182_v20 = vld [vmem:[#allocation6 + $0x98] sm:$0xff]  ;;  %v7184_v21 = vld [vmem:[#allocation6 + $0xa0] sm:$0xff] }
  0xe9   :  { %11901 = vst [vmem:[#allocation52_spill] sm:$0xff] %v7182_v20  ;;  %11902 = vst [vmem:[#allocation53_spill] sm:$0xff] %v7184_v21  ;;  %v7186_v22 = vld [vmem:[#allocation6 + $0xa8] sm:$0xff]  ;;  %v7188_v23 = vld [vmem:[#allocation6 + $0xb0] sm:$0xff] }
  0xea   :  { %11903 = vst [vmem:[#allocation54_spill] sm:$0xff] %v7186_v22  ;;  %11904 = vst [vmem:[#allocation55_spill] sm:$0xff] %v7188_v23  ;;  %v7190_v24 = vld [vmem:[#allocation6 + $0xb8] sm:$0xff]  ;;  %v7192_v25 = vld [vmem:[#allocation6 + $0xc0] sm:$0xff] }
  0xeb   :  { %v7194_v26 = vld [vmem:[#allocation6 + $0xc8] sm:$0xff]  ;;  %v7196_v27 = vld [vmem:[#allocation6 + $0xd0] sm:$0xff]  ;;  %v7198_v28 = vld [vmem:[#allocation6 + $0xd8] sm:$0xff] }
  0xec   :  { %v7200_v29 = vld [vmem:[#allocation6 + $0xe0] sm:$0xff]  ;;  %v7202_v30 = vld [vmem:[#allocation6 + $0xe8] sm:$0xff]  ;;  %v7204_v31 = vld [vmem:[#allocation6 + $0xf0] sm:$0xff] }
  0xed   :  { %v7206_v32 = vld [vmem:[#allocation6 + $0xf8] sm:$0xff]  ;;  %v7208_v33 = vld [vmem:[#allocation6 + $0x100] sm:$0xff]  ;;  %v7210_v34 = vld [vmem:[#allocation6 + $0x108] sm:$0xff] }
  0xee   :  { %v7212_v35 = vld [vmem:[#allocation6 + $0x110] sm:$0xff]  ;;  %v7214_v36 = vld [vmem:[#allocation6 + $0x118] sm:$0xff]  ;;  %v7216_v37 = vld [vmem:[#allocation6 + $0x120] sm:$0xff] }
  0xef   :  { %v7218_v38 = vld [vmem:[#allocation6 + $0x128] sm:$0xff]  ;;  %v7220_v39 = vld [vmem:[#allocation6 + $0x130] sm:$0xff]  ;;  %v7222_v40 = vld [vmem:[#allocation6 + $0x138] sm:$0xff] }
  0xf0   :  { %v7224_v41 = vld [vmem:[#allocation6 + $0x140] sm:$0xff]  ;;  %v7226_v42 = vld [vmem:[#allocation6 + $0x148] sm:$0xff]  ;;  %v7228_v43 = vld [vmem:[#allocation6 + $0x150] sm:$0xff] }
  0xf1   :  { %v7230_v44 = vld [vmem:[#allocation6 + $0x158] sm:$0xff]  ;;  %v7232_v45 = vld [vmem:[#allocation6 + $0x160] sm:$0xff]  ;;  %v7234_v46 = vld [vmem:[#allocation6 + $0x168] sm:$0xff] }
  0xf2   :  { %v7236_v47 = vld [vmem:[#allocation6 + $0x170] sm:$0xff]  ;;  %v7238_v48 = vld [vmem:[#allocation6 + $0x178] sm:$0xff]  ;;  %v7240_v49 = vld [vmem:[#allocation6 + $0x180] sm:$0xff] }
  0xf3   :  { %v7242_v50 = vld [vmem:[#allocation6 + $0x188] sm:$0xff]  ;;  %v7244_v51 = vld [vmem:[#allocation6 + $0x190] sm:$0xff]  ;;  %v7246_v52 = vld [vmem:[#allocation6 + $0x198] sm:$0xff] }
  0xf4   :  { %v7248_v53 = vld [vmem:[#allocation6 + $0x1a0] sm:$0xff]  ;;  %v7250_v54 = vld [vmem:[#allocation6 + $0x1a8] sm:$0xff]  ;;  %v7252_v55 = vld [vmem:[#allocation6 + $0x1b0] sm:$0xff] }
  0xf5   :  { %11905 = vst [vmem:[#allocation56_spill] sm:$0xff] %v7252_v55  ;;  %v7254_v56 = vld [vmem:[#allocation6 + $0x1b8] sm:$0xff]  ;;  %v7256_v57 = vld [vmem:[#allocation6 + $0x1c0] sm:$0xff]  ;;  %v7258_v58 = vld [vmem:[#allocation6 + $0x1c8] sm:$0xff] }
  0xf6   :  { %11906 = vst [vmem:[#allocation57_spill] sm:$0xff] %v7256_v57  ;;  %11907 = vst [vmem:[#allocation58_spill] sm:$0xff] %v7258_v58  ;;  %v7260_v59 = vld [vmem:[#allocation6 + $0x1d0] sm:$0xff]  ;;  %v7262_v60 = vld [vmem:[#allocation6 + $0x1d8] sm:$0xff]  ;;  %v7277_v57 = vmov 0.0   ;;  %v7279_v58 = vmov 0.0  }
  0xf7   :  { %11908 = vst [vmem:[#allocation59_spill] sm:$0xff] %v7260_v59  ;;  %v7264_v61 = vld [vmem:[#allocation6 + $0x1e0] sm:$0xff]  ;;  %v7266_v62 = vld [vmem:[#allocation6 + $0x1e8] sm:$0xff]  ;;  %v7268_v63 = vld [vmem:[#allocation6 + $0x1f0] sm:$0xff] }
  0xf8   :  { %11909 = vst [vmem:[#allocation60_spill] sm:$0xff] %v7264_v61  ;;  %11910 = vst [vmem:[#allocation61_spill] sm:$0xff] %v7268_v63  ;;  %v7270_v0 = vld [vmem:[#allocation6 + $0x1f8] sm:$0xff]  ;;  %v7275_v55 = vld [vmem:[%s11912_s28] sm:$0xf] }
  0xf9   :  { %11911 = vst [vmem:[#allocation62_spill] sm:$0xff] %v7270_v0  ;;  %11913 = vst [vmem:[#allocation63_spill] sm:$0xff] %v7275_v55 }
  0xfa LB: > { %11914 = vst [vmem:[#allocation64_spill] sm:$0xff] %v6718_v57  ;;  %11915 = vst [vmem:[#allocation65_spill] sm:$0xff] %v6722_v58  ;;  %v11916_v2 = vld [vmem:[#allocation34_spill] sm:$0xff]  ;;  %v11918_v4 = vld [vmem:[#allocation36_spill] sm:$0xff]  ;;  %s4491_s16 = sshll.u32 %s6726_s1, 3  ;;  %s11935_s11 = sld [smem:[#allocation523_spill]]  ;;  %s6726_s1 = sphi %s7281_s1, %s289_s1   ;;  %v6722_v58 = vphi %v7279_v58, %v519_v58   ;;  %v6718_v57 = vphi %v7277_v57, %v517_v57  }
  0xfb   : > { %v11917_v6 = vld [vmem:[#allocation38_spill] sm:$0xff]  ;;  %v11919_v8 = vld [vmem:[#allocation40_spill] sm:$0xff]  ;;  %v11920_v1 = vld [vmem:[#allocation33_spill] sm:$0xff]  ;;  %s520_s29 = scalar_lea.vmem [#allocation2], %s4491_s16  ;;  %s289_s1 = sadd.s32 1, %s6726_s1  }
  0xfc   : > { %v4560_v55 = vpack.c.bf16 %v11917_v6, %v11916_v2  ;;  %v4592_v63 = vpack.c.bf16 %v11919_v8, %v11918_v4  ;;  %v11921_v5 = vld [vmem:[#allocation37_spill] sm:$0xff]  ;;  %v11922_v3 = vld [vmem:[#allocation35_spill] sm:$0xff]  ;;  %v11924_v10 = vld [vmem:[#allocation42_spill] sm:$0xff]  ;;  %p286_p4 = scmp.ge.s32.totalorder %s289_s1, 16  }
  0xfd   : > { %v4562_v59 = vpack.c.bf16 %v11921_v5, %v11920_v1  ;;  %v11923_v7 = vld [vmem:[#allocation39_spill] sm:$0xff]  ;;  %v11925_v14 = vld [vmem:[#allocation46_spill] sm:$0xff]  ;;  %v11926_v12 = vld [vmem:[#allocation44_spill] sm:$0xff]  ;;  %v6820_v5 = vmov 0   ;;  %s7669_s23 = smov (%p286_p4), 0  }
  0xfe   : > { %v4594_v61 = vpack.c.bf16 %v11923_v7, %v11922_v3  ;;  %v4564_v57 = vpack.c.bf16 %v11925_v14, %v11924_v10  ;;  %v11927_v16 = vld [vmem:[#allocation48_spill] sm:$0xff]  ;;  %4561 = vmatprep.subr.bf16.mxu0 %v4560_v55  ;;  %4593 = vmatprep.subr.bf16.mxu1 %v4592_v63  ;;  %v11928_v9 = vld [vmem:[#allocation41_spill] sm:$0xff]  ;;  %v11930_v11 = vld [vmem:[#allocation43_spill] sm:$0xff]  ;;  %v6819_v55 = vmov 0.0   ;;  %v4604_v63 = vpack.c.bf16 %v7206_v32, %v7198_v28 }
  0xff   : > { %v4596_v58 = vpack.c.bf16 %v11927_v16, %v11926_v12  ;;  %4563 = vmatpush1.bf16.msra.mxu0 %v4562_v59  ;;  %v11929_v13 = vld [vmem:[#allocation45_spill] sm:$0xff]  ;;  %v11931_v15 = vld [vmem:[#allocation47_spill] sm:$0xff]  ;;  %v11932_v18 = vld [vmem:[#allocation50_spill] sm:$0xff]  ;;  %389 = vmatprep.mubr.f32.mxu0 %v6819_v55 }
 0x100   : > { %4595 = vmatpush1.bf16.msra.mxu1 %v4594_v61  ;;  %v4566_v2 = vpack.c.bf16 %v11929_v13, %v11928_v9  ;;  %v4598_v1 = vpack.c.bf16 %v11931_v15, %v11930_v11  ;;  %4565 = vmatprep.subr.bf16.mxu0 %v4564_v57  ;;  %v11933_v22 = vld [vmem:[#allocation54_spill] sm:$0xff]  ;;  %v11934_v20 = vld [vmem:[#allocation52_spill] sm:$0xff]  ;;  %s293_s25 = scalar_lea.vmem %s11935_s11, %s4491_s16  ;;  %v11936_v17 = vld [vmem:[#allocation49_spill] sm:$0xff]  ;;  %v4572_v61 = vpack.c.bf16 %v7202_v30, %v7194_v26 }
 0x101   : > { %4597 = vmatprep.subr.bf16.mxu1 %v4596_v58  ;;  %v4568_v3 = vpack.c.bf16 %v11933_v22, %v11932_v18  ;;  %v4600_v4 = vpack.c.bf16 %v7190_v24, %v11934_v20  ;;  %460 = vmatprep.mubr.f32.mxu1 %v6819_v55  ;;  %v11937_v21 = vld [vmem:[#allocation53_spill] sm:$0xff]  ;;  %v11938_v19 = vld [vmem:[#allocation51_spill] sm:$0xff]  ;;  %v4610_v55 = vpack.c.bf16 %v7220_v39, %v7212_v35  ;;  %v11942_v0 = vld [vmem:[#allocation62_spill] sm:$0xff] }
 0x102   : > { %v4570_v57 = vpack.c.bf16 %v11937_v21, %v11936_v17  ;;  %v11939_v23 = vld [vmem:[#allocation55_spill] sm:$0xff]  ;;  %v294_v59 = vld [vmem:[%s293_s25] sm:$0xff]  ;;  %6221 = vset.pattern.permute.xlu0 %v6820_v5  ;;  %v4578_v5 = vpack.c.bf16 %v7216_v37, %v7208_v33  ;;  %v11944_v6 = vld [vmem:[#allocation60_spill] sm:$0xff] }
 0x103   : > { %4567 = vmatpush1.bf16.msra.mxu0 %v4566_v2  ;;  %v4602_v58 = vpack.c.bf16 %v11939_v23, %v11938_v19  ;;  %297 = vperm.xlu0 %6221, %v294_v59   ;;  %v4606_v2 = vpack.c.bf16 %v7204_v31, %v7196_v27  ;;  %v4582_v59 = vpack.c.bf16 %v7232_v45, %v7224_v41  ;;  %v11946_v7 = vld [vmem:[#allocation61_spill] sm:$0xff]  ;;  %v7428_v26 = vld [vmem:[#allocation9 + $0x60] sm:$0xff] (%p286_p4)  ;;  %v7430_v27 = vld [vmem:[#allocation9 + $0x68] sm:$0xff] (%p286_p4) }
 0x104   : > { %4599 = vmatpush1.bf16.msra.mxu1 %v4598_v1  ;;  %4569 = vmatprep.subr.bf16.mxu0 %v4568_v3  ;;  %v4574_v1 = vpack.c.bf16 %v7200_v29, %v7192_v25  ;;  %v4576_v3 = vpack.c.bf16 %v7218_v38, %v7210_v34  ;;  %v7424_v24 = vld [vmem:[#allocation9 + $0x50] sm:$0xff] (%p286_p4)  ;;  %v7426_v25 = vld [vmem:[#allocation9 + $0x58] sm:$0xff] (%p286_p4)  ;;  %11968 = vst [vmem:[#allocation44_spill] sm:$0xff] (%p286_p4), %v7428_v26  ;;  %11969 = vst [vmem:[#allocation45_spill] sm:$0xff] (%p286_p4), %v7430_v27 }
 0x105   : > { %4601 = vmatprep.subr.bf16.mxu1 %v4600_v4  ;;  %v4608_v4 = vpack.c.bf16 %v7222_v40, %v7214_v36  ;;  %11966 = vst [vmem:[#allocation42_spill] sm:$0xff] (%p286_p4), %v7424_v24  ;;  %11967 = vst [vmem:[#allocation43_spill] sm:$0xff] (%p286_p4), %v7426_v25  ;;  %v7432_v28 = vld [vmem:[#allocation9 + $0x70] sm:$0xff] (%p286_p4)  ;;  %v7434_v29 = vld [vmem:[#allocation9 + $0x78] sm:$0xff] (%p286_p4) }
 0x106   :  { %11970 = vst [vmem:[#allocation46_spill] sm:$0xff] (%p286_p4), %v7432_v28  ;;  %11971 = vst [vmem:[#allocation47_spill] sm:$0xff] (%p286_p4), %v7434_v29  ;;  %v7436_v30 = vld [vmem:[#allocation9 + $0x80] sm:$0xff] (%p286_p4)  ;;  %v7438_v31 = vld [vmem:[#allocation9 + $0x88] sm:$0xff] (%p286_p4) }
 0x107   : > { %4571 = vmatpush1.bf16.msra.mxu0 %v4570_v57  ;;  %v4580_v57 = vpack.c.bf16 %v7234_v46, %v7226_v42  ;;  %11972 = vst [vmem:[#allocation48_spill] sm:$0xff] (%p286_p4), %v7436_v30  ;;  %11973 = vst [vmem:[#allocation49_spill] sm:$0xff] (%p286_p4), %v7438_v31  ;;  %v7440_v32 = vld [vmem:[#allocation9 + $0x90] sm:$0xff] (%p286_p4)  ;;  %v7442_v33 = vld [vmem:[#allocation9 + $0x98] sm:$0xff] (%p286_p4) }
 0x108   : > { %4603 = vmatpush1.bf16.msra.mxu1 %v4602_v58  ;;  %4573 = vmatprep.subr.bf16.mxu0 %v4572_v61  ;;  %v4612_v58 = vpack.c.bf16 %v7238_v48, %v7230_v44  ;;  %v4614_v61 = vpack.c.bf16 %v7236_v47, %v7228_v43  ;;  %11974 = vst [vmem:[#allocation50_spill] sm:$0xff] (%p286_p4), %v7440_v32  ;;  %11975 = vst [vmem:[#allocation51_spill] sm:$0xff] (%p286_p4), %v7442_v33  ;;  %v7444_v34 = vld [vmem:[#allocation9 + $0xa0] sm:$0xff] (%p286_p4)  ;;  %v7446_v35 = vld [vmem:[#allocation9 + $0xa8] sm:$0xff] (%p286_p4) }
 0x109   : > { %4605 = vmatprep.subr.bf16.mxu1 %v4604_v63  ;;  %v4584_v63 = vpack.c.bf16 %v7250_v54, %v7242_v50  ;;  %11976 = vst [vmem:[#allocation52_spill] sm:$0xff] (%p286_p4), %v7444_v34  ;;  %11977 = vst [vmem:[#allocation53_spill] sm:$0xff] (%p286_p4), %v7446_v35  ;;  %v7448_v36 = vld [vmem:[#allocation9 + $0xb0] sm:$0xff] (%p286_p4)  ;;  %v7450_v37 = vld [vmem:[#allocation9 + $0xb8] sm:$0xff] (%p286_p4) }
 0x10a   :  { %11978 = vst [vmem:[#allocation54_spill] sm:$0xff] (%p286_p4), %v7448_v36  ;;  %11979 = vst [vmem:[#allocation55_spill] sm:$0xff] (%p286_p4), %v7450_v37  ;;  %v7452_v38 = vld [vmem:[#allocation9 + $0xc0] sm:$0xff] (%p286_p4)  ;;  %v7454_v39 = vld [vmem:[#allocation9 + $0xc8] sm:$0xff] (%p286_p4) }
 0x10b   : > { %4575 = vmatpush1.bf16.msra.mxu0 %v4574_v1  ;;  %v4616_v1 = vpack.c.bf16 %v7254_v56, %v7246_v52  ;;  %v7456_v40 = vld [vmem:[#allocation9 + $0xd0] sm:$0xff] (%p286_p4)  ;;  %v7458_v41 = vld [vmem:[#allocation9 + $0xd8] sm:$0xff] (%p286_p4)  ;;  %v7460_v42 = vld [vmem:[#allocation9 + $0xe0] sm:$0xff] (%p286_p4) }
 0x10c   : > { %4607 = vmatpush1.bf16.msra.mxu1 %v4606_v2  ;;  %4577 = vmatprep.subr.bf16.mxu0 %v4576_v3  ;;  %v4586_v2 = vpack.c.bf16 %v7248_v53, %v7240_v49  ;;  %v11940_v3 = vld [vmem:[#allocation56_spill] sm:$0xff]  ;;  %11984 = vst [vmem:[#allocation60_spill] sm:$0xff] (%p286_p4), %v7460_v42  ;;  %v7464_v44 = vld [vmem:[#allocation9 + $0xf0] sm:$0xff] (%p286_p4)  ;;  %v7466_v45 = vld [vmem:[#allocation9 + $0xf8] sm:$0xff] (%p286_p4) }
 0x10d   : > { %4609 = vmatprep.subr.bf16.mxu1 %v4608_v4  ;;  %v4618_v4 = vpack.c.bf16 %v11940_v3, %v7244_v51  ;;  %11980 = vst [vmem:[#allocation56_spill] sm:$0xff] (%p286_p4), %v7452_v38  ;;  %v7462_v43 = vld [vmem:[#allocation9 + $0xe8] sm:$0xff] (%p286_p4)  ;;  %11986 = vst [vmem:[#allocation62_spill] sm:$0xff] (%p286_p4), %v7464_v44  ;;  %v7468_v46 = vld [vmem:[#allocation9 + $0x100] sm:$0xff] (%p286_p4) }
 0x10e   :  { %11985 = vst [vmem:[#allocation61_spill] sm:$0xff] (%p286_p4), %v7462_v43  ;;  %11988 = vst [vmem:[#allocation71_spill] sm:$0xff] (%p286_p4), %v7468_v46  ;;  %v7470_v47 = vld [vmem:[#allocation9 + $0x108] sm:$0xff] (%p286_p4)  ;;  %v7472_v48 = vld [vmem:[#allocation9 + $0x110] sm:$0xff] (%p286_p4) }
 0x10f   : > { %4579 = vmatpush1.bf16.msra.mxu0 %v4578_v5  ;;  %v11941_v5 = vld [vmem:[#allocation58_spill] sm:$0xff]  ;;  %11989 = vst [vmem:[#allocation72_spill] sm:$0xff] (%p286_p4), %v7470_v47  ;;  %11990 = vst [vmem:[#allocation73_spill] sm:$0xff] (%p286_p4), %v7472_v48  ;;  %v7476_v50 = vld [vmem:[#allocation9 + $0x120] sm:$0xff] (%p286_p4) }
 0x110   : > { %4611 = vmatpush1.bf16.msra.mxu1 %v4610_v55  ;;  %4581 = vmatprep.subr.bf16.mxu0 %v4580_v57  ;;  %v4588_v55 = vpack.c.bf16 %v7266_v62, %v11941_v5  ;;  %v4620_v57 = vpack.c.bf16 %v11942_v0, %v7262_v60  ;;  %11982 = vst [vmem:[#allocation58_spill] sm:$0xff] (%p286_p4), %v7456_v40  ;;  %v7474_v49 = vld [vmem:[#allocation9 + $0x118] sm:$0xff] (%p286_p4)  ;;  %11992 = vst [vmem:[#allocation75_spill] sm:$0xff] (%p286_p4), %v7476_v50  ;;  %v7478_v51 = vld [vmem:[#allocation9 + $0x128] sm:$0xff] (%p286_p4) }
 0x111   : > { %4613 = vmatprep.subr.bf16.mxu1 %v4612_v58  ;;  %v11943_v58 = vld [vmem:[#allocation57_spill] sm:$0xff]  ;;  %11991 = vst [vmem:[#allocation74_spill] sm:$0xff] (%p286_p4), %v7474_v49  ;;  %11993 = vst [vmem:[#allocation76_spill] sm:$0xff] (%p286_p4), %v7478_v51  ;;  %v7482_v53 = vld [vmem:[#allocation9 + $0x138] sm:$0xff] (%p286_p4) }
 0x112   :  { %11981 = vst [vmem:[#allocation57_spill] sm:$0xff] (%p286_p4), %v7454_v39  ;;  %v7480_v52 = vld [vmem:[#allocation9 + $0x130] sm:$0xff] (%p286_p4)  ;;  %11995 = vst [vmem:[#allocation78_spill] sm:$0xff] (%p286_p4), %v7482_v53  ;;  %v7484_v54 = vld [vmem:[#allocation9 + $0x140] sm:$0xff] (%p286_p4) }
 0x113   : > { %4583 = vmatpush1.bf16.msra.mxu0 %v4582_v59  ;;  %v4590_v59 = vpack.c.bf16 %v11944_v6, %v11943_v58  ;;  %11994 = vst [vmem:[#allocation77_spill] sm:$0xff] (%p286_p4), %v7480_v52  ;;  %11996 = vst [vmem:[#allocation79_spill] sm:$0xff] (%p286_p4), %v7484_v54  ;;  %v7486_v56 = vld [vmem:[#allocation9 + $0x148] sm:$0xff] (%p286_p4)  ;;  %v7488_v60 = vld [vmem:[#allocation9 + $0x150] sm:$0xff] (%p286_p4) }
 0x114   : > { %4615 = vmatpush1.bf16.msra.mxu1 %v4614_v61  ;;  %4585 = vmatprep.subr.bf16.mxu0 %v4584_v63  ;;  %v11945_v61 = vld [vmem:[#allocation59_spill] sm:$0xff]  ;;  %v11947_v63 = vld [vmem:[#allocation65_spill] sm:$0xff]  ;;  %11997 = vst [vmem:[#allocation80_spill] sm:$0xff] (%p286_p4), %v7486_v56  ;;  %11998 = vst [vmem:[#allocation81_spill] sm:$0xff] (%p286_p4), %v7488_v60 }
 0x115   : > { %4617 = vmatprep.subr.bf16.mxu1 %v4616_v1  ;;  %v4622_v8 = vpack.c.bf16 %v11946_v7, %v11945_v61  ;;  %v301_v1 = vlaneseq  ;;  %v11952_v7 = vld [vmem:[#allocation32_spill] sm:$0xff]  ;;  %v11953_v61 = vld [vmem:[#allocation63_spill] sm:$0xff]  ;;  %11983 = vst [vmem:[#allocation59_spill] sm:$0xff] (%p286_p4), %v7458_v41  ;;  %v7490_v62 = vld [vmem:[#allocation9 + $0x158] sm:$0xff] (%p286_p4) }
 0x116   :  { %11987 = vst [vmem:[#allocation63_spill] sm:$0xff] (%p286_p4), %v7466_v45  ;;  %11999 = vst [vmem:[#allocation82_spill] sm:$0xff] (%p286_p4), %v7490_v62  ;;  %v7566_v60 = vld [vmem:[#allocation11 + $0x88] sm:$0xff] (%p286_p4)  ;;  %v7570_v54 = vld [vmem:[#allocation11 + $0x98] sm:$0xff] (%p286_p4) }
 0x117   : > { %4587 = vmatpush1.bf16.msra.mxu0 %v4586_v2  ;;  %v7364_v3 = vshrl.u32 %v301_v1, 7  ;;  %v7574_v62 = vld [vmem:[#allocation11 + $0xa8] sm:$0xff] (%p286_p4)  ;;  %v7578_v56 = vld [vmem:[#allocation11 + $0xb8] sm:$0xff] (%p286_p4)  ;;  %v7580_v52 = vld [vmem:[#allocation11 + $0xc0] sm:$0xff] (%p286_p4) }
 0x118   : > { %4619 = vmatpush1.bf16.msra.mxu1 %v4618_v4  ;;  %4589 = vmatprep.subr.bf16.mxu0 %v4588_v55  ;;  %v7582_v48 = vld [vmem:[#allocation11 + $0xc8] sm:$0xff] (%p286_p4)  ;;  %v7584_v50 = vld [vmem:[#allocation11 + $0xd0] sm:$0xff] (%p286_p4)  ;;  %v7586_v46 = vld [vmem:[#allocation11 + $0xd8] sm:$0xff] (%p286_p4) }
 0x119   : > { %4621 = vmatprep.subr.bf16.mxu1 %v4620_v57  ;;  %11948 = vst [vmem:[#allocation66_spill] sm:$0xff] %v7364_v3  ;;  %v7367_v2 = vsub.s32 0, %v7364_v3  ;;  %v7370_v4 = vsub.s32 1, %v7364_v3  ;;  %v7373_v6 = vsub.s32 3, %v7364_v3  ;;  %v7386_v12 = vsub.s32 2, %v7364_v3  ;;  %v7522_v3 = vld [vmem:[#allocation9 + $0x1d8] sm:$0xff] (%p286_p4) }
 0x11a   :  { %12015 = vst [vmem:[#allocation98_spill] sm:$0xff] (%p286_p4), %v7522_v3  ;;  %v7544_v3 = vld [vmem:[#allocation11 + $0x30] sm:$0xff] (%p286_p4)  ;;  %v7588_v53 = vld [vmem:[#allocation11 + $0xe0] sm:$0xff] (%p286_p4)  ;;  %v7590_v49 = vld [vmem:[#allocation11 + $0xe8] sm:$0xff] (%p286_p4) }
 0x11b   : > { %4591 = vmatpush1.bf16.msra.mxu0 %v4590_v59  ;;  %11949 = vst [vmem:[#allocation67_spill] sm:$0xff] %v7367_v2  ;;  %11950 = vst [vmem:[#allocation68_spill] sm:$0xff] %v7370_v4  ;;  %v304_v5 = vrot.slane %v11952_v7, %v7367_v2  ;;  %v308_v55 = vrot.slane %v11952_v7, %v7370_v4  ;;  %v316_v57 = vrot.slane %v11952_v7, %v7373_v6  ;;  %v7592_v51 = vld [vmem:[#allocation11 + $0xf0] sm:$0xff] (%p286_p4)  ;;  %v7594_v47 = vld [vmem:[#allocation11 + $0xf8] sm:$0xff] (%p286_p4) }
 0x11c   : > { %4623 = vmatpush1.bf16.msra.mxu1 %v4622_v8  ;;  %11951 = vst [vmem:[#allocation69_spill] sm:$0xff] %v7373_v6  ;;  %v479_v9 = vrot.slane %v11953_v61, %v7370_v4  ;;  %11954 = vst [vmem:[#allocation70_spill] sm:$0xff] %v7386_v12  ;;  %v312_v19 = vrot.slane %v11952_v7, %v7386_v12  ;;  %v7492_v7 = vld [vmem:[#allocation9 + $0x160] sm:$0xff] (%p286_p4)  ;;  %v7528_v4 = vld [vmem:[#allocation9 + $0x1f0] sm:$0xff] (%p286_p4) }
 0x11d   :  { %12000 = vst [vmem:[#allocation83_spill] sm:$0xff] (%p286_p4), %v7492_v7  ;;  %12018 = vst [vmem:[#allocation101_spill] sm:$0xff] (%p286_p4), %v7528_v4  ;;  %v7550_v4 = vld [vmem:[#allocation11 + $0x48] sm:$0xff] (%p286_p4)  ;;  %v7568_v7 = vld [vmem:[#allocation11 + $0x90] sm:$0xff] (%p286_p4) }
 0x11e   : > { %390 = vmatmul.mubr.f32.vlgmr.msra.gmra.mrb[0].mxu0 %v11947_v63  ;;  %12022 = vst [vmem:[#allocation105_spill] sm:$0xff] (%p286_p4), %v7544_v3  ;;  %12025 = vst [vmem:[#allocation108_spill] sm:$0xff] (%p286_p4), %v7550_v4  ;;  %v7596_v44 = vld [vmem:[#allocation11 + $0x100] sm:$0xff] (%p286_p4)  ;;  %v7598_v40 = vld [vmem:[#allocation11 + $0x108] sm:$0xff] (%p286_p4) }
 0x11f   : > { %461 = vmatmul.mubr.f32.vlgmr.msra.gmra.mrb[0].mxu1 %v11947_v63  ;;  %v475_v63 = vrot.slane %v11953_v61, %v7367_v2  ;;  %v7530_v2 = vld [vmem:[#allocation9 + $0x1f8] sm:$0xff] (%p286_p4)  ;;  %12031 = vst [vmem:[#allocation114_spill] sm:$0xff] (%p286_p4), %v7568_v7  ;;  %v7600_v42 = vld [vmem:[#allocation11 + $0x110] sm:$0xff] (%p286_p4)  ;;  %v7604_v45 = vld [vmem:[#allocation11 + $0x120] sm:$0xff] (%p286_p4) }
 0x120   :  { %12019 = vst [vmem:[#allocation102_spill] sm:$0xff] (%p286_p4), %v7530_v2  ;;  %v7552_v2 = vld [vmem:[#allocation11 + $0x50] sm:$0xff] (%p286_p4)  ;;  %v7602_v38 = vld [vmem:[#allocation11 + $0x118] sm:$0xff] (%p286_p4)  ;;  %v7606_v41 = vld [vmem:[#allocation11 + $0x128] sm:$0xff] (%p286_p4) }
 0x121   :  { %12026 = vst [vmem:[#allocation109_spill] sm:$0xff] (%p286_p4), %v7552_v2  ;;  %v7608_v43 = vld [vmem:[#allocation11 + $0x130] sm:$0xff] (%p286_p4)  ;;  %v7610_v39 = vld [vmem:[#allocation11 + $0x138] sm:$0xff] (%p286_p4)  ;;  %v7612_v36 = vld [vmem:[#allocation11 + $0x140] sm:$0xff] (%p286_p4) }
 0x122   :  { %v7614_v32 = vld [vmem:[#allocation11 + $0x148] sm:$0xff] (%p286_p4)  ;;  %v7616_v34 = vld [vmem:[#allocation11 + $0x150] sm:$0xff] (%p286_p4)  ;;  %v7618_v30 = vld [vmem:[#allocation11 + $0x158] sm:$0xff] (%p286_p4) }
 0x123   :  { %v7620_v37 = vld [vmem:[#allocation11 + $0x160] sm:$0xff] (%p286_p4)  ;;  %v7622_v33 = vld [vmem:[#allocation11 + $0x168] sm:$0xff] (%p286_p4)  ;;  %v7624_v35 = vld [vmem:[#allocation11 + $0x170] sm:$0xff] (%p286_p4) }
 0x124   :  { %v7626_v31 = vld [vmem:[#allocation11 + $0x178] sm:$0xff] (%p286_p4)  ;;  %v7628_v28 = vld [vmem:[#allocation11 + $0x180] sm:$0xff] (%p286_p4)  ;;  %v7630_v24 = vld [vmem:[#allocation11 + $0x188] sm:$0xff] (%p286_p4) }
 0x125   :  { %v7632_v26 = vld [vmem:[#allocation11 + $0x190] sm:$0xff] (%p286_p4)  ;;  %v7636_v29 = vld [vmem:[#allocation11 + $0x1a0] sm:$0xff] (%p286_p4)  ;;  %v7638_v25 = vld [vmem:[#allocation11 + $0x1a8] sm:$0xff] (%p286_p4) }
 0x126   :  { %v7640_v27 = vld [vmem:[#allocation11 + $0x1b0] sm:$0xff] (%p286_p4) }
 0x127   :  { %12033 = vst [vmem:[#allocation116_spill] sm:$0xff] (%p286_p4), %v7640_v27  ;;  %v7663_v27 = vld [vmem:[%s11818_s6] sm:$0xf] (%p286_p4) }
 0x128   :  { %12042 = vst [vmem:[#allocation125_spill] sm:$0xff] (%p286_p4), %v7663_v27 }
 0x182   : > { %v298_v8 = vpop.permute.xlu0 %297 }
 0x183   : > { %v321_v58 = vmul.f32 %v304_v5, %v298_v8  ;;  %v322_v59 = vmul.f32 %v308_v55, %v298_v8  ;;  %v324_v10 = vmul.f32 %v316_v57, %v298_v8  ;;  %v487_v55 = vrot.slane %v11953_v61, %v7373_v6  ;;  %v7526_v6 = vld [vmem:[#allocation9 + $0x1e8] sm:$0xff] (%p286_p4) }
 0x184   :  { %12017 = vst [vmem:[#allocation100_spill] sm:$0xff] (%p286_p4), %v7526_v6  ;;  %v7548_v6 = vld [vmem:[#allocation11 + $0x40] sm:$0xff] (%p286_p4) }
 0x185   :  { %12024 = vst [vmem:[#allocation107_spill] sm:$0xff] (%p286_p4), %v7548_v6 }
 0x1f1   : > { %v391_v1 = vpop.f32.mrb[0].mxu0 }
 0x1f2   : > { %v462_v0 = vpop.f32.mrb[0].mxu1  ;;  %v467_v11 = vadd.f32 %v391_v1, %v321_v58  ;;  %v393_v13 = vpop.f32.mrb[1].mxu0  ;;  %v323_v1 = vmul.f32 %v312_v19, %v298_v8  ;;  %v11955_v8 = vld [vmem:[#allocation64_spill] sm:$0xff] }
 0x1f3   : > { %v464_v14 = vpop.f32.mrb[1].mxu1  ;;  %v468_v15 = vadd.f32 %v393_v13, %v322_v59 }
 0x1f4   : > { %v492_v16 = vadd.f32 %v475_v63, %v467_v11  ;;  %v470_v5 = vadd.f32 %v464_v14, %v324_v10  ;;  %v469_v23 = vadd.f32 %v462_v0, %v323_v1  ;;  %v7404_v63 = vld [vmem:[#allocation9] sm:$0xff] (%p286_p4)  ;;  %v7410_v1 = vld [vmem:[#allocation9 + $0x18] sm:$0xff] (%p286_p4) }
 0x1f5   : > { %v493_v17 = vadd.f32 %v479_v9, %v468_v15  ;;  %v483_v9 = vrot.slane %v11953_v61, %v7386_v12  ;;  %11956 = vst [vmem:[#allocation32_spill] sm:$0xff] (%p286_p4), %v7404_v63  ;;  %11959 = vst [vmem:[#allocation35_spill] sm:$0xff] (%p286_p4), %v7410_v1  ;;  %v7494_v61 = vld [vmem:[#allocation9 + $0x168] sm:$0xff] (%p286_p4)  ;;  %v7524_v12 = vld [vmem:[#allocation9 + $0x1e0] sm:$0xff] (%p286_p4) }
 0x1f6   : > { %v496_v18 = vsub.f32 0.0, %v492_v16  ;;  %v495_v58 = vadd.f32 %v487_v55, %v470_v5  ;;  %v7406_v5 = vld [vmem:[#allocation9 + $0x8] sm:$0xff] (%p286_p4)  ;;  %v7408_v55 = vld [vmem:[#allocation9 + $0x10] sm:$0xff] (%p286_p4)  ;;  %12001 = vst [vmem:[#allocation84_spill] sm:$0xff] (%p286_p4), %v7494_v61  ;;  %12016 = vst [vmem:[#allocation99_spill] sm:$0xff] (%p286_p4), %v7524_v12 }
 0x1f7   : > { %v502_v20 = vsub.f32 0.0, %v493_v17  ;;  %v494_v11 = vadd.f32 %v483_v9, %v469_v23  ;;  %11957 = vst [vmem:[#allocation33_spill] sm:$0xff] (%p286_p4), %v7406_v5  ;;  %11958 = vst [vmem:[#allocation34_spill] sm:$0xff] (%p286_p4), %v7408_v55  ;;  %v7412_v9 = vld [vmem:[#allocation9 + $0x20] sm:$0xff] (%p286_p4)  ;;  %v7546_v12 = vld [vmem:[#allocation11 + $0x38] sm:$0xff] (%p286_p4) }
 0x1f8   : > { %v497_v21 = vmul.f32 1.442695, %v496_v18  ;;  %v509_v22 = vsub.f32 0.0, %v495_v58  ;;  %11960 = vst [vmem:[#allocation36_spill] sm:$0xff] (%p286_p4), %v7412_v9  ;;  %12023 = vst [vmem:[#allocation106_spill] sm:$0xff] (%p286_p4), %v7546_v12  ;;  %v7576_v61 = vld [vmem:[#allocation11 + $0xb0] sm:$0xff] (%p286_p4) }
 0x1f9   : > { %v503_v57 = vmul.f32 1.442695, %v502_v20  ;;  %v7646_v55 = vld [vmem:[#allocation11 + $0x1c8] sm:$0xff] (%p286_p4)  ;;  %v7648_v9 = vld [vmem:[#allocation11 + $0x1d0] sm:$0xff] (%p286_p4)  ;;  %v7650_v63 = vld [vmem:[#allocation11 + $0x1d8] sm:$0xff] (%p286_p4) }
 0x1fa   : > { %6222 = vpow2.f32 %v497_v21  ;;  %v510_v10 = vmul.f32 1.442695, %v509_v22  ;;  %12036 = vst [vmem:[#allocation119_spill] sm:$0xff] (%p286_p4), %v7646_v55  ;;  %12037 = vst [vmem:[#allocation120_spill] sm:$0xff] (%p286_p4), %v7648_v9  ;;  %v7654_v1 = vld [vmem:[#allocation11 + $0x1e8] sm:$0xff] (%p286_p4)  ;;  %v7658_v5 = vld [vmem:[#allocation11 + $0x1f8] sm:$0xff] (%p286_p4) }
 0x1fb   : > { %6224 = vpow2.f32 %v503_v57  ;;  %12039 = vst [vmem:[#allocation122_spill] sm:$0xff] (%p286_p4), %v7654_v1  ;;  %12041 = vst [vmem:[#allocation124_spill] sm:$0xff] (%p286_p4), %v7658_v5  ;;  %v7667_v55 = vmov (%p286_p4), 0.0  }
 0x1fc   : > { %6226 = vpow2.f32 %v510_v10  ;;  %v7414_v10 = vld [vmem:[#allocation9 + $0x28] sm:$0xff] (%p286_p4) }
 0x1fd   : > { %6228 = vtanh.f32 %v494_v11  ;;  %11961 = vst [vmem:[#allocation37_spill] sm:$0xff] (%p286_p4), %v7414_v10  ;;  %v7416_v11 = vld [vmem:[#allocation9 + $0x30] sm:$0xff] (%p286_p4) }
 0x1fe   :  { %11962 = vst [vmem:[#allocation38_spill] sm:$0xff] (%p286_p4), %v7416_v11  ;;  %v7644_v11 = vld [vmem:[#allocation11 + $0x1c0] sm:$0xff] (%p286_p4)  ;;  %v7656_v10 = vld [vmem:[#allocation11 + $0x1f0] sm:$0xff] (%p286_p4) }
 0x1ff   :  { %12035 = vst [vmem:[#allocation118_spill] sm:$0xff] (%p286_p4), %v7644_v11  ;;  %12040 = vst [vmem:[#allocation123_spill] sm:$0xff] (%p286_p4), %v7656_v10  ;;  %v7665_v11 = vmov (%p286_p4), 0.0  }
 0x204   : > { %v6223_v13 = vpop.eup %6222 }
 0x205   : > { %v6225_v14 = vpop.eup %6224  ;;  %v499_v15 = vadd.f32 1.0, %v6223_v13  ;;  %v7418_v13 = vld [vmem:[#allocation9 + $0x38] sm:$0xff] (%p286_p4) }
 0x206   : > { %v505_v16 = vadd.f32 1.0, %v6225_v14  ;;  %v6227_v17 = vpop.eup %6226  ;;  %11963 = vst [vmem:[#allocation39_spill] sm:$0xff] (%p286_p4), %v7418_v13  ;;  %v7422_v14 = vld [vmem:[#allocation9 + $0x48] sm:$0xff] (%p286_p4)  ;;  %v7652_v13 = vld [vmem:[#allocation11 + $0x1e0] sm:$0xff] (%p286_p4) }
 0x207   : > { %6230 = vrcp.f32 %v499_v15  ;;  %v6229_v18 = vpop.eup %6228  ;;  %v512_v0 = vadd.f32 1.0, %v6227_v17  ;;  %11965 = vst [vmem:[#allocation41_spill] sm:$0xff] (%p286_p4), %v7422_v14  ;;  %v7498_v15 = vld [vmem:[#allocation9 + $0x178] sm:$0xff] (%p286_p4)  ;;  %v7502_v17 = vld [vmem:[#allocation9 + $0x188] sm:$0xff] (%p286_p4)  ;;  %12038 = vst [vmem:[#allocation121_spill] sm:$0xff] (%p286_p4), %v7652_v13 }
 0x208   : > { %6232 = vrcp.f32 %v505_v16  ;;  %12003 = vst [vmem:[#allocation86_spill] sm:$0xff] (%p286_p4), %v7498_v15  ;;  %v7500_v16 = vld [vmem:[#allocation9 + $0x180] sm:$0xff] (%p286_p4)  ;;  %12005 = vst [vmem:[#allocation88_spill] sm:$0xff] (%p286_p4), %v7502_v17  ;;  %v7562_v17 = vld [vmem:[#allocation11 + $0x78] sm:$0xff] (%p286_p4) }
 0x209   : > { %6234 = vrcp.f32 %v512_v0  ;;  %12004 = vst [vmem:[#allocation87_spill] sm:$0xff] (%p286_p4), %v7500_v16  ;;  %v7512_v0 = vld [vmem:[#allocation9 + $0x1b0] sm:$0xff] (%p286_p4)  ;;  %v7554_v16 = vld [vmem:[#allocation11 + $0x58] sm:$0xff] (%p286_p4)  ;;  %12030 = vst [vmem:[#allocation113_spill] sm:$0xff] (%p286_p4), %v7562_v17 }
 0x20a   :  { %12010 = vst [vmem:[#allocation93_spill] sm:$0xff] (%p286_p4), %v7512_v0  ;;  %v7534_v0 = vld [vmem:[#allocation11 + $0x8] sm:$0xff] (%p286_p4)  ;;  %12027 = vst [vmem:[#allocation110_spill] sm:$0xff] (%p286_p4), %v7554_v16  ;;  %v7572_v15 = vld [vmem:[#allocation11 + $0xa0] sm:$0xff] (%p286_p4) }
 0x20b   :  { %12021 = vst [vmem:[#allocation104_spill] sm:$0xff] (%p286_p4), %v7534_v0  ;;  %12032 = vst [vmem:[#allocation115_spill] sm:$0xff] (%p286_p4), %v7572_v15  ;;  %v7642_v14 = vld [vmem:[#allocation11 + $0x1b8] sm:$0xff] (%p286_p4) }
 0x20c   :  { %12034 = vst [vmem:[#allocation117_spill] sm:$0xff] (%p286_p4), %v7642_v14 }
 0x211   : > { %v6231_v19 = vpop.eup %6230 }
 0x212   : > { %v6233_v20 = vpop.eup %6232  ;;  %v516_v21 = vmul.f32 %v6231_v19, %v6229_v18  ;;  %v7504_v18 = vld [vmem:[#allocation9 + $0x190] sm:$0xff] (%p286_p4)  ;;  %v7506_v19 = vld [vmem:[#allocation9 + $0x198] sm:$0xff] (%p286_p4) }
 0x213   : > { %v515_v59 = vmul.f32 %v11955_v8, %v6233_v20  ;;  %v6235_v22 = vpop.eup %6234  ;;  %12006 = vst [vmem:[#allocation89_spill] sm:$0xff] (%p286_p4), %v7504_v18  ;;  %12007 = vst [vmem:[#allocation90_spill] sm:$0xff] (%p286_p4), %v7506_v19  ;;  %v7508_v20 = vld [vmem:[#allocation9 + $0x1a0] sm:$0xff] (%p286_p4)  ;;  %v7514_v8 = vld [vmem:[#allocation9 + $0x1b8] sm:$0xff] (%p286_p4) }
 0x214   :  { %12008 = vst [vmem:[#allocation91_spill] sm:$0xff] (%p286_p4), %v7508_v20  ;;  %12011 = vst [vmem:[#allocation94_spill] sm:$0xff] (%p286_p4), %v7514_v8  ;;  %v7532_v18 = vld [vmem:[#allocation11] sm:$0xff] (%p286_p4)  ;;  %v7536_v20 = vld [vmem:[#allocation11 + $0x10] sm:$0xff] (%p286_p4) }
 0x215   : > { %v517_v57 = vadd.f32 %v516_v21, %v515_v59   ;;  %v7510_v21 = vld [vmem:[#allocation9 + $0x1a8] sm:$0xff] (%p286_p4)  ;;  %v7516_v59 = vld [vmem:[#allocation9 + $0x1c0] sm:$0xff] (%p286_p4)  ;;  %12020 = vst [vmem:[#allocation103_spill] sm:$0xff] (%p286_p4), %v7532_v18 }
 0x216   :  { %12009 = vst [vmem:[#allocation92_spill] sm:$0xff] (%p286_p4), %v7510_v21  ;;  %12012 = vst [vmem:[#allocation95_spill] sm:$0xff] (%p286_p4), %v7516_v59  ;;  %v7538_v59 = vld [vmem:[#allocation11 + $0x18] sm:$0xff] (%p286_p4)  ;;  %v7556_v8 = vld [vmem:[#allocation11 + $0x60] sm:$0xff] (%p286_p4) }
 0x217   : > { %6236 = vtanh.f32 %v517_v57  ;;  %v7496_v57 = vld [vmem:[#allocation9 + $0x170] sm:$0xff] (%p286_p4)  ;;  %12028 = vst [vmem:[#allocation111_spill] sm:$0xff] (%p286_p4), %v7556_v8  ;;  %v7558_v19 = vld [vmem:[#allocation11 + $0x68] sm:$0xff] (%p286_p4) }
 0x218   :  { %12002 = vst [vmem:[#allocation85_spill] sm:$0xff] (%p286_p4), %v7496_v57  ;;  %12029 = vst [vmem:[#allocation112_spill] sm:$0xff] (%p286_p4), %v7558_v19  ;;  %v7560_v21 = vld [vmem:[#allocation11 + $0x70] sm:$0xff] (%p286_p4)  ;;  %v7564_v57 = vld [vmem:[#allocation11 + $0x80] sm:$0xff] (%p286_p4) }
 0x21e   :  { %288 = sbr.rel (!%p286_p4) target bundleno = 250 (0xfa), region = 201 }
 0x221   : > { %v6237_v23 = vpop.eup %6236 }
 0x222   : > { %v519_v58 = vmul.f32 %v6237_v23, %v6235_v22   ;;  %v7518_v22 = vld [vmem:[#allocation9 + $0x1c8] sm:$0xff] (%p286_p4)  ;;  %v7520_v23 = vld [vmem:[#allocation9 + $0x1d0] sm:$0xff] (%p286_p4) }
 0x223   :  { %12013 = vst [vmem:[#allocation96_spill] sm:$0xff] (%p286_p4), %v7518_v22  ;;  %12014 = vst [vmem:[#allocation97_spill] sm:$0xff] (%p286_p4), %v7520_v23  ;;  %v7540_v22 = vld [vmem:[#allocation11 + $0x20] sm:$0xff] (%p286_p4)  ;;  %v7542_v23 = vld [vmem:[#allocation11 + $0x28] sm:$0xff] (%p286_p4) }
 0x224   : > { %521 = vst [vmem:[%s520_s29] sm:$0xff] %v519_v58  ;;  %v7420_v58 = vld [vmem:[#allocation9 + $0x40] sm:$0xff] (%p286_p4) }
 0x225   :  { %11964 = vst [vmem:[#allocation40_spill] sm:$0xff] %v7420_v58  ;;  %v7634_v58 = vld [vmem:[#allocation11 + $0x198] sm:$0xff] }
 0x226 LB: > { %12043 = vst [vmem:[#allocation126_spill] sm:$0xff] %v6730_v11  ;;  %12044 = vst [vmem:[#allocation127_spill] sm:$0xff] %v6734_v55  ;;  %v12045_v0 = vld [vmem:[#allocation104_spill] sm:$0xff]  ;;  %v12046_v12 = vld [vmem:[#allocation106_spill] sm:$0xff]  ;;  %s4492_s6 = sshll.u32 %s6738_s23, 3  ;;  %s656_s23 = sadd.s32 1, %s6738_s23   ;;  %s6738_s23 = sphi %s7669_s23, %s656_s23   ;;  %v6734_v55 = vphi %v7667_v55, %v994_v55   ;;  %v6730_v11 = vphi %v7665_v11, %v992_v11  }
 0x227   : > { %v4624_v27 = vpack.c.bf16 %v7542_v23, %v12045_v0  ;;  %v4656_v10 = vpack.c.bf16 %v12046_v12, %v7538_v59  ;;  %v12047_v18 = vld [vmem:[#allocation103_spill] sm:$0xff]  ;;  %v12048_v3 = vld [vmem:[#allocation105_spill] sm:$0xff]  ;;  %v12049_v4 = vld [vmem:[#allocation108_spill] sm:$0xff]  ;;  %s660_s7 = scalar_lea.vmem [#allocation2], %s4492_s6  ;;  %s995_s21 = scalar_lea.vmem [#allocation3], %s4492_s6 }
 0x228   : > { %v4626_v9 = vpack.c.bf16 %v7540_v22, %v12047_v18  ;;  %v4658_v13 = vpack.c.bf16 %v12048_v3, %v7536_v20  ;;  %v12050_v19 = vld [vmem:[#allocation112_spill] sm:$0xff]  ;;  %v12051_v16 = vld [vmem:[#allocation110_spill] sm:$0xff]  ;;  %v12052_v17 = vld [vmem:[#allocation113_spill] sm:$0xff]  ;;  %v4632_v3 = vpack.c.bf16 %v7574_v62, %v7566_v60  ;;  %v11854_v18 = vmov 0.0   ;;  %p653_p5 = scmp.ge.s32.totalorder %s656_s23, 16  }
 0x229   : > { %v4628_v11 = vpack.c.bf16 %v12050_v19, %v12049_v4  ;;  %v4660_v55 = vpack.c.bf16 %v12052_v17, %v12051_v16  ;;  %4625 = vmatprep.subr.bf16.mxu0 %v4624_v27  ;;  %4657 = vmatprep.subr.bf16.mxu1 %v4656_v10  ;;  %v12053_v6 = vld [vmem:[#allocation107_spill] sm:$0xff]  ;;  %v12055_v2 = vld [vmem:[#allocation109_spill] sm:$0xff]  ;;  %v4664_v4 = vpack.c.bf16 %v7578_v56, %v7570_v54  ;;  %v12057_v7 = vld [vmem:[#allocation114_spill] sm:$0xff]  ;;  %s8616_s24 = smov (%p653_p5), 0  }
 0x22a   : > { %4627 = vmatpush1.bf16.msra.mxu0 %v4626_v9  ;;  %4659 = vmatpush1.bf16.msra.mxu1 %v4658_v13  ;;  %v12054_v8 = vld [vmem:[#allocation111_spill] sm:$0xff]  ;;  %v4662_v12 = vpack.c.bf16 %v7560_v21, %v12055_v2  ;;  %v4666_v10 = vpack.c.bf16 %v7576_v61, %v12057_v7  ;;  %v4638_v13 = vpack.c.bf16 %v7588_v53, %v7580_v52  ;;  %v12058_v14 = vld [vmem:[#allocation117_spill] sm:$0xff]  ;;  %v12061_v1 = vld [vmem:[#allocation122_spill] sm:$0xff] }
 0x22b   : > { %v4630_v0 = vpack.c.bf16 %v12054_v8, %v12053_v6  ;;  %4629 = vmatprep.subr.bf16.mxu0 %v4628_v11  ;;  %4661 = vmatprep.subr.bf16.mxu1 %v4660_v55  ;;  %v12056_v15 = vld [vmem:[#allocation115_spill] sm:$0xff]  ;;  %v4636_v55 = vpack.c.bf16 %v7590_v49, %v7582_v48  ;;  %v4668_v11 = vpack.c.bf16 %v7594_v47, %v7586_v46  ;;  %v12062_v5 = vld [vmem:[#allocation124_spill] sm:$0xff]  ;;  %v12064_v2 = vld [vmem:[#allocation121_spill] sm:$0xff] }
 0x22c   : > { %726 = vmatprep.mubr.f32.mxu0 %v11854_v18  ;;  %797 = vmatprep.mubr.f32.mxu1 %v11854_v18  ;;  %v4634_v9 = vpack.c.bf16 %v12056_v15, %v7564_v57  ;;  %v4642_v27 = vpack.c.bf16 %v7604_v45, %v7596_v44  ;;  %v12063_v18 = vld [vmem:[#allocation118_spill] sm:$0xff]  ;;  %v12066_v6 = vld [vmem:[#allocation123_spill] sm:$0xff]  ;;  %v7897_v44 = vld [vmem:[#allocation12 + $0xf8] sm:$0xff] (%p653_p5) }
 0x22d   : > { %v12067_v8 = vld [vmem:[#allocation33_spill] sm:$0xff]  ;;  %v7899_v45 = vld [vmem:[#allocation12 + $0x100] sm:$0xff] (%p653_p5)  ;;  %v7901_v46 = vld [vmem:[#allocation12 + $0x108] sm:$0xff] (%p653_p5) }
 0x22e   : > { %4631 = vmatpush1.bf16.msra.mxu0 %v4630_v0  ;;  %4663 = vmatpush1.bf16.msra.mxu1 %v4662_v12  ;;  %v4670_v12 = vpack.c.bf16 %v7592_v51, %v7584_v50  ;;  %v4674_v0 = vpack.c.bf16 %v7608_v43, %v7600_v42  ;;  %v7893_v42 = vld [vmem:[#allocation12 + $0xe8] sm:$0xff] (%p653_p5)  ;;  %v7895_v43 = vld [vmem:[#allocation12 + $0xf0] sm:$0xff] (%p653_p5)  ;;  %v7905_v48 = vld [vmem:[#allocation12 + $0x118] sm:$0xff] (%p653_p5) }
 0x22f   : > { %4633 = vmatprep.subr.bf16.mxu0 %v4632_v3  ;;  %4665 = vmatprep.subr.bf16.mxu1 %v4664_v4  ;;  %v4640_v3 = vpack.c.bf16 %v7606_v41, %v7598_v40  ;;  %v4672_v4 = vpack.c.bf16 %v7610_v39, %v7602_v38  ;;  %v7885_v38 = vld [vmem:[#allocation12 + $0xc8] sm:$0xff] (%p653_p5)  ;;  %v7887_v39 = vld [vmem:[#allocation12 + $0xd0] sm:$0xff] (%p653_p5)  ;;  %v7889_v40 = vld [vmem:[#allocation12 + $0xd8] sm:$0xff] (%p653_p5) }
 0x230   :  { %v7891_v41 = vld [vmem:[#allocation12 + $0xe0] sm:$0xff] (%p653_p5)  ;;  %v7903_v47 = vld [vmem:[#allocation12 + $0x110] sm:$0xff] (%p653_p5)  ;;  %v7909_v50 = vld [vmem:[#allocation12 + $0x128] sm:$0xff] (%p653_p5) }
 0x231   :  { %v7907_v49 = vld [vmem:[#allocation12 + $0x120] sm:$0xff] (%p653_p5)  ;;  %v7911_v51 = vld [vmem:[#allocation12 + $0x130] sm:$0xff] (%p653_p5)  ;;  %v7913_v52 = vld [vmem:[#allocation12 + $0x138] sm:$0xff] (%p653_p5) }
 0x232   : > { %4635 = vmatpush1.bf16.msra.mxu0 %v4634_v9  ;;  %4667 = vmatpush1.bf16.msra.mxu1 %v4666_v10  ;;  %v4644_v9 = vpack.c.bf16 %v7622_v33, %v7614_v32  ;;  %v4676_v10 = vpack.c.bf16 %v7626_v31, %v7618_v30  ;;  %v7869_v30 = vld [vmem:[#allocation12 + $0x88] sm:$0xff] (%p653_p5)  ;;  %v7871_v31 = vld [vmem:[#allocation12 + $0x90] sm:$0xff] (%p653_p5)  ;;  %v7873_v32 = vld [vmem:[#allocation12 + $0x98] sm:$0xff] (%p653_p5) }
 0x233   : > { %4637 = vmatprep.subr.bf16.mxu0 %v4636_v55  ;;  %4669 = vmatprep.subr.bf16.mxu1 %v4668_v11  ;;  %v4646_v55 = vpack.c.bf16 %v7620_v37, %v7612_v36  ;;  %v4678_v11 = vpack.c.bf16 %v7624_v35, %v7616_v34  ;;  %v7875_v33 = vld [vmem:[#allocation12 + $0xa0] sm:$0xff] (%p653_p5)  ;;  %v7877_v34 = vld [vmem:[#allocation12 + $0xa8] sm:$0xff] (%p653_p5)  ;;  %v7879_v35 = vld [vmem:[#allocation12 + $0xb0] sm:$0xff] (%p653_p5) }
 0x234   :  { %v7881_v36 = vld [vmem:[#allocation12 + $0xb8] sm:$0xff] (%p653_p5)  ;;  %v7883_v37 = vld [vmem:[#allocation12 + $0xc0] sm:$0xff] (%p653_p5)  ;;  %v7917_v54 = vld [vmem:[#allocation12 + $0x148] sm:$0xff] (%p653_p5) }
 0x235   :  { %v7915_v53 = vld [vmem:[#allocation12 + $0x140] sm:$0xff] (%p653_p5)  ;;  %v7919_v56 = vld [vmem:[#allocation12 + $0x150] sm:$0xff] (%p653_p5)  ;;  %v7921_v60 = vld [vmem:[#allocation12 + $0x158] sm:$0xff] (%p653_p5) }
 0x236   : > { %4639 = vmatpush1.bf16.msra.mxu0 %v4638_v13  ;;  %4671 = vmatpush1.bf16.msra.mxu1 %v4670_v12  ;;  %v4648_v13 = vpack.c.bf16 %v7638_v25, %v7630_v24  ;;  %v4680_v12 = vpack.c.bf16 %v12058_v14, %v7634_v58  ;;  %v12070_v14 = vld [vmem:[#allocation39_spill] sm:$0xff]  ;;  %v7857_v58 = vld [vmem:[#allocation12 + $0x58] sm:$0xff] (%p653_p5)  ;;  %v7861_v25 = vld [vmem:[#allocation12 + $0x68] sm:$0xff] (%p653_p5) }
 0x237   : > { %4641 = vmatprep.subr.bf16.mxu0 %v4640_v3  ;;  %4673 = vmatprep.subr.bf16.mxu1 %v4672_v4  ;;  %v4650_v3 = vpack.c.bf16 %v7636_v29, %v7628_v28  ;;  %v12059_v4 = vld [vmem:[#allocation116_spill] sm:$0xff]  ;;  %v7859_v24 = vld [vmem:[#allocation12 + $0x60] sm:$0xff] (%p653_p5)  ;;  %v7925_v61 = vld [vmem:[#allocation12 + $0x168] sm:$0xff] (%p653_p5) }
 0x238   :  { %v7865_v28 = vld [vmem:[#allocation12 + $0x78] sm:$0xff] (%p653_p5)  ;;  %v7867_v29 = vld [vmem:[#allocation12 + $0x80] sm:$0xff] (%p653_p5)  ;;  %v7927_v57 = vld [vmem:[#allocation12 + $0x170] sm:$0xff] (%p653_p5) }
 0x239   :  { %v7923_v62 = vld [vmem:[#allocation12 + $0x160] sm:$0xff] (%p653_p5)  ;;  %v7929_v20 = vld [vmem:[#allocation12 + $0x178] sm:$0xff] (%p653_p5)  ;;  %v7933_v59 = vld [vmem:[#allocation12 + $0x188] sm:$0xff] (%p653_p5) }
 0x23a   : > { %4643 = vmatpush1.bf16.msra.mxu0 %v4642_v27  ;;  %4675 = vmatpush1.bf16.msra.mxu1 %v4674_v0  ;;  %v4682_v27 = vpack.c.bf16 %v12059_v4, %v7632_v26  ;;  %v12060_v0 = vld [vmem:[#allocation119_spill] sm:$0xff]  ;;  %v7931_v21 = vld [vmem:[#allocation12 + $0x180] sm:$0xff] (%p653_p5)  ;;  %v7937_v23 = vld [vmem:[#allocation12 + $0x198] sm:$0xff] (%p653_p5) }
 0x23b   : > { %4645 = vmatprep.subr.bf16.mxu0 %v4644_v9  ;;  %4677 = vmatprep.subr.bf16.mxu1 %v4676_v10  ;;  %v4652_v9 = vpack.c.bf16 %v12061_v1, %v12060_v0  ;;  %v4684_v10 = vpack.c.bf16 %v12062_v5, %v7650_v63  ;;  %v12068_v4 = vld [vmem:[#allocation37_spill] sm:$0xff]  ;;  %v12071_v0 = vld [vmem:[#allocation32_spill] sm:$0xff]  ;;  %v12074_v5 = vld [vmem:[#allocation38_spill] sm:$0xff] }
 0x23c   : > { %v12072_v1 = vld [vmem:[#allocation36_spill] sm:$0xff]  ;;  %v7855_v63 = vld [vmem:[#allocation12 + $0x50] sm:$0xff] (%p653_p5) }
 0x23d   :  { %v7863_v26 = vld [vmem:[#allocation12 + $0x70] sm:$0xff] (%p653_p5) }
 0x23e   : > { %4647 = vmatpush1.bf16.msra.mxu0 %v4646_v55  ;;  %4679 = vmatpush1.bf16.msra.mxu1 %v4678_v11  ;;  %v4654_v55 = vpack.c.bf16 %v12064_v2, %v12063_v18  ;;  %v12065_v11 = vld [vmem:[#allocation120_spill] sm:$0xff]  ;;  %v12075_v2 = vld [vmem:[#allocation41_spill] sm:$0xff] }
 0x23f   : > { %4649 = vmatprep.subr.bf16.mxu0 %v4648_v13  ;;  %4681 = vmatprep.subr.bf16.mxu1 %v4680_v12  ;;  %v4686_v7 = vpack.c.bf16 %v12066_v6, %v12065_v11  ;;  %v4688_v13 = vpack.c.bf16 %v12068_v4, %v12067_v8  ;;  %v12069_v12 = vld [vmem:[#allocation35_spill] sm:$0xff]  ;;  %v12076_v6 = vld [vmem:[#allocation45_spill] sm:$0xff]  ;;  %v12079_v8 = vld [vmem:[#allocation127_spill] sm:$0xff] }
 0x240   : > { %v4720_v15 = vpack.c.bf16 %v12070_v14, %v12069_v12  ;;  %v4692_v18 = vpack.c.bf16 %v12076_v6, %v12075_v2  ;;  %v12080_v14 = vld [vmem:[#allocation40_spill] sm:$0xff]  ;;  %v12083_v4 = vld [vmem:[#allocation46_spill] sm:$0xff]  ;;  %v12088_v6 = vmov 0.0   ;;  %12152 = vst [vmem:[#allocation45_spill] sm:$0xff] (%p653_p5), %v7861_v25  ;;  %v7935_v22 = vld [vmem:[#allocation12 + $0x190] sm:$0xff] (%p653_p5) }
 0x241   :  { %12153 = vst [vmem:[#allocation46_spill] sm:$0xff] (%p653_p5), %v7863_v26  ;;  %v8035_v26 = vld [vmem:[#allocation12 + $0x320] sm:$0xff] (%p653_p5)  ;;  %v8055_v25 = vld [vmem:[#allocation12 + $0x370] sm:$0xff] (%p653_p5) }
 0x242   : > { %4651 = vmatpush1.bf16.msra.mxu0 %v4650_v3  ;;  %4683 = vmatpush1.bf16.msra.mxu1 %v4682_v27  ;;  %v4690_v3 = vpack.c.bf16 %v12072_v1, %v12071_v0  ;;  %v12073_v27 = vld [vmem:[#allocation34_spill] sm:$0xff]  ;;  %v12086_v0 = vld [vmem:[#allocation51_spill] sm:$0xff]  ;;  %12239 = vst [vmem:[#allocation141_spill] sm:$0xff] (%p653_p5), %v8035_v26  ;;  %12249 = vst [vmem:[#allocation151_spill] sm:$0xff] (%p653_p5), %v8055_v25 }
 0x243   : > { %4653 = vmatprep.subr.bf16.mxu0 %v4652_v9  ;;  %4685 = vmatprep.subr.bf16.mxu1 %v4684_v10  ;;  %v4722_v16 = vpack.c.bf16 %v12074_v5, %v12073_v27  ;;  %v12077_v9 = vld [vmem:[#allocation43_spill] sm:$0xff]  ;;  %12158 = vst [vmem:[#allocation51_spill] sm:$0xff] (%p653_p5), %v7873_v32  ;;  %v8057_v26 = vld [vmem:[#allocation12 + $0x378] sm:$0xff] (%p653_p5)  ;;  %v8077_v25 = vld [vmem:[#allocation12 + $0x3c8] sm:$0xff] (%p653_p5) }
 0x244   : > { %v12078_v10 = vld [vmem:[#allocation47_spill] sm:$0xff]  ;;  %12150 = vst [vmem:[#allocation43_spill] sm:$0xff] (%p653_p5), %v7857_v58  ;;  %12250 = vst [vmem:[#allocation152_spill] sm:$0xff] (%p653_p5), %v8057_v26  ;;  %v8079_v26 = vld [vmem:[#allocation12 + $0x3d0] sm:$0xff] (%p653_p5) }
 0x245   : > { %v4724_v11 = vpack.c.bf16 %v12078_v10, %v12077_v9  ;;  %v12087_v27 = vld [vmem:[#allocation55_spill] sm:$0xff]  ;;  %v12091_v10 = vld [vmem:[#allocation50_spill] sm:$0xff]  ;;  %12154 = vst [vmem:[#allocation47_spill] sm:$0xff] (%p653_p5), %v7865_v28  ;;  %12260 = vst [vmem:[#allocation162_spill] sm:$0xff] (%p653_p5), %v8077_v25 }
 0x246   : > { %4655 = vmatpush1.bf16.msra.mxu0 %v4654_v55  ;;  %4687 = vmatpush1.bf16.msra.mxu1 %v4686_v7  ;;  %v12081_v7 = vld [vmem:[#allocation44_spill] sm:$0xff]  ;;  %v12082_v55 = vld [vmem:[#allocation42_spill] sm:$0xff]  ;;  %v4728_v2 = vpack.c.bf16 %v12087_v27, %v12086_v0  ;;  %12157 = vst [vmem:[#allocation50_spill] sm:$0xff] (%p653_p5), %v7871_v31  ;;  %12162 = vst [vmem:[#allocation55_spill] sm:$0xff] (%p653_p5), %v7881_v36 }
 0x247   : > { %4689 = vmatprep.subr.bf16.mxu0 %v4688_v13  ;;  %4721 = vmatprep.subr.bf16.mxu1 %v4720_v15  ;;  %v4694_v1 = vpack.c.bf16 %v12081_v7, %v12080_v14  ;;  %v4726_v5 = vpack.c.bf16 %v12083_v4, %v12082_v55  ;;  %v12084_v15 = vld [vmem:[#allocation49_spill] sm:$0xff]  ;;  %v12095_v55 = vld [vmem:[#allocation59_spill] sm:$0xff]  ;;  %v12098_v0 = vld [vmem:[#allocation60_spill] sm:$0xff]  ;;  %12149 = vst [vmem:[#allocation42_spill] sm:$0xff] (%p653_p5), %v7855_v63 }
 0x248   : > { %v12085_v13 = vld [vmem:[#allocation53_spill] sm:$0xff]  ;;  %v12096_v4 = vld [vmem:[#allocation63_spill] sm:$0xff]  ;;  %v12100_v27 = vld [vmem:[#allocation62_spill] sm:$0xff]  ;;  %12151 = vst [vmem:[#allocation44_spill] sm:$0xff] (%p653_p5), %v7859_v24 }
 0x249   : > { %727 = vmatmul.mubr.f32.vlgmr.msra.gmra.mrb[0].mxu0 %v12079_v8  ;;  %798 = vmatmul.mubr.f32.vlgmr.msra.gmra.mrb[0].mxu1 %v12079_v8  ;;  %v4696_v12 = vpack.c.bf16 %v12085_v13, %v12084_v15  ;;  %v12092_v8 = vld [vmem:[#allocation54_spill] sm:$0xff]  ;;  %v4732_v15 = vpack.c.bf16 %v12096_v4, %v12095_v55  ;;  %v12097_v13 = vld [vmem:[#allocation56_spill] sm:$0xff]  ;;  %v12108_v55 = vld [vmem:[#allocation77_spill] sm:$0xff]  ;;  %12156 = vst [vmem:[#allocation49_spill] sm:$0xff] (%p653_p5), %v7869_v30 }
 0x24a   : > { %4691 = vmatpush1.bf16.msra.mxu0 %v4690_v3  ;;  %4723 = vmatpush1.bf16.msra.mxu1 %v4722_v16  ;;  %v12089_v16 = vld [vmem:[#allocation48_spill] sm:$0xff]  ;;  %v4730_v14 = vpack.c.bf16 %v12092_v8, %v12091_v10  ;;  %12160 = vst [vmem:[#allocation53_spill] sm:$0xff] (%p653_p5), %v7877_v34  ;;  %12161 = vst [vmem:[#allocation54_spill] sm:$0xff] (%p653_p5), %v7879_v35  ;;  %v8033_v34 = vld [vmem:[#allocation12 + $0x318] sm:$0xff] (%p653_p5) }
 0x24b   : > { %4693 = vmatprep.subr.bf16.mxu0 %v4692_v18  ;;  %4725 = vmatprep.subr.bf16.mxu1 %v4724_v11  ;;  %v12090_v3 = vld [vmem:[#allocation52_spill] sm:$0xff]  ;;  %v12093_v18 = vld [vmem:[#allocation57_spill] sm:$0xff]  ;;  %12155 = vst [vmem:[#allocation48_spill] sm:$0xff] (%p653_p5), %v7867_v29  ;;  %12163 = vst [vmem:[#allocation56_spill] sm:$0xff] (%p653_p5), %v7883_v37 }
 0x24c   : > { %868 = vmatprep.mubr.f32.mxu0 %v12088_v6  ;;  %939 = vmatprep.mubr.f32.mxu1 %v12088_v6  ;;  %v4698_v9 = vpack.c.bf16 %v12090_v3, %v12089_v16  ;;  %v12094_v11 = vld [vmem:[#allocation61_spill] sm:$0xff]  ;;  %v12101_v16 = vld [vmem:[#allocation72_spill] sm:$0xff]  ;;  %v12104_v10 = vld [vmem:[#allocation78_spill] sm:$0xff]  ;;  %12159 = vst [vmem:[#allocation52_spill] sm:$0xff] (%p653_p5), %v7875_v33 }
 0x24d   : > { %v4700_v7 = vpack.c.bf16 %v12094_v11, %v12093_v18  ;;  %v12102_v3 = vld [vmem:[#allocation76_spill] sm:$0xff]  ;;  %v12105_v18 = vld [vmem:[#allocation71_spill] sm:$0xff]  ;;  %12164 = vst [vmem:[#allocation57_spill] sm:$0xff] (%p653_p5), %v7885_v38  ;;  %12166 = vst [vmem:[#allocation59_spill] sm:$0xff] (%p653_p5), %v7889_v40 }
 0x24e   : > { %4695 = vmatpush1.bf16.msra.mxu0 %v4694_v1  ;;  %4727 = vmatpush1.bf16.msra.mxu1 %v4726_v5  ;;  %v4702_v1 = vpack.c.bf16 %v12098_v0, %v12097_v13  ;;  %v12099_v5 = vld [vmem:[#allocation58_spill] sm:$0xff]  ;;  %v12106_v11 = vld [vmem:[#allocation75_spill] sm:$0xff]  ;;  %12167 = vst [vmem:[#allocation60_spill] sm:$0xff] (%p653_p5), %v7891_v41  ;;  %12168 = vst [vmem:[#allocation61_spill] sm:$0xff] (%p653_p5), %v7893_v42 }
 0x24f   : > { %4697 = vmatprep.subr.bf16.mxu0 %v4696_v12  ;;  %4729 = vmatprep.subr.bf16.mxu1 %v4728_v2  ;;  %v4734_v6 = vpack.c.bf16 %v12100_v27, %v12099_v5  ;;  %v4704_v12 = vpack.c.bf16 %v12102_v3, %v12101_v16  ;;  %v12103_v2 = vld [vmem:[#allocation74_spill] sm:$0xff]  ;;  %v12109_v13 = vld [vmem:[#allocation80_spill] sm:$0xff]  ;;  %v12113_v16 = vld [vmem:[#allocation79_spill] sm:$0xff]  ;;  %12165 = vst [vmem:[#allocation58_spill] sm:$0xff] (%p653_p5), %v7887_v39 }
 0x250   : > { %v4736_v8 = vpack.c.bf16 %v12104_v10, %v12103_v2  ;;  %v12110_v0 = vld [vmem:[#allocation84_spill] sm:$0xff]  ;;  %v12112_v5 = vld [vmem:[#allocation86_spill] sm:$0xff]  ;;  %v12115_v3 = vld [vmem:[#allocation81_spill] sm:$0xff]  ;;  %12169 = vst [vmem:[#allocation62_spill] sm:$0xff] (%p653_p5), %v7895_v43 }
 0x251   : > { %v12116_v2 = vld [vmem:[#allocation85_spill] sm:$0xff]  ;;  %12170 = vst [vmem:[#allocation63_spill] sm:$0xff] (%p653_p5), %v7897_v44  ;;  %12171 = vst [vmem:[#allocation71_spill] sm:$0xff] (%p653_p5), %v7899_v45  ;;  %v8005_v35 = vld [vmem:[#allocation12 + $0x2a8] sm:$0xff] (%p653_p5) }
 0x252   : > { %4699 = vmatpush1.bf16.msra.mxu0 %v4698_v9  ;;  %4731 = vmatpush1.bf16.msra.mxu1 %v4730_v14  ;;  %v4706_v9 = vpack.c.bf16 %v12106_v11, %v12105_v18  ;;  %v12107_v14 = vld [vmem:[#allocation73_spill] sm:$0xff]  ;;  %v4742_v10 = vpack.c.bf16 %v12116_v2, %v12115_v3  ;;  %v12117_v18 = vld [vmem:[#allocation88_spill] sm:$0xff]  ;;  %v12119_v11 = vld [vmem:[#allocation90_spill] sm:$0xff]  ;;  %12172 = vst [vmem:[#allocation72_spill] sm:$0xff] (%p653_p5), %v7901_v46 }
 0x253   : > { %4701 = vmatprep.subr.bf16.mxu0 %v4700_v7  ;;  %4733 = vmatprep.subr.bf16.mxu1 %v4732_v15  ;;  %v4738_v4 = vpack.c.bf16 %v12108_v55, %v12107_v14  ;;  %v4708_v7 = vpack.c.bf16 %v12110_v0, %v12109_v13  ;;  %v12111_v15 = vld [vmem:[#allocation82_spill] sm:$0xff]  ;;  %v12121_v13 = vld [vmem:[#allocation87_spill] sm:$0xff]  ;;  %v12123_v0 = vld [vmem:[#allocation89_spill] sm:$0xff]  ;;  %12173 = vst [vmem:[#allocation73_spill] sm:$0xff] (%p653_p5), %v7903_v47 }
 0x254   : > { %v4740_v27 = vpack.c.bf16 %v12112_v5, %v12111_v15  ;;  %v12120_v14 = vld [vmem:[#allocation94_spill] sm:$0xff]  ;;  %v12124_v15 = vld [vmem:[#allocation93_spill] sm:$0xff]  ;;  %12174 = vst [vmem:[#allocation74_spill] sm:$0xff] (%p653_p5), %v7905_v48  ;;  %12175 = vst [vmem:[#allocation75_spill] sm:$0xff] (%p653_p5), %v7907_v49 }
 0x255   : > { %v4744_v55 = vpack.c.bf16 %v12120_v14, %v12119_v11  ;;  %v4746_v5 = vpack.c.bf16 %v12124_v15, %v12123_v0  ;;  %v12128_v3 = vld [vmem:[#allocation102_spill] sm:$0xff]  ;;  %v12132_v11 = vld [vmem:[#allocation101_spill] sm:$0xff]  ;;  %12176 = vst [vmem:[#allocation76_spill] sm:$0xff] (%p653_p5), %v7909_v50  ;;  %12177 = vst [vmem:[#allocation77_spill] sm:$0xff] (%p653_p5), %v7911_v51 }
 0x256   : > { %4703 = vmatpush1.bf16.msra.mxu0 %v4702_v1  ;;  %4735 = vmatpush1.bf16.msra.mxu1 %v4734_v6  ;;  %v12114_v1 = vld [vmem:[#allocation83_spill] sm:$0xff]  ;;  %12178 = vst [vmem:[#allocation78_spill] sm:$0xff] (%p653_p5), %v7913_v52  ;;  %12179 = vst [vmem:[#allocation79_spill] sm:$0xff] (%p653_p5), %v7915_v53  ;;  %v7973_v51 = vld [vmem:[#allocation12 + $0x228] sm:$0xff] (%p653_p5) }
 0x257   : > { %4705 = vmatprep.subr.bf16.mxu0 %v4704_v12  ;;  %4737 = vmatprep.subr.bf16.mxu1 %v4736_v8  ;;  %v4710_v6 = vpack.c.bf16 %v12114_v1, %v12113_v16  ;;  %v12118_v12 = vld [vmem:[#allocation92_spill] sm:$0xff]  ;;  %v12127_v1 = vld [vmem:[#allocation98_spill] sm:$0xff]  ;;  %12180 = vst [vmem:[#allocation80_spill] sm:$0xff] (%p653_p5), %v7917_v54  ;;  %12181 = vst [vmem:[#allocation81_spill] sm:$0xff] (%p653_p5), %v7919_v56 }
 0x258   : > { %v4712_v8 = vpack.c.bf16 %v12118_v12, %v12117_v18  ;;  %v12125_v16 = vld [vmem:[#allocation96_spill] sm:$0xff]  ;;  %v4748_v2 = vpack.c.bf16 %v12128_v3, %v12127_v1  ;;  %v12131_v12 = vld [vmem:[#allocation97_spill] sm:$0xff]  ;;  %12182 = vst [vmem:[#allocation82_spill] sm:$0xff] (%p653_p5), %v7921_v60  ;;  %12183 = vst [vmem:[#allocation83_spill] sm:$0xff] (%p653_p5), %v7923_v62 }
 0x259   : > { %v4750_v14 = vpack.c.bf16 %v12132_v11, %v12131_v12  ;;  %v12136_v3 = vld [vmem:[#allocation69_spill] sm:$0xff]  ;;  %12184 = vst [vmem:[#allocation84_spill] sm:$0xff] (%p653_p5), %v7925_v61  ;;  %12185 = vst [vmem:[#allocation85_spill] sm:$0xff] (%p653_p5), %v7927_v57  ;;  %v7975_v62 = vld [vmem:[#allocation12 + $0x230] sm:$0xff] (%p653_p5) }
 0x25a   : > { %4707 = vmatpush1.bf16.msra.mxu0 %v4706_v9  ;;  %4739 = vmatpush1.bf16.msra.mxu1 %v4738_v4  ;;  %v12122_v9 = vld [vmem:[#allocation91_spill] sm:$0xff]  ;;  %12186 = vst [vmem:[#allocation86_spill] sm:$0xff] (%p653_p5), %v7929_v20  ;;  %12187 = vst [vmem:[#allocation87_spill] sm:$0xff] (%p653_p5), %v7931_v21  ;;  %v7971_v57 = vld [vmem:[#allocation12 + $0x220] sm:$0xff] (%p653_p5) }
 0x25b   : > { %4709 = vmatprep.subr.bf16.mxu0 %v4708_v7  ;;  %4741 = vmatprep.subr.bf16.mxu1 %v4740_v27  ;;  %v4714_v4 = vpack.c.bf16 %v12122_v9, %v12121_v13  ;;  %v12126_v7 = vld [vmem:[#allocation100_spill] sm:$0xff]  ;;  %v12134_v13 = vld [vmem:[#allocation125_spill] sm:$0xff]  ;;  %12188 = vst [vmem:[#allocation88_spill] sm:$0xff] (%p653_p5), %v7933_v59  ;;  %12189 = vst [vmem:[#allocation89_spill] sm:$0xff] (%p653_p5), %v7935_v22 }
 0x25c   : > { %v4716_v27 = vpack.c.bf16 %v12126_v7, %v12125_v16  ;;  %12190 = vst [vmem:[#allocation90_spill] sm:$0xff] (%p653_p5), %v7937_v23  ;;  %12207 = vst [vmem:[#allocation107_spill] sm:$0xff] (%p653_p5), %v7971_v57  ;;  %v7985_v49 = vld [vmem:[#allocation12 + $0x258] sm:$0xff] (%p653_p5)  ;;  %v7987_v20 = vld [vmem:[#allocation12 + $0x260] sm:$0xff] (%p653_p5) }
 0x25d   :  { %12208 = vst [vmem:[#allocation108_spill] sm:$0xff] (%p653_p5), %v7973_v51  ;;  %12209 = vst [vmem:[#allocation109_spill] sm:$0xff] (%p653_p5), %v7975_v62  ;;  %v7989_v52 = vld [vmem:[#allocation12 + $0x268] sm:$0xff] (%p653_p5)  ;;  %v7991_v61 = vld [vmem:[#allocation12 + $0x270] sm:$0xff] (%p653_p5) }
 0x25e   : > { %4711 = vmatpush1.bf16.msra.mxu0 %v4710_v6  ;;  %4743 = vmatpush1.bf16.msra.mxu1 %v4742_v10  ;;  %v12129_v6 = vld [vmem:[#allocation95_spill] sm:$0xff]  ;;  %12214 = vst [vmem:[#allocation114_spill] sm:$0xff] (%p653_p5), %v7985_v49  ;;  %12215 = vst [vmem:[#allocation115_spill] sm:$0xff] (%p653_p5), %v7987_v20  ;;  %v7993_v57 = vld [vmem:[#allocation12 + $0x278] sm:$0xff] (%p653_p5) }
 0x25f   : > { %4713 = vmatprep.subr.bf16.mxu0 %v4712_v8  ;;  %4745 = vmatprep.subr.bf16.mxu1 %v4744_v55  ;;  %v12130_v10 = vld [vmem:[#allocation99_spill] sm:$0xff]  ;;  %12216 = vst [vmem:[#allocation116_spill] sm:$0xff] (%p653_p5), %v7989_v52  ;;  %12217 = vst [vmem:[#allocation117_spill] sm:$0xff] (%p653_p5), %v7991_v61  ;;  %v7995_v51 = vld [vmem:[#allocation12 + $0x280] sm:$0xff] (%p653_p5) }
 0x260   : > { %v4718_v18 = vpack.c.bf16 %v12130_v10, %v12129_v6  ;;  %v661_v8 = vld [vmem:[%s660_s7] sm:$0xff]  ;;  %12218 = vst [vmem:[#allocation118_spill] sm:$0xff] (%p653_p5), %v7993_v57  ;;  %12219 = vst [vmem:[#allocation119_spill] sm:$0xff] (%p653_p5), %v7995_v51  ;;  %v7997_v62 = vld [vmem:[#allocation12 + $0x288] sm:$0xff] (%p653_p5) }
 0x261   : > { %v12133_v55 = vld [vmem:[#allocation67_spill] sm:$0xff]  ;;  %12220 = vst [vmem:[#allocation120_spill] sm:$0xff] (%p653_p5), %v7997_v62  ;;  %v8001_v50 = vld [vmem:[#allocation12 + $0x298] sm:$0xff] (%p653_p5)  ;;  %v8003_v43 = vld [vmem:[#allocation12 + $0x2a0] sm:$0xff] (%p653_p5) }
 0x262   : > { %4715 = vmatpush1.bf16.msra.mxu0 %v4714_v4  ;;  %4747 = vmatpush1.bf16.msra.mxu1 %v4746_v5  ;;  %v950_v9 = vrot.slane %v12134_v13, %v12133_v55  ;;  %v12135_v4 = vld [vmem:[#allocation68_spill] sm:$0xff]  ;;  %12222 = vst [vmem:[#allocation122_spill] sm:$0xff] (%p653_p5), %v8001_v50  ;;  %12223 = vst [vmem:[#allocation123_spill] sm:$0xff] (%p653_p5), %v8003_v43  ;;  %v8007_v41 = vld [vmem:[#allocation12 + $0x2b0] sm:$0xff] (%p653_p5) }
 0x263   : > { %4717 = vmatprep.subr.bf16.mxu0 %v4716_v27  ;;  %4749 = vmatprep.subr.bf16.mxu1 %v4748_v2  ;;  %v954_v0 = vrot.slane %v12134_v13, %v12135_v4  ;;  %v962_v2 = vrot.slane %v12134_v13, %v12136_v3  ;;  %12224 = vst [vmem:[#allocation124_spill] sm:$0xff] (%p653_p5), %v8005_v35  ;;  %12225 = vst [vmem:[#allocation125_spill] sm:$0xff] (%p653_p5), %v8007_v41  ;;  %v8009_v20 = vld [vmem:[#allocation12 + $0x2b8] sm:$0xff] (%p653_p5)  ;;  %v8011_v52 = vld [vmem:[#allocation12 + $0x2c0] sm:$0xff] (%p653_p5) }
 0x264   :  { %12226 = vst [vmem:[#allocation128_spill] sm:$0xff] (%p653_p5), %v8009_v20  ;;  %12227 = vst [vmem:[#allocation129_spill] sm:$0xff] (%p653_p5), %v8011_v52  ;;  %v8013_v61 = vld [vmem:[#allocation12 + $0x2c8] sm:$0xff] (%p653_p5)  ;;  %v8015_v57 = vld [vmem:[#allocation12 + $0x2d0] sm:$0xff] (%p653_p5) }
 0x265   :  { %12228 = vst [vmem:[#allocation130_spill] sm:$0xff] (%p653_p5), %v8013_v61  ;;  %12229 = vst [vmem:[#allocation131_spill] sm:$0xff] (%p653_p5), %v8015_v57  ;;  %v8017_v33 = vld [vmem:[#allocation12 + $0x2d8] sm:$0xff] (%p653_p5)  ;;  %v8019_v44 = vld [vmem:[#allocation12 + $0x2e0] sm:$0xff] (%p653_p5) }
 0x266   : > { %4719 = vmatpush1.bf16.msra.mxu0 %v4718_v18  ;;  %4751 = vmatpush1.bf16.msra.mxu1 %v4750_v14  ;;  %12230 = vst [vmem:[#allocation132_spill] sm:$0xff] (%p653_p5), %v8017_v33  ;;  %12231 = vst [vmem:[#allocation133_spill] sm:$0xff] (%p653_p5), %v8019_v44  ;;  %v8021_v36 = vld [vmem:[#allocation12 + $0x2e8] sm:$0xff] (%p653_p5)  ;;  %v8023_v42 = vld [vmem:[#allocation12 + $0x2f0] sm:$0xff] (%p653_p5) }
 0x267   :  { %12232 = vst [vmem:[#allocation134_spill] sm:$0xff] (%p653_p5), %v8021_v36  ;;  %12233 = vst [vmem:[#allocation135_spill] sm:$0xff] (%p653_p5), %v8023_v42  ;;  %v8025_v43 = vld [vmem:[#allocation12 + $0x2f8] sm:$0xff] (%p653_p5)  ;;  %v8027_v35 = vld [vmem:[#allocation12 + $0x300] sm:$0xff] (%p653_p5) }
 0x268   :  { %12234 = vst [vmem:[#allocation136_spill] sm:$0xff] (%p653_p5), %v8025_v43  ;;  %12235 = vst [vmem:[#allocation137_spill] sm:$0xff] (%p653_p5), %v8027_v35  ;;  %v8029_v41 = vld [vmem:[#allocation12 + $0x308] sm:$0xff] (%p653_p5)  ;;  %v8031_v20 = vld [vmem:[#allocation12 + $0x310] sm:$0xff] (%p653_p5) }
 0x269   : > { %869 = vmatmul.mubr.f32.vlgmr.msra.gmra.mrb[0].mxu0 %v661_v8  ;;  %940 = vmatmul.mubr.f32.vlgmr.msra.gmra.mrb[0].mxu1 %v661_v8  ;;  %v12137_v8 = vld [vmem:[#allocation70_spill] sm:$0xff]  ;;  %12236 = vst [vmem:[#allocation138_spill] sm:$0xff] (%p653_p5), %v8029_v41  ;;  %12237 = vst [vmem:[#allocation139_spill] sm:$0xff] (%p653_p5), %v8031_v20  ;;  %v8039_v24 = vld [vmem:[#allocation12 + $0x330] sm:$0xff] (%p653_p5) }
 0x26a   : > { %v958_v55 = vrot.slane %v12134_v13, %v12137_v8  ;;  %v7843_v8 = vld [vmem:[#allocation12 + $0x20] sm:$0xff] (%p653_p5)  ;;  %12238 = vst [vmem:[#allocation140_spill] sm:$0xff] (%p653_p5), %v8033_v34  ;;  %12241 = vst [vmem:[#allocation143_spill] sm:$0xff] (%p653_p5), %v8039_v24  ;;  %v8041_v44 = vld [vmem:[#allocation12 + $0x338] sm:$0xff] (%p653_p5) }
 0x26b   :  { %12143 = vst [vmem:[#allocation36_spill] sm:$0xff] (%p653_p5), %v7843_v8  ;;  %v7939_v13 = vld [vmem:[#allocation12 + $0x1a0] sm:$0xff] (%p653_p5)  ;;  %12242 = vst [vmem:[#allocation144_spill] sm:$0xff] (%p653_p5), %v8041_v44  ;;  %v8045_v42 = vld [vmem:[#allocation12 + $0x348] sm:$0xff] (%p653_p5) }
 0x26c   :  { %12191 = vst [vmem:[#allocation91_spill] sm:$0xff] (%p653_p5), %v7939_v13  ;;  %v7963_v13 = vld [vmem:[#allocation12 + $0x200] sm:$0xff] (%p653_p5)  ;;  %12244 = vst [vmem:[#allocation146_spill] sm:$0xff] (%p653_p5), %v8045_v42  ;;  %v8047_v43 = vld [vmem:[#allocation12 + $0x350] sm:$0xff] (%p653_p5) }
 0x26d   :  { %12203 = vst [vmem:[#allocation103_spill] sm:$0xff] (%p653_p5), %v7963_v13  ;;  %v8043_v36 = vld [vmem:[#allocation12 + $0x340] sm:$0xff] (%p653_p5)  ;;  %12245 = vst [vmem:[#allocation147_spill] sm:$0xff] (%p653_p5), %v8047_v43  ;;  %v8049_v8 = vld [vmem:[#allocation12 + $0x358] sm:$0xff] (%p653_p5) }
 0x26e   :  { %12243 = vst [vmem:[#allocation145_spill] sm:$0xff] (%p653_p5), %v8043_v36  ;;  %12246 = vst [vmem:[#allocation148_spill] sm:$0xff] (%p653_p5), %v8049_v8  ;;  %v8051_v28 = vld [vmem:[#allocation12 + $0x360] sm:$0xff] (%p653_p5)  ;;  %v8061_v24 = vld [vmem:[#allocation12 + $0x388] sm:$0xff] (%p653_p5) }
 0x26f   :  { %12247 = vst [vmem:[#allocation149_spill] sm:$0xff] (%p653_p5), %v8051_v28  ;;  %12252 = vst [vmem:[#allocation154_spill] sm:$0xff] (%p653_p5), %v8061_v24  ;;  %v8063_v44 = vld [vmem:[#allocation12 + $0x390] sm:$0xff] (%p653_p5)  ;;  %v8067_v20 = vld [vmem:[#allocation12 + $0x3a0] sm:$0xff] (%p653_p5) }
 0x270   :  { %12253 = vst [vmem:[#allocation155_spill] sm:$0xff] (%p653_p5), %v8063_v44  ;;  %12255 = vst [vmem:[#allocation157_spill] sm:$0xff] (%p653_p5), %v8067_v20  ;;  %v8069_v43 = vld [vmem:[#allocation12 + $0x3a8] sm:$0xff] (%p653_p5)  ;;  %v8071_v36 = vld [vmem:[#allocation12 + $0x3b0] sm:$0xff] (%p653_p5) }
 0x271   :  { %12256 = vst [vmem:[#allocation158_spill] sm:$0xff] (%p653_p5), %v8069_v43  ;;  %12257 = vst [vmem:[#allocation159_spill] sm:$0xff] (%p653_p5), %v8071_v36  ;;  %v8073_v28 = vld [vmem:[#allocation12 + $0x3b8] sm:$0xff] (%p653_p5)  ;;  %v8083_v24 = vld [vmem:[#allocation12 + $0x3e0] sm:$0xff] (%p653_p5) }
 0x272   :  { %12258 = vst [vmem:[#allocation160_spill] sm:$0xff] (%p653_p5), %v8073_v28  ;;  %12261 = vst [vmem:[#allocation163_spill] sm:$0xff] (%p653_p5), %v8079_v26  ;;  %v8085_v44 = vld [vmem:[#allocation12 + $0x3e8] sm:$0xff] (%p653_p5)  ;;  %v8089_v20 = vld [vmem:[#allocation12 + $0x3f8] sm:$0xff] (%p653_p5) }
 0x273   :  { %12263 = vst [vmem:[#allocation165_spill] sm:$0xff] (%p653_p5), %v8083_v24  ;;  %12264 = vst [vmem:[#allocation166_spill] sm:$0xff] (%p653_p5), %v8085_v44  ;;  %v8091_v43 = vld [vmem:[#allocation14] sm:$0xff] (%p653_p5)  ;;  %v8093_v36 = vld [vmem:[#allocation14 + $0x8] sm:$0xff] (%p653_p5) }
 0x274   :  { %12266 = vst [vmem:[#allocation168_spill] sm:$0xff] (%p653_p5), %v8089_v20  ;;  %v8095_v28 = vld [vmem:[#allocation14 + $0x10] sm:$0xff] (%p653_p5)  ;;  %v8099_v25 = vld [vmem:[#allocation14 + $0x20] sm:$0xff] (%p653_p5)  ;;  %v8101_v26 = vld [vmem:[#allocation14 + $0x28] sm:$0xff] (%p653_p5) }
 0x275   :  { %12268 = vst [vmem:[#allocation170_spill] sm:$0xff] (%p653_p5), %v8099_v25  ;;  %12269 = vst [vmem:[#allocation171_spill] sm:$0xff] (%p653_p5), %v8101_v26  ;;  %v8105_v24 = vld [vmem:[#allocation14 + $0x38] sm:$0xff] (%p653_p5)  ;;  %v8107_v44 = vld [vmem:[#allocation14 + $0x40] sm:$0xff] (%p653_p5) }
 0x276   :  { %12271 = vst [vmem:[#allocation173_spill] sm:$0xff] (%p653_p5), %v8105_v24  ;;  %v8111_v20 = vld [vmem:[#allocation14 + $0x50] sm:$0xff] (%p653_p5)  ;;  %v8113_v35 = vld [vmem:[#allocation14 + $0x58] sm:$0xff] (%p653_p5)  ;;  %v8115_v8 = vld [vmem:[#allocation14 + $0x60] sm:$0xff] (%p653_p5) }
 0x277   :  { %12273 = vst [vmem:[#allocation175_spill] sm:$0xff] (%p653_p5), %v8111_v20  ;;  %12274 = vst [vmem:[#allocation176_spill] sm:$0xff] (%p653_p5), %v8115_v8  ;;  %v8117_v34 = vld [vmem:[#allocation14 + $0x68] sm:$0xff] (%p653_p5)  ;;  %v8119_v42 = vld [vmem:[#allocation14 + $0x70] sm:$0xff] (%p653_p5) }
 0x278   :  { %12275 = vst [vmem:[#allocation177_spill] sm:$0xff] (%p653_p5), %v8117_v34  ;;  %12276 = vst [vmem:[#allocation178_spill] sm:$0xff] (%p653_p5), %v8119_v42  ;;  %v8121_v41 = vld [vmem:[#allocation14 + $0x78] sm:$0xff] (%p653_p5)  ;;  %v8123_v57 = vld [vmem:[#allocation14 + $0x80] sm:$0xff] (%p653_p5) }
 0x279   :  { %12277 = vst [vmem:[#allocation179_spill] sm:$0xff] (%p653_p5), %v8121_v41  ;;  %v8127_v52 = vld [vmem:[#allocation14 + $0x90] sm:$0xff] (%p653_p5)  ;;  %v8129_v51 = vld [vmem:[#allocation14 + $0x98] sm:$0xff] (%p653_p5)  ;;  %v8131_v33 = vld [vmem:[#allocation14 + $0xa0] sm:$0xff] (%p653_p5) }
 0x27a   :  { %12279 = vst [vmem:[#allocation181_spill] sm:$0xff] (%p653_p5), %v8131_v33  ;;  %v8133_v50 = vld [vmem:[#allocation14 + $0xa8] sm:$0xff] (%p653_p5)  ;;  %v8135_v61 = vld [vmem:[#allocation14 + $0xb0] sm:$0xff] (%p653_p5)  ;;  %v8137_v62 = vld [vmem:[#allocation14 + $0xb8] sm:$0xff] (%p653_p5) }
 0x27b   :  { %12280 = vst [vmem:[#allocation182_spill] sm:$0xff] (%p653_p5), %v8133_v50  ;;  %12281 = vst [vmem:[#allocation183_spill] sm:$0xff] (%p653_p5), %v8135_v61  ;;  %v8145_v13 = vld [vmem:[#allocation14 + $0xd8] sm:$0xff] (%p653_p5)  ;;  %v8147_v49 = vld [vmem:[#allocation14 + $0xe0] sm:$0xff] (%p653_p5) }
 0x27c   :  { %12282 = vst [vmem:[#allocation184_spill] sm:$0xff] (%p653_p5), %v8137_v62  ;;  %12286 = vst [vmem:[#allocation188_spill] sm:$0xff] (%p653_p5), %v8145_v13  ;;  %v8157_v22 = vld [vmem:[#allocation14 + $0x108] sm:$0xff] (%p653_p5)  ;;  %v8161_v21 = vld [vmem:[#allocation14 + $0x118] sm:$0xff] (%p653_p5) }
 0x27d   :  { %12287 = vst [vmem:[#allocation189_spill] sm:$0xff] (%p653_p5), %v8147_v49  ;;  %v8165_v23 = vld [vmem:[#allocation14 + $0x128] sm:$0xff] (%p653_p5)  ;;  %v8169_v59 = vld [vmem:[#allocation14 + $0x138] sm:$0xff] (%p653_p5)  ;;  %v8171_v56 = vld [vmem:[#allocation14 + $0x140] sm:$0xff] (%p653_p5) }
 0x27e   :  { %12294 = vst [vmem:[#allocation196_spill] sm:$0xff] (%p653_p5), %v8165_v23  ;;  %12296 = vst [vmem:[#allocation198_spill] sm:$0xff] (%p653_p5), %v8169_v59  ;;  %v8173_v47 = vld [vmem:[#allocation14 + $0x148] sm:$0xff] (%p653_p5)  ;;  %v8175_v53 = vld [vmem:[#allocation14 + $0x150] sm:$0xff] (%p653_p5) }
 0x27f   :  { %v8177_v45 = vld [vmem:[#allocation14 + $0x158] sm:$0xff] (%p653_p5)  ;;  %v8179_v60 = vld [vmem:[#allocation14 + $0x160] sm:$0xff] (%p653_p5)  ;;  %v8181_v48 = vld [vmem:[#allocation14 + $0x168] sm:$0xff] (%p653_p5) }
 0x280   :  { %12297 = vst [vmem:[#allocation199_spill] sm:$0xff] (%p653_p5), %v8179_v60  ;;  %12298 = vst [vmem:[#allocation200_spill] sm:$0xff] (%p653_p5), %v8181_v48  ;;  %v8183_v54 = vld [vmem:[#allocation14 + $0x170] sm:$0xff] (%p653_p5)  ;;  %v8185_v46 = vld [vmem:[#allocation14 + $0x178] sm:$0xff] (%p653_p5) }
 0x281   :  { %12299 = vst [vmem:[#allocation201_spill] sm:$0xff] (%p653_p5), %v8183_v54  ;;  %12300 = vst [vmem:[#allocation202_spill] sm:$0xff] (%p653_p5), %v8185_v46  ;;  %v8187_v39 = vld [vmem:[#allocation14 + $0x180] sm:$0xff] (%p653_p5)  ;;  %v8189_v31 = vld [vmem:[#allocation14 + $0x188] sm:$0xff] (%p653_p5) }
 0x282   :  { %v8191_v37 = vld [vmem:[#allocation14 + $0x190] sm:$0xff] (%p653_p5)  ;;  %v8193_v29 = vld [vmem:[#allocation14 + $0x198] sm:$0xff] (%p653_p5)  ;;  %v8195_v40 = vld [vmem:[#allocation14 + $0x1a0] sm:$0xff] (%p653_p5) }
 0x283   :  { %12301 = vst [vmem:[#allocation203_spill] sm:$0xff] (%p653_p5), %v8195_v40  ;;  %v8197_v32 = vld [vmem:[#allocation14 + $0x1a8] sm:$0xff] (%p653_p5)  ;;  %v8199_v38 = vld [vmem:[#allocation14 + $0x1b0] sm:$0xff] (%p653_p5)  ;;  %v8201_v30 = vld [vmem:[#allocation14 + $0x1b8] sm:$0xff] (%p653_p5) }
 0x284   :  { %12302 = vst [vmem:[#allocation204_spill] sm:$0xff] (%p653_p5), %v8197_v32  ;;  %12303 = vst [vmem:[#allocation205_spill] sm:$0xff] (%p653_p5), %v8199_v38  ;;  %v8203_v63 = vld [vmem:[#allocation14 + $0x1c0] sm:$0xff] (%p653_p5)  ;;  %v8221_v38 = vld [vmem:[#allocation14 + $0x208] sm:$0xff] (%p653_p5) }
 0x285   :  { %12304 = vst [vmem:[#allocation206_spill] sm:$0xff] (%p653_p5), %v8201_v30  ;;  %v8211_v58 = vld [vmem:[#allocation14 + $0x1e0] sm:$0xff] (%p653_p5)  ;;  %v8223_v30 = vld [vmem:[#allocation14 + $0x210] sm:$0xff] (%p653_p5)  ;;  %v8225_v32 = vld [vmem:[#allocation14 + $0x218] sm:$0xff] (%p653_p5) }
 0x286   :  { %12307 = vst [vmem:[#allocation209_spill] sm:$0xff] (%p653_p5), %v8211_v58  ;;  %v8219_v40 = vld [vmem:[#allocation14 + $0x200] sm:$0xff] (%p653_p5)  ;;  %v8231_v60 = vld [vmem:[#allocation14 + $0x230] sm:$0xff] (%p653_p5)  ;;  %v8233_v58 = vld [vmem:[#allocation14 + $0x238] sm:$0xff] (%p653_p5) }
 0x287   :  { %v8227_v54 = vld [vmem:[#allocation14 + $0x220] sm:$0xff] (%p653_p5)  ;;  %12313 = vst [vmem:[#allocation215_spill] sm:$0xff] (%p653_p5), %v8231_v60  ;;  %12314 = vst [vmem:[#allocation216_spill] sm:$0xff] (%p653_p5), %v8233_v58  ;;  %v8245_v59 = vld [vmem:[#allocation14 + $0x268] sm:$0xff] (%p653_p5) }
 0x288   :  { %12311 = vst [vmem:[#allocation213_spill] sm:$0xff] (%p653_p5), %v8227_v54  ;;  %v8243_v46 = vld [vmem:[#allocation14 + $0x260] sm:$0xff] (%p653_p5)  ;;  %12320 = vst [vmem:[#allocation222_spill] sm:$0xff] (%p653_p5), %v8245_v59  ;;  %v8247_v48 = vld [vmem:[#allocation14 + $0x270] sm:$0xff] (%p653_p5) }
 0x289   :  { %12319 = vst [vmem:[#allocation221_spill] sm:$0xff] (%p653_p5), %v8243_v46  ;;  %12321 = vst [vmem:[#allocation223_spill] sm:$0xff] (%p653_p5), %v8247_v48  ;;  %v8249_v54 = vld [vmem:[#allocation14 + $0x278] sm:$0xff] (%p653_p5)  ;;  %v8253_v60 = vld [vmem:[#allocation14 + $0x288] sm:$0xff] (%p653_p5) }
 0x28a   :  { %12322 = vst [vmem:[#allocation224_spill] sm:$0xff] (%p653_p5), %v8249_v54  ;;  %v8255_v58 = vld [vmem:[#allocation14 + $0x290] sm:$0xff] (%p653_p5)  ;;  %v8257_v23 = vld [vmem:[#allocation14 + $0x298] sm:$0xff] (%p653_p5)  ;;  %v8261_v61 = vld [vmem:[#allocation14 + $0x2a8] sm:$0xff] (%p653_p5) }
 0x28b   :  { %12324 = vst [vmem:[#allocation226_spill] sm:$0xff] (%p653_p5), %v8261_v61  ;;  %v8263_v49 = vld [vmem:[#allocation14 + $0x2b0] sm:$0xff] (%p653_p5)  ;;  %v8265_v46 = vld [vmem:[#allocation14 + $0x2b8] sm:$0xff] (%p653_p5)  ;;  %v8267_v59 = vld [vmem:[#allocation14 + $0x2c0] sm:$0xff] (%p653_p5) }
 0x28c   :  { %12325 = vst [vmem:[#allocation227_spill] sm:$0xff] (%p653_p5), %v8263_v49  ;;  %12326 = vst [vmem:[#allocation228_spill] sm:$0xff] (%p653_p5), %v8265_v46  ;;  %v8269_v48 = vld [vmem:[#allocation14 + $0x2c8] sm:$0xff] (%p653_p5)  ;;  %v8271_v54 = vld [vmem:[#allocation14 + $0x2d0] sm:$0xff] (%p653_p5) }
 0x28d   :  { %v8273_v33 = vld [vmem:[#allocation14 + $0x2d8] sm:$0xff] (%p653_p5)  ;;  %v8277_v62 = vld [vmem:[#allocation14 + $0x2e8] sm:$0xff] (%p653_p5)  ;;  %v8283_v61 = vld [vmem:[#allocation14 + $0x300] sm:$0xff] (%p653_p5) }
 0x28e   :  { %12328 = vst [vmem:[#allocation230_spill] sm:$0xff] (%p653_p5), %v8277_v62  ;;  %v8285_v49 = vld [vmem:[#allocation14 + $0x308] sm:$0xff] (%p653_p5)  ;;  %v8287_v46 = vld [vmem:[#allocation14 + $0x310] sm:$0xff] (%p653_p5)  ;;  %v8289_v50 = vld [vmem:[#allocation14 + $0x318] sm:$0xff] (%p653_p5) }
 0x28f   :  { %12331 = vst [vmem:[#allocation233_spill] sm:$0xff] (%p653_p5), %v8287_v46  ;;  %v8291_v42 = vld [vmem:[#allocation14 + $0x320] sm:$0xff] (%p653_p5)  ;;  %v8295_v8 = vld [vmem:[#allocation14 + $0x330] sm:$0xff] (%p653_p5)  ;;  %v8305_v25 = vld [vmem:[#allocation14 + $0x358] sm:$0xff] (%p653_p5) }
 0x290   :  { %12332 = vst [vmem:[#allocation234_spill] sm:$0xff] (%p653_p5), %v8291_v42  ;;  %12334 = vst [vmem:[#allocation236_spill] sm:$0xff] (%p653_p5), %v8295_v8  ;;  %v8299_v62 = vld [vmem:[#allocation14 + $0x340] sm:$0xff] (%p653_p5)  ;;  %v8309_v24 = vld [vmem:[#allocation14 + $0x368] sm:$0xff] (%p653_p5) }
 0x291   :  { %12336 = vst [vmem:[#allocation238_spill] sm:$0xff] (%p653_p5), %v8299_v62  ;;  %v8307_v41 = vld [vmem:[#allocation14 + $0x360] sm:$0xff] (%p653_p5)  ;;  %12340 = vst [vmem:[#allocation242_spill] sm:$0xff] (%p653_p5), %v8309_v24  ;;  %v8311_v34 = vld [vmem:[#allocation14 + $0x370] sm:$0xff] (%p653_p5) }
 0x292   :  { %12339 = vst [vmem:[#allocation241_spill] sm:$0xff] (%p653_p5), %v8307_v41  ;;  %12341 = vst [vmem:[#allocation243_spill] sm:$0xff] (%p653_p5), %v8311_v34  ;;  %v8313_v42 = vld [vmem:[#allocation14 + $0x378] sm:$0xff] (%p653_p5)  ;;  %v8317_v8 = vld [vmem:[#allocation14 + $0x388] sm:$0xff] (%p653_p5) }
 0x293   :  { %12342 = vst [vmem:[#allocation244_spill] sm:$0xff] (%p653_p5), %v8313_v42  ;;  %12344 = vst [vmem:[#allocation246_spill] sm:$0xff] (%p653_p5), %v8317_v8  ;;  %v8321_v26 = vld [vmem:[#allocation14 + $0x398] sm:$0xff] (%p653_p5)  ;;  %v8323_v46 = vld [vmem:[#allocation14 + $0x3a0] sm:$0xff] (%p653_p5) }
 0x294   :  { %12346 = vst [vmem:[#allocation248_spill] sm:$0xff] (%p653_p5), %v8321_v26  ;;  %12347 = vst [vmem:[#allocation249_spill] sm:$0xff] (%p653_p5), %v8323_v46  ;;  %v8327_v62 = vld [vmem:[#allocation14 + $0x3b0] sm:$0xff] (%p653_p5)  ;;  %v8329_v41 = vld [vmem:[#allocation14 + $0x3b8] sm:$0xff] (%p653_p5) }
 0x295   :  { %12349 = vst [vmem:[#allocation251_spill] sm:$0xff] (%p653_p5), %v8327_v62  ;;  %12350 = vst [vmem:[#allocation252_spill] sm:$0xff] (%p653_p5), %v8329_v41  ;;  %v8331_v24 = vld [vmem:[#allocation14 + $0x3c0] sm:$0xff] (%p653_p5)  ;;  %v8333_v34 = vld [vmem:[#allocation14 + $0x3c8] sm:$0xff] (%p653_p5) }
 0x296   :  { %12351 = vst [vmem:[#allocation253_spill] sm:$0xff] (%p653_p5), %v8331_v24  ;;  %12352 = vst [vmem:[#allocation254_spill] sm:$0xff] (%p653_p5), %v8333_v34  ;;  %v8335_v42 = vld [vmem:[#allocation14 + $0x3d0] sm:$0xff] (%p653_p5)  ;;  %v8339_v8 = vld [vmem:[#allocation14 + $0x3e0] sm:$0xff] (%p653_p5) }
 0x297   :  { %12353 = vst [vmem:[#allocation255_spill] sm:$0xff] (%p653_p5), %v8335_v42  ;;  %12355 = vst [vmem:[#allocation257_spill] sm:$0xff] (%p653_p5), %v8339_v8  ;;  %v8343_v26 = vld [vmem:[#allocation14 + $0x3f0] sm:$0xff] (%p653_p5)  ;;  %v8345_v46 = vld [vmem:[#allocation14 + $0x3f8] sm:$0xff] (%p653_p5) }
 0x298   :  { %12357 = vst [vmem:[#allocation259_spill] sm:$0xff] (%p653_p5), %v8343_v26  ;;  %12358 = vst [vmem:[#allocation260_spill] sm:$0xff] (%p653_p5), %v8345_v46  ;;  %v8349_v62 = vld [vmem:[#allocation14 + $0x408] sm:$0xff] (%p653_p5)  ;;  %v8351_v41 = vld [vmem:[#allocation14 + $0x410] sm:$0xff] (%p653_p5) }
 0x299   :  { %12360 = vst [vmem:[#allocation262_spill] sm:$0xff] (%p653_p5), %v8349_v62  ;;  %12361 = vst [vmem:[#allocation263_spill] sm:$0xff] (%p653_p5), %v8351_v41  ;;  %v8353_v24 = vld [vmem:[#allocation14 + $0x418] sm:$0xff] (%p653_p5)  ;;  %v8355_v34 = vld [vmem:[#allocation14 + $0x420] sm:$0xff] (%p653_p5) }
 0x29a   :  { %12362 = vst [vmem:[#allocation264_spill] sm:$0xff] (%p653_p5), %v8353_v24  ;;  %12363 = vst [vmem:[#allocation265_spill] sm:$0xff] (%p653_p5), %v8355_v34  ;;  %v8357_v42 = vld [vmem:[#allocation14 + $0x428] sm:$0xff] (%p653_p5)  ;;  %v8361_v8 = vld [vmem:[#allocation14 + $0x438] sm:$0xff] (%p653_p5) }
 0x29b   :  { %12364 = vst [vmem:[#allocation266_spill] sm:$0xff] (%p653_p5), %v8357_v42  ;;  %12366 = vst [vmem:[#allocation268_spill] sm:$0xff] (%p653_p5), %v8361_v8  ;;  %v8365_v26 = vld [vmem:[#allocation14 + $0x448] sm:$0xff] (%p653_p5)  ;;  %v8367_v46 = vld [vmem:[#allocation14 + $0x450] sm:$0xff] (%p653_p5) }
 0x29c   :  { %12368 = vst [vmem:[#allocation270_spill] sm:$0xff] (%p653_p5), %v8365_v26  ;;  %12369 = vst [vmem:[#allocation271_spill] sm:$0xff] (%p653_p5), %v8367_v46  ;;  %v8371_v62 = vld [vmem:[#allocation14 + $0x460] sm:$0xff] (%p653_p5)  ;;  %v8373_v41 = vld [vmem:[#allocation14 + $0x468] sm:$0xff] (%p653_p5) }
 0x29d   :  { %12371 = vst [vmem:[#allocation273_spill] sm:$0xff] (%p653_p5), %v8371_v62  ;;  %12372 = vst [vmem:[#allocation274_spill] sm:$0xff] (%p653_p5), %v8373_v41  ;;  %v8375_v24 = vld [vmem:[#allocation14 + $0x470] sm:$0xff] (%p653_p5)  ;;  %v8377_v34 = vld [vmem:[#allocation14 + $0x478] sm:$0xff] (%p653_p5) }
 0x29e   :  { %12373 = vst [vmem:[#allocation275_spill] sm:$0xff] (%p653_p5), %v8375_v24  ;;  %12374 = vst [vmem:[#allocation276_spill] sm:$0xff] (%p653_p5), %v8377_v34  ;;  %v8379_v42 = vld [vmem:[#allocation14 + $0x480] sm:$0xff] (%p653_p5)  ;;  %v8383_v8 = vld [vmem:[#allocation14 + $0x490] sm:$0xff] (%p653_p5) }
 0x29f   :  { %12375 = vst [vmem:[#allocation277_spill] sm:$0xff] (%p653_p5), %v8379_v42  ;;  %12377 = vst [vmem:[#allocation279_spill] sm:$0xff] (%p653_p5), %v8383_v8  ;;  %v8387_v26 = vld [vmem:[#allocation14 + $0x4a0] sm:$0xff] (%p653_p5)  ;;  %v8389_v46 = vld [vmem:[#allocation14 + $0x4a8] sm:$0xff] (%p653_p5) }
 0x2a0   :  { %12379 = vst [vmem:[#allocation281_spill] sm:$0xff] (%p653_p5), %v8387_v26  ;;  %12380 = vst [vmem:[#allocation282_spill] sm:$0xff] (%p653_p5), %v8389_v46  ;;  %v8393_v62 = vld [vmem:[#allocation14 + $0x4b8] sm:$0xff] (%p653_p5)  ;;  %v8395_v41 = vld [vmem:[#allocation14 + $0x4c0] sm:$0xff] (%p653_p5) }
 0x2a1   :  { %12382 = vst [vmem:[#allocation284_spill] sm:$0xff] (%p653_p5), %v8393_v62  ;;  %12383 = vst [vmem:[#allocation285_spill] sm:$0xff] (%p653_p5), %v8395_v41  ;;  %v8397_v24 = vld [vmem:[#allocation14 + $0x4c8] sm:$0xff] (%p653_p5)  ;;  %v8399_v34 = vld [vmem:[#allocation14 + $0x4d0] sm:$0xff] (%p653_p5) }
 0x2a2   :  { %12384 = vst [vmem:[#allocation286_spill] sm:$0xff] (%p653_p5), %v8397_v24  ;;  %12385 = vst [vmem:[#allocation287_spill] sm:$0xff] (%p653_p5), %v8399_v34  ;;  %v8401_v42 = vld [vmem:[#allocation14 + $0x4d8] sm:$0xff] (%p653_p5)  ;;  %v8405_v8 = vld [vmem:[#allocation14 + $0x4e8] sm:$0xff] (%p653_p5) }
 0x2a3   :  { %12386 = vst [vmem:[#allocation288_spill] sm:$0xff] (%p653_p5), %v8401_v42  ;;  %12388 = vst [vmem:[#allocation290_spill] sm:$0xff] (%p653_p5), %v8405_v8  ;;  %v8409_v26 = vld [vmem:[#allocation14 + $0x4f8] sm:$0xff] (%p653_p5)  ;;  %v8411_v46 = vld [vmem:[#allocation14 + $0x500] sm:$0xff] (%p653_p5) }
 0x2a4   :  { %12390 = vst [vmem:[#allocation292_spill] sm:$0xff] (%p653_p5), %v8409_v26  ;;  %12391 = vst [vmem:[#allocation293_spill] sm:$0xff] (%p653_p5), %v8411_v46  ;;  %v8415_v62 = vld [vmem:[#allocation14 + $0x510] sm:$0xff] (%p653_p5)  ;;  %v8417_v41 = vld [vmem:[#allocation14 + $0x518] sm:$0xff] (%p653_p5) }
 0x2a5   :  { %12393 = vst [vmem:[#allocation295_spill] sm:$0xff] (%p653_p5), %v8415_v62  ;;  %12394 = vst [vmem:[#allocation296_spill] sm:$0xff] (%p653_p5), %v8417_v41  ;;  %v8419_v24 = vld [vmem:[#allocation14 + $0x520] sm:$0xff] (%p653_p5)  ;;  %v8421_v34 = vld [vmem:[#allocation14 + $0x528] sm:$0xff] (%p653_p5) }
 0x2a6   :  { %12395 = vst [vmem:[#allocation297_spill] sm:$0xff] (%p653_p5), %v8419_v24  ;;  %12396 = vst [vmem:[#allocation298_spill] sm:$0xff] (%p653_p5), %v8421_v34  ;;  %v8423_v42 = vld [vmem:[#allocation14 + $0x530] sm:$0xff] (%p653_p5)  ;;  %v8427_v8 = vld [vmem:[#allocation14 + $0x540] sm:$0xff] (%p653_p5) }
 0x2a7   :  { %12397 = vst [vmem:[#allocation299_spill] sm:$0xff] (%p653_p5), %v8423_v42  ;;  %12399 = vst [vmem:[#allocation301_spill] sm:$0xff] (%p653_p5), %v8427_v8  ;;  %v8431_v26 = vld [vmem:[#allocation14 + $0x550] sm:$0xff] (%p653_p5)  ;;  %v8433_v46 = vld [vmem:[#allocation14 + $0x558] sm:$0xff] (%p653_p5) }
 0x2a8   :  { %12401 = vst [vmem:[#allocation303_spill] sm:$0xff] (%p653_p5), %v8431_v26  ;;  %12402 = vst [vmem:[#allocation304_spill] sm:$0xff] (%p653_p5), %v8433_v46  ;;  %v8437_v62 = vld [vmem:[#allocation14 + $0x568] sm:$0xff] (%p653_p5)  ;;  %v8439_v41 = vld [vmem:[#allocation14 + $0x570] sm:$0xff] (%p653_p5) }
 0x2a9   :  { %12404 = vst [vmem:[#allocation306_spill] sm:$0xff] (%p653_p5), %v8437_v62  ;;  %12405 = vst [vmem:[#allocation307_spill] sm:$0xff] (%p653_p5), %v8439_v41  ;;  %v8441_v24 = vld [vmem:[#allocation14 + $0x578] sm:$0xff] (%p653_p5)  ;;  %v8443_v34 = vld [vmem:[#allocation14 + $0x580] sm:$0xff] (%p653_p5) }
 0x2aa   :  { %12406 = vst [vmem:[#allocation308_spill] sm:$0xff] (%p653_p5), %v8441_v24  ;;  %12407 = vst [vmem:[#allocation309_spill] sm:$0xff] (%p653_p5), %v8443_v34  ;;  %v8445_v42 = vld [vmem:[#allocation14 + $0x588] sm:$0xff] (%p653_p5)  ;;  %v8449_v8 = vld [vmem:[#allocation14 + $0x598] sm:$0xff] (%p653_p5) }
 0x2ab   :  { %12408 = vst [vmem:[#allocation310_spill] sm:$0xff] (%p653_p5), %v8445_v42  ;;  %12410 = vst [vmem:[#allocation312_spill] sm:$0xff] (%p653_p5), %v8449_v8  ;;  %v8453_v26 = vld [vmem:[#allocation14 + $0x5a8] sm:$0xff] (%p653_p5)  ;;  %v8455_v46 = vld [vmem:[#allocation14 + $0x5b0] sm:$0xff] (%p653_p5) }
 0x2ac   :  { %12412 = vst [vmem:[#allocation314_spill] sm:$0xff] (%p653_p5), %v8453_v26  ;;  %12413 = vst [vmem:[#allocation315_spill] sm:$0xff] (%p653_p5), %v8455_v46  ;;  %v8459_v62 = vld [vmem:[#allocation14 + $0x5c0] sm:$0xff] (%p653_p5)  ;;  %v8461_v41 = vld [vmem:[#allocation14 + $0x5c8] sm:$0xff] (%p653_p5) }
 0x2ad   :  { %12415 = vst [vmem:[#allocation317_spill] sm:$0xff] (%p653_p5), %v8459_v62  ;;  %12416 = vst [vmem:[#allocation318_spill] sm:$0xff] (%p653_p5), %v8461_v41  ;;  %v8463_v24 = vld [vmem:[#allocation14 + $0x5d0] sm:$0xff] (%p653_p5)  ;;  %v8465_v34 = vld [vmem:[#allocation14 + $0x5d8] sm:$0xff] (%p653_p5) }
 0x2ae   :  { %12417 = vst [vmem:[#allocation319_spill] sm:$0xff] (%p653_p5), %v8463_v24  ;;  %12418 = vst [vmem:[#allocation320_spill] sm:$0xff] (%p653_p5), %v8465_v34  ;;  %v8467_v42 = vld [vmem:[#allocation14 + $0x5e0] sm:$0xff] (%p653_p5)  ;;  %v8471_v8 = vld [vmem:[#allocation14 + $0x5f0] sm:$0xff] (%p653_p5) }
 0x2af   :  { %12419 = vst [vmem:[#allocation321_spill] sm:$0xff] (%p653_p5), %v8467_v42  ;;  %12421 = vst [vmem:[#allocation323_spill] sm:$0xff] (%p653_p5), %v8471_v8  ;;  %v8475_v26 = vld [vmem:[#allocation14 + $0x600] sm:$0xff] (%p653_p5)  ;;  %v8477_v46 = vld [vmem:[#allocation14 + $0x608] sm:$0xff] (%p653_p5) }
 0x2b0   :  { %12423 = vst [vmem:[#allocation325_spill] sm:$0xff] (%p653_p5), %v8475_v26  ;;  %12424 = vst [vmem:[#allocation326_spill] sm:$0xff] (%p653_p5), %v8477_v46  ;;  %v8481_v62 = vld [vmem:[#allocation14 + $0x618] sm:$0xff] (%p653_p5)  ;;  %v8483_v41 = vld [vmem:[#allocation14 + $0x620] sm:$0xff] (%p653_p5) }
 0x2b1   :  { %12426 = vst [vmem:[#allocation328_spill] sm:$0xff] (%p653_p5), %v8481_v62  ;;  %12427 = vst [vmem:[#allocation329_spill] sm:$0xff] (%p653_p5), %v8483_v41  ;;  %v8485_v24 = vld [vmem:[#allocation14 + $0x628] sm:$0xff] (%p653_p5)  ;;  %v8487_v34 = vld [vmem:[#allocation14 + $0x630] sm:$0xff] (%p653_p5) }
 0x2b2   :  { %12428 = vst [vmem:[#allocation330_spill] sm:$0xff] (%p653_p5), %v8485_v24  ;;  %12429 = vst [vmem:[#allocation331_spill] sm:$0xff] (%p653_p5), %v8487_v34  ;;  %v8489_v42 = vld [vmem:[#allocation14 + $0x638] sm:$0xff] (%p653_p5)  ;;  %v8493_v8 = vld [vmem:[#allocation14 + $0x648] sm:$0xff] (%p653_p5) }
 0x2b3   :  { %12430 = vst [vmem:[#allocation332_spill] sm:$0xff] (%p653_p5), %v8489_v42  ;;  %12432 = vst [vmem:[#allocation334_spill] sm:$0xff] (%p653_p5), %v8493_v8  ;;  %v8497_v26 = vld [vmem:[#allocation14 + $0x658] sm:$0xff] (%p653_p5)  ;;  %v8499_v46 = vld [vmem:[#allocation14 + $0x660] sm:$0xff] (%p653_p5) }
 0x2b4   :  { %12434 = vst [vmem:[#allocation336_spill] sm:$0xff] (%p653_p5), %v8497_v26  ;;  %12435 = vst [vmem:[#allocation337_spill] sm:$0xff] (%p653_p5), %v8499_v46  ;;  %v8503_v62 = vld [vmem:[#allocation14 + $0x670] sm:$0xff] (%p653_p5)  ;;  %v8505_v41 = vld [vmem:[#allocation14 + $0x678] sm:$0xff] (%p653_p5) }
 0x2b5   :  { %12437 = vst [vmem:[#allocation339_spill] sm:$0xff] (%p653_p5), %v8503_v62  ;;  %12438 = vst [vmem:[#allocation340_spill] sm:$0xff] (%p653_p5), %v8505_v41  ;;  %v8507_v24 = vld [vmem:[#allocation14 + $0x680] sm:$0xff] (%p653_p5)  ;;  %v8509_v34 = vld [vmem:[#allocation14 + $0x688] sm:$0xff] (%p653_p5) }
 0x2b6   :  { %12439 = vst [vmem:[#allocation341_spill] sm:$0xff] (%p653_p5), %v8507_v24  ;;  %12440 = vst [vmem:[#allocation342_spill] sm:$0xff] (%p653_p5), %v8509_v34  ;;  %v8511_v42 = vld [vmem:[#allocation14 + $0x690] sm:$0xff] (%p653_p5)  ;;  %v8515_v8 = vld [vmem:[#allocation14 + $0x6a0] sm:$0xff] (%p653_p5) }
 0x2b7   :  { %12441 = vst [vmem:[#allocation343_spill] sm:$0xff] (%p653_p5), %v8511_v42  ;;  %12443 = vst [vmem:[#allocation345_spill] sm:$0xff] (%p653_p5), %v8515_v8  ;;  %v8519_v26 = vld [vmem:[#allocation14 + $0x6b0] sm:$0xff] (%p653_p5)  ;;  %v8521_v46 = vld [vmem:[#allocation14 + $0x6b8] sm:$0xff] (%p653_p5) }
 0x2b8   :  { %12445 = vst [vmem:[#allocation347_spill] sm:$0xff] (%p653_p5), %v8519_v26  ;;  %12446 = vst [vmem:[#allocation348_spill] sm:$0xff] (%p653_p5), %v8521_v46  ;;  %v8525_v62 = vld [vmem:[#allocation14 + $0x6c8] sm:$0xff] (%p653_p5)  ;;  %v8527_v41 = vld [vmem:[#allocation14 + $0x6d0] sm:$0xff] (%p653_p5) }
 0x2b9   :  { %12448 = vst [vmem:[#allocation350_spill] sm:$0xff] (%p653_p5), %v8525_v62  ;;  %12449 = vst [vmem:[#allocation351_spill] sm:$0xff] (%p653_p5), %v8527_v41  ;;  %v8529_v24 = vld [vmem:[#allocation14 + $0x6d8] sm:$0xff] (%p653_p5)  ;;  %v8531_v34 = vld [vmem:[#allocation14 + $0x6e0] sm:$0xff] (%p653_p5) }
 0x2ba   :  { %12450 = vst [vmem:[#allocation352_spill] sm:$0xff] (%p653_p5), %v8529_v24  ;;  %12451 = vst [vmem:[#allocation353_spill] sm:$0xff] (%p653_p5), %v8531_v34  ;;  %v8533_v42 = vld [vmem:[#allocation14 + $0x6e8] sm:$0xff] (%p653_p5)  ;;  %v8537_v8 = vld [vmem:[#allocation14 + $0x6f8] sm:$0xff] (%p653_p5) }
 0x2bb   :  { %12452 = vst [vmem:[#allocation354_spill] sm:$0xff] (%p653_p5), %v8533_v42  ;;  %12454 = vst [vmem:[#allocation356_spill] sm:$0xff] (%p653_p5), %v8537_v8  ;;  %v8541_v26 = vld [vmem:[#allocation14 + $0x708] sm:$0xff] (%p653_p5)  ;;  %v8543_v46 = vld [vmem:[#allocation14 + $0x710] sm:$0xff] (%p653_p5) }
 0x2bc   :  { %12456 = vst [vmem:[#allocation358_spill] sm:$0xff] (%p653_p5), %v8541_v26  ;;  %12457 = vst [vmem:[#allocation359_spill] sm:$0xff] (%p653_p5), %v8543_v46  ;;  %v8547_v62 = vld [vmem:[#allocation14 + $0x720] sm:$0xff] (%p653_p5)  ;;  %v8549_v41 = vld [vmem:[#allocation14 + $0x728] sm:$0xff] (%p653_p5) }
 0x2bd   :  { %12459 = vst [vmem:[#allocation361_spill] sm:$0xff] (%p653_p5), %v8547_v62  ;;  %12460 = vst [vmem:[#allocation362_spill] sm:$0xff] (%p653_p5), %v8549_v41  ;;  %v8551_v24 = vld [vmem:[#allocation14 + $0x730] sm:$0xff] (%p653_p5)  ;;  %v8553_v34 = vld [vmem:[#allocation14 + $0x738] sm:$0xff] (%p653_p5) }
 0x2be   :  { %12461 = vst [vmem:[#allocation363_spill] sm:$0xff] (%p653_p5), %v8551_v24  ;;  %12462 = vst [vmem:[#allocation364_spill] sm:$0xff] (%p653_p5), %v8553_v34  ;;  %v8555_v42 = vld [vmem:[#allocation14 + $0x740] sm:$0xff] (%p653_p5)  ;;  %v8559_v8 = vld [vmem:[#allocation14 + $0x750] sm:$0xff] (%p653_p5) }
 0x2bf   :  { %12463 = vst [vmem:[#allocation365_spill] sm:$0xff] (%p653_p5), %v8555_v42  ;;  %12465 = vst [vmem:[#allocation367_spill] sm:$0xff] (%p653_p5), %v8559_v8  ;;  %v8563_v26 = vld [vmem:[#allocation14 + $0x760] sm:$0xff] (%p653_p5)  ;;  %v8565_v46 = vld [vmem:[#allocation14 + $0x768] sm:$0xff] (%p653_p5) }
 0x2c0   :  { %12467 = vst [vmem:[#allocation369_spill] sm:$0xff] (%p653_p5), %v8563_v26  ;;  %12468 = vst [vmem:[#allocation370_spill] sm:$0xff] (%p653_p5), %v8565_v46  ;;  %v8569_v62 = vld [vmem:[#allocation14 + $0x778] sm:$0xff] (%p653_p5)  ;;  %v8571_v41 = vld [vmem:[#allocation14 + $0x780] sm:$0xff] (%p653_p5) }
 0x2c1   :  { %12470 = vst [vmem:[#allocation372_spill] sm:$0xff] (%p653_p5), %v8569_v62  ;;  %12471 = vst [vmem:[#allocation373_spill] sm:$0xff] (%p653_p5), %v8571_v41  ;;  %v8573_v24 = vld [vmem:[#allocation14 + $0x788] sm:$0xff] (%p653_p5)  ;;  %v8575_v34 = vld [vmem:[#allocation14 + $0x790] sm:$0xff] (%p653_p5) }
 0x2c2   :  { %12472 = vst [vmem:[#allocation374_spill] sm:$0xff] (%p653_p5), %v8573_v24  ;;  %12473 = vst [vmem:[#allocation375_spill] sm:$0xff] (%p653_p5), %v8575_v34  ;;  %v8577_v42 = vld [vmem:[#allocation14 + $0x798] sm:$0xff] (%p653_p5)  ;;  %v8581_v8 = vld [vmem:[#allocation14 + $0x7a8] sm:$0xff] (%p653_p5) }
 0x2c3   :  { %12474 = vst [vmem:[#allocation376_spill] sm:$0xff] (%p653_p5), %v8577_v42  ;;  %12476 = vst [vmem:[#allocation378_spill] sm:$0xff] (%p653_p5), %v8581_v8  ;;  %v8585_v26 = vld [vmem:[#allocation14 + $0x7b8] sm:$0xff] (%p653_p5)  ;;  %v8587_v46 = vld [vmem:[#allocation14 + $0x7c0] sm:$0xff] (%p653_p5)  ;;  %v8610_v8 = vmov (%p653_p5), 0.0  }
 0x2c4   :  { %12478 = vst [vmem:[#allocation380_spill] sm:$0xff] (%p653_p5), %v8585_v26  ;;  %12479 = vst [vmem:[#allocation381_spill] sm:$0xff] (%p653_p5), %v8587_v46  ;;  %v8591_v62 = vld [vmem:[#allocation14 + $0x7d0] sm:$0xff] (%p653_p5)  ;;  %v8593_v41 = vld [vmem:[#allocation14 + $0x7d8] sm:$0xff] (%p653_p5)  ;;  %v8608_v26 = vmov (%p653_p5), 0.0   ;;  %v8614_v46 = vmov (%p653_p5), 0.0  }
 0x2c5   :  { %12481 = vst [vmem:[#allocation383_spill] sm:$0xff] (%p653_p5), %v8591_v62  ;;  %v8595_v24 = vld [vmem:[#allocation14 + $0x7e0] sm:$0xff] (%p653_p5)  ;;  %v8597_v34 = vld [vmem:[#allocation14 + $0x7e8] sm:$0xff] (%p653_p5)  ;;  %v8599_v42 = vld [vmem:[#allocation14 + $0x7f0] sm:$0xff] (%p653_p5)  ;;  %v8612_v62 = vmov (%p653_p5), 0.0  }
 0x2c6   :  { %12482 = vst [vmem:[#allocation384_spill] sm:$0xff] (%p653_p5), %v8595_v24  ;;  %12483 = vst [vmem:[#allocation385_spill] sm:$0xff] (%p653_p5), %v8599_v42 }
 0x33c   : > { %v870_v15 = vpop.f32.mrb[0].mxu0  ;;  %v941_v5 = vpop.f32.mrb[0].mxu1 }
 0x33d   : > { %v967_v16 = vadd.f32 %v950_v9, %v870_v15  ;;  %v872_v7 = vpop.f32.mrb[1].mxu0  ;;  %v943_v1 = vpop.f32.mrb[1].mxu1  ;;  %v969_v17 = vadd.f32 %v958_v55, %v941_v5 }
 0x33e   : > { %v968_v27 = vadd.f32 %v954_v0, %v872_v7  ;;  %v970_v11 = vadd.f32 %v962_v2, %v943_v1 }
 0x33f   : > { %v971_v6 = vsub.f32 0.0, %v967_v16 }
 0x340   : > { %v977_v10 = vsub.f32 0.0, %v968_v27  ;;  %v984_v14 = vsub.f32 0.0, %v970_v11 }
 0x341   : > { %v972_v18 = vmul.f32 1.442695, %v971_v6  ;;  %v12138_v6 = vld [vmem:[#allocation126_spill] sm:$0xff] }
 0x342   : > { %v978_v12 = vmul.f32 1.442695, %v977_v10  ;;  %v985_v4 = vmul.f32 1.442695, %v984_v14  ;;  %v7841_v14 = vld [vmem:[#allocation12 + $0x18] sm:$0xff] (%p653_p5) }
 0x343   : > { %6238 = vpow2.f32 %v972_v18  ;;  %12142 = vst [vmem:[#allocation35_spill] sm:$0xff] (%p653_p5), %v7841_v14  ;;  %v8213_v14 = vld [vmem:[#allocation14 + $0x1e8] sm:$0xff] (%p653_p5) }
 0x344   : > { %6240 = vpow2.f32 %v978_v12  ;;  %v7839_v12 = vld [vmem:[#allocation12 + $0x10] sm:$0xff] (%p653_p5)  ;;  %12308 = vst [vmem:[#allocation210_spill] sm:$0xff] (%p653_p5), %v8213_v14  ;;  %v8235_v14 = vld [vmem:[#allocation14 + $0x240] sm:$0xff] (%p653_p5) }
 0x345   : > { %6242 = vpow2.f32 %v985_v4  ;;  %12141 = vst [vmem:[#allocation34_spill] sm:$0xff] (%p653_p5), %v7839_v12  ;;  %v7845_v4 = vld [vmem:[#allocation12 + $0x28] sm:$0xff] (%p653_p5)  ;;  %12315 = vst [vmem:[#allocation217_spill] sm:$0xff] (%p653_p5), %v8235_v14 }
 0x346   : > { %6244 = vtanh.f32 %v969_v17  ;;  %v7835_v17 = vld [vmem:[#allocation12] sm:$0xff] (%p653_p5)  ;;  %12144 = vst [vmem:[#allocation37_spill] sm:$0xff] (%p653_p5), %v7845_v4  ;;  %v8065_v4 = vld [vmem:[#allocation12 + $0x398] sm:$0xff] (%p653_p5)  ;;  %v8205_v12 = vld [vmem:[#allocation14 + $0x1c8] sm:$0xff] (%p653_p5) }
 0x347   :  { %12139 = vst [vmem:[#allocation32_spill] sm:$0xff] (%p653_p5), %v7835_v17  ;;  %12254 = vst [vmem:[#allocation156_spill] sm:$0xff] (%p653_p5), %v8065_v4  ;;  %v8087_v4 = vld [vmem:[#allocation12 + $0x3f0] sm:$0xff] (%p653_p5)  ;;  %v8209_v17 = vld [vmem:[#allocation14 + $0x1d8] sm:$0xff] (%p653_p5) }
 0x348   :  { %12265 = vst [vmem:[#allocation167_spill] sm:$0xff] (%p653_p5), %v8087_v4  ;;  %v8109_v4 = vld [vmem:[#allocation14 + $0x48] sm:$0xff] (%p653_p5)  ;;  %12305 = vst [vmem:[#allocation207_spill] sm:$0xff] (%p653_p5), %v8205_v12 }
 0x349   :  { %12272 = vst [vmem:[#allocation174_spill] sm:$0xff] (%p653_p5), %v8109_v4  ;;  %12306 = vst [vmem:[#allocation208_spill] sm:$0xff] (%p653_p5), %v8209_v17 }
 0x34d   : > { %v6239_v9 = vpop.eup %6238 }
 0x34e   : > { %v6241_v15 = vpop.eup %6240  ;;  %v974_v19 = vadd.f32 1.0, %v6239_v9  ;;  %v7847_v9 = vld [vmem:[#allocation12 + $0x30] sm:$0xff] (%p653_p5) }
 0x34f   : > { %v980_v0 = vadd.f32 1.0, %v6241_v15  ;;  %v6243_v16 = vpop.eup %6242  ;;  %12145 = vst [vmem:[#allocation38_spill] sm:$0xff] (%p653_p5), %v7847_v9  ;;  %v7849_v15 = vld [vmem:[#allocation12 + $0x38] sm:$0xff] (%p653_p5)  ;;  %v8037_v9 = vld [vmem:[#allocation12 + $0x328] sm:$0xff] (%p653_p5) }
 0x350   : > { %6246 = vrcp.f32 %v974_v19  ;;  %v6245_v7 = vpop.eup %6244  ;;  %v987_v2 = vadd.f32 1.0, %v6243_v16  ;;  %v7837_v19 = vld [vmem:[#allocation12 + $0x8] sm:$0xff] (%p653_p5)  ;;  %12146 = vst [vmem:[#allocation39_spill] sm:$0xff] (%p653_p5), %v7849_v15  ;;  %v7943_v16 = vld [vmem:[#allocation12 + $0x1b0] sm:$0xff] (%p653_p5)  ;;  %12240 = vst [vmem:[#allocation142_spill] sm:$0xff] (%p653_p5), %v8037_v9 }
 0x351   : > { %6248 = vrcp.f32 %v980_v0  ;;  %12140 = vst [vmem:[#allocation33_spill] sm:$0xff] (%p653_p5), %v7837_v19  ;;  %v7853_v0 = vld [vmem:[#allocation12 + $0x48] sm:$0xff] (%p653_p5)  ;;  %12193 = vst [vmem:[#allocation93_spill] sm:$0xff] (%p653_p5), %v7943_v16  ;;  %v8059_v9 = vld [vmem:[#allocation12 + $0x380] sm:$0xff] (%p653_p5) }
 0x352   : > { %6250 = vrcp.f32 %v987_v2  ;;  %12148 = vst [vmem:[#allocation41_spill] sm:$0xff] (%p653_p5), %v7853_v0  ;;  %v7953_v2 = vld [vmem:[#allocation12 + $0x1d8] sm:$0xff] (%p653_p5)  ;;  %v7965_v16 = vld [vmem:[#allocation12 + $0x208] sm:$0xff] (%p653_p5)  ;;  %12251 = vst [vmem:[#allocation153_spill] sm:$0xff] (%p653_p5), %v8059_v9 }
 0x353   :  { %12198 = vst [vmem:[#allocation98_spill] sm:$0xff] (%p653_p5), %v7953_v2  ;;  %12204 = vst [vmem:[#allocation104_spill] sm:$0xff] (%p653_p5), %v7965_v16  ;;  %v8053_v15 = vld [vmem:[#allocation12 + $0x368] sm:$0xff] (%p653_p5)  ;;  %v8081_v9 = vld [vmem:[#allocation12 + $0x3d8] sm:$0xff] (%p653_p5) }
 0x354   :  { %12248 = vst [vmem:[#allocation150_spill] sm:$0xff] (%p653_p5), %v8053_v15  ;;  %v8075_v15 = vld [vmem:[#allocation12 + $0x3c0] sm:$0xff] (%p653_p5)  ;;  %12262 = vst [vmem:[#allocation164_spill] sm:$0xff] (%p653_p5), %v8081_v9  ;;  %v8103_v9 = vld [vmem:[#allocation14 + $0x30] sm:$0xff] (%p653_p5) }
 0x355   :  { %12259 = vst [vmem:[#allocation161_spill] sm:$0xff] (%p653_p5), %v8075_v15  ;;  %v8097_v15 = vld [vmem:[#allocation14 + $0x18] sm:$0xff] (%p653_p5)  ;;  %12270 = vst [vmem:[#allocation172_spill] sm:$0xff] (%p653_p5), %v8103_v9  ;;  %v8163_v2 = vld [vmem:[#allocation14 + $0x120] sm:$0xff] (%p653_p5) }
 0x356   :  { %12267 = vst [vmem:[#allocation169_spill] sm:$0xff] (%p653_p5), %v8097_v15  ;;  %v8153_v16 = vld [vmem:[#allocation14 + $0xf8] sm:$0xff] (%p653_p5)  ;;  %12293 = vst [vmem:[#allocation195_spill] sm:$0xff] (%p653_p5), %v8163_v2  ;;  %v8215_v0 = vld [vmem:[#allocation14 + $0x1f0] sm:$0xff] (%p653_p5) }
 0x357   :  { %12290 = vst [vmem:[#allocation192_spill] sm:$0xff] (%p653_p5), %v8153_v16  ;;  %12309 = vst [vmem:[#allocation211_spill] sm:$0xff] (%p653_p5), %v8215_v0  ;;  %v8217_v19 = vld [vmem:[#allocation14 + $0x1f8] sm:$0xff] (%p653_p5)  ;;  %v8237_v0 = vld [vmem:[#allocation14 + $0x248] sm:$0xff] (%p653_p5) }
 0x358   :  { %12310 = vst [vmem:[#allocation212_spill] sm:$0xff] (%p653_p5), %v8217_v19  ;;  %12316 = vst [vmem:[#allocation218_spill] sm:$0xff] (%p653_p5), %v8237_v0  ;;  %v8239_v19 = vld [vmem:[#allocation14 + $0x250] sm:$0xff] (%p653_p5)  ;;  %v8241_v2 = vld [vmem:[#allocation14 + $0x258] sm:$0xff] (%p653_p5) }
 0x359   :  { %12317 = vst [vmem:[#allocation219_spill] sm:$0xff] (%p653_p5), %v8239_v19  ;;  %12318 = vst [vmem:[#allocation220_spill] sm:$0xff] (%p653_p5), %v8241_v2  ;;  %v8275_v16 = vld [vmem:[#allocation14 + $0x2e0] sm:$0xff] (%p653_p5)  ;;  %v8293_v9 = vld [vmem:[#allocation14 + $0x328] sm:$0xff] (%p653_p5) }
 0x35a   : > { %v6247_v1 = vpop.eup %6246  ;;  %12327 = vst [vmem:[#allocation229_spill] sm:$0xff] (%p653_p5), %v8275_v16  ;;  %12333 = vst [vmem:[#allocation235_spill] sm:$0xff] (%p653_p5), %v8293_v9  ;;  %v8297_v16 = vld [vmem:[#allocation14 + $0x338] sm:$0xff] (%p653_p5)  ;;  %v8315_v9 = vld [vmem:[#allocation14 + $0x380] sm:$0xff] (%p653_p5) }
 0x35b   : > { %v6249_v27 = vpop.eup %6248  ;;  %v991_v3 = vmul.f32 %v6247_v1, %v6245_v7  ;;  %v7945_v7 = vld [vmem:[#allocation12 + $0x1b8] sm:$0xff] (%p653_p5)  ;;  %v7947_v1 = vld [vmem:[#allocation12 + $0x1c0] sm:$0xff] (%p653_p5)  ;;  %12335 = vst [vmem:[#allocation237_spill] sm:$0xff] (%p653_p5), %v8297_v16  ;;  %12343 = vst [vmem:[#allocation245_spill] sm:$0xff] (%p653_p5), %v8315_v9 }
 0x35c   : > { %v990_v10 = vmul.f32 %v12138_v6, %v6249_v27  ;;  %v6251_v5 = vpop.eup %6250  ;;  %12194 = vst [vmem:[#allocation94_spill] sm:$0xff] (%p653_p5), %v7945_v7  ;;  %12195 = vst [vmem:[#allocation95_spill] sm:$0xff] (%p653_p5), %v7947_v1  ;;  %v7949_v27 = vld [vmem:[#allocation12 + $0x1c8] sm:$0xff] (%p653_p5)  ;;  %v7955_v6 = vld [vmem:[#allocation12 + $0x1e0] sm:$0xff] (%p653_p5) }
 0x35d   :  { %12196 = vst [vmem:[#allocation96_spill] sm:$0xff] (%p653_p5), %v7949_v27  ;;  %12199 = vst [vmem:[#allocation99_spill] sm:$0xff] (%p653_p5), %v7955_v6  ;;  %v7967_v7 = vld [vmem:[#allocation12 + $0x210] sm:$0xff] (%p653_p5)  ;;  %v7977_v6 = vld [vmem:[#allocation12 + $0x238] sm:$0xff] (%p653_p5) }
 0x35e   : > { %v992_v11 = vadd.f32 %v991_v3, %v990_v10   ;;  %v7951_v3 = vld [vmem:[#allocation12 + $0x1d0] sm:$0xff] (%p653_p5)  ;;  %v7957_v10 = vld [vmem:[#allocation12 + $0x1e8] sm:$0xff] (%p653_p5)  ;;  %12205 = vst [vmem:[#allocation105_spill] sm:$0xff] (%p653_p5), %v7967_v7  ;;  %12210 = vst [vmem:[#allocation110_spill] sm:$0xff] (%p653_p5), %v7977_v6 }
 0x35f   :  { %12197 = vst [vmem:[#allocation97_spill] sm:$0xff] (%p653_p5), %v7951_v3  ;;  %12200 = vst [vmem:[#allocation100_spill] sm:$0xff] (%p653_p5), %v7957_v10  ;;  %v7979_v10 = vld [vmem:[#allocation12 + $0x240] sm:$0xff] (%p653_p5)  ;;  %v7999_v6 = vld [vmem:[#allocation12 + $0x290] sm:$0xff] (%p653_p5) }
 0x360   : > { %6252 = vtanh.f32 %v992_v11  ;;  %v7941_v11 = vld [vmem:[#allocation12 + $0x1a8] sm:$0xff] (%p653_p5)  ;;  %12211 = vst [vmem:[#allocation111_spill] sm:$0xff] (%p653_p5), %v7979_v10  ;;  %12221 = vst [vmem:[#allocation121_spill] sm:$0xff] (%p653_p5), %v7999_v6  ;;  %v8143_v10 = vld [vmem:[#allocation14 + $0xd0] sm:$0xff] (%p653_p5) }
 0x361   :  { %12192 = vst [vmem:[#allocation92_spill] sm:$0xff] (%p653_p5), %v7941_v11  ;;  %v7969_v11 = vld [vmem:[#allocation12 + $0x218] sm:$0xff] (%p653_p5)  ;;  %v8125_v6 = vld [vmem:[#allocation14 + $0x88] sm:$0xff] (%p653_p5)  ;;  %12285 = vst [vmem:[#allocation187_spill] sm:$0xff] (%p653_p5), %v8143_v10 }
 0x362   :  { %12206 = vst [vmem:[#allocation106_spill] sm:$0xff] (%p653_p5), %v7969_v11  ;;  %12278 = vst [vmem:[#allocation180_spill] sm:$0xff] (%p653_p5), %v8125_v6  ;;  %v8141_v7 = vld [vmem:[#allocation14 + $0xc8] sm:$0xff] (%p653_p5)  ;;  %v8155_v3 = vld [vmem:[#allocation14 + $0x100] sm:$0xff] (%p653_p5) }
 0x363   :  { %12284 = vst [vmem:[#allocation186_spill] sm:$0xff] (%p653_p5), %v8141_v7  ;;  %v8149_v11 = vld [vmem:[#allocation14 + $0xe8] sm:$0xff] (%p653_p5)  ;;  %12291 = vst [vmem:[#allocation193_spill] sm:$0xff] (%p653_p5), %v8155_v3  ;;  %v8159_v1 = vld [vmem:[#allocation14 + $0x110] sm:$0xff] (%p653_p5) }
 0x364   :  { %12288 = vst [vmem:[#allocation190_spill] sm:$0xff] (%p653_p5), %v8149_v11  ;;  %12292 = vst [vmem:[#allocation194_spill] sm:$0xff] (%p653_p5), %v8159_v1  ;;  %v8167_v27 = vld [vmem:[#allocation14 + $0x130] sm:$0xff] (%p653_p5)  ;;  %v8337_v9 = vld [vmem:[#allocation14 + $0x3d8] sm:$0xff] (%p653_p5) }
 0x365   :  { %12295 = vst [vmem:[#allocation197_spill] sm:$0xff] (%p653_p5), %v8167_v27  ;;  %v8229_v27 = vld [vmem:[#allocation14 + $0x228] sm:$0xff] (%p653_p5)  ;;  %v8279_v11 = vld [vmem:[#allocation14 + $0x2f0] sm:$0xff] (%p653_p5)  ;;  %12354 = vst [vmem:[#allocation256_spill] sm:$0xff] (%p653_p5), %v8337_v9 }
 0x366   :  { %12312 = vst [vmem:[#allocation214_spill] sm:$0xff] (%p653_p5), %v8229_v27  ;;  %v8251_v27 = vld [vmem:[#allocation14 + $0x280] sm:$0xff] (%p653_p5)  ;;  %12329 = vst [vmem:[#allocation231_spill] sm:$0xff] (%p653_p5), %v8279_v11  ;;  %v8301_v11 = vld [vmem:[#allocation14 + $0x348] sm:$0xff] (%p653_p5) }
 0x367   :  { %655 = sbr.rel (!%p653_p5) target bundleno = 550 (0x226), region = 212  ;;  %12337 = vst [vmem:[#allocation239_spill] sm:$0xff] (%p653_p5), %v8301_v11  ;;  %v8319_v16 = vld [vmem:[#allocation14 + $0x390] sm:$0xff] (%p653_p5) }
 0x368   :  { %12345 = vst [vmem:[#allocation247_spill] sm:$0xff] (%p653_p5), %v8319_v16  ;;  %v8341_v16 = vld [vmem:[#allocation14 + $0x3e8] sm:$0xff] (%p653_p5)  ;;  %v8359_v9 = vld [vmem:[#allocation14 + $0x430] sm:$0xff] (%p653_p5) }
 0x369   :  { %12356 = vst [vmem:[#allocation258_spill] sm:$0xff] (%p653_p5), %v8341_v16  ;;  %12365 = vst [vmem:[#allocation267_spill] sm:$0xff] (%p653_p5), %v8359_v9  ;;  %v8363_v16 = vld [vmem:[#allocation14 + $0x440] sm:$0xff] (%p653_p5)  ;;  %v8381_v9 = vld [vmem:[#allocation14 + $0x488] sm:$0xff] (%p653_p5) }
 0x36a   : > { %v6253_v18 = vpop.eup %6252  ;;  %12367 = vst [vmem:[#allocation269_spill] sm:$0xff] (%p653_p5), %v8363_v16  ;;  %12376 = vst [vmem:[#allocation278_spill] sm:$0xff] (%p653_p5), %v8381_v9  ;;  %v8385_v16 = vld [vmem:[#allocation14 + $0x498] sm:$0xff] (%p653_p5)  ;;  %v8403_v9 = vld [vmem:[#allocation14 + $0x4e0] sm:$0xff] (%p653_p5) }
 0x36b   : > { %v994_v55 = vmul.f32 %v6253_v18, %v6251_v5   ;;  %v7959_v5 = vld [vmem:[#allocation12 + $0x1f0] sm:$0xff] (%p653_p5)  ;;  %v7961_v18 = vld [vmem:[#allocation12 + $0x1f8] sm:$0xff] (%p653_p5)  ;;  %12378 = vst [vmem:[#allocation280_spill] sm:$0xff] (%p653_p5), %v8385_v16  ;;  %12387 = vst [vmem:[#allocation289_spill] sm:$0xff] (%p653_p5), %v8403_v9 }
 0x36c   :  { %12201 = vst [vmem:[#allocation101_spill] sm:$0xff] (%p653_p5), %v7959_v5  ;;  %12202 = vst [vmem:[#allocation102_spill] sm:$0xff] (%p653_p5), %v7961_v18  ;;  %v7981_v5 = vld [vmem:[#allocation12 + $0x248] sm:$0xff] (%p653_p5)  ;;  %v7983_v18 = vld [vmem:[#allocation12 + $0x250] sm:$0xff] (%p653_p5) }
 0x36d   : > { %996 = vst [vmem:[%s995_s21] sm:$0xff] %v994_v55  ;;  %v7851_v55 = vld [vmem:[#allocation12 + $0x40] sm:$0xff] (%p653_p5)  ;;  %12212 = vst [vmem:[#allocation112_spill] sm:$0xff] (%p653_p5), %v7981_v5  ;;  %v8151_v5 = vld [vmem:[#allocation14 + $0xf0] sm:$0xff] (%p653_p5) }
 0x36e   :  { %12147 = vst [vmem:[#allocation40_spill] sm:$0xff] %v7851_v55  ;;  %12213 = vst [vmem:[#allocation113_spill] sm:$0xff] %v7983_v18  ;;  %v8139_v18 = vld [vmem:[#allocation14 + $0xc0] sm:$0xff]  ;;  %v8207_v55 = vld [vmem:[#allocation14 + $0x1d0] sm:$0xff] }
 0x36f   :  { %12283 = vst [vmem:[#allocation185_spill] sm:$0xff] %v8139_v18  ;;  %12289 = vst [vmem:[#allocation191_spill] sm:$0xff] %v8151_v5  ;;  %v8259_v5 = vld [vmem:[#allocation14 + $0x2a0] sm:$0xff]  ;;  %v8407_v16 = vld [vmem:[#allocation14 + $0x4f0] sm:$0xff] }
 0x370   :  { %12323 = vst [vmem:[#allocation225_spill] sm:$0xff] %v8259_v5  ;;  %v8281_v5 = vld [vmem:[#allocation14 + $0x2f8] sm:$0xff]  ;;  %12389 = vst [vmem:[#allocation291_spill] sm:$0xff] %v8407_v16  ;;  %v8429_v16 = vld [vmem:[#allocation14 + $0x548] sm:$0xff] }
 0x371   :  { %12330 = vst [vmem:[#allocation232_spill] sm:$0xff] %v8281_v5  ;;  %v8303_v5 = vld [vmem:[#allocation14 + $0x350] sm:$0xff]  ;;  %v8425_v9 = vld [vmem:[#allocation14 + $0x538] sm:$0xff]  ;;  %12400 = vst [vmem:[#allocation302_spill] sm:$0xff] %v8429_v16 }
 0x372   :  { %12338 = vst [vmem:[#allocation240_spill] sm:$0xff] %v8303_v5  ;;  %v8325_v5 = vld [vmem:[#allocation14 + $0x3a8] sm:$0xff]  ;;  %12398 = vst [vmem:[#allocation300_spill] sm:$0xff] %v8425_v9  ;;  %v8447_v9 = vld [vmem:[#allocation14 + $0x590] sm:$0xff] }
 0x373   :  { %12348 = vst [vmem:[#allocation250_spill] sm:$0xff] %v8325_v5  ;;  %v8347_v5 = vld [vmem:[#allocation14 + $0x400] sm:$0xff]  ;;  %12409 = vst [vmem:[#allocation311_spill] sm:$0xff] %v8447_v9  ;;  %v8469_v9 = vld [vmem:[#allocation14 + $0x5e8] sm:$0xff] }
 0x374   :  { %12359 = vst [vmem:[#allocation261_spill] sm:$0xff] %v8347_v5  ;;  %v8369_v5 = vld [vmem:[#allocation14 + $0x458] sm:$0xff]  ;;  %v8451_v16 = vld [vmem:[#allocation14 + $0x5a0] sm:$0xff]  ;;  %12420 = vst [vmem:[#allocation322_spill] sm:$0xff] %v8469_v9 }
 0x375   :  { %12370 = vst [vmem:[#allocation272_spill] sm:$0xff] %v8369_v5  ;;  %v8391_v5 = vld [vmem:[#allocation14 + $0x4b0] sm:$0xff]  ;;  %12411 = vst [vmem:[#allocation313_spill] sm:$0xff] %v8451_v16  ;;  %v8473_v16 = vld [vmem:[#allocation14 + $0x5f8] sm:$0xff] }
 0x376   :  { %12381 = vst [vmem:[#allocation283_spill] sm:$0xff] %v8391_v5  ;;  %v8413_v5 = vld [vmem:[#allocation14 + $0x508] sm:$0xff]  ;;  %12422 = vst [vmem:[#allocation324_spill] sm:$0xff] %v8473_v16  ;;  %v8491_v9 = vld [vmem:[#allocation14 + $0x640] sm:$0xff] }
 0x377   :  { %12392 = vst [vmem:[#allocation294_spill] sm:$0xff] %v8413_v5  ;;  %v8435_v5 = vld [vmem:[#allocation14 + $0x560] sm:$0xff]  ;;  %12431 = vst [vmem:[#allocation333_spill] sm:$0xff] %v8491_v9  ;;  %v8495_v16 = vld [vmem:[#allocation14 + $0x650] sm:$0xff] }
 0x378   :  { %12403 = vst [vmem:[#allocation305_spill] sm:$0xff] %v8435_v5  ;;  %v8457_v5 = vld [vmem:[#allocation14 + $0x5b8] sm:$0xff]  ;;  %12433 = vst [vmem:[#allocation335_spill] sm:$0xff] %v8495_v16  ;;  %v8517_v16 = vld [vmem:[#allocation14 + $0x6a8] sm:$0xff] }
 0x379   :  { %12414 = vst [vmem:[#allocation316_spill] sm:$0xff] %v8457_v5  ;;  %v8479_v5 = vld [vmem:[#allocation14 + $0x610] sm:$0xff]  ;;  %v8513_v9 = vld [vmem:[#allocation14 + $0x698] sm:$0xff]  ;;  %12444 = vst [vmem:[#allocation346_spill] sm:$0xff] %v8517_v16 }
 0x37a   :  { %12425 = vst [vmem:[#allocation327_spill] sm:$0xff] %v8479_v5  ;;  %v8501_v5 = vld [vmem:[#allocation14 + $0x668] sm:$0xff]  ;;  %12442 = vst [vmem:[#allocation344_spill] sm:$0xff] %v8513_v9  ;;  %v8535_v9 = vld [vmem:[#allocation14 + $0x6f0] sm:$0xff] }
 0x37b   :  { %12436 = vst [vmem:[#allocation338_spill] sm:$0xff] %v8501_v5  ;;  %v8523_v5 = vld [vmem:[#allocation14 + $0x6c0] sm:$0xff]  ;;  %12453 = vst [vmem:[#allocation355_spill] sm:$0xff] %v8535_v9  ;;  %v8557_v9 = vld [vmem:[#allocation14 + $0x748] sm:$0xff] }
 0x37c   :  { %12447 = vst [vmem:[#allocation349_spill] sm:$0xff] %v8523_v5  ;;  %v8539_v16 = vld [vmem:[#allocation14 + $0x700] sm:$0xff]  ;;  %v8545_v5 = vld [vmem:[#allocation14 + $0x718] sm:$0xff]  ;;  %12464 = vst [vmem:[#allocation366_spill] sm:$0xff] %v8557_v9 }
 0x37d   :  { %12455 = vst [vmem:[#allocation357_spill] sm:$0xff] %v8539_v16  ;;  %12458 = vst [vmem:[#allocation360_spill] sm:$0xff] %v8545_v5  ;;  %v8561_v16 = vld [vmem:[#allocation14 + $0x758] sm:$0xff]  ;;  %v8567_v5 = vld [vmem:[#allocation14 + $0x770] sm:$0xff] }
 0x37e   :  { %12466 = vst [vmem:[#allocation368_spill] sm:$0xff] %v8561_v16  ;;  %12469 = vst [vmem:[#allocation371_spill] sm:$0xff] %v8567_v5  ;;  %v8579_v9 = vld [vmem:[#allocation14 + $0x7a0] sm:$0xff]  ;;  %v8583_v16 = vld [vmem:[#allocation14 + $0x7b0] sm:$0xff] }
 0x37f   :  { %12475 = vst [vmem:[#allocation377_spill] sm:$0xff] %v8579_v9  ;;  %12477 = vst [vmem:[#allocation379_spill] sm:$0xff] %v8583_v16  ;;  %v8589_v5 = vld [vmem:[#allocation14 + $0x7c8] sm:$0xff]  ;;  %v8601_v9 = vld [vmem:[#allocation14 + $0x7f8] sm:$0xff] }
 0x380   :  { %12480 = vst [vmem:[#allocation382_spill] sm:$0xff] %v8589_v5  ;;  %12484 = vst [vmem:[#allocation386_spill] sm:$0xff] %v8601_v9  ;;  %v8606_v16 = vld [vmem:[%s11821_s9] sm:$0xff] }
 0x381   :  { %12485 = vst [vmem:[#allocation387_spill] sm:$0xff] %v8606_v16 }
 0x382 LB: > { %12486 = vst [vmem:[#allocation388_spill] sm:$0xff] %v6742_v26  ;;  %12487 = vst [vmem:[#allocation389_spill] sm:$0xff] %v6746_v8  ;;  %v12488_v4 = vld [vmem:[#allocation174_spill] sm:$0xff]  ;;  %v12489_v15 = vld [vmem:[#allocation169_spill] sm:$0xff]  ;;  %v4754_v26 = vpack.c.bf16 %v8107_v44, %v8091_v43  ;;  %1459 = vmatprep.mubr.f32.mxu0 %v6750_v62  ;;  %1530 = vmatprep.mubr.f32.mxu1 %v6750_v62  ;;  %s4493_s9 = sshll.u32 %s6758_s24, 3  ;;  %s4504_s14 = sshll.u32 %s6758_s24, 4  ;;  %s6758_s24 = sphi %s8616_s24, %s1387_s24   ;;  %v6754_v46 = vphi %v8614_v46, %v12843_v46   ;;  %v6750_v62 = vphi %v8612_v62, %v2059_v62   ;;  %v6746_v8 = vphi %v8610_v8, %v2054_v8   ;;  %v6742_v26 = vphi %v8608_v26, %v2055_v26  }
 0x383   : > { %v4752_v16 = vpack.c.bf16 %v12488_v4, %v8093_v36  ;;  %v4816_v42 = vpack.c.bf16 %v8113_v35, %v12489_v15  ;;  %v12490_v20 = vld [vmem:[#allocation175_spill] sm:$0xff]  ;;  %v12491_v6 = vld [vmem:[#allocation180_spill] sm:$0xff]  ;;  %v12492_v7 = vld [vmem:[#allocation186_spill] sm:$0xff]  ;;  %s1393_s3 = scalar_lea.vmem [#allocation3], %s4493_s9  ;;  %s2062_s2 = scalar_lea.vmem [#allocation4], %s4504_s14 }
 0x384   : > { %v4818_v8 = vpack.c.bf16 %v12490_v20, %v8095_v28  ;;  %v4756_v24 = vpack.c.bf16 %v12492_v7, %v12491_v6  ;;  %v12493_v13 = vld [vmem:[#allocation188_spill] sm:$0xff]  ;;  %v12494_v18 = vld [vmem:[#allocation185_spill] sm:$0xff]  ;;  %v12495_v10 = vld [vmem:[#allocation187_spill] sm:$0xff]  ;;  %v4760_v20 = vpack.c.bf16 %v8173_v47, %v8157_v22  ;;  %v4824_v6 = vpack.c.bf16 %v8177_v45, %v8161_v21  ;;  %s1387_s24 = sadd.s32 1, %s6758_s24  }
 0x385   : > { %v4820_v9 = vpack.c.bf16 %v12493_v13, %v8129_v51  ;;  %4753 = vmatprep.subr.bf16.mxu0 %v4752_v16  ;;  %4817 = vmatprep.subr.bf16.mxu1 %v4816_v42  ;;  %v4758_v4 = vpack.c.bf16 %v12494_v18, %v8123_v57  ;;  %v4822_v15 = vpack.c.bf16 %v12495_v10, %v8127_v52  ;;  %v12496_v3 = vld [vmem:[#allocation193_spill] sm:$0xff]  ;;  %v12497_v1 = vld [vmem:[#allocation194_spill] sm:$0xff]  ;;  %v12498_v12 = vld [vmem:[#allocation207_spill] sm:$0xff]  ;;  %p1384_p6 = scmp.ge.s32.totalorder %s1387_s24, 16  }
 0x386   : > { %4755 = vmatpush1.bf16.msra.mxu0 %v4754_v26  ;;  %4819 = vmatpush1.bf16.msra.mxu1 %v4818_v8  ;;  %v4762_v8 = vpack.c.bf16 %v8171_v56, %v12496_v3  ;;  %v4826_v26 = vpack.c.bf16 %v8175_v53, %v12497_v1  ;;  %v12499_v17 = vld [vmem:[#allocation208_spill] sm:$0xff]  ;;  %v12500_v0 = vld [vmem:[#allocation218_spill] sm:$0xff]  ;;  %v12502_v14 = vld [vmem:[#allocation217_spill] sm:$0xff]  ;;  %s10111_s0 = smov (%p1384_p6), 0  }
 0x387   : > { %4757 = vmatprep.subr.bf16.mxu0 %v4756_v24  ;;  %4821 = vmatprep.subr.bf16.mxu1 %v4820_v9  ;;  %v4764_v9 = vpack.c.bf16 %v12498_v12, %v8189_v31  ;;  %v4828_v24 = vpack.c.bf16 %v12499_v17, %v8193_v29  ;;  %v4768_v42 = vpack.c.bf16 %v12500_v0, %v8221_v38  ;;  %v12501_v2 = vld [vmem:[#allocation220_spill] sm:$0xff]  ;;  %v12503_v19 = vld [vmem:[#allocation219_spill] sm:$0xff]  ;;  %v12508_v1 = vld [vmem:[#allocation246_spill] sm:$0xff] }
 0x388   : > { %v4770_v16 = vpack.c.bf16 %v12502_v14, %v8219_v40  ;;  %v12504_v11 = vld [vmem:[#allocation239_spill] sm:$0xff]  ;;  %v12511_v3 = vld [vmem:[#allocation256_spill] sm:$0xff]  ;;  %v12512_v10 = vld [vmem:[#allocation245_spill] sm:$0xff] }
 0x389   : > { %v12515_v12 = vld [vmem:[#allocation255_spill] sm:$0xff]  ;;  %v12573_v5 = vld [vmem:[#allocation382_spill] sm:$0xff]  ;;  %v12840_v18 = vld [vmem:[#allocation66_spill] sm:$0xff] }
 0x38a   : > { %4759 = vmatpush1.bf16.msra.mxu0 %v4758_v4  ;;  %4823 = vmatpush1.bf16.msra.mxu1 %v4822_v15  ;;  %v4766_v4 = vpack.c.bf16 %v8203_v63, %v8187_v39  ;;  %v4830_v15 = vpack.c.bf16 %v8207_v55, %v8191_v37  ;;  %v9094_v55 = vld [vmem:[#allocation15 + $0x50] sm:$0xff] (%p1384_p6)  ;;  %v9096_v63 = vld [vmem:[#allocation15 + $0x58] sm:$0xff] (%p1384_p6)  ;;  %v9108_v31 = vld [vmem:[#allocation15 + $0x88] sm:$0xff] (%p1384_p6) }
 0x38b   : > { %4761 = vmatprep.subr.bf16.mxu0 %v4760_v20  ;;  %4825 = vmatprep.subr.bf16.mxu1 %v4824_v6  ;;  %v4832_v20 = vpack.c.bf16 %v12501_v2, %v8225_v32  ;;  %v4834_v6 = vpack.c.bf16 %v12503_v19, %v8223_v30  ;;  %v12509_v2 = vld [vmem:[#allocation254_spill] sm:$0xff]  ;;  %v11860_v19 = vsub.s32 4, %v12840_v18  ;;  %v9102_v28 = vld [vmem:[#allocation15 + $0x70] sm:$0xff] (%p1384_p6)  ;;  %v9106_v30 = vld [vmem:[#allocation15 + $0x80] sm:$0xff] (%p1384_p6) }
 0x38c   :  { %v9104_v29 = vld [vmem:[#allocation15 + $0x78] sm:$0xff] (%p1384_p6)  ;;  %v9110_v32 = vld [vmem:[#allocation15 + $0x90] sm:$0xff] (%p1384_p6)  ;;  %v9116_v35 = vld [vmem:[#allocation15 + $0xa8] sm:$0xff] (%p1384_p6) }
 0x38d   :  { %v9118_v36 = vld [vmem:[#allocation15 + $0xb0] sm:$0xff] (%p1384_p6)  ;;  %v9120_v37 = vld [vmem:[#allocation15 + $0xb8] sm:$0xff] (%p1384_p6)  ;;  %v9122_v38 = vld [vmem:[#allocation15 + $0xc0] sm:$0xff] (%p1384_p6) }
 0x38e   : > { %4763 = vmatpush1.bf16.msra.mxu0 %v4762_v8  ;;  %4827 = vmatpush1.bf16.msra.mxu1 %v4826_v26  ;;  %v4772_v8 = vpack.c.bf16 %v8269_v48, %v8253_v60  ;;  %v4836_v26 = vpack.c.bf16 %v8273_v33, %v8257_v23  ;;  %v9112_v33 = vld [vmem:[#allocation15 + $0x98] sm:$0xff] (%p1384_p6)  ;;  %v9124_v39 = vld [vmem:[#allocation15 + $0xc8] sm:$0xff] (%p1384_p6)  ;;  %v9126_v40 = vld [vmem:[#allocation15 + $0xd0] sm:$0xff] (%p1384_p6) }
 0x38f   : > { %4765 = vmatprep.subr.bf16.mxu0 %v4764_v9  ;;  %4829 = vmatprep.subr.bf16.mxu1 %v4828_v24  ;;  %v4774_v9 = vpack.c.bf16 %v8267_v59, %v8251_v27  ;;  %v4838_v24 = vpack.c.bf16 %v8271_v54, %v8255_v58  ;;  %v9098_v58 = vld [vmem:[#allocation15 + $0x60] sm:$0xff] (%p1384_p6)  ;;  %v9132_v44 = vld [vmem:[#allocation15 + $0xe8] sm:$0xff] (%p1384_p6)  ;;  %v9134_v45 = vld [vmem:[#allocation15 + $0xf0] sm:$0xff] (%p1384_p6) }
 0x390   :  { %v9130_v43 = vld [vmem:[#allocation15 + $0xe0] sm:$0xff] (%p1384_p6)  ;;  %v9136_v47 = vld [vmem:[#allocation15 + $0xf8] sm:$0xff] (%p1384_p6)  ;;  %v9148_v53 = vld [vmem:[#allocation15 + $0x128] sm:$0xff] (%p1384_p6) }
 0x391   :  { %v9138_v48 = vld [vmem:[#allocation15 + $0x100] sm:$0xff] (%p1384_p6)  ;;  %v9144_v51 = vld [vmem:[#allocation15 + $0x118] sm:$0xff] (%p1384_p6)  ;;  %v9150_v54 = vld [vmem:[#allocation15 + $0x130] sm:$0xff] (%p1384_p6) }
 0x392   : > { %4767 = vmatpush1.bf16.msra.mxu0 %v4766_v4  ;;  %4831 = vmatpush1.bf16.msra.mxu1 %v4830_v15  ;;  %v4776_v4 = vpack.c.bf16 %v12504_v11, %v8285_v49  ;;  %v4840_v15 = vpack.c.bf16 %v8305_v25, %v8289_v50  ;;  %v12513_v11 = vld [vmem:[#allocation253_spill] sm:$0xff]  ;;  %v9100_v25 = vld [vmem:[#allocation15 + $0x68] sm:$0xff] (%p1384_p6)  ;;  %v9146_v52 = vld [vmem:[#allocation15 + $0x120] sm:$0xff] (%p1384_p6) }
 0x393   : > { %4769 = vmatprep.subr.bf16.mxu0 %v4768_v42  ;;  %4833 = vmatprep.subr.bf16.mxu1 %v4832_v20  ;;  %v12505_v42 = vld [vmem:[#allocation238_spill] sm:$0xff]  ;;  %v9140_v49 = vld [vmem:[#allocation15 + $0x108] sm:$0xff] (%p1384_p6)  ;;  %v9142_v50 = vld [vmem:[#allocation15 + $0x110] sm:$0xff] (%p1384_p6) }
 0x394   : > { %v4778_v20 = vpack.c.bf16 %v12505_v42, %v8283_v61  ;;  %v12516_v42 = vld [vmem:[#allocation262_spill] sm:$0xff]  ;;  %v9154_v60 = vld [vmem:[#allocation15 + $0x140] sm:$0xff] (%p1384_p6)  ;;  %v9156_v61 = vld [vmem:[#allocation15 + $0x148] sm:$0xff] (%p1384_p6) }
 0x395   :  { %v9152_v56 = vld [vmem:[#allocation15 + $0x138] sm:$0xff] (%p1384_p6)  ;;  %v9158_v57 = vld [vmem:[#allocation15 + $0x150] sm:$0xff] (%p1384_p6)  ;;  %v9162_v59 = vld [vmem:[#allocation15 + $0x160] sm:$0xff] (%p1384_p6) }
 0x396   : > { %4771 = vmatpush1.bf16.msra.mxu0 %v4770_v16  ;;  %4835 = vmatpush1.bf16.msra.mxu1 %v4834_v6  ;;  %v12506_v16 = vld [vmem:[#allocation233_spill] sm:$0xff]  ;;  %v12507_v6 = vld [vmem:[#allocation240_spill] sm:$0xff]  ;;  %v9160_v21 = vld [vmem:[#allocation15 + $0x158] sm:$0xff] (%p1384_p6) }
 0x397   : > { %4773 = vmatprep.subr.bf16.mxu0 %v4772_v8  ;;  %4837 = vmatprep.subr.bf16.mxu1 %v4836_v26  ;;  %v4842_v0 = vpack.c.bf16 %v12507_v6, %v12506_v16  ;;  %v4780_v8 = vpack.c.bf16 %v12509_v2, %v12508_v1  ;;  %v12510_v26 = vld [vmem:[#allocation248_spill] sm:$0xff]  ;;  %v12517_v16 = vld [vmem:[#allocation270_spill] sm:$0xff]  ;;  %v12520_v1 = vld [vmem:[#allocation261_spill] sm:$0xff] }
 0x398   : > { %v4844_v7 = vpack.c.bf16 %v12511_v3, %v12510_v26  ;;  %v12519_v6 = vld [vmem:[#allocation272_spill] sm:$0xff]  ;;  %v12521_v3 = vld [vmem:[#allocation269_spill] sm:$0xff]  ;;  %v9168_v27 = vld [vmem:[#allocation15 + $0x178] sm:$0xff] (%p1384_p6) }
 0x399   : > { %v4786_v2 = vpack.c.bf16 %v12521_v3, %v12520_v1  ;;  %v12532_v1 = vld [vmem:[#allocation294_spill] sm:$0xff]  ;;  %v9164_v22 = vld [vmem:[#allocation15 + $0x168] sm:$0xff] (%p1384_p6)  ;;  %v9166_v23 = vld [vmem:[#allocation15 + $0x170] sm:$0xff] (%p1384_p6) }
 0x39a   : > { %4775 = vmatpush1.bf16.msra.mxu0 %v4774_v9  ;;  %4839 = vmatpush1.bf16.msra.mxu1 %v4838_v24  ;;  %v4782_v9 = vpack.c.bf16 %v12513_v11, %v12512_v10  ;;  %v12514_v24 = vld [vmem:[#allocation247_spill] sm:$0xff]  ;;  %v12524_v11 = vld [vmem:[#allocation278_spill] sm:$0xff] }
 0x39b   : > { %4777 = vmatprep.subr.bf16.mxu0 %v4776_v4  ;;  %4841 = vmatprep.subr.bf16.mxu1 %v4840_v15  ;;  %v4846_v13 = vpack.c.bf16 %v12515_v12, %v12514_v24  ;;  %v4784_v4 = vpack.c.bf16 %v12517_v16, %v12516_v42  ;;  %v12518_v15 = vld [vmem:[#allocation264_spill] sm:$0xff]  ;;  %v12525_v12 = vld [vmem:[#allocation286_spill] sm:$0xff]  ;;  %v12528_v42 = vld [vmem:[#allocation277_spill] sm:$0xff] }
 0x39c   : > { %v4848_v14 = vpack.c.bf16 %v12519_v6, %v12518_v15  ;;  %v4788_v10 = vpack.c.bf16 %v12525_v12, %v12524_v11  ;;  %v12529_v16 = vld [vmem:[#allocation285_spill] sm:$0xff]  ;;  %v12531_v15 = vld [vmem:[#allocation287_spill] sm:$0xff]  ;;  %v12533_v3 = vld [vmem:[#allocation302_spill] sm:$0xff] }
 0x39d   : > { %v12536_v11 = vld [vmem:[#allocation293_spill] sm:$0xff] }
 0x39e   : > { %4779 = vmatpush1.bf16.msra.mxu0 %v4778_v20  ;;  %4843 = vmatpush1.bf16.msra.mxu1 %v4842_v0  ;;  %v12522_v0 = vld [vmem:[#allocation263_spill] sm:$0xff]  ;;  %v12537_v12 = vld [vmem:[#allocation301_spill] sm:$0xff] }
 0x39f   : > { %4781 = vmatprep.subr.bf16.mxu0 %v4780_v8  ;;  %4845 = vmatprep.subr.bf16.mxu1 %v4844_v7  ;;  %v12523_v20 = vld [vmem:[#allocation271_spill] sm:$0xff]  ;;  %v12526_v7 = vld [vmem:[#allocation280_spill] sm:$0xff] }
 0x3a0   : > { %v4850_v26 = vpack.c.bf16 %v12523_v20, %v12522_v0  ;;  %v12527_v8 = vld [vmem:[#allocation288_spill] sm:$0xff] }
 0x3a1   : > { %v4852_v24 = vpack.c.bf16 %v12527_v8, %v12526_v7  ;;  %v12535_v0 = vld [vmem:[#allocation304_spill] sm:$0xff]  ;;  %v12539_v7 = vld [vmem:[#allocation303_spill] sm:$0xff] }
 0x3a2   : > { %4783 = vmatpush1.bf16.msra.mxu0 %v4782_v9  ;;  %4847 = vmatpush1.bf16.msra.mxu1 %v4846_v13  ;;  %v4790_v9 = vpack.c.bf16 %v12529_v16, %v12528_v42  ;;  %v12530_v13 = vld [vmem:[#allocation279_spill] sm:$0xff]  ;;  %v12540_v42 = vld [vmem:[#allocation310_spill] sm:$0xff] }
 0x3a3   : > { %4785 = vmatprep.subr.bf16.mxu0 %v4784_v4  ;;  %4849 = vmatprep.subr.bf16.mxu1 %v4848_v14  ;;  %v4854_v6 = vpack.c.bf16 %v12531_v15, %v12530_v13  ;;  %v4792_v4 = vpack.c.bf16 %v12533_v3, %v12532_v1  ;;  %v12534_v14 = vld [vmem:[#allocation296_spill] sm:$0xff]  ;;  %v12541_v16 = vld [vmem:[#allocation318_spill] sm:$0xff]  ;;  %v12544_v1 = vld [vmem:[#allocation309_spill] sm:$0xff] }
 0x3a4   : > { %v4856_v20 = vpack.c.bf16 %v12535_v0, %v12534_v14  ;;  %v12543_v13 = vld [vmem:[#allocation320_spill] sm:$0xff]  ;;  %v12545_v3 = vld [vmem:[#allocation317_spill] sm:$0xff]  ;;  %v12547_v14 = vld [vmem:[#allocation319_spill] sm:$0xff] }
 0x3a6   : > { %4787 = vmatpush1.bf16.msra.mxu0 %v4786_v2  ;;  %4851 = vmatpush1.bf16.msra.mxu1 %v4850_v26  ;;  %v4794_v2 = vpack.c.bf16 %v12537_v12, %v12536_v11  ;;  %v12538_v26 = vld [vmem:[#allocation295_spill] sm:$0xff]  ;;  %v12548_v11 = vld [vmem:[#allocation326_spill] sm:$0xff] }
 0x3a7   : > { %4789 = vmatprep.subr.bf16.mxu0 %v4788_v10  ;;  %4853 = vmatprep.subr.bf16.mxu1 %v4852_v24  ;;  %v4858_v8 = vpack.c.bf16 %v12539_v7, %v12538_v26  ;;  %v4796_v10 = vpack.c.bf16 %v12541_v16, %v12540_v42  ;;  %v12542_v24 = vld [vmem:[#allocation312_spill] sm:$0xff]  ;;  %v12549_v12 = vld [vmem:[#allocation334_spill] sm:$0xff]  ;;  %v12552_v42 = vld [vmem:[#allocation325_spill] sm:$0xff] }
 0x3a8   : > { %v4860_v15 = vpack.c.bf16 %v12543_v13, %v12542_v24  ;;  %v12551_v26 = vld [vmem:[#allocation336_spill] sm:$0xff]  ;;  %v12553_v16 = vld [vmem:[#allocation333_spill] sm:$0xff]  ;;  %v12555_v24 = vld [vmem:[#allocation335_spill] sm:$0xff] }
 0x3aa   : > { %4791 = vmatpush1.bf16.msra.mxu0 %v4790_v9  ;;  %4855 = vmatpush1.bf16.msra.mxu1 %v4854_v6  ;;  %v4798_v9 = vpack.c.bf16 %v12545_v3, %v12544_v1  ;;  %v12546_v6 = vld [vmem:[#allocation311_spill] sm:$0xff]  ;;  %v12556_v1 = vld [vmem:[#allocation342_spill] sm:$0xff] }
 0x3ab   : > { %4793 = vmatprep.subr.bf16.mxu0 %v4792_v4  ;;  %4857 = vmatprep.subr.bf16.mxu1 %v4856_v20  ;;  %v4862_v0 = vpack.c.bf16 %v12547_v14, %v12546_v6  ;;  %v4800_v4 = vpack.c.bf16 %v12549_v12, %v12548_v11  ;;  %v12550_v20 = vld [vmem:[#allocation328_spill] sm:$0xff]  ;;  %v12557_v3 = vld [vmem:[#allocation350_spill] sm:$0xff]  ;;  %v12560_v11 = vld [vmem:[#allocation341_spill] sm:$0xff] }
 0x3ac   : > { %v4864_v7 = vpack.c.bf16 %v12551_v26, %v12550_v20  ;;  %v12559_v6 = vld [vmem:[#allocation352_spill] sm:$0xff]  ;;  %v12561_v12 = vld [vmem:[#allocation349_spill] sm:$0xff]  ;;  %v12563_v20 = vld [vmem:[#allocation351_spill] sm:$0xff] }
 0x3ae   : > { %4795 = vmatpush1.bf16.msra.mxu0 %v4794_v2  ;;  %4859 = vmatpush1.bf16.msra.mxu1 %v4858_v8  ;;  %v4802_v2 = vpack.c.bf16 %v12553_v16, %v12552_v42  ;;  %v12554_v8 = vld [vmem:[#allocation327_spill] sm:$0xff]  ;;  %v12564_v42 = vld [vmem:[#allocation358_spill] sm:$0xff] }
 0x3af   : > { %4797 = vmatprep.subr.bf16.mxu0 %v4796_v10  ;;  %4861 = vmatprep.subr.bf16.mxu1 %v4860_v15  ;;  %v4866_v13 = vpack.c.bf16 %v12555_v24, %v12554_v8  ;;  %v4804_v10 = vpack.c.bf16 %v12557_v3, %v12556_v1  ;;  %v12558_v15 = vld [vmem:[#allocation344_spill] sm:$0xff]  ;;  %v12565_v16 = vld [vmem:[#allocation366_spill] sm:$0xff]  ;;  %v12568_v1 = vld [vmem:[#allocation357_spill] sm:$0xff] }
 0x3b0   : > { %v4868_v14 = vpack.c.bf16 %v12559_v6, %v12558_v15  ;;  %v12567_v8 = vld [vmem:[#allocation368_spill] sm:$0xff]  ;;  %v12569_v3 = vld [vmem:[#allocation365_spill] sm:$0xff]  ;;  %v12571_v15 = vld [vmem:[#allocation367_spill] sm:$0xff] }
 0x3b2   : > { %4799 = vmatpush1.bf16.msra.mxu0 %v4798_v9  ;;  %4863 = vmatpush1.bf16.msra.mxu1 %v4862_v0  ;;  %v4806_v9 = vpack.c.bf16 %v12561_v12, %v12560_v11  ;;  %v12562_v0 = vld [vmem:[#allocation343_spill] sm:$0xff]  ;;  %v12572_v11 = vld [vmem:[#allocation374_spill] sm:$0xff] }
 0x3b3   : > { %4801 = vmatprep.subr.bf16.mxu0 %v4800_v4  ;;  %4865 = vmatprep.subr.bf16.mxu1 %v4864_v7  ;;  %v4870_v26 = vpack.c.bf16 %v12563_v20, %v12562_v0  ;;  %v4808_v4 = vpack.c.bf16 %v12565_v16, %v12564_v42  ;;  %v12566_v7 = vld [vmem:[#allocation360_spill] sm:$0xff]  ;;  %v12575_v0 = vld [vmem:[#allocation373_spill] sm:$0xff]  ;;  %v12578_v42 = vld [vmem:[#allocation383_spill] sm:$0xff] }
 0x3b4   : > { %v4872_v24 = vpack.c.bf16 %v12567_v8, %v12566_v7  ;;  %v12576_v20 = vld [vmem:[#allocation381_spill] sm:$0xff]  ;;  %v12579_v7 = vld [vmem:[#allocation171_spill] sm:$0xff] }
 0x3b5   : > { %v12580_v8 = vld [vmem:[#allocation177_spill] sm:$0xff] }
 0x3b6   : > { %4803 = vmatpush1.bf16.msra.mxu0 %v4802_v2  ;;  %4867 = vmatpush1.bf16.msra.mxu1 %v4866_v13  ;;  %v4810_v2 = vpack.c.bf16 %v12569_v3, %v12568_v1  ;;  %v12570_v13 = vld [vmem:[#allocation359_spill] sm:$0xff] }
 0x3b7   : > { %4805 = vmatprep.subr.bf16.mxu0 %v4804_v10  ;;  %4869 = vmatprep.subr.bf16.mxu1 %v4868_v14  ;;  %v4874_v6 = vpack.c.bf16 %v12571_v15, %v12570_v13  ;;  %v4812_v10 = vpack.c.bf16 %v12573_v5, %v12572_v11  ;;  %v12574_v14 = vld [vmem:[#allocation376_spill] sm:$0xff]  ;;  %v12582_v1 = vld [vmem:[#allocation179_spill] sm:$0xff]  ;;  %v12583_v13 = vld [vmem:[#allocation170_spill] sm:$0xff] }
 0x3b8   : > { %v4876_v12 = vpack.c.bf16 %v8593_v41, %v12574_v14  ;;  %v12584_v15 = vld [vmem:[#allocation176_spill] sm:$0xff]  ;;  %v12586_v11 = vld [vmem:[#allocation178_spill] sm:$0xff] }
 0x3b9   :  { %v9128_v41 = vld [vmem:[#allocation15 + $0xd8] sm:$0xff] (%p1384_p6) }
 0x3ba   : > { %4807 = vmatpush1.bf16.msra.mxu0 %v4806_v9  ;;  %4871 = vmatpush1.bf16.msra.mxu1 %v4870_v26  ;;  %v4814_v9 = vpack.c.bf16 %v12576_v20, %v12575_v0  ;;  %v12577_v26 = vld [vmem:[#allocation375_spill] sm:$0xff]  ;;  %v12587_v0 = vld [vmem:[#allocation182_spill] sm:$0xff] }
 0x3bb   : > { %4809 = vmatprep.subr.bf16.mxu0 %v4808_v4  ;;  %4873 = vmatprep.subr.bf16.mxu1 %v4872_v24  ;;  %v4878_v16 = vpack.c.bf16 %v12578_v42, %v12577_v26  ;;  %v4880_v4 = vpack.c.bf16 %v12580_v8, %v12579_v7  ;;  %v12581_v24 = vld [vmem:[#allocation173_spill] sm:$0xff]  ;;  %v12588_v20 = vld [vmem:[#allocation190_spill] sm:$0xff]  ;;  %v12590_v26 = vld [vmem:[#allocation192_spill] sm:$0xff] }
 0x3bc   : > { %v4944_v3 = vpack.c.bf16 %v12582_v1, %v12581_v24  ;;  %v12593_v8 = vld [vmem:[#allocation183_spill] sm:$0xff] }
 0x3bd   : > { %v12594_v24 = vld [vmem:[#allocation191_spill] sm:$0xff] }
 0x3be   : > { %4811 = vmatpush1.bf16.msra.mxu0 %v4810_v2  ;;  %4875 = vmatpush1.bf16.msra.mxu1 %v4874_v6  ;;  %v4882_v2 = vpack.c.bf16 %v12584_v15, %v12583_v13  ;;  %v12585_v6 = vld [vmem:[#allocation172_spill] sm:$0xff]  ;;  %v4950_v1 = vpack.c.bf16 %v12594_v24, %v12593_v8  ;;  %v12597_v15 = vld [vmem:[#allocation198_spill] sm:$0xff] }
 0x3bf   : > { %4813 = vmatprep.subr.bf16.mxu0 %v4812_v10  ;;  %4877 = vmatprep.subr.bf16.mxu1 %v4876_v12  ;;  %v4946_v14 = vpack.c.bf16 %v12586_v11, %v12585_v6  ;;  %v4884_v10 = vpack.c.bf16 %v12588_v20, %v12587_v0  ;;  %v12589_v12 = vld [vmem:[#allocation184_spill] sm:$0xff]  ;;  %v12598_v6 = vld [vmem:[#allocation202_spill] sm:$0xff]  ;;  %v12601_v20 = vld [vmem:[#allocation197_spill] sm:$0xff] }
 0x3c0   : > { %v4948_v42 = vpack.c.bf16 %v12590_v26, %v12589_v12  ;;  %v4952_v11 = vpack.c.bf16 %v12598_v6, %v12597_v15  ;;  %v12602_v12 = vld [vmem:[#allocation201_spill] sm:$0xff]  ;;  %v12606_v8 = vld [vmem:[#allocation212_spill] sm:$0xff]  ;;  %v12611_v6 = vld [vmem:[#allocation214_spill] sm:$0xff] }
 0x3c1   : > { %v4954_v26 = vpack.c.bf16 %v12602_v12, %v12601_v20  ;;  %v12615_v12 = vld [vmem:[#allocation213_spill] sm:$0xff] }
 0x3c2   : > { %4815 = vmatpush1.bf16.msra.mxu0 %v4814_v9  ;;  %4879 = vmatpush1.bf16.msra.mxu1 %v4878_v16  ;;  %v12591_v9 = vld [vmem:[#allocation181_spill] sm:$0xff] }
 0x3c3   : > { %4881 = vmatprep.subr.bf16.mxu0 %v4880_v4  ;;  %4945 = vmatprep.subr.bf16.mxu1 %v4944_v3  ;;  %v12592_v16 = vld [vmem:[#allocation189_spill] sm:$0xff]  ;;  %v12595_v4 = vld [vmem:[#allocation196_spill] sm:$0xff] }
 0x3c4   : > { %v4886_v7 = vpack.c.bf16 %v12592_v16, %v12591_v9  ;;  %v12596_v3 = vld [vmem:[#allocation200_spill] sm:$0xff]  ;;  %v12605_v16 = vld [vmem:[#allocation206_spill] sm:$0xff] }
 0x3c5   : > { %1460 = vmatmul.mubr.f32.vlgmr.msra.gmra.mrb[0].mxu0 %v6754_v46  ;;  %1531 = vmatmul.mubr.f32.vlgmr.msra.gmra.mrb[0].mxu1 %v6754_v46  ;;  %v4888_v13 = vpack.c.bf16 %v12596_v3, %v12595_v4  ;;  %v4956_v24 = vpack.c.bf16 %v12606_v8, %v12605_v16  ;;  %v12607_v4 = vld [vmem:[#allocation203_spill] sm:$0xff]  ;;  %v12619_v8 = vld [vmem:[#allocation226_spill] sm:$0xff] }
 0x3c6   : > { %4883 = vmatpush1.bf16.msra.mxu0 %v4882_v2  ;;  %4947 = vmatpush1.bf16.msra.mxu1 %v4946_v14  ;;  %v12599_v2 = vld [vmem:[#allocation195_spill] sm:$0xff] }
 0x3c7   : > { %4885 = vmatprep.subr.bf16.mxu0 %v4884_v10  ;;  %4949 = vmatprep.subr.bf16.mxu1 %v4948_v42  ;;  %v12600_v14 = vld [vmem:[#allocation199_spill] sm:$0xff]  ;;  %v12603_v10 = vld [vmem:[#allocation204_spill] sm:$0xff]  ;;  %v12604_v42 = vld [vmem:[#allocation210_spill] sm:$0xff] }
 0x3c8   : > { %1601 = vmatprep.mubr.f32.mxu0 %v6750_v62  ;;  %1672 = vmatprep.mubr.f32.mxu1 %v6750_v62  ;;  %v4890_v0 = vpack.c.bf16 %v12600_v14, %v12599_v2  ;;  %v4892_v9 = vpack.c.bf16 %v12604_v42, %v12603_v10  ;;  %v12608_v62 = vld [vmem:[#allocation209_spill] sm:$0xff]  ;;  %v12610_v3 = vld [vmem:[#allocation211_spill] sm:$0xff]  ;;  %v12612_v2 = vld [vmem:[#allocation222_spill] sm:$0xff] }
 0x3c9   : > { %v12614_v14 = vld [vmem:[#allocation224_spill] sm:$0xff]  ;;  %v12616_v10 = vld [vmem:[#allocation221_spill] sm:$0xff]  ;;  %v12618_v42 = vld [vmem:[#allocation223_spill] sm:$0xff] }
 0x3ca   : > { %4887 = vmatpush1.bf16.msra.mxu0 %v4886_v7  ;;  %4951 = vmatpush1.bf16.msra.mxu1 %v4950_v1  ;;  %v4894_v7 = vpack.c.bf16 %v12608_v62, %v12607_v4  ;;  %v12609_v1 = vld [vmem:[#allocation205_spill] sm:$0xff]  ;;  %v12620_v4 = vld [vmem:[#allocation230_spill] sm:$0xff]  ;;  %v12622_v62 = vld [vmem:[#allocation232_spill] sm:$0xff] }
 0x3cb   : > { %4889 = vmatprep.subr.bf16.mxu0 %v4888_v13  ;;  %4953 = vmatprep.subr.bf16.mxu1 %v4952_v11  ;;  %v4958_v15 = vpack.c.bf16 %v12610_v3, %v12609_v1  ;;  %v4896_v13 = vpack.c.bf16 %v12612_v2, %v12611_v6  ;;  %v12613_v11 = vld [vmem:[#allocation216_spill] sm:$0xff]  ;;  %v12623_v3 = vld [vmem:[#allocation225_spill] sm:$0xff]  ;;  %v12626_v2 = vld [vmem:[#allocation231_spill] sm:$0xff] }
 0x3cc   : > { %v4960_v20 = vpack.c.bf16 %v12614_v14, %v12613_v11  ;;  %v12624_v6 = vld [vmem:[#allocation229_spill] sm:$0xff]  ;;  %v12627_v14 = vld [vmem:[#allocation235_spill] sm:$0xff] }
 0x3ce   : > { %4891 = vmatpush1.bf16.msra.mxu0 %v4890_v0  ;;  %4955 = vmatpush1.bf16.msra.mxu1 %v4954_v26  ;;  %v4898_v0 = vpack.c.bf16 %v12616_v10, %v12615_v12  ;;  %v12617_v26 = vld [vmem:[#allocation215_spill] sm:$0xff]  ;;  %v12628_v12 = vld [vmem:[#allocation242_spill] sm:$0xff]  ;;  %v12630_v10 = vld [vmem:[#allocation244_spill] sm:$0xff] }
 0x3cf   : > { %4893 = vmatprep.subr.bf16.mxu0 %v4892_v9  ;;  %4957 = vmatprep.subr.bf16.mxu1 %v4956_v24  ;;  %v4962_v16 = vpack.c.bf16 %v12618_v42, %v12617_v26  ;;  %v4900_v9 = vpack.c.bf16 %v12620_v4, %v12619_v8  ;;  %v12621_v24 = vld [vmem:[#allocation228_spill] sm:$0xff]  ;;  %v12631_v42 = vld [vmem:[#allocation234_spill] sm:$0xff]  ;;  %v12632_v8 = vld [vmem:[#allocation241_spill] sm:$0xff] }
 0x3d0   : > { %v4964_v1 = vpack.c.bf16 %v12622_v62, %v12621_v24  ;;  %v12634_v4 = vld [vmem:[#allocation243_spill] sm:$0xff]  ;;  %v12635_v62 = vld [vmem:[#allocation250_spill] sm:$0xff] }
 0x3d2   : > { %4895 = vmatpush1.bf16.msra.mxu0 %v4894_v7  ;;  %4959 = vmatpush1.bf16.msra.mxu1 %v4958_v15  ;;  %v4902_v7 = vpack.c.bf16 %v12624_v6, %v12623_v3  ;;  %v12625_v15 = vld [vmem:[#allocation227_spill] sm:$0xff]  ;;  %v12636_v3 = vld [vmem:[#allocation258_spill] sm:$0xff]  ;;  %v12638_v6 = vld [vmem:[#allocation260_spill] sm:$0xff] }
 0x3d3   : > { %4897 = vmatprep.subr.bf16.mxu0 %v4896_v13  ;;  %4961 = vmatprep.subr.bf16.mxu1 %v4960_v20  ;;  %v4966_v11 = vpack.c.bf16 %v12626_v2, %v12625_v15  ;;  %v4904_v13 = vpack.c.bf16 %v12628_v12, %v12627_v14  ;;  %v12629_v20 = vld [vmem:[#allocation237_spill] sm:$0xff]  ;;  %v12642_v12 = vld [vmem:[#allocation259_spill] sm:$0xff] }
 0x3d4   : > { %v4968_v26 = vpack.c.bf16 %v12630_v10, %v12629_v20  ;;  %v12639_v2 = vld [vmem:[#allocation249_spill] sm:$0xff]  ;;  %v12643_v10 = vld [vmem:[#allocation266_spill] sm:$0xff] }
 0x3d5   : > { %v12640_v14 = vld [vmem:[#allocation257_spill] sm:$0xff] }
 0x3d6   : > { %4899 = vmatpush1.bf16.msra.mxu0 %v4898_v0  ;;  %4963 = vmatpush1.bf16.msra.mxu1 %v4962_v16  ;;  %v4906_v0 = vpack.c.bf16 %v12632_v8, %v12631_v42  ;;  %v12633_v16 = vld [vmem:[#allocation236_spill] sm:$0xff]  ;;  %v12644_v42 = vld [vmem:[#allocation274_spill] sm:$0xff] }
 0x3d7   : > { %4901 = vmatprep.subr.bf16.mxu0 %v4900_v9  ;;  %4965 = vmatprep.subr.bf16.mxu1 %v4964_v1  ;;  %v4970_v24 = vpack.c.bf16 %v12634_v4, %v12633_v16  ;;  %v4908_v9 = vpack.c.bf16 %v12636_v3, %v12635_v62  ;;  %v12637_v1 = vld [vmem:[#allocation252_spill] sm:$0xff]  ;;  %v12647_v4 = vld [vmem:[#allocation265_spill] sm:$0xff]  ;;  %v12650_v3 = vld [vmem:[#allocation275_spill] sm:$0xff] }
 0x3d8   : > { %v4972_v15 = vpack.c.bf16 %v12638_v6, %v12637_v1  ;;  %v12646_v8 = vld [vmem:[#allocation276_spill] sm:$0xff]  ;;  %v12648_v62 = vld [vmem:[#allocation273_spill] sm:$0xff]  ;;  %v12651_v6 = vld [vmem:[#allocation282_spill] sm:$0xff] }
 0x3da   : > { %4903 = vmatpush1.bf16.msra.mxu0 %v4902_v7  ;;  %4967 = vmatpush1.bf16.msra.mxu1 %v4966_v11  ;;  %v4910_v7 = vpack.c.bf16 %v12640_v14, %v12639_v2  ;;  %v12641_v11 = vld [vmem:[#allocation251_spill] sm:$0xff]  ;;  %v12652_v2 = vld [vmem:[#allocation290_spill] sm:$0xff]  ;;  %v12654_v14 = vld [vmem:[#allocation292_spill] sm:$0xff] }
 0x3db   : > { %4905 = vmatprep.subr.bf16.mxu0 %v4904_v13  ;;  %4969 = vmatprep.subr.bf16.mxu1 %v4968_v26  ;;  %v4974_v20 = vpack.c.bf16 %v12642_v12, %v12641_v11  ;;  %v4912_v13 = vpack.c.bf16 %v12644_v42, %v12643_v10  ;;  %v12645_v26 = vld [vmem:[#allocation268_spill] sm:$0xff]  ;;  %v12655_v12 = vld [vmem:[#allocation281_spill] sm:$0xff]  ;;  %v12658_v42 = vld [vmem:[#allocation291_spill] sm:$0xff] }
 0x3dc   : > { %v4976_v16 = vpack.c.bf16 %v12646_v8, %v12645_v26  ;;  %v12656_v10 = vld [vmem:[#allocation289_spill] sm:$0xff]  ;;  %v12659_v8 = vld [vmem:[#allocation298_spill] sm:$0xff] }
 0x3de   : > { %4907 = vmatpush1.bf16.msra.mxu0 %v4906_v0  ;;  %4971 = vmatpush1.bf16.msra.mxu1 %v4970_v24  ;;  %v4914_v0 = vpack.c.bf16 %v12648_v62, %v12647_v4  ;;  %v12649_v24 = vld [vmem:[#allocation267_spill] sm:$0xff]  ;;  %v12660_v4 = vld [vmem:[#allocation306_spill] sm:$0xff]  ;;  %v12662_v62 = vld [vmem:[#allocation308_spill] sm:$0xff] }
 0x3df   : > { %4909 = vmatprep.subr.bf16.mxu0 %v4908_v9  ;;  %4973 = vmatprep.subr.bf16.mxu1 %v4972_v15  ;;  %v4978_v1 = vpack.c.bf16 %v12650_v3, %v12649_v24  ;;  %v4916_v9 = vpack.c.bf16 %v12652_v2, %v12651_v6  ;;  %v12653_v15 = vld [vmem:[#allocation284_spill] sm:$0xff]  ;;  %v12663_v3 = vld [vmem:[#allocation297_spill] sm:$0xff]  ;;  %v12666_v2 = vld [vmem:[#allocation307_spill] sm:$0xff] }
 0x3e0   : > { %v4980_v11 = vpack.c.bf16 %v12654_v14, %v12653_v15  ;;  %v12664_v6 = vld [vmem:[#allocation305_spill] sm:$0xff]  ;;  %v12667_v14 = vld [vmem:[#allocation314_spill] sm:$0xff] }
 0x3e2   : > { %4911 = vmatpush1.bf16.msra.mxu0 %v4910_v7  ;;  %4975 = vmatpush1.bf16.msra.mxu1 %v4974_v20  ;;  %v4918_v7 = vpack.c.bf16 %v12656_v10, %v12655_v12  ;;  %v12657_v20 = vld [vmem:[#allocation283_spill] sm:$0xff]  ;;  %v12668_v12 = vld [vmem:[#allocation322_spill] sm:$0xff]  ;;  %v12670_v10 = vld [vmem:[#allocation324_spill] sm:$0xff] }
 0x3e3   : > { %4913 = vmatprep.subr.bf16.mxu0 %v4912_v13  ;;  %4977 = vmatprep.subr.bf16.mxu1 %v4976_v16  ;;  %v4982_v26 = vpack.c.bf16 %v12658_v42, %v12657_v20  ;;  %v4920_v13 = vpack.c.bf16 %v12660_v4, %v12659_v8  ;;  %v12661_v16 = vld [vmem:[#allocation300_spill] sm:$0xff]  ;;  %v12671_v42 = vld [vmem:[#allocation313_spill] sm:$0xff]  ;;  %v12674_v4 = vld [vmem:[#allocation323_spill] sm:$0xff] }
 0x3e4   : > { %v4984_v24 = vpack.c.bf16 %v12662_v62, %v12661_v16  ;;  %v12672_v8 = vld [vmem:[#allocation321_spill] sm:$0xff]  ;;  %v12675_v62 = vld [vmem:[#allocation330_spill] sm:$0xff] }
 0x3e6   : > { %4915 = vmatpush1.bf16.msra.mxu0 %v4914_v0  ;;  %4979 = vmatpush1.bf16.msra.mxu1 %v4978_v1  ;;  %v4922_v0 = vpack.c.bf16 %v12664_v6, %v12663_v3  ;;  %v12665_v1 = vld [vmem:[#allocation299_spill] sm:$0xff]  ;;  %v12676_v3 = vld [vmem:[#allocation338_spill] sm:$0xff]  ;;  %v12678_v6 = vld [vmem:[#allocation340_spill] sm:$0xff] }
 0x3e7   : > { %4917 = vmatprep.subr.bf16.mxu0 %v4916_v9  ;;  %4981 = vmatprep.subr.bf16.mxu1 %v4980_v11  ;;  %v4986_v15 = vpack.c.bf16 %v12666_v2, %v12665_v1  ;;  %v4924_v9 = vpack.c.bf16 %v12668_v12, %v12667_v14  ;;  %v12669_v11 = vld [vmem:[#allocation316_spill] sm:$0xff]  ;;  %v12679_v2 = vld [vmem:[#allocation329_spill] sm:$0xff]  ;;  %v12682_v12 = vld [vmem:[#allocation339_spill] sm:$0xff] }
 0x3e8   : > { %v4988_v20 = vpack.c.bf16 %v12670_v10, %v12669_v11  ;;  %v12680_v14 = vld [vmem:[#allocation337_spill] sm:$0xff]  ;;  %v12683_v10 = vld [vmem:[#allocation346_spill] sm:$0xff] }
 0x3ea   : > { %4919 = vmatpush1.bf16.msra.mxu0 %v4918_v7  ;;  %4983 = vmatpush1.bf16.msra.mxu1 %v4982_v26  ;;  %v4926_v7 = vpack.c.bf16 %v12672_v8, %v12671_v42  ;;  %v12673_v26 = vld [vmem:[#allocation315_spill] sm:$0xff]  ;;  %v12684_v42 = vld [vmem:[#allocation354_spill] sm:$0xff]  ;;  %v12686_v8 = vld [vmem:[#allocation356_spill] sm:$0xff] }
 0x3eb   : > { %4921 = vmatprep.subr.bf16.mxu0 %v4920_v13  ;;  %4985 = vmatprep.subr.bf16.mxu1 %v4984_v24  ;;  %v4990_v16 = vpack.c.bf16 %v12674_v4, %v12673_v26  ;;  %v4928_v13 = vpack.c.bf16 %v12676_v3, %v12675_v62  ;;  %v12677_v24 = vld [vmem:[#allocation332_spill] sm:$0xff]  ;;  %v12687_v4 = vld [vmem:[#allocation345_spill] sm:$0xff]  ;;  %v12690_v3 = vld [vmem:[#allocation355_spill] sm:$0xff] }
 0x3ec   : > { %v4992_v1 = vpack.c.bf16 %v12678_v6, %v12677_v24  ;;  %v12688_v62 = vld [vmem:[#allocation353_spill] sm:$0xff]  ;;  %v12691_v6 = vld [vmem:[#allocation362_spill] sm:$0xff] }
 0x3ee   : > { %4923 = vmatpush1.bf16.msra.mxu0 %v4922_v0  ;;  %4987 = vmatpush1.bf16.msra.mxu1 %v4986_v15  ;;  %v4930_v0 = vpack.c.bf16 %v12680_v14, %v12679_v2  ;;  %v12681_v15 = vld [vmem:[#allocation331_spill] sm:$0xff]  ;;  %v12692_v2 = vld [vmem:[#allocation370_spill] sm:$0xff]  ;;  %v12694_v14 = vld [vmem:[#allocation372_spill] sm:$0xff] }
 0x3ef   : > { %4925 = vmatprep.subr.bf16.mxu0 %v4924_v9  ;;  %4989 = vmatprep.subr.bf16.mxu1 %v4988_v20  ;;  %v4994_v11 = vpack.c.bf16 %v12682_v12, %v12681_v15  ;;  %v4932_v9 = vpack.c.bf16 %v12684_v42, %v12683_v10  ;;  %v12685_v20 = vld [vmem:[#allocation348_spill] sm:$0xff]  ;;  %v12695_v12 = vld [vmem:[#allocation361_spill] sm:$0xff]  ;;  %v12698_v42 = vld [vmem:[#allocation371_spill] sm:$0xff] }
 0x3f0   : > { %v4996_v26 = vpack.c.bf16 %v12686_v8, %v12685_v20  ;;  %v12696_v10 = vld [vmem:[#allocation369_spill] sm:$0xff]  ;;  %v12699_v8 = vld [vmem:[#allocation378_spill] sm:$0xff] }
 0x3f2   : > { %4927 = vmatpush1.bf16.msra.mxu0 %v4926_v7  ;;  %4991 = vmatpush1.bf16.msra.mxu1 %v4990_v16  ;;  %v4934_v7 = vpack.c.bf16 %v12688_v62, %v12687_v4  ;;  %v12689_v16 = vld [vmem:[#allocation347_spill] sm:$0xff]  ;;  %v12701_v4 = vld [vmem:[#allocation386_spill] sm:$0xff] }
 0x3f3   : > { %4929 = vmatprep.subr.bf16.mxu0 %v4928_v13  ;;  %4993 = vmatprep.subr.bf16.mxu1 %v4992_v1  ;;  %v4998_v24 = vpack.c.bf16 %v12690_v3, %v12689_v16  ;;  %v4936_v13 = vpack.c.bf16 %v12692_v2, %v12691_v6  ;;  %v12693_v1 = vld [vmem:[#allocation364_spill] sm:$0xff]  ;;  %v12702_v16 = vld [vmem:[#allocation377_spill] sm:$0xff] }
 0x3f4   : > { %v5000_v15 = vpack.c.bf16 %v12694_v14, %v12693_v1  ;;  %v12703_v3 = vld [vmem:[#allocation384_spill] sm:$0xff]  ;;  %v12705_v6 = vld [vmem:[#allocation385_spill] sm:$0xff] }
 0x3f5   : > { %v12706_v1 = vld [vmem:[#allocation33_spill] sm:$0xff] }
 0x3f6   : > { %4931 = vmatpush1.bf16.msra.mxu0 %v4930_v0  ;;  %4995 = vmatpush1.bf16.msra.mxu1 %v4994_v11  ;;  %v4938_v0 = vpack.c.bf16 %v12696_v10, %v12695_v12  ;;  %v12697_v11 = vld [vmem:[#allocation363_spill] sm:$0xff]  ;;  %v12707_v14 = vld [vmem:[#allocation41_spill] sm:$0xff] }
 0x3f7   : > { %4933 = vmatprep.subr.bf16.mxu0 %v4932_v9  ;;  %4997 = vmatprep.subr.bf16.mxu1 %v4996_v26  ;;  %v5002_v20 = vpack.c.bf16 %v12698_v42, %v12697_v11  ;;  %v4940_v9 = vpack.c.bf16 %v8597_v34, %v12699_v8  ;;  %v12700_v26 = vld [vmem:[#allocation380_spill] sm:$0xff]  ;;  %v12709_v12 = vld [vmem:[#allocation43_spill] sm:$0xff]  ;;  %v12713_v8 = vld [vmem:[#allocation42_spill] sm:$0xff] }
 0x3f8   : > { %v5004_v62 = vpack.c.bf16 %v12701_v4, %v12700_v26  ;;  %v12710_v11 = vld [vmem:[#allocation32_spill] sm:$0xff]  ;;  %v12714_v4 = vld [vmem:[#allocation49_spill] sm:$0xff]  ;;  %12854 = vst [vmem:[#allocation42_spill] sm:$0xff] (%p1384_p6), %v9094_v55  ;;  %12855 = vst [vmem:[#allocation43_spill] sm:$0xff] (%p1384_p6), %v9096_v63 }
 0x3f9   : > { %v12711_v42 = vld [vmem:[#allocation40_spill] sm:$0xff]  ;;  %12861 = vst [vmem:[#allocation49_spill] sm:$0xff] (%p1384_p6), %v9108_v31  ;;  %v9114_v34 = vld [vmem:[#allocation15 + $0xa0] sm:$0xff] (%p1384_p6)  ;;  %v9696_v31 = vld [vmem:[#allocation17 + $0x1b8] sm:$0xff] (%p1384_p6) }
 0x3fa   : > { %4935 = vmatpush1.bf16.msra.mxu0 %v4934_v7  ;;  %4999 = vmatpush1.bf16.msra.mxu1 %v4998_v24  ;;  %v4942_v7 = vpack.c.bf16 %v12703_v3, %v12702_v16  ;;  %v12704_v24 = vld [vmem:[#allocation379_spill] sm:$0xff]  ;;  %v12715_v16 = vld [vmem:[#allocation57_spill] sm:$0xff]  ;;  %13135 = vst [vmem:[#allocation332_spill] sm:$0xff] (%p1384_p6), %v9696_v31 }
 0x3fb   : > { %4937 = vmatprep.subr.bf16.mxu0 %v4936_v13  ;;  %5001 = vmatprep.subr.bf16.mxu1 %v5000_v15  ;;  %v5006_v2 = vpack.c.bf16 %v12705_v6, %v12704_v24  ;;  %v5008_v13 = vpack.c.bf16 %v12707_v14, %v12706_v1  ;;  %v12708_v15 = vld [vmem:[#allocation35_spill] sm:$0xff]  ;;  %v12719_v6 = vld [vmem:[#allocation56_spill] sm:$0xff]  ;;  %v12720_v1 = vld [vmem:[#allocation50_spill] sm:$0xff]  ;;  %12869 = vst [vmem:[#allocation57_spill] sm:$0xff] (%p1384_p6), %v9124_v39 }
 0x3fc   : > { %v5040_v10 = vpack.c.bf16 %v12709_v12, %v12708_v15  ;;  %v12717_v3 = vld [vmem:[#allocation59_spill] sm:$0xff]  ;;  %v12721_v14 = vld [vmem:[#allocation58_spill] sm:$0xff]  ;;  %12862 = vst [vmem:[#allocation50_spill] sm:$0xff] (%p1384_p6), %v9110_v32  ;;  %12868 = vst [vmem:[#allocation56_spill] sm:$0xff] (%p1384_p6), %v9122_v38 }
 0x3fd   : > { %v5046_v15 = vpack.c.bf16 %v12721_v14, %v12720_v1  ;;  %v12723_v12 = vld [vmem:[#allocation80_spill] sm:$0xff]  ;;  %v12734_v14 = vld [vmem:[#allocation87_spill] sm:$0xff]  ;;  %12870 = vst [vmem:[#allocation58_spill] sm:$0xff] (%p1384_p6), %v9126_v40  ;;  %12871 = vst [vmem:[#allocation59_spill] sm:$0xff] (%p1384_p6), %v9128_v41 }
 0x3fe   : > { %4939 = vmatpush1.bf16.msra.mxu0 %v4938_v0  ;;  %5003 = vmatpush1.bf16.msra.mxu1 %v5002_v20  ;;  %v5010_v0 = vpack.c.bf16 %v12711_v42, %v12710_v11  ;;  %v12712_v20 = vld [vmem:[#allocation34_spill] sm:$0xff]  ;;  %v12724_v11 = vld [vmem:[#allocation74_spill] sm:$0xff]  ;;  %12885 = vst [vmem:[#allocation80_spill] sm:$0xff] (%p1384_p6), %v9156_v61  ;;  %v9678_v61 = vld [vmem:[#allocation17 + $0x170] sm:$0xff] (%p1384_p6) }
 0x3ff   : > { %4941 = vmatprep.subr.bf16.mxu0 %v4940_v9  ;;  %5005 = vmatprep.subr.bf16.mxu1 %v5004_v62  ;;  %v5042_v26 = vpack.c.bf16 %v12713_v8, %v12712_v20  ;;  %v5012_v9 = vpack.c.bf16 %v12715_v16, %v12714_v4  ;;  %v12716_v62 = vld [vmem:[#allocation51_spill] sm:$0xff]  ;;  %v12725_v42 = vld [vmem:[#allocation82_spill] sm:$0xff]  ;;  %v6822_v8 = vmov 0.0   ;;  %12879 = vst [vmem:[#allocation74_spill] sm:$0xff] (%p1384_p6), %v9144_v51  ;;  %13130 = vst [vmem:[#allocation327_spill] sm:$0xff] (%p1384_p6), %v9678_v61 }
 0x400   : > { %v5044_v24 = vpack.c.bf16 %v12717_v3, %v12716_v62  ;;  %v5048_v20 = vpack.c.bf16 %v12725_v42, %v12724_v11  ;;  %v12728_v4 = vld [vmem:[#allocation73_spill] sm:$0xff]  ;;  %v12730_v62 = vld [vmem:[#allocation88_spill] sm:$0xff]  ;;  %12863 = vst [vmem:[#allocation51_spill] sm:$0xff] (%p1384_p6), %v9112_v33  ;;  %12887 = vst [vmem:[#allocation82_spill] sm:$0xff] (%p1384_p6), %v9160_v21 }
 0x401   : > { %v12729_v16 = vld [vmem:[#allocation81_spill] sm:$0xff]  ;;  %v12731_v3 = vld [vmem:[#allocation96_spill] sm:$0xff]  ;;  %12878 = vst [vmem:[#allocation73_spill] sm:$0xff] (%p1384_p6), %v9142_v50  ;;  %v9668_v50 = vld [vmem:[#allocation17 + $0x148] sm:$0xff] (%p1384_p6) }
 0x402   : > { %4943 = vmatpush1.bf16.msra.mxu0 %v4942_v7  ;;  %5007 = vmatpush1.bf16.msra.mxu1 %v5006_v2  ;;  %v12718_v7 = vld [vmem:[#allocation48_spill] sm:$0xff]  ;;  %v12738_v42 = vld [vmem:[#allocation104_spill] sm:$0xff]  ;;  %12886 = vst [vmem:[#allocation81_spill] sm:$0xff] (%p1384_p6), %v9158_v57  ;;  %v9666_v57 = vld [vmem:[#allocation17 + $0x140] sm:$0xff] (%p1384_p6) }
 0x403   : > { %5009 = vmatprep.subr.bf16.mxu0 %v5008_v13  ;;  %5041 = vmatprep.subr.bf16.mxu1 %v5040_v10  ;;  %v5014_v2 = vpack.c.bf16 %v12719_v6, %v12718_v7  ;;  %v12722_v13 = vld [vmem:[#allocation72_spill] sm:$0xff]  ;;  %v12732_v7 = vld [vmem:[#allocation90_spill] sm:$0xff]  ;;  %12860 = vst [vmem:[#allocation48_spill] sm:$0xff] (%p1384_p6), %v9106_v30  ;;  %v9674_v21 = vld [vmem:[#allocation17 + $0x160] sm:$0xff] (%p1384_p6) }
 0x404   : > { %v5016_v10 = vpack.c.bf16 %v12723_v12, %v12722_v13  ;;  %v12733_v6 = vld [vmem:[#allocation98_spill] sm:$0xff]  ;;  %v12735_v13 = vld [vmem:[#allocation95_spill] sm:$0xff]  ;;  %v12737_v12 = vld [vmem:[#allocation97_spill] sm:$0xff]  ;;  %12877 = vst [vmem:[#allocation72_spill] sm:$0xff] (%p1384_p6), %v9140_v49 }
 0x405   : > { %1602 = vmatmul.mubr.f32.vlgmr.msra.gmra.mrb[2].mxu0 %v6754_v46  ;;  %1673 = vmatmul.mubr.f32.vlgmr.msra.gmra.mrb[2].mxu1 %v6754_v46  ;;  %v12726_v46 = vld [vmem:[#allocation71_spill] sm:$0xff]  ;;  %v5052_v1 = vpack.c.bf16 %v12733_v6, %v12732_v7  ;;  %v12746_v6 = vld [vmem:[#allocation120_spill] sm:$0xff]  ;;  %13128 = vst [vmem:[#allocation325_spill] sm:$0xff] (%p1384_p6), %v9674_v21  ;;  %v9676_v51 = vld [vmem:[#allocation17 + $0x168] sm:$0xff] (%p1384_p6) }
 0x406   : > { %5011 = vmatpush1.bf16.msra.mxu0 %v5010_v0  ;;  %5043 = vmatpush1.bf16.msra.mxu1 %v5042_v26  ;;  %v12727_v0 = vld [vmem:[#allocation79_spill] sm:$0xff]  ;;  %12876 = vst [vmem:[#allocation71_spill] sm:$0xff] (%p1384_p6), %v9138_v48  ;;  %v9672_v48 = vld [vmem:[#allocation17 + $0x158] sm:$0xff] (%p1384_p6)  ;;  %13129 = vst [vmem:[#allocation326_spill] sm:$0xff] (%p1384_p6), %v9676_v51 }
 0x407   : > { %5013 = vmatprep.subr.bf16.mxu0 %v5012_v9  ;;  %5045 = vmatprep.subr.bf16.mxu1 %v5044_v24  ;;  %v5018_v26 = vpack.c.bf16 %v12727_v0, %v12726_v46  ;;  %v5050_v9 = vpack.c.bf16 %v12729_v16, %v12728_v4  ;;  %v5020_v24 = vpack.c.bf16 %v12731_v3, %v12730_v62  ;;  %v12739_v46 = vld [vmem:[#allocation112_spill] sm:$0xff]  ;;  %v12741_v0 = vld [vmem:[#allocation114_spill] sm:$0xff]  ;;  %v12742_v16 = vld [vmem:[#allocation103_spill] sm:$0xff] }
 0x408   : > { %1743 = vmatprep.mubr.f32.mxu0 %v6822_v8  ;;  %1814 = vmatprep.mubr.f32.mxu1 %v6822_v8  ;;  %v12743_v62 = vld [vmem:[#allocation111_spill] sm:$0xff]  ;;  %v12745_v3 = vld [vmem:[#allocation113_spill] sm:$0xff]  ;;  %12884 = vst [vmem:[#allocation79_spill] sm:$0xff] (%p1384_p6), %v9154_v60  ;;  %v9680_v49 = vld [vmem:[#allocation17 + $0x178] sm:$0xff] (%p1384_p6) }
 0x409   :  { %v9670_v60 = vld [vmem:[#allocation17 + $0x150] sm:$0xff] (%p1384_p6)  ;;  %13131 = vst [vmem:[#allocation328_spill] sm:$0xff] (%p1384_p6), %v9680_v49  ;;  %v9682_v40 = vld [vmem:[#allocation17 + $0x180] sm:$0xff] (%p1384_p6)  ;;  %v9684_v32 = vld [vmem:[#allocation17 + $0x188] sm:$0xff] (%p1384_p6) }
 0x40a   : > { %5015 = vmatpush1.bf16.msra.mxu0 %v5014_v2  ;;  %5047 = vmatpush1.bf16.msra.mxu1 %v5046_v15  ;;  %v5022_v2 = vpack.c.bf16 %v12735_v13, %v12734_v14  ;;  %v12736_v15 = vld [vmem:[#allocation89_spill] sm:$0xff]  ;;  %v12747_v14 = vld [vmem:[#allocation130_spill] sm:$0xff]  ;;  %v12749_v13 = vld [vmem:[#allocation132_spill] sm:$0xff] }
 0x40b   : > { %5017 = vmatprep.subr.bf16.mxu0 %v5016_v10  ;;  %5049 = vmatprep.subr.bf16.mxu1 %v5048_v20  ;;  %v5054_v11 = vpack.c.bf16 %v12737_v12, %v12736_v15  ;;  %v5024_v10 = vpack.c.bf16 %v12739_v46, %v12738_v42  ;;  %v12740_v20 = vld [vmem:[#allocation106_spill] sm:$0xff]  ;;  %v12750_v12 = vld [vmem:[#allocation119_spill] sm:$0xff]  ;;  %v12752_v42 = vld [vmem:[#allocation121_spill] sm:$0xff] }
 0x40c   : > { %v5056_v4 = vpack.c.bf16 %v12741_v0, %v12740_v20  ;;  %v12753_v46 = vld [vmem:[#allocation131_spill] sm:$0xff]  ;;  %v12754_v0 = vld [vmem:[#allocation138_spill] sm:$0xff]  ;;  %v9686_v38 = vld [vmem:[#allocation17 + $0x190] sm:$0xff] (%p1384_p6) }
 0x40d   : > { %v5062_v20 = vpack.c.bf16 %v12753_v46, %v12752_v42  ;;  %v12766_v46 = vld [vmem:[#allocation153_spill] sm:$0xff]  ;;  %v9688_v30 = vld [vmem:[#allocation17 + $0x198] sm:$0xff] (%p1384_p6)  ;;  %v9690_v41 = vld [vmem:[#allocation17 + $0x1a0] sm:$0xff] (%p1384_p6) }
 0x40e   : > { %5019 = vmatpush1.bf16.msra.mxu0 %v5018_v26  ;;  %5051 = vmatpush1.bf16.msra.mxu1 %v5050_v9  ;;  %v5026_v26 = vpack.c.bf16 %v12743_v62, %v12742_v16  ;;  %v12744_v9 = vld [vmem:[#allocation105_spill] sm:$0xff]  ;;  %v12756_v16 = vld [vmem:[#allocation140_spill] sm:$0xff]  ;;  %13132 = vst [vmem:[#allocation329_spill] sm:$0xff] (%p1384_p6), %v9690_v41  ;;  %v9694_v39 = vld [vmem:[#allocation17 + $0x1b0] sm:$0xff] (%p1384_p6) }
 0x40f   : > { %5021 = vmatprep.subr.bf16.mxu0 %v5020_v24  ;;  %5053 = vmatprep.subr.bf16.mxu1 %v5052_v1  ;;  %v5058_v7 = vpack.c.bf16 %v12745_v3, %v12744_v9  ;;  %v5028_v24 = vpack.c.bf16 %v12747_v14, %v12746_v6  ;;  %v12748_v1 = vld [vmem:[#allocation122_spill] sm:$0xff]  ;;  %v12758_v3 = vld [vmem:[#allocation137_spill] sm:$0xff]  ;;  %v12761_v14 = vld [vmem:[#allocation147_spill] sm:$0xff]  ;;  %13134 = vst [vmem:[#allocation331_spill] sm:$0xff] (%p1384_p6), %v9694_v39 }
 0x410   : > { %v5060_v15 = vpack.c.bf16 %v12749_v13, %v12748_v1  ;;  %v12757_v62 = vld [vmem:[#allocation148_spill] sm:$0xff]  ;;  %v12762_v13 = vld [vmem:[#allocation154_spill] sm:$0xff]  ;;  %v9698_v55 = vld [vmem:[#allocation17 + $0x1c0] sm:$0xff] (%p1384_p6) }
 0x411   : > { %v5064_v9 = vpack.c.bf16 %v12757_v62, %v12756_v16  ;;  %v12770_v62 = vld [vmem:[#allocation37_spill] sm:$0xff]  ;;  %v9692_v33 = vld [vmem:[#allocation17 + $0x1a8] sm:$0xff] (%p1384_p6)  ;;  %v9706_v63 = vld [vmem:[#allocation17 + $0x1e0] sm:$0xff] (%p1384_p6) }
 0x412   : > { %5023 = vmatpush1.bf16.msra.mxu0 %v5022_v2  ;;  %5055 = vmatpush1.bf16.msra.mxu1 %v5054_v11  ;;  %v12751_v2 = vld [vmem:[#allocation129_spill] sm:$0xff]  ;;  %13133 = vst [vmem:[#allocation330_spill] sm:$0xff] (%p1384_p6), %v9692_v33  ;;  %13139 = vst [vmem:[#allocation336_spill] sm:$0xff] (%p1384_p6), %v9706_v63  ;;  %v9714_v41 = vld [vmem:[#allocation17 + $0x200] sm:$0xff] (%p1384_p6) }
 0x413   : > { %5025 = vmatprep.subr.bf16.mxu0 %v5024_v10  ;;  %5057 = vmatprep.subr.bf16.mxu1 %v5056_v4  ;;  %v5030_v11 = vpack.c.bf16 %v12751_v2, %v12750_v12  ;;  %v12755_v10 = vld [vmem:[#allocation146_spill] sm:$0xff]  ;;  %v12765_v2 = vld [vmem:[#allocation164_spill] sm:$0xff]  ;;  %v9718_v31 = vld [vmem:[#allocation17 + $0x210] sm:$0xff] (%p1384_p6) }
 0x414   : > { %v5032_v4 = vpack.c.bf16 %v12755_v10, %v12754_v0  ;;  %v12763_v12 = vld [vmem:[#allocation162_spill] sm:$0xff]  ;;  %v12768_v0 = vld [vmem:[#allocation155_spill] sm:$0xff]  ;;  %v9716_v39 = vld [vmem:[#allocation17 + $0x208] sm:$0xff] (%p1384_p6) }
 0x415   : > { %v12769_v10 = vld [vmem:[#allocation163_spill] sm:$0xff]  ;;  %v9720_v33 = vld [vmem:[#allocation17 + $0x218] sm:$0xff] (%p1384_p6)  ;;  %v9726_v21 = vld [vmem:[#allocation17 + $0x230] sm:$0xff] (%p1384_p6) }
 0x416   : > { %5027 = vmatpush1.bf16.msra.mxu0 %v5026_v26  ;;  %5059 = vmatpush1.bf16.msra.mxu1 %v5058_v7  ;;  %v12759_v26 = vld [vmem:[#allocation145_spill] sm:$0xff]  ;;  %v12760_v7 = vld [vmem:[#allocation139_spill] sm:$0xff]  ;;  %v5070_v16 = vpack.c.bf16 %v12769_v10, %v12768_v0  ;;  %13145 = vst [vmem:[#allocation342_spill] sm:$0xff] (%p1384_p6), %v9726_v21  ;;  %v9728_v63 = vld [vmem:[#allocation17 + $0x238] sm:$0xff] (%p1384_p6) }
 0x417   : > { %5029 = vmatprep.subr.bf16.mxu0 %v5028_v24  ;;  %5061 = vmatprep.subr.bf16.mxu1 %v5060_v15  ;;  %v5034_v6 = vpack.c.bf16 %v12759_v26, %v12758_v3  ;;  %v5066_v1 = vpack.c.bf16 %v12761_v14, %v12760_v7  ;;  %v5036_v24 = vpack.c.bf16 %v12763_v12, %v12762_v13  ;;  %v12764_v15 = vld [vmem:[#allocation156_spill] sm:$0xff]  ;;  %v12772_v3 = vld [vmem:[#allocation39_spill] sm:$0xff]  ;;  %v8968_v14 = vld [vmem:[%s1393_s3] sm:$0xff] }
 0x418   : > { %v5068_v42 = vpack.c.bf16 %v12765_v2, %v12764_v15  ;;  %v12773_v26 = vld [vmem:[#allocation47_spill] sm:$0xff]  ;;  %v12776_v12 = vld [vmem:[#allocation38_spill] sm:$0xff]  ;;  %13146 = vst [vmem:[#allocation343_spill] sm:$0xff] (%p1384_p6), %v9728_v63  ;;  %v9742_v51 = vld [vmem:[#allocation17 + $0x270] sm:$0xff] (%p1384_p6) }
 0x419   : > { %v5104_v7 = vpack.c.bf16 %v12773_v26, %v12772_v3  ;;  %v12777_v15 = vld [vmem:[#allocation46_spill] sm:$0xff]  ;;  %v12781_v0 = vld [vmem:[#allocation63_spill] sm:$0xff]  ;;  %12859 = vst [vmem:[#allocation47_spill] sm:$0xff] (%p1384_p6), %v9104_v29  ;;  %13151 = vst [vmem:[#allocation348_spill] sm:$0xff] (%p1384_p6), %v9742_v51 }
 0x41a   : > { %5031 = vmatpush1.bf16.msra.mxu0 %v5030_v11  ;;  %5063 = vmatpush1.bf16.msra.mxu1 %v5062_v20  ;;  %v12767_v11 = vld [vmem:[#allocation161_spill] sm:$0xff]  ;;  %v5106_v2 = vpack.c.bf16 %v12777_v15, %v12776_v12  ;;  %v12785_v3 = vld [vmem:[#allocation62_spill] sm:$0xff]  ;;  %v12789_v12 = vld [vmem:[#allocation86_spill] sm:$0xff]  ;;  %12858 = vst [vmem:[#allocation46_spill] sm:$0xff] (%p1384_p6), %v9102_v28 }
 0x41b   : > { %5033 = vmatprep.subr.bf16.mxu0 %v5032_v4  ;;  %5065 = vmatprep.subr.bf16.mxu1 %v5064_v9  ;;  %v5038_v20 = vpack.c.bf16 %v12767_v11, %v12766_v46  ;;  %v12771_v4 = vld [vmem:[#allocation45_spill] sm:$0xff]  ;;  %v12780_v11 = vld [vmem:[#allocation55_spill] sm:$0xff]  ;;  %12874 = vst [vmem:[#allocation62_spill] sm:$0xff] (%p1384_p6), %v9134_v45  ;;  %12875 = vst [vmem:[#allocation63_spill] sm:$0xff] (%p1384_p6), %v9136_v47 }
 0x41c   : > { %v5072_v9 = vpack.c.bf16 %v12771_v4, %v12770_v62  ;;  %v5108_v10 = vpack.c.bf16 %v12781_v0, %v12780_v11  ;;  %v12784_v4 = vld [vmem:[#allocation54_spill] sm:$0xff]  ;;  %v12793_v11 = vld [vmem:[#allocation85_spill] sm:$0xff]  ;;  %12857 = vst [vmem:[#allocation45_spill] sm:$0xff] (%p1384_p6), %v9100_v25  ;;  %12867 = vst [vmem:[#allocation55_spill] sm:$0xff] (%p1384_p6), %v9120_v37 }
 0x41d   : > { %v5110_v26 = vpack.c.bf16 %v12785_v3, %v12784_v4  ;;  %v12797_v4 = vld [vmem:[#allocation102_spill] sm:$0xff]  ;;  %12866 = vst [vmem:[#allocation54_spill] sm:$0xff] (%p1384_p6), %v9118_v36  ;;  %12890 = vst [vmem:[#allocation85_spill] sm:$0xff] (%p1384_p6), %v9166_v23  ;;  %v9210_v23 = vld [vmem:[#allocation15 + $0x220] sm:$0xff] (%p1384_p6) }
 0x41e   : > { %5035 = vmatpush1.bf16.msra.mxu0 %v5034_v6  ;;  %5067 = vmatpush1.bf16.msra.mxu1 %v5066_v1  ;;  %v12774_v6 = vld [vmem:[#allocation36_spill] sm:$0xff]  ;;  %12891 = vst [vmem:[#allocation86_spill] sm:$0xff] (%p1384_p6), %v9168_v27  ;;  %v9226_v27 = vld [vmem:[#allocation15 + $0x260] sm:$0xff] (%p1384_p6)  ;;  %v9294_v25 = vld [vmem:[#allocation15 + $0x370] sm:$0xff] (%p1384_p6) }
 0x41f   : > { %5037 = vmatprep.subr.bf16.mxu0 %v5036_v24  ;;  %5069 = vmatprep.subr.bf16.mxu1 %v5068_v42  ;;  %v12775_v1 = vld [vmem:[#allocation44_spill] sm:$0xff]  ;;  %v12778_v24 = vld [vmem:[#allocation53_spill] sm:$0xff]  ;;  %v9242_v45 = vld [vmem:[#allocation15 + $0x2a0] sm:$0xff] (%p1384_p6) }
 0x420   : > { %v5074_v13 = vpack.c.bf16 %v12775_v1, %v12774_v6  ;;  %v12779_v42 = vld [vmem:[#allocation61_spill] sm:$0xff]  ;;  %v12788_v1 = vld [vmem:[#allocation78_spill] sm:$0xff]  ;;  %12856 = vst [vmem:[#allocation44_spill] sm:$0xff] (%p1384_p6), %v9098_v58  ;;  %12865 = vst [vmem:[#allocation53_spill] sm:$0xff] (%p1384_p6), %v9116_v35 }
 0x421   : > { %v5076_v46 = vpack.c.bf16 %v12779_v42, %v12778_v24  ;;  %v5112_v15 = vpack.c.bf16 %v12789_v12, %v12788_v1  ;;  %v12792_v42 = vld [vmem:[#allocation77_spill] sm:$0xff]  ;;  %v12802_v12 = vld [vmem:[#allocation108_spill] sm:$0xff]  ;;  %12873 = vst [vmem:[#allocation61_spill] sm:$0xff] (%p1384_p6), %v9132_v44  ;;  %12883 = vst [vmem:[#allocation78_spill] sm:$0xff] (%p1384_p6), %v9152_v56 }
 0x422   : > { %5039 = vmatpush1.bf16.msra.mxu0 %v5038_v20  ;;  %5071 = vmatpush1.bf16.msra.mxu1 %v5070_v16  ;;  %v12782_v20 = vld [vmem:[#allocation52_spill] sm:$0xff]  ;;  %v5114_v0 = vpack.c.bf16 %v12793_v11, %v12792_v42  ;;  %v12806_v11 = vld [vmem:[#allocation107_spill] sm:$0xff]  ;;  %12882 = vst [vmem:[#allocation77_spill] sm:$0xff] (%p1384_p6), %v9150_v54  ;;  %v9258_v47 = vld [vmem:[#allocation15 + $0x2e0] sm:$0xff] (%p1384_p6) }
 0x423   : > { %5073 = vmatprep.subr.bf16.mxu0 %v5072_v9  ;;  %5105 = vmatprep.subr.bf16.mxu1 %v5104_v7  ;;  %v12783_v16 = vld [vmem:[#allocation60_spill] sm:$0xff]  ;;  %v12786_v9 = vld [vmem:[#allocation76_spill] sm:$0xff]  ;;  %12864 = vst [vmem:[#allocation52_spill] sm:$0xff] (%p1384_p6), %v9114_v34  ;;  %12912 = vst [vmem:[#allocation107_spill] sm:$0xff] (%p1384_p6), %v9210_v23 }
 0x424   : > { %v5078_v62 = vpack.c.bf16 %v12783_v16, %v12782_v20  ;;  %v12787_v7 = vld [vmem:[#allocation84_spill] sm:$0xff]  ;;  %v12796_v16 = vld [vmem:[#allocation94_spill] sm:$0xff]  ;;  %12872 = vst [vmem:[#allocation60_spill] sm:$0xff] (%p1384_p6), %v9130_v43  ;;  %12881 = vst [vmem:[#allocation76_spill] sm:$0xff] (%p1384_p6), %v9148_v53 }
 0x425   : > { %1744 = vmatmul.mubr.f32.vlgmr.msra.gmra.mrb[0].mxu0 %v8968_v14  ;;  %1815 = vmatmul.mubr.f32.vlgmr.msra.gmra.mrb[0].mxu1 %v8968_v14  ;;  %v5080_v6 = vpack.c.bf16 %v12787_v7, %v12786_v9  ;;  %v5116_v3 = vpack.c.bf16 %v12797_v4, %v12796_v16  ;;  %v12798_v9 = vld [vmem:[#allocation91_spill] sm:$0xff]  ;;  %v12801_v7 = vld [vmem:[#allocation101_spill] sm:$0xff]  ;;  %v12810_v4 = vld [vmem:[#allocation124_spill] sm:$0xff]  ;;  %12889 = vst [vmem:[#allocation84_spill] sm:$0xff] (%p1384_p6), %v9164_v22 }
 0x426   : > { %5075 = vmatpush1.bf16.msra.mxu0 %v5074_v13  ;;  %5107 = vmatpush1.bf16.msra.mxu1 %v5106_v2  ;;  %v12790_v13 = vld [vmem:[#allocation75_spill] sm:$0xff]  ;;  %v9212_v54 = vld [vmem:[#allocation15 + $0x228] sm:$0xff] (%p1384_p6)  ;;  %v9232_v23 = vld [vmem:[#allocation15 + $0x278] sm:$0xff] (%p1384_p6) }
 0x427   : > { %5077 = vmatprep.subr.bf16.mxu0 %v5076_v46  ;;  %5109 = vmatprep.subr.bf16.mxu1 %v5108_v10  ;;  %v12791_v2 = vld [vmem:[#allocation83_spill] sm:$0xff]  ;;  %v12794_v46 = vld [vmem:[#allocation92_spill] sm:$0xff]  ;;  %12880 = vst [vmem:[#allocation75_spill] sm:$0xff] (%p1384_p6), %v9146_v52  ;;  %12913 = vst [vmem:[#allocation108_spill] sm:$0xff] (%p1384_p6), %v9212_v54 }
 0x428   : > { %1885 = vmatprep.mubr.f32.mxu0 %v6822_v8  ;;  %1956 = vmatprep.mubr.f32.mxu1 %v6822_v8  ;;  %v5082_v24 = vpack.c.bf16 %v12791_v2, %v12790_v13  ;;  %v12795_v10 = vld [vmem:[#allocation100_spill] sm:$0xff]  ;;  %v12799_v8 = vld [vmem:[#allocation99_spill] sm:$0xff]  ;;  %v12805_v2 = vld [vmem:[#allocation118_spill] sm:$0xff]  ;;  %12888 = vst [vmem:[#allocation83_spill] sm:$0xff] (%p1384_p6), %v9162_v59 }
 0x429   : > { %v5084_v20 = vpack.c.bf16 %v12795_v10, %v12794_v46  ;;  %v12803_v13 = vld [vmem:[#allocation116_spill] sm:$0xff]  ;;  %v12807_v46 = vld [vmem:[#allocation115_spill] sm:$0xff]  ;;  %v12809_v10 = vld [vmem:[#allocation117_spill] sm:$0xff]  ;;  %12923 = vst [vmem:[#allocation118_spill] sm:$0xff] (%p1384_p6), %v9232_v23 }
 0x42a   : > { %5079 = vmatpush1.bf16.msra.mxu0 %v5078_v62  ;;  %5111 = vmatpush1.bf16.msra.mxu1 %v5110_v26  ;;  %v5086_v62 = vpack.c.bf16 %v12799_v8, %v12798_v9  ;;  %v12800_v26 = vld [vmem:[#allocation93_spill] sm:$0xff]  ;;  %v12811_v9 = vld [vmem:[#allocation134_spill] sm:$0xff]  ;;  %v12813_v8 = vld [vmem:[#allocation136_spill] sm:$0xff]  ;;  %12920 = vst [vmem:[#allocation115_spill] sm:$0xff] (%p1384_p6), %v9226_v27 }
 0x42b   : > { %5081 = vmatprep.subr.bf16.mxu0 %v5080_v6  ;;  %5113 = vmatprep.subr.bf16.mxu1 %v5112_v15  ;;  %v5118_v1 = vpack.c.bf16 %v12801_v7, %v12800_v26  ;;  %v5088_v6 = vpack.c.bf16 %v12803_v13, %v12802_v12  ;;  %v12804_v15 = vld [vmem:[#allocation110_spill] sm:$0xff]  ;;  %v12814_v7 = vld [vmem:[#allocation123_spill] sm:$0xff]  ;;  %v12817_v13 = vld [vmem:[#allocation135_spill] sm:$0xff] }
 0x42c   : > { %v5120_v42 = vpack.c.bf16 %v12805_v2, %v12804_v15  ;;  %v12815_v12 = vld [vmem:[#allocation133_spill] sm:$0xff]  ;;  %v12818_v2 = vld [vmem:[#allocation142_spill] sm:$0xff]  ;;  %v9228_v56 = vld [vmem:[#allocation15 + $0x268] sm:$0xff] (%p1384_p6)  ;;  %12928 = vst [vmem:[#allocation123_spill] sm:$0xff] (%p1384_p6), %v9242_v45 }
 0x42d   :  { %v9214_v59 = vld [vmem:[#allocation15 + $0x230] sm:$0xff] (%p1384_p6)  ;;  %v9224_v52 = vld [vmem:[#allocation15 + $0x258] sm:$0xff] (%p1384_p6)  ;;  %12921 = vst [vmem:[#allocation116_spill] sm:$0xff] (%p1384_p6), %v9228_v56  ;;  %v9234_v54 = vld [vmem:[#allocation15 + $0x280] sm:$0xff] (%p1384_p6) }
 0x42e   : > { %5083 = vmatpush1.bf16.msra.mxu0 %v5082_v24  ;;  %5115 = vmatpush1.bf16.msra.mxu1 %v5114_v0  ;;  %v5090_v24 = vpack.c.bf16 %v12807_v46, %v12806_v11  ;;  %v12808_v0 = vld [vmem:[#allocation109_spill] sm:$0xff]  ;;  %v12819_v11 = vld [vmem:[#allocation150_spill] sm:$0xff]  ;;  %v12821_v46 = vld [vmem:[#allocation152_spill] sm:$0xff]  ;;  %12919 = vst [vmem:[#allocation114_spill] sm:$0xff] (%p1384_p6), %v9224_v52 }
 0x42f   : > { %5085 = vmatprep.subr.bf16.mxu0 %v5084_v20  ;;  %5117 = vmatprep.subr.bf16.mxu1 %v5116_v3  ;;  %v5122_v16 = vpack.c.bf16 %v12809_v10, %v12808_v0  ;;  %v5092_v20 = vpack.c.bf16 %v12811_v9, %v12810_v4  ;;  %v12812_v3 = vld [vmem:[#allocation128_spill] sm:$0xff]  ;;  %v12822_v10 = vld [vmem:[#allocation141_spill] sm:$0xff]  ;;  %v12825_v9 = vld [vmem:[#allocation151_spill] sm:$0xff]  ;;  %12914 = vst [vmem:[#allocation109_spill] sm:$0xff] (%p1384_p6), %v9214_v59 }
 0x430   : > { %v5124_v26 = vpack.c.bf16 %v12813_v8, %v12812_v3  ;;  %v12823_v4 = vld [vmem:[#allocation149_spill] sm:$0xff]  ;;  %v12826_v8 = vld [vmem:[#allocation158_spill] sm:$0xff]  ;;  %12924 = vst [vmem:[#allocation119_spill] sm:$0xff] (%p1384_p6), %v9234_v54  ;;  %v9236_v59 = vld [vmem:[#allocation15 + $0x288] sm:$0xff] (%p1384_p6) }
 0x431   :  { %v9230_v22 = vld [vmem:[#allocation15 + $0x270] sm:$0xff] (%p1384_p6)  ;;  %12925 = vst [vmem:[#allocation120_spill] sm:$0xff] (%p1384_p6), %v9236_v59  ;;  %v9240_v53 = vld [vmem:[#allocation15 + $0x298] sm:$0xff] (%p1384_p6)  ;;  %v9244_v36 = vld [vmem:[#allocation15 + $0x2a8] sm:$0xff] (%p1384_p6) }
 0x432   : > { %5087 = vmatpush1.bf16.msra.mxu0 %v5086_v62  ;;  %5119 = vmatpush1.bf16.msra.mxu1 %v5118_v1  ;;  %v5094_v62 = vpack.c.bf16 %v12815_v12, %v12814_v7  ;;  %v12816_v1 = vld [vmem:[#allocation125_spill] sm:$0xff]  ;;  %v12827_v7 = vld [vmem:[#allocation166_spill] sm:$0xff]  ;;  %v12829_v12 = vld [vmem:[#allocation168_spill] sm:$0xff]  ;;  %12922 = vst [vmem:[#allocation117_spill] sm:$0xff] (%p1384_p6), %v9230_v22 }
 0x433   : > { %5089 = vmatprep.subr.bf16.mxu0 %v5088_v6  ;;  %5121 = vmatprep.subr.bf16.mxu1 %v5120_v42  ;;  %v5126_v15 = vpack.c.bf16 %v12817_v13, %v12816_v1  ;;  %v5096_v6 = vpack.c.bf16 %v12819_v11, %v12818_v2  ;;  %v12820_v42 = vld [vmem:[#allocation144_spill] sm:$0xff]  ;;  %v12830_v13 = vld [vmem:[#allocation157_spill] sm:$0xff]  ;;  %v12833_v11 = vld [vmem:[#allocation167_spill] sm:$0xff]  ;;  %12927 = vst [vmem:[#allocation122_spill] sm:$0xff] (%p1384_p6), %v9240_v53 }
 0x434   : > { %v5128_v0 = vpack.c.bf16 %v12821_v46, %v12820_v42  ;;  %v12831_v2 = vld [vmem:[#allocation165_spill] sm:$0xff]  ;;  %v12835_v46 = vld [vmem:[#allocation387_spill] sm:$0xff]  ;;  %12929 = vst [vmem:[#allocation124_spill] sm:$0xff] (%p1384_p6), %v9244_v36  ;;  %v9248_v27 = vld [vmem:[#allocation15 + $0x2b8] sm:$0xff] (%p1384_p6) }
 0x435   :  { %v9246_v43 = vld [vmem:[#allocation15 + $0x2b0] sm:$0xff] (%p1384_p6)  ;;  %12931 = vst [vmem:[#allocation128_spill] sm:$0xff] (%p1384_p6), %v9248_v27  ;;  %v9250_v56 = vld [vmem:[#allocation15 + $0x2c0] sm:$0xff] (%p1384_p6)  ;;  %v9252_v22 = vld [vmem:[#allocation15 + $0x2c8] sm:$0xff] (%p1384_p6) }
 0x436   : > { %5091 = vmatpush1.bf16.msra.mxu0 %v5090_v24  ;;  %5123 = vmatpush1.bf16.msra.mxu1 %v5122_v16  ;;  %v5098_v24 = vpack.c.bf16 %v12823_v4, %v12822_v10  ;;  %v12824_v16 = vld [vmem:[#allocation143_spill] sm:$0xff]  ;;  %v12837_v4 = vld [vmem:[#allocation70_spill] sm:$0xff]  ;;  %12930 = vst [vmem:[#allocation125_spill] sm:$0xff] (%p1384_p6), %v9246_v43  ;;  %12932 = vst [vmem:[#allocation129_spill] sm:$0xff] (%p1384_p6), %v9250_v56 }
 0x437   : > { %5093 = vmatprep.subr.bf16.mxu0 %v5092_v20  ;;  %5125 = vmatprep.subr.bf16.mxu1 %v5124_v26  ;;  %v5130_v3 = vpack.c.bf16 %v12825_v9, %v12824_v16  ;;  %v5100_v20 = vpack.c.bf16 %v12827_v7, %v12826_v8  ;;  %v12828_v26 = vld [vmem:[#allocation160_spill] sm:$0xff]  ;;  %12933 = vst [vmem:[#allocation130_spill] sm:$0xff] (%p1384_p6), %v9252_v22  ;;  %v9254_v23 = vld [vmem:[#allocation15 + $0x2d0] sm:$0xff] (%p1384_p6)  ;;  %v9256_v34 = vld [vmem:[#allocation15 + $0x2d8] sm:$0xff] (%p1384_p6) }
 0x438   : > { %v5132_v1 = vpack.c.bf16 %v12829_v12, %v12828_v26  ;;  %v12839_v26 = vld [vmem:[#allocation69_spill] sm:$0xff]  ;;  %12934 = vst [vmem:[#allocation131_spill] sm:$0xff] (%p1384_p6), %v9254_v23  ;;  %12935 = vst [vmem:[#allocation132_spill] sm:$0xff] (%p1384_p6), %v9256_v34  ;;  %v9260_v37 = vld [vmem:[#allocation15 + $0x2e8] sm:$0xff] (%p1384_p6) }
 0x439   :  { %12936 = vst [vmem:[#allocation133_spill] sm:$0xff] (%p1384_p6), %v9258_v47  ;;  %12937 = vst [vmem:[#allocation134_spill] sm:$0xff] (%p1384_p6), %v9260_v37  ;;  %v9262_v44 = vld [vmem:[#allocation15 + $0x2f0] sm:$0xff] (%p1384_p6)  ;;  %v9264_v45 = vld [vmem:[#allocation15 + $0x2f8] sm:$0xff] (%p1384_p6) }
 0x43a   : > { %5095 = vmatpush1.bf16.msra.mxu0 %v5094_v62  ;;  %5127 = vmatpush1.bf16.msra.mxu1 %v5126_v15  ;;  %v5102_v62 = vpack.c.bf16 %v12831_v2, %v12830_v13  ;;  %v12832_v15 = vld [vmem:[#allocation159_spill] sm:$0xff]  ;;  %12938 = vst [vmem:[#allocation135_spill] sm:$0xff] (%p1384_p6), %v9262_v44  ;;  %12939 = vst [vmem:[#allocation136_spill] sm:$0xff] (%p1384_p6), %v9264_v45  ;;  %v9268_v43 = vld [vmem:[#allocation15 + $0x308] sm:$0xff] (%p1384_p6) }
 0x43b   : > { %5097 = vmatprep.subr.bf16.mxu0 %v5096_v6  ;;  %5129 = vmatprep.subr.bf16.mxu1 %v5128_v0  ;;  %v5134_v42 = vpack.c.bf16 %v12833_v11, %v12832_v15  ;;  %v12834_v6 = vld [vmem:[#allocation67_spill] sm:$0xff]  ;;  %v12836_v0 = vmov %v12835_v46  ;;  %v9266_v36 = vld [vmem:[#allocation15 + $0x300] sm:$0xff] (%p1384_p6)  ;;  %12941 = vst [vmem:[#allocation138_spill] sm:$0xff] (%p1384_p6), %v9268_v43  ;;  %v9272_v35 = vld [vmem:[#allocation15 + $0x318] sm:$0xff] (%p1384_p6) }
 0x43c   : > { %v1967_v10 = vrot.slane %v12835_v46, %v12834_v6  ;;  %v1979_v12 = vrot.slane %v12836_v0, %v12839_v26  ;;  %12940 = vst [vmem:[#allocation137_spill] sm:$0xff] (%p1384_p6), %v9266_v36  ;;  %v9270_v27 = vld [vmem:[#allocation15 + $0x310] sm:$0xff] (%p1384_p6)  ;;  %12943 = vst [vmem:[#allocation140_spill] sm:$0xff] (%p1384_p6), %v9272_v35  ;;  %v9274_v28 = vld [vmem:[#allocation15 + $0x320] sm:$0xff] (%p1384_p6) }
 0x43d   :  { %12942 = vst [vmem:[#allocation139_spill] sm:$0xff] (%p1384_p6), %v9270_v27  ;;  %12944 = vst [vmem:[#allocation141_spill] sm:$0xff] (%p1384_p6), %v9274_v28  ;;  %v9278_v58 = vld [vmem:[#allocation15 + $0x330] sm:$0xff] (%p1384_p6)  ;;  %v9280_v47 = vld [vmem:[#allocation15 + $0x338] sm:$0xff] (%p1384_p6) }
 0x43e   : > { %5099 = vmatpush1.bf16.msra.mxu0 %v5098_v24  ;;  %5131 = vmatpush1.bf16.msra.mxu1 %v5130_v3  ;;  %v1975_v24 = vrot.slane %v12836_v0, %v12837_v4  ;;  %v12838_v3 = vld [vmem:[#allocation68_spill] sm:$0xff]  ;;  %12946 = vst [vmem:[#allocation143_spill] sm:$0xff] (%p1384_p6), %v9278_v58  ;;  %12947 = vst [vmem:[#allocation144_spill] sm:$0xff] (%p1384_p6), %v9280_v47  ;;  %v9282_v37 = vld [vmem:[#allocation15 + $0x340] sm:$0xff] (%p1384_p6) }
 0x43f   : > { %5101 = vmatprep.subr.bf16.mxu0 %v5100_v20  ;;  %5133 = vmatprep.subr.bf16.mxu1 %v5132_v1  ;;  %v1971_v8 = vrot.slane %v12836_v0, %v12838_v3  ;;  %12948 = vst [vmem:[#allocation145_spill] sm:$0xff] (%p1384_p6), %v9282_v37  ;;  %v9284_v44 = vld [vmem:[#allocation15 + $0x348] sm:$0xff] (%p1384_p6)  ;;  %v9286_v45 = vld [vmem:[#allocation15 + $0x350] sm:$0xff] (%p1384_p6)  ;;  %v9290_v29 = vld [vmem:[#allocation15 + $0x360] sm:$0xff] (%p1384_p6) }
 0x440   :  { %12949 = vst [vmem:[#allocation146_spill] sm:$0xff] (%p1384_p6), %v9284_v44  ;;  %12950 = vst [vmem:[#allocation147_spill] sm:$0xff] (%p1384_p6), %v9286_v45  ;;  %v9296_v28 = vld [vmem:[#allocation15 + $0x378] sm:$0xff] (%p1384_p6)  ;;  %v9300_v58 = vld [vmem:[#allocation15 + $0x388] sm:$0xff] (%p1384_p6) }
 0x441   :  { %12952 = vst [vmem:[#allocation149_spill] sm:$0xff] (%p1384_p6), %v9290_v29  ;;  %12954 = vst [vmem:[#allocation151_spill] sm:$0xff] (%p1384_p6), %v9294_v25  ;;  %v9302_v47 = vld [vmem:[#allocation15 + $0x390] sm:$0xff] (%p1384_p6)  ;;  %v9306_v27 = vld [vmem:[#allocation15 + $0x3a0] sm:$0xff] (%p1384_p6) }
 0x442   : > { %5103 = vmatpush1.bf16.msra.mxu0 %v5102_v62  ;;  %5135 = vmatpush1.bf16.msra.mxu1 %v5134_v42  ;;  %12955 = vst [vmem:[#allocation152_spill] sm:$0xff] (%p1384_p6), %v9296_v28  ;;  %12957 = vst [vmem:[#allocation154_spill] sm:$0xff] (%p1384_p6), %v9300_v58  ;;  %v9308_v45 = vld [vmem:[#allocation15 + $0x3a8] sm:$0xff] (%p1384_p6)  ;;  %v9310_v37 = vld [vmem:[#allocation15 + $0x3b0] sm:$0xff] (%p1384_p6) }
 0x443   :  { %12958 = vst [vmem:[#allocation155_spill] sm:$0xff] (%p1384_p6), %v9302_v47  ;;  %12960 = vst [vmem:[#allocation157_spill] sm:$0xff] (%p1384_p6), %v9306_v27  ;;  %v9312_v29 = vld [vmem:[#allocation15 + $0x3b8] sm:$0xff] (%p1384_p6)  ;;  %v9316_v25 = vld [vmem:[#allocation15 + $0x3c8] sm:$0xff] (%p1384_p6) }
 0x444   :  { %12961 = vst [vmem:[#allocation158_spill] sm:$0xff] (%p1384_p6), %v9308_v45  ;;  %12962 = vst [vmem:[#allocation159_spill] sm:$0xff] (%p1384_p6), %v9310_v37  ;;  %v9318_v28 = vld [vmem:[#allocation15 + $0x3d0] sm:$0xff] (%p1384_p6)  ;;  %v9322_v58 = vld [vmem:[#allocation15 + $0x3e0] sm:$0xff] (%p1384_p6) }
 0x445   : > { %1886 = vmatmul.mubr.f32.vlgmr.msra.gmra.mrb[2].mxu0 %v8968_v14  ;;  %1957 = vmatmul.mubr.f32.vlgmr.msra.gmra.mrb[2].mxu1 %v8968_v14  ;;  %12963 = vst [vmem:[#allocation160_spill] sm:$0xff] (%p1384_p6), %v9312_v29  ;;  %12965 = vst [vmem:[#allocation162_spill] sm:$0xff] (%p1384_p6), %v9316_v25  ;;  %v9324_v47 = vld [vmem:[#allocation15 + $0x3e8] sm:$0xff] (%p1384_p6)  ;;  %v9328_v27 = vld [vmem:[#allocation15 + $0x3f8] sm:$0xff] (%p1384_p6) }
 0x446   :  { %12966 = vst [vmem:[#allocation163_spill] sm:$0xff] (%p1384_p6), %v9318_v28  ;;  %12968 = vst [vmem:[#allocation165_spill] sm:$0xff] (%p1384_p6), %v9322_v58  ;;  %v9330_v45 = vld [vmem:[#allocation15 + $0x400] sm:$0xff] (%p1384_p6)  ;;  %v9332_v37 = vld [vmem:[#allocation15 + $0x408] sm:$0xff] (%p1384_p6) }
 0x447   :  { %12969 = vst [vmem:[#allocation166_spill] sm:$0xff] (%p1384_p6), %v9324_v47  ;;  %12971 = vst [vmem:[#allocation168_spill] sm:$0xff] (%p1384_p6), %v9328_v27  ;;  %v9334_v29 = vld [vmem:[#allocation15 + $0x410] sm:$0xff] (%p1384_p6)  ;;  %v9338_v25 = vld [vmem:[#allocation15 + $0x420] sm:$0xff] (%p1384_p6) }
 0x448   :  { %12972 = vst [vmem:[#allocation169_spill] sm:$0xff] (%p1384_p6), %v9330_v45  ;;  %12973 = vst [vmem:[#allocation170_spill] sm:$0xff] (%p1384_p6), %v9332_v37  ;;  %v9340_v28 = vld [vmem:[#allocation15 + $0x428] sm:$0xff] (%p1384_p6)  ;;  %v9344_v58 = vld [vmem:[#allocation15 + $0x438] sm:$0xff] (%p1384_p6) }
 0x449   :  { %12974 = vst [vmem:[#allocation171_spill] sm:$0xff] (%p1384_p6), %v9334_v29  ;;  %12976 = vst [vmem:[#allocation173_spill] sm:$0xff] (%p1384_p6), %v9338_v25  ;;  %v9346_v47 = vld [vmem:[#allocation15 + $0x440] sm:$0xff] (%p1384_p6)  ;;  %v9350_v27 = vld [vmem:[#allocation15 + $0x450] sm:$0xff] (%p1384_p6) }
 0x44a   :  { %12977 = vst [vmem:[#allocation174_spill] sm:$0xff] (%p1384_p6), %v9340_v28  ;;  %12979 = vst [vmem:[#allocation176_spill] sm:$0xff] (%p1384_p6), %v9344_v58  ;;  %v9352_v45 = vld [vmem:[#allocation15 + $0x458] sm:$0xff] (%p1384_p6)  ;;  %v9354_v37 = vld [vmem:[#allocation15 + $0x460] sm:$0xff] (%p1384_p6) }
 0x44b   :  { %12980 = vst [vmem:[#allocation177_spill] sm:$0xff] (%p1384_p6), %v9346_v47  ;;  %12982 = vst [vmem:[#allocation179_spill] sm:$0xff] (%p1384_p6), %v9350_v27  ;;  %v9356_v29 = vld [vmem:[#allocation15 + $0x468] sm:$0xff] (%p1384_p6)  ;;  %v9360_v25 = vld [vmem:[#allocation15 + $0x478] sm:$0xff] (%p1384_p6) }
 0x44c   :  { %12983 = vst [vmem:[#allocation180_spill] sm:$0xff] (%p1384_p6), %v9352_v45  ;;  %12984 = vst [vmem:[#allocation181_spill] sm:$0xff] (%p1384_p6), %v9354_v37  ;;  %v9362_v28 = vld [vmem:[#allocation15 + $0x480] sm:$0xff] (%p1384_p6)  ;;  %v9366_v58 = vld [vmem:[#allocation15 + $0x490] sm:$0xff] (%p1384_p6) }
 0x44d   :  { %12985 = vst [vmem:[#allocation182_spill] sm:$0xff] (%p1384_p6), %v9356_v29  ;;  %12987 = vst [vmem:[#allocation184_spill] sm:$0xff] (%p1384_p6), %v9360_v25  ;;  %v9368_v47 = vld [vmem:[#allocation15 + $0x498] sm:$0xff] (%p1384_p6)  ;;  %v9372_v27 = vld [vmem:[#allocation15 + $0x4a8] sm:$0xff] (%p1384_p6) }
 0x44e   :  { %12988 = vst [vmem:[#allocation185_spill] sm:$0xff] (%p1384_p6), %v9362_v28  ;;  %12990 = vst [vmem:[#allocation187_spill] sm:$0xff] (%p1384_p6), %v9366_v58  ;;  %v9374_v45 = vld [vmem:[#allocation15 + $0x4b0] sm:$0xff] (%p1384_p6)  ;;  %v9376_v37 = vld [vmem:[#allocation15 + $0x4b8] sm:$0xff] (%p1384_p6) }
 0x44f   :  { %12991 = vst [vmem:[#allocation188_spill] sm:$0xff] (%p1384_p6), %v9368_v47  ;;  %12993 = vst [vmem:[#allocation190_spill] sm:$0xff] (%p1384_p6), %v9372_v27  ;;  %v9378_v29 = vld [vmem:[#allocation15 + $0x4c0] sm:$0xff] (%p1384_p6)  ;;  %v9382_v25 = vld [vmem:[#allocation15 + $0x4d0] sm:$0xff] (%p1384_p6) }
 0x450   :  { %12994 = vst [vmem:[#allocation191_spill] sm:$0xff] (%p1384_p6), %v9374_v45  ;;  %12995 = vst [vmem:[#allocation192_spill] sm:$0xff] (%p1384_p6), %v9376_v37  ;;  %v9384_v28 = vld [vmem:[#allocation15 + $0x4d8] sm:$0xff] (%p1384_p6)  ;;  %v9388_v58 = vld [vmem:[#allocation15 + $0x4e8] sm:$0xff] (%p1384_p6) }
 0x451   :  { %12996 = vst [vmem:[#allocation193_spill] sm:$0xff] (%p1384_p6), %v9378_v29  ;;  %12998 = vst [vmem:[#allocation195_spill] sm:$0xff] (%p1384_p6), %v9382_v25  ;;  %v9390_v47 = vld [vmem:[#allocation15 + $0x4f0] sm:$0xff] (%p1384_p6)  ;;  %v9394_v27 = vld [vmem:[#allocation15 + $0x500] sm:$0xff] (%p1384_p6) }
 0x452   :  { %12999 = vst [vmem:[#allocation196_spill] sm:$0xff] (%p1384_p6), %v9384_v28  ;;  %13001 = vst [vmem:[#allocation198_spill] sm:$0xff] (%p1384_p6), %v9388_v58  ;;  %v9396_v45 = vld [vmem:[#allocation15 + $0x508] sm:$0xff] (%p1384_p6)  ;;  %v9398_v37 = vld [vmem:[#allocation15 + $0x510] sm:$0xff] (%p1384_p6) }
 0x453   :  { %13002 = vst [vmem:[#allocation199_spill] sm:$0xff] (%p1384_p6), %v9390_v47  ;;  %13004 = vst [vmem:[#allocation201_spill] sm:$0xff] (%p1384_p6), %v9394_v27  ;;  %v9400_v29 = vld [vmem:[#allocation15 + $0x518] sm:$0xff] (%p1384_p6)  ;;  %v9404_v25 = vld [vmem:[#allocation15 + $0x528] sm:$0xff] (%p1384_p6) }
 0x454   :  { %13005 = vst [vmem:[#allocation202_spill] sm:$0xff] (%p1384_p6), %v9396_v45  ;;  %13006 = vst [vmem:[#allocation203_spill] sm:$0xff] (%p1384_p6), %v9398_v37  ;;  %v9406_v28 = vld [vmem:[#allocation15 + $0x530] sm:$0xff] (%p1384_p6)  ;;  %v9410_v58 = vld [vmem:[#allocation15 + $0x540] sm:$0xff] (%p1384_p6) }
 0x455   :  { %13007 = vst [vmem:[#allocation204_spill] sm:$0xff] (%p1384_p6), %v9400_v29  ;;  %13009 = vst [vmem:[#allocation206_spill] sm:$0xff] (%p1384_p6), %v9404_v25  ;;  %v9412_v47 = vld [vmem:[#allocation15 + $0x548] sm:$0xff] (%p1384_p6)  ;;  %v9416_v27 = vld [vmem:[#allocation15 + $0x558] sm:$0xff] (%p1384_p6) }
 0x456   :  { %13010 = vst [vmem:[#allocation207_spill] sm:$0xff] (%p1384_p6), %v9406_v28  ;;  %13012 = vst [vmem:[#allocation209_spill] sm:$0xff] (%p1384_p6), %v9410_v58  ;;  %v9418_v45 = vld [vmem:[#allocation15 + $0x560] sm:$0xff] (%p1384_p6)  ;;  %v9420_v37 = vld [vmem:[#allocation15 + $0x568] sm:$0xff] (%p1384_p6) }
 0x457   :  { %13013 = vst [vmem:[#allocation210_spill] sm:$0xff] (%p1384_p6), %v9412_v47  ;;  %13015 = vst [vmem:[#allocation212_spill] sm:$0xff] (%p1384_p6), %v9416_v27  ;;  %v9422_v29 = vld [vmem:[#allocation15 + $0x570] sm:$0xff] (%p1384_p6)  ;;  %v9426_v25 = vld [vmem:[#allocation15 + $0x580] sm:$0xff] (%p1384_p6) }
 0x458   :  { %13016 = vst [vmem:[#allocation213_spill] sm:$0xff] (%p1384_p6), %v9418_v45  ;;  %13017 = vst [vmem:[#allocation214_spill] sm:$0xff] (%p1384_p6), %v9420_v37  ;;  %v9428_v28 = vld [vmem:[#allocation15 + $0x588] sm:$0xff] (%p1384_p6)  ;;  %v9432_v58 = vld [vmem:[#allocation15 + $0x598] sm:$0xff] (%p1384_p6) }
 0x459   :  { %13018 = vst [vmem:[#allocation215_spill] sm:$0xff] (%p1384_p6), %v9422_v29  ;;  %13020 = vst [vmem:[#allocation217_spill] sm:$0xff] (%p1384_p6), %v9426_v25  ;;  %v9434_v47 = vld [vmem:[#allocation15 + $0x5a0] sm:$0xff] (%p1384_p6)  ;;  %v9438_v27 = vld [vmem:[#allocation15 + $0x5b0] sm:$0xff] (%p1384_p6) }
 0x45a   :  { %13021 = vst [vmem:[#allocation218_spill] sm:$0xff] (%p1384_p6), %v9428_v28  ;;  %13023 = vst [vmem:[#allocation220_spill] sm:$0xff] (%p1384_p6), %v9432_v58  ;;  %v9440_v45 = vld [vmem:[#allocation15 + $0x5b8] sm:$0xff] (%p1384_p6)  ;;  %v9442_v37 = vld [vmem:[#allocation15 + $0x5c0] sm:$0xff] (%p1384_p6) }
 0x45b   :  { %13024 = vst [vmem:[#allocation221_spill] sm:$0xff] (%p1384_p6), %v9434_v47  ;;  %13026 = vst [vmem:[#allocation223_spill] sm:$0xff] (%p1384_p6), %v9438_v27  ;;  %v9444_v29 = vld [vmem:[#allocation15 + $0x5c8] sm:$0xff] (%p1384_p6)  ;;  %v9448_v25 = vld [vmem:[#allocation15 + $0x5d8] sm:$0xff] (%p1384_p6) }
 0x45c   :  { %13027 = vst [vmem:[#allocation224_spill] sm:$0xff] (%p1384_p6), %v9440_v45  ;;  %13028 = vst [vmem:[#allocation225_spill] sm:$0xff] (%p1384_p6), %v9442_v37  ;;  %v9450_v28 = vld [vmem:[#allocation15 + $0x5e0] sm:$0xff] (%p1384_p6)  ;;  %v9454_v58 = vld [vmem:[#allocation15 + $0x5f0] sm:$0xff] (%p1384_p6) }
 0x45d   :  { %13029 = vst [vmem:[#allocation226_spill] sm:$0xff] (%p1384_p6), %v9444_v29  ;;  %13031 = vst [vmem:[#allocation228_spill] sm:$0xff] (%p1384_p6), %v9448_v25  ;;  %v9456_v47 = vld [vmem:[#allocation15 + $0x5f8] sm:$0xff] (%p1384_p6)  ;;  %v9460_v27 = vld [vmem:[#allocation15 + $0x608] sm:$0xff] (%p1384_p6) }
 0x45e   :  { %13032 = vst [vmem:[#allocation229_spill] sm:$0xff] (%p1384_p6), %v9450_v28  ;;  %13034 = vst [vmem:[#allocation231_spill] sm:$0xff] (%p1384_p6), %v9454_v58  ;;  %v9462_v45 = vld [vmem:[#allocation15 + $0x610] sm:$0xff] (%p1384_p6)  ;;  %v9464_v37 = vld [vmem:[#allocation15 + $0x618] sm:$0xff] (%p1384_p6) }
 0x45f   :  { %13035 = vst [vmem:[#allocation232_spill] sm:$0xff] (%p1384_p6), %v9456_v47  ;;  %13037 = vst [vmem:[#allocation234_spill] sm:$0xff] (%p1384_p6), %v9460_v27  ;;  %v9466_v29 = vld [vmem:[#allocation15 + $0x620] sm:$0xff] (%p1384_p6)  ;;  %v9470_v25 = vld [vmem:[#allocation15 + $0x630] sm:$0xff] (%p1384_p6) }
 0x460   :  { %13038 = vst [vmem:[#allocation235_spill] sm:$0xff] (%p1384_p6), %v9462_v45  ;;  %13039 = vst [vmem:[#allocation236_spill] sm:$0xff] (%p1384_p6), %v9464_v37  ;;  %v9472_v28 = vld [vmem:[#allocation15 + $0x638] sm:$0xff] (%p1384_p6)  ;;  %v9476_v58 = vld [vmem:[#allocation15 + $0x648] sm:$0xff] (%p1384_p6) }
 0x461   :  { %13040 = vst [vmem:[#allocation237_spill] sm:$0xff] (%p1384_p6), %v9466_v29  ;;  %13042 = vst [vmem:[#allocation239_spill] sm:$0xff] (%p1384_p6), %v9470_v25  ;;  %v9478_v47 = vld [vmem:[#allocation15 + $0x650] sm:$0xff] (%p1384_p6)  ;;  %v9482_v27 = vld [vmem:[#allocation15 + $0x660] sm:$0xff] (%p1384_p6) }
 0x462   :  { %13043 = vst [vmem:[#allocation240_spill] sm:$0xff] (%p1384_p6), %v9472_v28  ;;  %13045 = vst [vmem:[#allocation242_spill] sm:$0xff] (%p1384_p6), %v9476_v58  ;;  %v9484_v45 = vld [vmem:[#allocation15 + $0x668] sm:$0xff] (%p1384_p6)  ;;  %v9486_v37 = vld [vmem:[#allocation15 + $0x670] sm:$0xff] (%p1384_p6) }
 0x463   :  { %13046 = vst [vmem:[#allocation243_spill] sm:$0xff] (%p1384_p6), %v9478_v47  ;;  %13048 = vst [vmem:[#allocation245_spill] sm:$0xff] (%p1384_p6), %v9482_v27  ;;  %v9488_v29 = vld [vmem:[#allocation15 + $0x678] sm:$0xff] (%p1384_p6)  ;;  %v9492_v25 = vld [vmem:[#allocation15 + $0x688] sm:$0xff] (%p1384_p6) }
 0x464   :  { %13049 = vst [vmem:[#allocation246_spill] sm:$0xff] (%p1384_p6), %v9484_v45  ;;  %13050 = vst [vmem:[#allocation247_spill] sm:$0xff] (%p1384_p6), %v9486_v37  ;;  %v9494_v28 = vld [vmem:[#allocation15 + $0x690] sm:$0xff] (%p1384_p6)  ;;  %v9498_v58 = vld [vmem:[#allocation15 + $0x6a0] sm:$0xff] (%p1384_p6) }
 0x465   :  { %13051 = vst [vmem:[#allocation248_spill] sm:$0xff] (%p1384_p6), %v9488_v29  ;;  %13053 = vst [vmem:[#allocation250_spill] sm:$0xff] (%p1384_p6), %v9492_v25  ;;  %v9500_v47 = vld [vmem:[#allocation15 + $0x6a8] sm:$0xff] (%p1384_p6)  ;;  %v9504_v27 = vld [vmem:[#allocation15 + $0x6b8] sm:$0xff] (%p1384_p6) }
 0x466   :  { %13054 = vst [vmem:[#allocation251_spill] sm:$0xff] (%p1384_p6), %v9494_v28  ;;  %13056 = vst [vmem:[#allocation253_spill] sm:$0xff] (%p1384_p6), %v9498_v58  ;;  %v9506_v45 = vld [vmem:[#allocation15 + $0x6c0] sm:$0xff] (%p1384_p6)  ;;  %v9508_v37 = vld [vmem:[#allocation15 + $0x6c8] sm:$0xff] (%p1384_p6) }
 0x467   :  { %13057 = vst [vmem:[#allocation254_spill] sm:$0xff] (%p1384_p6), %v9500_v47  ;;  %13059 = vst [vmem:[#allocation256_spill] sm:$0xff] (%p1384_p6), %v9504_v27  ;;  %v9510_v29 = vld [vmem:[#allocation15 + $0x6d0] sm:$0xff] (%p1384_p6)  ;;  %v9514_v25 = vld [vmem:[#allocation15 + $0x6e0] sm:$0xff] (%p1384_p6) }
 0x468   :  { %13060 = vst [vmem:[#allocation257_spill] sm:$0xff] (%p1384_p6), %v9506_v45  ;;  %13061 = vst [vmem:[#allocation258_spill] sm:$0xff] (%p1384_p6), %v9508_v37  ;;  %v9516_v28 = vld [vmem:[#allocation15 + $0x6e8] sm:$0xff] (%p1384_p6)  ;;  %v9520_v58 = vld [vmem:[#allocation15 + $0x6f8] sm:$0xff] (%p1384_p6) }
 0x469   :  { %13062 = vst [vmem:[#allocation259_spill] sm:$0xff] (%p1384_p6), %v9510_v29  ;;  %13064 = vst [vmem:[#allocation261_spill] sm:$0xff] (%p1384_p6), %v9514_v25  ;;  %v9522_v47 = vld [vmem:[#allocation15 + $0x700] sm:$0xff] (%p1384_p6)  ;;  %v9526_v27 = vld [vmem:[#allocation15 + $0x710] sm:$0xff] (%p1384_p6) }
 0x46a   :  { %13065 = vst [vmem:[#allocation262_spill] sm:$0xff] (%p1384_p6), %v9516_v28  ;;  %13067 = vst [vmem:[#allocation264_spill] sm:$0xff] (%p1384_p6), %v9520_v58  ;;  %v9528_v45 = vld [vmem:[#allocation15 + $0x718] sm:$0xff] (%p1384_p6)  ;;  %v9530_v37 = vld [vmem:[#allocation15 + $0x720] sm:$0xff] (%p1384_p6) }
 0x46b   :  { %13068 = vst [vmem:[#allocation265_spill] sm:$0xff] (%p1384_p6), %v9522_v47  ;;  %13070 = vst [vmem:[#allocation267_spill] sm:$0xff] (%p1384_p6), %v9526_v27  ;;  %v9532_v29 = vld [vmem:[#allocation15 + $0x728] sm:$0xff] (%p1384_p6)  ;;  %v9536_v25 = vld [vmem:[#allocation15 + $0x738] sm:$0xff] (%p1384_p6) }
 0x46c   :  { %13071 = vst [vmem:[#allocation268_spill] sm:$0xff] (%p1384_p6), %v9528_v45  ;;  %13072 = vst [vmem:[#allocation269_spill] sm:$0xff] (%p1384_p6), %v9530_v37  ;;  %v9538_v28 = vld [vmem:[#allocation15 + $0x740] sm:$0xff] (%p1384_p6)  ;;  %v9542_v58 = vld [vmem:[#allocation15 + $0x750] sm:$0xff] (%p1384_p6) }
 0x46d   :  { %13073 = vst [vmem:[#allocation270_spill] sm:$0xff] (%p1384_p6), %v9532_v29  ;;  %13075 = vst [vmem:[#allocation272_spill] sm:$0xff] (%p1384_p6), %v9536_v25  ;;  %v9544_v47 = vld [vmem:[#allocation15 + $0x758] sm:$0xff] (%p1384_p6)  ;;  %v9548_v27 = vld [vmem:[#allocation15 + $0x768] sm:$0xff] (%p1384_p6) }
 0x46e   :  { %13076 = vst [vmem:[#allocation273_spill] sm:$0xff] (%p1384_p6), %v9538_v28  ;;  %13078 = vst [vmem:[#allocation275_spill] sm:$0xff] (%p1384_p6), %v9542_v58  ;;  %v9550_v45 = vld [vmem:[#allocation15 + $0x770] sm:$0xff] (%p1384_p6)  ;;  %v9552_v37 = vld [vmem:[#allocation15 + $0x778] sm:$0xff] (%p1384_p6) }
 0x46f   :  { %13079 = vst [vmem:[#allocation276_spill] sm:$0xff] (%p1384_p6), %v9544_v47  ;;  %13081 = vst [vmem:[#allocation278_spill] sm:$0xff] (%p1384_p6), %v9548_v27  ;;  %v9554_v29 = vld [vmem:[#allocation15 + $0x780] sm:$0xff] (%p1384_p6)  ;;  %v9558_v25 = vld [vmem:[#allocation15 + $0x790] sm:$0xff] (%p1384_p6) }
 0x470   :  { %13082 = vst [vmem:[#allocation279_spill] sm:$0xff] (%p1384_p6), %v9550_v45  ;;  %13083 = vst [vmem:[#allocation280_spill] sm:$0xff] (%p1384_p6), %v9552_v37  ;;  %v9560_v28 = vld [vmem:[#allocation15 + $0x798] sm:$0xff] (%p1384_p6)  ;;  %v9564_v58 = vld [vmem:[#allocation15 + $0x7a8] sm:$0xff] (%p1384_p6) }
 0x471   :  { %13084 = vst [vmem:[#allocation281_spill] sm:$0xff] (%p1384_p6), %v9554_v29  ;;  %13086 = vst [vmem:[#allocation283_spill] sm:$0xff] (%p1384_p6), %v9558_v25  ;;  %v9566_v47 = vld [vmem:[#allocation15 + $0x7b0] sm:$0xff] (%p1384_p6)  ;;  %v9570_v27 = vld [vmem:[#allocation15 + $0x7c0] sm:$0xff] (%p1384_p6) }
 0x472   :  { %13087 = vst [vmem:[#allocation284_spill] sm:$0xff] (%p1384_p6), %v9560_v28  ;;  %13089 = vst [vmem:[#allocation286_spill] sm:$0xff] (%p1384_p6), %v9564_v58  ;;  %v9572_v45 = vld [vmem:[#allocation15 + $0x7c8] sm:$0xff] (%p1384_p6)  ;;  %v9574_v37 = vld [vmem:[#allocation15 + $0x7d0] sm:$0xff] (%p1384_p6) }
 0x473   :  { %13090 = vst [vmem:[#allocation287_spill] sm:$0xff] (%p1384_p6), %v9566_v47  ;;  %13092 = vst [vmem:[#allocation289_spill] sm:$0xff] (%p1384_p6), %v9570_v27  ;;  %v9576_v29 = vld [vmem:[#allocation15 + $0x7d8] sm:$0xff] (%p1384_p6)  ;;  %v9580_v25 = vld [vmem:[#allocation15 + $0x7e8] sm:$0xff] (%p1384_p6) }
 0x474   :  { %13093 = vst [vmem:[#allocation290_spill] sm:$0xff] (%p1384_p6), %v9572_v45  ;;  %13094 = vst [vmem:[#allocation291_spill] sm:$0xff] (%p1384_p6), %v9574_v37  ;;  %v9582_v28 = vld [vmem:[#allocation15 + $0x7f0] sm:$0xff] (%p1384_p6)  ;;  %v9586_v58 = vld [vmem:[#allocation17] sm:$0xff] (%p1384_p6) }
 0x475   :  { %13095 = vst [vmem:[#allocation292_spill] sm:$0xff] (%p1384_p6), %v9576_v29  ;;  %13097 = vst [vmem:[#allocation294_spill] sm:$0xff] (%p1384_p6), %v9580_v25  ;;  %v9588_v47 = vld [vmem:[#allocation17 + $0x8] sm:$0xff] (%p1384_p6)  ;;  %v9592_v27 = vld [vmem:[#allocation17 + $0x18] sm:$0xff] (%p1384_p6) }
 0x476   :  { %13098 = vst [vmem:[#allocation295_spill] sm:$0xff] (%p1384_p6), %v9582_v28  ;;  %13101 = vst [vmem:[#allocation298_spill] sm:$0xff] (%p1384_p6), %v9592_v27  ;;  %v9594_v45 = vld [vmem:[#allocation17 + $0x20] sm:$0xff] (%p1384_p6)  ;;  %v9596_v37 = vld [vmem:[#allocation17 + $0x28] sm:$0xff] (%p1384_p6) }
 0x477   :  { %13102 = vst [vmem:[#allocation299_spill] sm:$0xff] (%p1384_p6), %v9594_v45  ;;  %13103 = vst [vmem:[#allocation300_spill] sm:$0xff] (%p1384_p6), %v9596_v37  ;;  %v9598_v29 = vld [vmem:[#allocation17 + $0x30] sm:$0xff] (%p1384_p6)  ;;  %v9602_v25 = vld [vmem:[#allocation17 + $0x40] sm:$0xff] (%p1384_p6) }
 0x478   :  { %13104 = vst [vmem:[#allocation301_spill] sm:$0xff] (%p1384_p6), %v9598_v29  ;;  %v9604_v28 = vld [vmem:[#allocation17 + $0x48] sm:$0xff] (%p1384_p6)  ;;  %v9608_v36 = vld [vmem:[#allocation17 + $0x58] sm:$0xff] (%p1384_p6)  ;;  %v9614_v44 = vld [vmem:[#allocation17 + $0x70] sm:$0xff] (%p1384_p6) }
 0x479   :  { %13106 = vst [vmem:[#allocation303_spill] sm:$0xff] (%p1384_p6), %v9604_v28  ;;  %v9612_v35 = vld [vmem:[#allocation17 + $0x68] sm:$0xff] (%p1384_p6)  ;;  %13110 = vst [vmem:[#allocation307_spill] sm:$0xff] (%p1384_p6), %v9614_v44  ;;  %v9616_v43 = vld [vmem:[#allocation17 + $0x78] sm:$0xff] (%p1384_p6) }
 0x47a   :  { %13109 = vst [vmem:[#allocation306_spill] sm:$0xff] (%p1384_p6), %v9612_v35  ;;  %13111 = vst [vmem:[#allocation308_spill] sm:$0xff] (%p1384_p6), %v9616_v43  ;;  %v9618_v23 = vld [vmem:[#allocation17 + $0x80] sm:$0xff] (%p1384_p6)  ;;  %v9622_v56 = vld [vmem:[#allocation17 + $0x90] sm:$0xff] (%p1384_p6) }
 0x47b   :  { %v9624_v54 = vld [vmem:[#allocation17 + $0x98] sm:$0xff] (%p1384_p6)  ;;  %v9626_v34 = vld [vmem:[#allocation17 + $0xa0] sm:$0xff] (%p1384_p6)  ;;  %v9628_v53 = vld [vmem:[#allocation17 + $0xa8] sm:$0xff] (%p1384_p6) }
 0x47c   :  { %13112 = vst [vmem:[#allocation309_spill] sm:$0xff] (%p1384_p6), %v9626_v34  ;;  %13113 = vst [vmem:[#allocation310_spill] sm:$0xff] (%p1384_p6), %v9628_v53  ;;  %v9630_v22 = vld [vmem:[#allocation17 + $0xb0] sm:$0xff] (%p1384_p6)  ;;  %v9632_v59 = vld [vmem:[#allocation17 + $0xb8] sm:$0xff] (%p1384_p6) }
 0x47d   :  { %13114 = vst [vmem:[#allocation311_spill] sm:$0xff] (%p1384_p6), %v9630_v22  ;;  %13115 = vst [vmem:[#allocation312_spill] sm:$0xff] (%p1384_p6), %v9632_v59  ;;  %v9642_v52 = vld [vmem:[#allocation17 + $0xe0] sm:$0xff] (%p1384_p6)  ;;  %v9748_v21 = vld [vmem:[#allocation17 + $0x288] sm:$0xff] (%p1384_p6) }
 0x47e   :  { %13117 = vst [vmem:[#allocation314_spill] sm:$0xff] (%p1384_p6), %v9642_v52  ;;  %v9722_v61 = vld [vmem:[#allocation17 + $0x220] sm:$0xff] (%p1384_p6)  ;;  %v9750_v63 = vld [vmem:[#allocation17 + $0x290] sm:$0xff] (%p1384_p6)  ;;  %v9756_v22 = vld [vmem:[#allocation17 + $0x2a8] sm:$0xff] (%p1384_p6) }
 0x47f   :  { %13143 = vst [vmem:[#allocation340_spill] sm:$0xff] (%p1384_p6), %v9722_v61  ;;  %v9738_v49 = vld [vmem:[#allocation17 + $0x260] sm:$0xff] (%p1384_p6)  ;;  %v9744_v61 = vld [vmem:[#allocation17 + $0x278] sm:$0xff] (%p1384_p6)  ;;  %13155 = vst [vmem:[#allocation352_spill] sm:$0xff] (%p1384_p6), %v9756_v22 }
 0x480   :  { %13149 = vst [vmem:[#allocation346_spill] sm:$0xff] (%p1384_p6), %v9738_v49  ;;  %13152 = vst [vmem:[#allocation349_spill] sm:$0xff] (%p1384_p6), %v9744_v61  ;;  %v9758_v52 = vld [vmem:[#allocation17 + $0x2b0] sm:$0xff] (%p1384_p6)  ;;  %v9760_v49 = vld [vmem:[#allocation17 + $0x2b8] sm:$0xff] (%p1384_p6) }
 0x481   :  { %13156 = vst [vmem:[#allocation353_spill] sm:$0xff] (%p1384_p6), %v9758_v52  ;;  %13157 = vst [vmem:[#allocation354_spill] sm:$0xff] (%p1384_p6), %v9760_v49  ;;  %v9764_v51 = vld [vmem:[#allocation17 + $0x2c8] sm:$0xff] (%p1384_p6)  ;;  %v9766_v61 = vld [vmem:[#allocation17 + $0x2d0] sm:$0xff] (%p1384_p6) }
 0x482   :  { %v9768_v34 = vld [vmem:[#allocation17 + $0x2d8] sm:$0xff] (%p1384_p6)  ;;  %v9772_v59 = vld [vmem:[#allocation17 + $0x2e8] sm:$0xff] (%p1384_p6)  ;;  %v9778_v22 = vld [vmem:[#allocation17 + $0x300] sm:$0xff] (%p1384_p6) }
 0x483   :  { %13160 = vst [vmem:[#allocation357_spill] sm:$0xff] (%p1384_p6), %v9772_v59  ;;  %v9780_v52 = vld [vmem:[#allocation17 + $0x308] sm:$0xff] (%p1384_p6)  ;;  %v9782_v49 = vld [vmem:[#allocation17 + $0x310] sm:$0xff] (%p1384_p6)  ;;  %v9784_v53 = vld [vmem:[#allocation17 + $0x318] sm:$0xff] (%p1384_p6) }
 0x484   :  { %13163 = vst [vmem:[#allocation360_spill] sm:$0xff] (%p1384_p6), %v9782_v49  ;;  %v9786_v44 = vld [vmem:[#allocation17 + $0x320] sm:$0xff] (%p1384_p6)  ;;  %v9788_v29 = vld [vmem:[#allocation17 + $0x328] sm:$0xff] (%p1384_p6)  ;;  %v9800_v45 = vld [vmem:[#allocation17 + $0x358] sm:$0xff] (%p1384_p6) }
 0x485   :  { %13164 = vst [vmem:[#allocation361_spill] sm:$0xff] (%p1384_p6), %v9786_v44  ;;  %13165 = vst [vmem:[#allocation362_spill] sm:$0xff] (%p1384_p6), %v9788_v29  ;;  %v9794_v59 = vld [vmem:[#allocation17 + $0x340] sm:$0xff] (%p1384_p6)  ;;  %v9806_v35 = vld [vmem:[#allocation17 + $0x370] sm:$0xff] (%p1384_p6) }
 0x486   :  { %13168 = vst [vmem:[#allocation365_spill] sm:$0xff] (%p1384_p6), %v9794_v59  ;;  %v9802_v43 = vld [vmem:[#allocation17 + $0x360] sm:$0xff] (%p1384_p6)  ;;  %13173 = vst [vmem:[#allocation370_spill] sm:$0xff] (%p1384_p6), %v9806_v35  ;;  %v9808_v44 = vld [vmem:[#allocation17 + $0x378] sm:$0xff] (%p1384_p6) }
 0x487   :  { %13171 = vst [vmem:[#allocation368_spill] sm:$0xff] (%p1384_p6), %v9802_v43  ;;  %13174 = vst [vmem:[#allocation371_spill] sm:$0xff] (%p1384_p6), %v9808_v44  ;;  %v9810_v29 = vld [vmem:[#allocation17 + $0x380] sm:$0xff] (%p1384_p6)  ;;  %v9816_v37 = vld [vmem:[#allocation17 + $0x398] sm:$0xff] (%p1384_p6) }
 0x488   :  { %13175 = vst [vmem:[#allocation372_spill] sm:$0xff] (%p1384_p6), %v9810_v29  ;;  %13178 = vst [vmem:[#allocation375_spill] sm:$0xff] (%p1384_p6), %v9816_v37  ;;  %v9818_v49 = vld [vmem:[#allocation17 + $0x3a0] sm:$0xff] (%p1384_p6)  ;;  %v9822_v59 = vld [vmem:[#allocation17 + $0x3b0] sm:$0xff] (%p1384_p6) }
 0x489   :  { %13179 = vst [vmem:[#allocation376_spill] sm:$0xff] (%p1384_p6), %v9818_v49  ;;  %13181 = vst [vmem:[#allocation378_spill] sm:$0xff] (%p1384_p6), %v9822_v59  ;;  %v9824_v43 = vld [vmem:[#allocation17 + $0x3b8] sm:$0xff] (%p1384_p6)  ;;  %v9828_v35 = vld [vmem:[#allocation17 + $0x3c8] sm:$0xff] (%p1384_p6) }
 0x48a   :  { %13182 = vst [vmem:[#allocation379_spill] sm:$0xff] (%p1384_p6), %v9824_v43  ;;  %13184 = vst [vmem:[#allocation381_spill] sm:$0xff] (%p1384_p6), %v9828_v35  ;;  %v9830_v44 = vld [vmem:[#allocation17 + $0x3d0] sm:$0xff] (%p1384_p6)  ;;  %v9832_v29 = vld [vmem:[#allocation17 + $0x3d8] sm:$0xff] (%p1384_p6) }
 0x48b   :  { %13185 = vst [vmem:[#allocation382_spill] sm:$0xff] (%p1384_p6), %v9830_v44  ;;  %13186 = vst [vmem:[#allocation383_spill] sm:$0xff] (%p1384_p6), %v9832_v29  ;;  %v9838_v37 = vld [vmem:[#allocation17 + $0x3f0] sm:$0xff] (%p1384_p6)  ;;  %v9840_v49 = vld [vmem:[#allocation17 + $0x3f8] sm:$0xff] (%p1384_p6) }
 0x48c   :  { %13189 = vst [vmem:[#allocation386_spill] sm:$0xff] (%p1384_p6), %v9838_v37  ;;  %13190 = vst [vmem:[#allocation387_spill] sm:$0xff] (%p1384_p6), %v9840_v49  ;;  %v9844_v59 = vld [vmem:[#allocation17 + $0x408] sm:$0xff] (%p1384_p6)  ;;  %v9846_v43 = vld [vmem:[#allocation17 + $0x410] sm:$0xff] (%p1384_p6) }
 0x48d   :  { %13192 = vst [vmem:[#allocation391_spill] sm:$0xff] (%p1384_p6), %v9844_v59  ;;  %13193 = vst [vmem:[#allocation392_spill] sm:$0xff] (%p1384_p6), %v9846_v43  ;;  %v9850_v35 = vld [vmem:[#allocation17 + $0x420] sm:$0xff] (%p1384_p6)  ;;  %v9852_v44 = vld [vmem:[#allocation17 + $0x428] sm:$0xff] (%p1384_p6) }
 0x48e   :  { %13195 = vst [vmem:[#allocation394_spill] sm:$0xff] (%p1384_p6), %v9850_v35  ;;  %13196 = vst [vmem:[#allocation395_spill] sm:$0xff] (%p1384_p6), %v9852_v44  ;;  %v9854_v29 = vld [vmem:[#allocation17 + $0x430] sm:$0xff] (%p1384_p6)  ;;  %v9860_v37 = vld [vmem:[#allocation17 + $0x448] sm:$0xff] (%p1384_p6) }
 0x48f   :  { %13197 = vst [vmem:[#allocation396_spill] sm:$0xff] (%p1384_p6), %v9854_v29  ;;  %13200 = vst [vmem:[#allocation399_spill] sm:$0xff] (%p1384_p6), %v9860_v37  ;;  %v9862_v49 = vld [vmem:[#allocation17 + $0x450] sm:$0xff] (%p1384_p6)  ;;  %v9866_v59 = vld [vmem:[#allocation17 + $0x460] sm:$0xff] (%p1384_p6) }
 0x490   :  { %13201 = vst [vmem:[#allocation400_spill] sm:$0xff] (%p1384_p6), %v9862_v49  ;;  %13203 = vst [vmem:[#allocation402_spill] sm:$0xff] (%p1384_p6), %v9866_v59  ;;  %v9868_v43 = vld [vmem:[#allocation17 + $0x468] sm:$0xff] (%p1384_p6)  ;;  %v9872_v35 = vld [vmem:[#allocation17 + $0x478] sm:$0xff] (%p1384_p6) }
 0x491   :  { %13204 = vst [vmem:[#allocation403_spill] sm:$0xff] (%p1384_p6), %v9868_v43  ;;  %13206 = vst [vmem:[#allocation405_spill] sm:$0xff] (%p1384_p6), %v9872_v35  ;;  %v9874_v44 = vld [vmem:[#allocation17 + $0x480] sm:$0xff] (%p1384_p6)  ;;  %v9876_v29 = vld [vmem:[#allocation17 + $0x488] sm:$0xff] (%p1384_p6) }
 0x492   :  { %13207 = vst [vmem:[#allocation406_spill] sm:$0xff] (%p1384_p6), %v9874_v44  ;;  %13208 = vst [vmem:[#allocation407_spill] sm:$0xff] (%p1384_p6), %v9876_v29  ;;  %v9882_v37 = vld [vmem:[#allocation17 + $0x4a0] sm:$0xff] (%p1384_p6)  ;;  %v9884_v49 = vld [vmem:[#allocation17 + $0x4a8] sm:$0xff] (%p1384_p6) }
 0x493   :  { %13211 = vst [vmem:[#allocation410_spill] sm:$0xff] (%p1384_p6), %v9882_v37  ;;  %13212 = vst [vmem:[#allocation411_spill] sm:$0xff] (%p1384_p6), %v9884_v49  ;;  %v9888_v59 = vld [vmem:[#allocation17 + $0x4b8] sm:$0xff] (%p1384_p6)  ;;  %v9890_v43 = vld [vmem:[#allocation17 + $0x4c0] sm:$0xff] (%p1384_p6) }
 0x494   :  { %13214 = vst [vmem:[#allocation413_spill] sm:$0xff] (%p1384_p6), %v9888_v59  ;;  %13215 = vst [vmem:[#allocation414_spill] sm:$0xff] (%p1384_p6), %v9890_v43  ;;  %v9894_v35 = vld [vmem:[#allocation17 + $0x4d0] sm:$0xff] (%p1384_p6)  ;;  %v9896_v44 = vld [vmem:[#allocation17 + $0x4d8] sm:$0xff] (%p1384_p6) }
 0x495   :  { %13217 = vst [vmem:[#allocation416_spill] sm:$0xff] (%p1384_p6), %v9894_v35  ;;  %13218 = vst [vmem:[#allocation417_spill] sm:$0xff] (%p1384_p6), %v9896_v44  ;;  %v9898_v29 = vld [vmem:[#allocation17 + $0x4e0] sm:$0xff] (%p1384_p6)  ;;  %v9904_v37 = vld [vmem:[#allocation17 + $0x4f8] sm:$0xff] (%p1384_p6) }
 0x496   :  { %13219 = vst [vmem:[#allocation418_spill] sm:$0xff] (%p1384_p6), %v9898_v29  ;;  %13222 = vst [vmem:[#allocation421_spill] sm:$0xff] (%p1384_p6), %v9904_v37  ;;  %v9906_v49 = vld [vmem:[#allocation17 + $0x500] sm:$0xff] (%p1384_p6)  ;;  %v9910_v59 = vld [vmem:[#allocation17 + $0x510] sm:$0xff] (%p1384_p6) }
 0x497   :  { %13223 = vst [vmem:[#allocation422_spill] sm:$0xff] (%p1384_p6), %v9906_v49  ;;  %13225 = vst [vmem:[#allocation424_spill] sm:$0xff] (%p1384_p6), %v9910_v59  ;;  %v9912_v43 = vld [vmem:[#allocation17 + $0x518] sm:$0xff] (%p1384_p6)  ;;  %v9916_v35 = vld [vmem:[#allocation17 + $0x528] sm:$0xff] (%p1384_p6) }
 0x498   :  { %13226 = vst [vmem:[#allocation425_spill] sm:$0xff] (%p1384_p6), %v9912_v43  ;;  %13228 = vst [vmem:[#allocation427_spill] sm:$0xff] (%p1384_p6), %v9916_v35  ;;  %v9918_v44 = vld [vmem:[#allocation17 + $0x530] sm:$0xff] (%p1384_p6)  ;;  %v9920_v29 = vld [vmem:[#allocation17 + $0x538] sm:$0xff] (%p1384_p6) }
 0x499   :  { %13229 = vst [vmem:[#allocation428_spill] sm:$0xff] (%p1384_p6), %v9918_v44  ;;  %13230 = vst [vmem:[#allocation429_spill] sm:$0xff] (%p1384_p6), %v9920_v29  ;;  %v9926_v37 = vld [vmem:[#allocation17 + $0x550] sm:$0xff] (%p1384_p6)  ;;  %v9928_v49 = vld [vmem:[#allocation17 + $0x558] sm:$0xff] (%p1384_p6) }
 0x49a   :  { %13233 = vst [vmem:[#allocation432_spill] sm:$0xff] (%p1384_p6), %v9926_v37  ;;  %13234 = vst [vmem:[#allocation433_spill] sm:$0xff] (%p1384_p6), %v9928_v49  ;;  %v9932_v59 = vld [vmem:[#allocation17 + $0x568] sm:$0xff] (%p1384_p6)  ;;  %v9934_v43 = vld [vmem:[#allocation17 + $0x570] sm:$0xff] (%p1384_p6) }
 0x49b   :  { %13236 = vst [vmem:[#allocation435_spill] sm:$0xff] (%p1384_p6), %v9932_v59  ;;  %13237 = vst [vmem:[#allocation436_spill] sm:$0xff] (%p1384_p6), %v9934_v43  ;;  %v9938_v35 = vld [vmem:[#allocation17 + $0x580] sm:$0xff] (%p1384_p6)  ;;  %v9940_v44 = vld [vmem:[#allocation17 + $0x588] sm:$0xff] (%p1384_p6) }
 0x49c   :  { %13239 = vst [vmem:[#allocation438_spill] sm:$0xff] (%p1384_p6), %v9938_v35  ;;  %13240 = vst [vmem:[#allocation439_spill] sm:$0xff] (%p1384_p6), %v9940_v44  ;;  %v9942_v29 = vld [vmem:[#allocation17 + $0x590] sm:$0xff] (%p1384_p6)  ;;  %v9948_v37 = vld [vmem:[#allocation17 + $0x5a8] sm:$0xff] (%p1384_p6) }
 0x49d   :  { %13241 = vst [vmem:[#allocation440_spill] sm:$0xff] (%p1384_p6), %v9942_v29  ;;  %13244 = vst [vmem:[#allocation443_spill] sm:$0xff] (%p1384_p6), %v9948_v37  ;;  %v9950_v49 = vld [vmem:[#allocation17 + $0x5b0] sm:$0xff] (%p1384_p6)  ;;  %v9954_v59 = vld [vmem:[#allocation17 + $0x5c0] sm:$0xff] (%p1384_p6) }
 0x49e   :  { %13245 = vst [vmem:[#allocation444_spill] sm:$0xff] (%p1384_p6), %v9950_v49  ;;  %13247 = vst [vmem:[#allocation446_spill] sm:$0xff] (%p1384_p6), %v9954_v59  ;;  %v9956_v43 = vld [vmem:[#allocation17 + $0x5c8] sm:$0xff] (%p1384_p6)  ;;  %v9960_v35 = vld [vmem:[#allocation17 + $0x5d8] sm:$0xff] (%p1384_p6) }
 0x49f   :  { %13248 = vst [vmem:[#allocation447_spill] sm:$0xff] (%p1384_p6), %v9956_v43  ;;  %13250 = vst [vmem:[#allocation449_spill] sm:$0xff] (%p1384_p6), %v9960_v35  ;;  %v9962_v44 = vld [vmem:[#allocation17 + $0x5e0] sm:$0xff] (%p1384_p6)  ;;  %v9964_v29 = vld [vmem:[#allocation17 + $0x5e8] sm:$0xff] (%p1384_p6) }
 0x4a0   :  { %13251 = vst [vmem:[#allocation450_spill] sm:$0xff] (%p1384_p6), %v9962_v44  ;;  %13252 = vst [vmem:[#allocation451_spill] sm:$0xff] (%p1384_p6), %v9964_v29  ;;  %v9970_v37 = vld [vmem:[#allocation17 + $0x600] sm:$0xff] (%p1384_p6)  ;;  %v9972_v49 = vld [vmem:[#allocation17 + $0x608] sm:$0xff] (%p1384_p6) }
 0x4a1   :  { %13255 = vst [vmem:[#allocation454_spill] sm:$0xff] (%p1384_p6), %v9970_v37  ;;  %13256 = vst [vmem:[#allocation455_spill] sm:$0xff] (%p1384_p6), %v9972_v49  ;;  %v9976_v59 = vld [vmem:[#allocation17 + $0x618] sm:$0xff] (%p1384_p6)  ;;  %v9978_v43 = vld [vmem:[#allocation17 + $0x620] sm:$0xff] (%p1384_p6) }
 0x4a2   :  { %13258 = vst [vmem:[#allocation457_spill] sm:$0xff] (%p1384_p6), %v9976_v59  ;;  %13259 = vst [vmem:[#allocation458_spill] sm:$0xff] (%p1384_p6), %v9978_v43  ;;  %v9982_v35 = vld [vmem:[#allocation17 + $0x630] sm:$0xff] (%p1384_p6)  ;;  %v9984_v44 = vld [vmem:[#allocation17 + $0x638] sm:$0xff] (%p1384_p6) }
 0x4a3   :  { %13261 = vst [vmem:[#allocation460_spill] sm:$0xff] (%p1384_p6), %v9982_v35  ;;  %13262 = vst [vmem:[#allocation461_spill] sm:$0xff] (%p1384_p6), %v9984_v44  ;;  %v9986_v29 = vld [vmem:[#allocation17 + $0x640] sm:$0xff] (%p1384_p6)  ;;  %v9992_v37 = vld [vmem:[#allocation17 + $0x658] sm:$0xff] (%p1384_p6) }
 0x4a4   :  { %13263 = vst [vmem:[#allocation462_spill] sm:$0xff] (%p1384_p6), %v9986_v29  ;;  %13266 = vst [vmem:[#allocation465_spill] sm:$0xff] (%p1384_p6), %v9992_v37  ;;  %v9994_v49 = vld [vmem:[#allocation17 + $0x660] sm:$0xff] (%p1384_p6)  ;;  %v9998_v59 = vld [vmem:[#allocation17 + $0x670] sm:$0xff] (%p1384_p6) }
 0x4a5   :  { %13267 = vst [vmem:[#allocation466_spill] sm:$0xff] (%p1384_p6), %v9994_v49  ;;  %13269 = vst [vmem:[#allocation468_spill] sm:$0xff] (%p1384_p6), %v9998_v59  ;;  %v10000_v43 = vld [vmem:[#allocation17 + $0x678] sm:$0xff] (%p1384_p6)  ;;  %v10004_v35 = vld [vmem:[#allocation17 + $0x688] sm:$0xff] (%p1384_p6) }
 0x4a6   :  { %13270 = vst [vmem:[#allocation469_spill] sm:$0xff] (%p1384_p6), %v10000_v43  ;;  %13272 = vst [vmem:[#allocation471_spill] sm:$0xff] (%p1384_p6), %v10004_v35  ;;  %v10006_v44 = vld [vmem:[#allocation17 + $0x690] sm:$0xff] (%p1384_p6)  ;;  %v10008_v29 = vld [vmem:[#allocation17 + $0x698] sm:$0xff] (%p1384_p6) }
 0x4a7   :  { %13273 = vst [vmem:[#allocation472_spill] sm:$0xff] (%p1384_p6), %v10006_v44  ;;  %13274 = vst [vmem:[#allocation473_spill] sm:$0xff] (%p1384_p6), %v10008_v29  ;;  %v10014_v37 = vld [vmem:[#allocation17 + $0x6b0] sm:$0xff] (%p1384_p6)  ;;  %v10016_v49 = vld [vmem:[#allocation17 + $0x6b8] sm:$0xff] (%p1384_p6) }
 0x4a8   :  { %13277 = vst [vmem:[#allocation476_spill] sm:$0xff] (%p1384_p6), %v10014_v37  ;;  %13278 = vst [vmem:[#allocation477_spill] sm:$0xff] (%p1384_p6), %v10016_v49  ;;  %v10020_v59 = vld [vmem:[#allocation17 + $0x6c8] sm:$0xff] (%p1384_p6)  ;;  %v10022_v43 = vld [vmem:[#allocation17 + $0x6d0] sm:$0xff] (%p1384_p6) }
 0x4a9   :  { %13280 = vst [vmem:[#allocation479_spill] sm:$0xff] (%p1384_p6), %v10020_v59  ;;  %13281 = vst [vmem:[#allocation480_spill] sm:$0xff] (%p1384_p6), %v10022_v43  ;;  %v10026_v35 = vld [vmem:[#allocation17 + $0x6e0] sm:$0xff] (%p1384_p6)  ;;  %v10028_v44 = vld [vmem:[#allocation17 + $0x6e8] sm:$0xff] (%p1384_p6) }
 0x4aa   :  { %13283 = vst [vmem:[#allocation482_spill] sm:$0xff] (%p1384_p6), %v10026_v35  ;;  %13284 = vst [vmem:[#allocation483_spill] sm:$0xff] (%p1384_p6), %v10028_v44  ;;  %v10030_v29 = vld [vmem:[#allocation17 + $0x6f0] sm:$0xff] (%p1384_p6)  ;;  %v10036_v37 = vld [vmem:[#allocation17 + $0x708] sm:$0xff] (%p1384_p6) }
 0x4ab   :  { %13285 = vst [vmem:[#allocation484_spill] sm:$0xff] (%p1384_p6), %v10030_v29  ;;  %13288 = vst [vmem:[#allocation487_spill] sm:$0xff] (%p1384_p6), %v10036_v37  ;;  %v10038_v49 = vld [vmem:[#allocation17 + $0x710] sm:$0xff] (%p1384_p6)  ;;  %v10042_v59 = vld [vmem:[#allocation17 + $0x720] sm:$0xff] (%p1384_p6) }
 0x4ac   :  { %13289 = vst [vmem:[#allocation488_spill] sm:$0xff] (%p1384_p6), %v10038_v49  ;;  %13291 = vst [vmem:[#allocation490_spill] sm:$0xff] (%p1384_p6), %v10042_v59  ;;  %v10044_v43 = vld [vmem:[#allocation17 + $0x728] sm:$0xff] (%p1384_p6)  ;;  %v10048_v35 = vld [vmem:[#allocation17 + $0x738] sm:$0xff] (%p1384_p6) }
 0x4ad   :  { %13292 = vst [vmem:[#allocation491_spill] sm:$0xff] (%p1384_p6), %v10044_v43  ;;  %13294 = vst [vmem:[#allocation493_spill] sm:$0xff] (%p1384_p6), %v10048_v35  ;;  %v10050_v44 = vld [vmem:[#allocation17 + $0x740] sm:$0xff] (%p1384_p6)  ;;  %v10052_v29 = vld [vmem:[#allocation17 + $0x748] sm:$0xff] (%p1384_p6) }
 0x4ae   :  { %13295 = vst [vmem:[#allocation494_spill] sm:$0xff] (%p1384_p6), %v10050_v44  ;;  %13296 = vst [vmem:[#allocation495_spill] sm:$0xff] (%p1384_p6), %v10052_v29  ;;  %v10058_v37 = vld [vmem:[#allocation17 + $0x760] sm:$0xff] (%p1384_p6)  ;;  %v10060_v49 = vld [vmem:[#allocation17 + $0x768] sm:$0xff] (%p1384_p6) }
 0x4af   :  { %13299 = vst [vmem:[#allocation498_spill] sm:$0xff] (%p1384_p6), %v10058_v37  ;;  %13300 = vst [vmem:[#allocation499_spill] sm:$0xff] (%p1384_p6), %v10060_v49  ;;  %v10064_v59 = vld [vmem:[#allocation17 + $0x778] sm:$0xff] (%p1384_p6)  ;;  %v10066_v43 = vld [vmem:[#allocation17 + $0x780] sm:$0xff] (%p1384_p6) }
 0x4b0   :  { %13302 = vst [vmem:[#allocation501_spill] sm:$0xff] (%p1384_p6), %v10064_v59  ;;  %13303 = vst [vmem:[#allocation502_spill] sm:$0xff] (%p1384_p6), %v10066_v43  ;;  %v10070_v35 = vld [vmem:[#allocation17 + $0x790] sm:$0xff] (%p1384_p6)  ;;  %v10072_v44 = vld [vmem:[#allocation17 + $0x798] sm:$0xff] (%p1384_p6) }
 0x4b1   :  { %13305 = vst [vmem:[#allocation504_spill] sm:$0xff] (%p1384_p6), %v10070_v35  ;;  %13306 = vst [vmem:[#allocation505_spill] sm:$0xff] (%p1384_p6), %v10072_v44  ;;  %v10074_v29 = vld [vmem:[#allocation17 + $0x7a0] sm:$0xff] (%p1384_p6)  ;;  %v10080_v37 = vld [vmem:[#allocation17 + $0x7b8] sm:$0xff] (%p1384_p6) }
 0x4b2   :  { %13307 = vst [vmem:[#allocation506_spill] sm:$0xff] (%p1384_p6), %v10074_v29  ;;  %13310 = vst [vmem:[#allocation509_spill] sm:$0xff] (%p1384_p6), %v10080_v37  ;;  %v10082_v49 = vld [vmem:[#allocation17 + $0x7c0] sm:$0xff] (%p1384_p6)  ;;  %v10086_v59 = vld [vmem:[#allocation17 + $0x7d0] sm:$0xff] (%p1384_p6)  ;;  %v10103_v37 = vmov (%p1384_p6), 0.0  }
 0x4b3   :  { %13311 = vst [vmem:[#allocation510_spill] sm:$0xff] (%p1384_p6), %v10082_v49  ;;  %13313 = vst [vmem:[#allocation512_spill] sm:$0xff] (%p1384_p6), %v10086_v59  ;;  %v10088_v43 = vld [vmem:[#allocation17 + $0x7d8] sm:$0xff] (%p1384_p6)  ;;  %v10092_v35 = vld [vmem:[#allocation17 + $0x7e8] sm:$0xff] (%p1384_p6)  ;;  %v10107_v59 = vmov (%p1384_p6), 0.0   ;;  %v10109_v49 = vmov (%p1384_p6), 0.0  }
 0x4b4   :  { %v10094_v44 = vld [vmem:[#allocation17 + $0x7f0] sm:$0xff] (%p1384_p6)  ;;  %v10096_v29 = vld [vmem:[#allocation17 + $0x7f8] sm:$0xff] (%p1384_p6) }
 0x4b5   :  { %13315 = vst [vmem:[#allocation514_spill] sm:$0xff] (%p1384_p6), %v10094_v44  ;;  %13316 = vst [vmem:[#allocation515_spill] sm:$0xff] (%p1384_p6), %v10096_v29 }
 0x4f8   : > { %v1745_v16 = vpop.f32.mrb[0].mxu0  ;;  %v1816_v9 = vpop.f32.mrb[0].mxu1 }
 0x4f9   : > { %v1747_v7 = vpop.f32.mrb[1].mxu0  ;;  %v1818_v20 = vpop.f32.mrb[1].mxu1  ;;  %v2004_v1 = vadd.f32 %v1967_v10, %v1745_v16  ;;  %v2006_v13 = vadd.f32 %v1975_v24, %v1816_v9  ;;  %v11859_v10 = vsub.s32 6, %v12840_v18  ;;  %v11858_v16 = vsub.s32 5, %v12840_v18 }
 0x4fa   : > { %v2005_v2 = vadd.f32 %v1971_v8, %v1747_v7  ;;  %v2007_v14 = vadd.f32 %v1979_v12, %v1818_v20  ;;  %v11857_v9 = vsub.s32 7, %v12840_v18  ;;  %v1983_v12 = vrot.slane %v12836_v0, %v11860_v19  ;;  %v9200_v19 = vld [vmem:[#allocation15 + $0x1f8] sm:$0xff] (%p1384_p6) }
 0x4fb   : > { %v2012_v62 = vsub.f32 0.0, %v2004_v1  ;;  %v2024_v15 = vsub.f32 0.0, %v2006_v13  ;;  %v1987_v13 = vrot.slane %v12836_v0, %v11858_v16  ;;  %v9196_v16 = vld [vmem:[#allocation15 + $0x1e8] sm:$0xff] (%p1384_p6)  ;;  %12907 = vst [vmem:[#allocation102_spill] sm:$0xff] (%p1384_p6), %v9200_v19  ;;  %v9222_v19 = vld [vmem:[#allocation15 + $0x250] sm:$0xff] (%p1384_p6) }
 0x4fc   : > { %v2013_v11 = vsub.f32 0.0, %v2005_v2  ;;  %v2025_v42 = vsub.f32 0.0, %v2007_v14  ;;  %v1995_v2 = vrot.slane %v12836_v0, %v11857_v9  ;;  %12905 = vst [vmem:[#allocation100_spill] sm:$0xff] (%p1384_p6), %v9196_v16  ;;  %v9218_v16 = vld [vmem:[#allocation15 + $0x240] sm:$0xff] (%p1384_p6)  ;;  %12918 = vst [vmem:[#allocation113_spill] sm:$0xff] (%p1384_p6), %v9222_v19 }
 0x4fd   : > { %v2014_v6 = vmul.f32 1.442695, %v2012_v62  ;;  %v2026_v46 = vmul.f32 1.442695, %v2024_v15  ;;  %12916 = vst [vmem:[#allocation111_spill] sm:$0xff] (%p1384_p6), %v9218_v16  ;;  %v9634_v19 = vld [vmem:[#allocation17 + $0xc0] sm:$0xff] (%p1384_p6) }
 0x4fe   : > { %v2016_v4 = vmul.f32 1.442695, %v2013_v11  ;;  %v2028_v5 = vmul.f32 1.442695, %v2025_v42  ;;  %v9638_v16 = vld [vmem:[#allocation17 + $0xd0] sm:$0xff] (%p1384_p6) }
 0x4ff   : > { %6254 = vpow2.f32 %v2014_v6  ;;  %13116 = vst [vmem:[#allocation313_spill] sm:$0xff] (%p1384_p6), %v9638_v16 }
 0x500   : > { %6256 = vpow2.f32 %v2026_v46 }
 0x501   : > { %6258 = vpow2.f32 %v2016_v4 }
 0x502   : > { %6260 = vpow2.f32 %v2028_v5  ;;  %v1991_v5 = vrot.slane %v12836_v0, %v11859_v10  ;;  %v9170_v0 = vld [vmem:[#allocation15 + $0x180] sm:$0xff] (%p1384_p6)  ;;  %v9198_v10 = vld [vmem:[#allocation15 + $0x1f0] sm:$0xff] (%p1384_p6) }
 0x503   :  { %12892 = vst [vmem:[#allocation87_spill] sm:$0xff] (%p1384_p6), %v9170_v0  ;;  %12906 = vst [vmem:[#allocation101_spill] sm:$0xff] (%p1384_p6), %v9198_v10  ;;  %v9220_v10 = vld [vmem:[#allocation15 + $0x248] sm:$0xff] (%p1384_p6)  ;;  %v9656_v0 = vld [vmem:[#allocation17 + $0x118] sm:$0xff] (%p1384_p6) }
 0x504   :  { %12917 = vst [vmem:[#allocation112_spill] sm:$0xff] (%p1384_p6), %v9220_v10  ;;  %v9646_v10 = vld [vmem:[#allocation17 + $0xf0] sm:$0xff] (%p1384_p6)  ;;  %13123 = vst [vmem:[#allocation320_spill] sm:$0xff] (%p1384_p6), %v9656_v0 }
 0x505   :  { %13119 = vst [vmem:[#allocation316_spill] sm:$0xff] (%p1384_p6), %v9646_v10  ;;  %v9754_v10 = vld [vmem:[#allocation17 + $0x2a0] sm:$0xff] (%p1384_p6) }
 0x506   :  { %13154 = vst [vmem:[#allocation351_spill] sm:$0xff] (%p1384_p6), %v9754_v10  ;;  %v9776_v10 = vld [vmem:[#allocation17 + $0x2f8] sm:$0xff] (%p1384_p6) }
 0x507   :  { %13162 = vst [vmem:[#allocation359_spill] sm:$0xff] (%p1384_p6), %v9776_v10  ;;  %v9798_v10 = vld [vmem:[#allocation17 + $0x350] sm:$0xff] (%p1384_p6) }
 0x508   :  { %13170 = vst [vmem:[#allocation367_spill] sm:$0xff] (%p1384_p6), %v9798_v10  ;;  %v9820_v10 = vld [vmem:[#allocation17 + $0x3a8] sm:$0xff] (%p1384_p6) }
 0x509   : > { %v6255_v3 = vpop.eup %6254  ;;  %13180 = vst [vmem:[#allocation377_spill] sm:$0xff] (%p1384_p6), %v9820_v10  ;;  %v9842_v10 = vld [vmem:[#allocation17 + $0x400] sm:$0xff] (%p1384_p6) }
 0x50a   : > { %v6257_v17 = vpop.eup %6256  ;;  %v2018_v7 = vadd.f32 1.0, %v6255_v3  ;;  %13191 = vst [vmem:[#allocation390_spill] sm:$0xff] (%p1384_p6), %v9842_v10  ;;  %v9864_v10 = vld [vmem:[#allocation17 + $0x458] sm:$0xff] (%p1384_p6) }
 0x50b   : > { %v6259_v24 = vpop.eup %6258  ;;  %v2030_v20 = vadd.f32 1.0, %v6257_v17  ;;  %13202 = vst [vmem:[#allocation401_spill] sm:$0xff] (%p1384_p6), %v9864_v10  ;;  %v9886_v10 = vld [vmem:[#allocation17 + $0x4b0] sm:$0xff] (%p1384_p6) }
 0x50c   : > { %v6261_v8 = vpop.eup %6260  ;;  %v2019_v26 = vadd.f32 1.0, %v6259_v24  ;;  %6262 = vrcp.f32 %v2018_v7  ;;  %13213 = vst [vmem:[#allocation412_spill] sm:$0xff] (%p1384_p6), %v9886_v10  ;;  %v9908_v10 = vld [vmem:[#allocation17 + $0x508] sm:$0xff] (%p1384_p6) }
 0x50d   : > { %v2031_v1 = vadd.f32 1.0, %v6261_v8  ;;  %6264 = vrcp.f32 %v2030_v20  ;;  %13224 = vst [vmem:[#allocation423_spill] sm:$0xff] (%p1384_p6), %v9908_v10  ;;  %v9930_v10 = vld [vmem:[#allocation17 + $0x560] sm:$0xff] (%p1384_p6) }
 0x50e   : > { %6266 = vrcp.f32 %v2019_v26  ;;  %13235 = vst [vmem:[#allocation434_spill] sm:$0xff] (%p1384_p6), %v9930_v10  ;;  %v9952_v10 = vld [vmem:[#allocation17 + $0x5b8] sm:$0xff] (%p1384_p6) }
 0x50f   : > { %6268 = vrcp.f32 %v2031_v1  ;;  %13246 = vst [vmem:[#allocation445_spill] sm:$0xff] (%p1384_p6), %v9952_v10  ;;  %v9974_v10 = vld [vmem:[#allocation17 + $0x610] sm:$0xff] (%p1384_p6) }
 0x510   :  { %13257 = vst [vmem:[#allocation456_spill] sm:$0xff] (%p1384_p6), %v9974_v10  ;;  %v9996_v10 = vld [vmem:[#allocation17 + $0x668] sm:$0xff] (%p1384_p6) }
 0x511   :  { %13268 = vst [vmem:[#allocation467_spill] sm:$0xff] (%p1384_p6), %v9996_v10  ;;  %v10018_v10 = vld [vmem:[#allocation17 + $0x6c0] sm:$0xff] (%p1384_p6) }
 0x512   :  { %13279 = vst [vmem:[#allocation478_spill] sm:$0xff] (%p1384_p6), %v10018_v10  ;;  %v10040_v10 = vld [vmem:[#allocation17 + $0x718] sm:$0xff] (%p1384_p6) }
 0x513   :  { %13290 = vst [vmem:[#allocation489_spill] sm:$0xff] (%p1384_p6), %v10040_v10  ;;  %v10062_v10 = vld [vmem:[#allocation17 + $0x770] sm:$0xff] (%p1384_p6) }
 0x514   :  { %13301 = vst [vmem:[#allocation500_spill] sm:$0xff] (%p1384_p6), %v10062_v10  ;;  %v10084_v10 = vld [vmem:[#allocation17 + $0x7c8] sm:$0xff] (%p1384_p6) }
 0x515   :  { %13312 = vst [vmem:[#allocation511_spill] sm:$0xff] (%p1384_p6), %v10084_v10 }
 0x516   : > { %v6263_v8 = vpop.eup %6262 }
 0x517   : > { %v6265_v7 = vpop.eup %6264 }
 0x518   : > { %v1887_v17 = vpop.f32.mrb[2].mxu0  ;;  %v1958_v14 = vpop.f32.mrb[2].mxu1 }
 0x519   : > { %v2008_v62 = vadd.f32 %v1983_v12, %v1887_v17  ;;  %v2010_v15 = vadd.f32 %v1991_v5, %v1958_v14  ;;  %v1889_v11 = vpop.f32.mrb[3].mxu0  ;;  %v1960_v42 = vpop.f32.mrb[3].mxu1  ;;  %v12841_v5 = vld [vmem:[#allocation389_spill] sm:$0xff] }
 0x51a   : > { %v2009_v6 = vadd.f32 %v1987_v13, %v1889_v11  ;;  %v2011_v46 = vadd.f32 %v1995_v2, %v1960_v42  ;;  %v6267_v20 = vpop.eup %6266  ;;  %v2050_v17 = vmul.f32 %v12841_v5, %v6265_v7  ;;  %v12842_v13 = vld [vmem:[#allocation388_spill] sm:$0xff]  ;;  %v9078_v7 = vld [vmem:[#allocation15 + $0x10] sm:$0xff] (%p1384_p6)  ;;  %v9084_v5 = vld [vmem:[#allocation15 + $0x28] sm:$0xff] (%p1384_p6) }
 0x51b   : > { %6270 = vtanh.f32 %v2008_v62  ;;  %v2038_v4 = vsub.f32 0.0, %v2010_v15  ;;  %v6269_v9 = vpop.eup %6268  ;;  %12846 = vst [vmem:[#allocation34_spill] sm:$0xff] (%p1384_p6), %v9078_v7  ;;  %12849 = vst [vmem:[#allocation37_spill] sm:$0xff] (%p1384_p6), %v9084_v5  ;;  %v9304_v5 = vld [vmem:[#allocation15 + $0x398] sm:$0xff] (%p1384_p6)  ;;  %v9700_v7 = vld [vmem:[#allocation17 + $0x1c8] sm:$0xff] (%p1384_p6) }
 0x51c   : > { %6272 = vtanh.f32 %v2009_v6  ;;  %v2039_v3 = vsub.f32 0.0, %v2011_v46  ;;  %v2051_v2 = vmul.f32 %v12842_v13, %v6269_v9  ;;  %v9074_v9 = vld [vmem:[#allocation15] sm:$0xff] (%p1384_p6)  ;;  %12959 = vst [vmem:[#allocation156_spill] sm:$0xff] (%p1384_p6), %v9304_v5  ;;  %v9326_v5 = vld [vmem:[#allocation15 + $0x3f0] sm:$0xff] (%p1384_p6)  ;;  %13136 = vst [vmem:[#allocation333_spill] sm:$0xff] (%p1384_p6), %v9700_v7 }
 0x51d   : > { %v2040_v24 = vmul.f32 1.442695, %v2038_v4  ;;  %12844 = vst [vmem:[#allocation32_spill] sm:$0xff] (%p1384_p6), %v9074_v9  ;;  %v9090_v13 = vld [vmem:[#allocation15 + $0x40] sm:$0xff] (%p1384_p6)  ;;  %12970 = vst [vmem:[#allocation167_spill] sm:$0xff] (%p1384_p6), %v9326_v5  ;;  %v9348_v5 = vld [vmem:[#allocation15 + $0x448] sm:$0xff] (%p1384_p6) }
 0x51e   : > { %v2042_v18 = vmul.f32 1.442695, %v2039_v3  ;;  %12852 = vst [vmem:[#allocation40_spill] sm:$0xff] (%p1384_p6), %v9090_v13  ;;  %12981 = vst [vmem:[#allocation178_spill] sm:$0xff] (%p1384_p6), %v9348_v5  ;;  %v9370_v5 = vld [vmem:[#allocation15 + $0x4a0] sm:$0xff] (%p1384_p6)  ;;  %v9702_v13 = vld [vmem:[#allocation17 + $0x1d0] sm:$0xff] (%p1384_p6) }
 0x51f   : > { %6274 = vpow2.f32 %v2040_v24  ;;  %12992 = vst [vmem:[#allocation189_spill] sm:$0xff] (%p1384_p6), %v9370_v5  ;;  %v9392_v5 = vld [vmem:[#allocation15 + $0x4f8] sm:$0xff] (%p1384_p6)  ;;  %13137 = vst [vmem:[#allocation334_spill] sm:$0xff] (%p1384_p6), %v9702_v13 }
 0x520   : > { %6276 = vpow2.f32 %v2042_v18  ;;  %v9076_v18 = vld [vmem:[#allocation15 + $0x8] sm:$0xff] (%p1384_p6)  ;;  %13003 = vst [vmem:[#allocation200_spill] sm:$0xff] (%p1384_p6), %v9392_v5  ;;  %v9414_v5 = vld [vmem:[#allocation15 + $0x550] sm:$0xff] (%p1384_p6)  ;;  %v9704_v9 = vld [vmem:[#allocation17 + $0x1d8] sm:$0xff] (%p1384_p6) }
 0x521   :  { %12845 = vst [vmem:[#allocation33_spill] sm:$0xff] (%p1384_p6), %v9076_v18  ;;  %13014 = vst [vmem:[#allocation211_spill] sm:$0xff] (%p1384_p6), %v9414_v5  ;;  %v9436_v5 = vld [vmem:[#allocation15 + $0x5a8] sm:$0xff] (%p1384_p6)  ;;  %v9712_v18 = vld [vmem:[#allocation17 + $0x1f8] sm:$0xff] (%p1384_p6) }
 0x522   :  { %13025 = vst [vmem:[#allocation222_spill] sm:$0xff] (%p1384_p6), %v9436_v5  ;;  %v9458_v5 = vld [vmem:[#allocation15 + $0x600] sm:$0xff] (%p1384_p6)  ;;  %13138 = vst [vmem:[#allocation335_spill] sm:$0xff] (%p1384_p6), %v9704_v9 }
 0x523   :  { %13036 = vst [vmem:[#allocation233_spill] sm:$0xff] (%p1384_p6), %v9458_v5  ;;  %v9480_v5 = vld [vmem:[#allocation15 + $0x658] sm:$0xff] (%p1384_p6)  ;;  %13142 = vst [vmem:[#allocation339_spill] sm:$0xff] (%p1384_p6), %v9712_v18  ;;  %v9734_v18 = vld [vmem:[#allocation17 + $0x250] sm:$0xff] (%p1384_p6) }
 0x524   :  { %13047 = vst [vmem:[#allocation244_spill] sm:$0xff] (%p1384_p6), %v9480_v5  ;;  %v9502_v5 = vld [vmem:[#allocation15 + $0x6b0] sm:$0xff] (%p1384_p6) }
 0x525   : > { %v6271_v26 = vpop.eup %6270  ;;  %13058 = vst [vmem:[#allocation255_spill] sm:$0xff] (%p1384_p6), %v9502_v5  ;;  %v9524_v5 = vld [vmem:[#allocation15 + $0x708] sm:$0xff] (%p1384_p6) }
 0x526   : > { %v6273_v12 = vpop.eup %6272  ;;  %v2052_v1 = vmul.f32 %v6271_v26, %v6263_v8  ;;  %13069 = vst [vmem:[#allocation266_spill] sm:$0xff] (%p1384_p6), %v9524_v5  ;;  %v9546_v5 = vld [vmem:[#allocation15 + $0x760] sm:$0xff] (%p1384_p6) }
 0x527   : > { %v2053_v14 = vmul.f32 %v6273_v12, %v6267_v20  ;;  %v9080_v20 = vld [vmem:[#allocation15 + $0x18] sm:$0xff] (%p1384_p6)  ;;  %v9082_v12 = vld [vmem:[#allocation15 + $0x20] sm:$0xff] (%p1384_p6)  ;;  %13080 = vst [vmem:[#allocation277_spill] sm:$0xff] (%p1384_p6), %v9546_v5 }
 0x528   : > { %v2054_v8 = vadd.f32 %v2052_v1, %v2050_v17   ;;  %12847 = vst [vmem:[#allocation35_spill] sm:$0xff] (%p1384_p6), %v9080_v20  ;;  %12848 = vst [vmem:[#allocation36_spill] sm:$0xff] (%p1384_p6), %v9082_v12  ;;  %v9086_v17 = vld [vmem:[#allocation15 + $0x30] sm:$0xff] (%p1384_p6)  ;;  %v9088_v1 = vld [vmem:[#allocation15 + $0x38] sm:$0xff] (%p1384_p6) }
 0x529   : > { %v6275_v62 = vpop.eup %6274  ;;  %v2055_v26 = vadd.f32 %v2053_v14, %v2051_v2   ;;  %12850 = vst [vmem:[#allocation38_spill] sm:$0xff] (%p1384_p6), %v9086_v17  ;;  %12851 = vst [vmem:[#allocation39_spill] sm:$0xff] (%p1384_p6), %v9088_v1  ;;  %v9092_v2 = vld [vmem:[#allocation15 + $0x48] sm:$0xff] (%p1384_p6)  ;;  %v9176_v14 = vld [vmem:[#allocation15 + $0x198] sm:$0xff] (%p1384_p6) }
 0x52a   : > { %v6277_v15 = vpop.eup %6276  ;;  %6278 = vtanh.f32 %v2054_v8  ;;  %v2044_v11 = vadd.f32 1.0, %v6275_v62  ;;  %12853 = vst [vmem:[#allocation41_spill] sm:$0xff] (%p1384_p6), %v9092_v2  ;;  %v9172_v8 = vld [vmem:[#allocation15 + $0x188] sm:$0xff] (%p1384_p6)  ;;  %12895 = vst [vmem:[#allocation90_spill] sm:$0xff] (%p1384_p6), %v9176_v14  ;;  %v9288_v12 = vld [vmem:[#allocation15 + $0x358] sm:$0xff] (%p1384_p6) }
 0x52b   : > { %6280 = vtanh.f32 %v2055_v26  ;;  %v2045_v42 = vadd.f32 1.0, %v6277_v15  ;;  %12893 = vst [vmem:[#allocation88_spill] sm:$0xff] (%p1384_p6), %v9172_v8  ;;  %v9174_v26 = vld [vmem:[#allocation15 + $0x190] sm:$0xff] (%p1384_p6)  ;;  %v9180_v15 = vld [vmem:[#allocation15 + $0x1a8] sm:$0xff] (%p1384_p6)  ;;  %12951 = vst [vmem:[#allocation148_spill] sm:$0xff] (%p1384_p6), %v9288_v12 }
 0x52c   : > { %6282 = vrcp.f32 %v2044_v11  ;;  %12894 = vst [vmem:[#allocation89_spill] sm:$0xff] (%p1384_p6), %v9174_v26  ;;  %12897 = vst [vmem:[#allocation92_spill] sm:$0xff] (%p1384_p6), %v9180_v15  ;;  %v9182_v11 = vld [vmem:[#allocation15 + $0x1b0] sm:$0xff] (%p1384_p6)  ;;  %v9208_v15 = vld [vmem:[#allocation15 + $0x218] sm:$0xff] (%p1384_p6) }
 0x52d   : > { %6284 = vrcp.f32 %v2045_v42  ;;  %12898 = vst [vmem:[#allocation93_spill] sm:$0xff] (%p1384_p6), %v9182_v11  ;;  %v9184_v42 = vld [vmem:[#allocation15 + $0x1b8] sm:$0xff] (%p1384_p6)  ;;  %v9204_v11 = vld [vmem:[#allocation15 + $0x208] sm:$0xff] (%p1384_p6)  ;;  %12911 = vst [vmem:[#allocation106_spill] sm:$0xff] (%p1384_p6), %v9208_v15 }
 0x52e   :  { %12899 = vst [vmem:[#allocation94_spill] sm:$0xff] (%p1384_p6), %v9184_v42  ;;  %12909 = vst [vmem:[#allocation104_spill] sm:$0xff] (%p1384_p6), %v9204_v11  ;;  %v9206_v42 = vld [vmem:[#allocation15 + $0x210] sm:$0xff] (%p1384_p6)  ;;  %v9276_v17 = vld [vmem:[#allocation15 + $0x328] sm:$0xff] (%p1384_p6) }
 0x52f   :  { %12910 = vst [vmem:[#allocation105_spill] sm:$0xff] (%p1384_p6), %v9206_v42  ;;  %12945 = vst [vmem:[#allocation142_spill] sm:$0xff] (%p1384_p6), %v9276_v17  ;;  %v9292_v1 = vld [vmem:[#allocation15 + $0x368] sm:$0xff] (%p1384_p6)  ;;  %v9298_v17 = vld [vmem:[#allocation15 + $0x380] sm:$0xff] (%p1384_p6) }
 0x530   :  { %12953 = vst [vmem:[#allocation150_spill] sm:$0xff] (%p1384_p6), %v9292_v1  ;;  %12956 = vst [vmem:[#allocation153_spill] sm:$0xff] (%p1384_p6), %v9298_v17  ;;  %v9314_v1 = vld [vmem:[#allocation15 + $0x3c0] sm:$0xff] (%p1384_p6)  ;;  %v9320_v17 = vld [vmem:[#allocation15 + $0x3d8] sm:$0xff] (%p1384_p6) }
 0x531   :  { %12964 = vst [vmem:[#allocation161_spill] sm:$0xff] (%p1384_p6), %v9314_v1  ;;  %12967 = vst [vmem:[#allocation164_spill] sm:$0xff] (%p1384_p6), %v9320_v17  ;;  %v9336_v1 = vld [vmem:[#allocation15 + $0x418] sm:$0xff] (%p1384_p6)  ;;  %v9342_v17 = vld [vmem:[#allocation15 + $0x430] sm:$0xff] (%p1384_p6) }
 0x532   :  { %12975 = vst [vmem:[#allocation172_spill] sm:$0xff] (%p1384_p6), %v9336_v1  ;;  %12978 = vst [vmem:[#allocation175_spill] sm:$0xff] (%p1384_p6), %v9342_v17  ;;  %v9358_v1 = vld [vmem:[#allocation15 + $0x470] sm:$0xff] (%p1384_p6)  ;;  %v9364_v17 = vld [vmem:[#allocation15 + $0x488] sm:$0xff] (%p1384_p6) }
 0x533   :  { %12986 = vst [vmem:[#allocation183_spill] sm:$0xff] (%p1384_p6), %v9358_v1  ;;  %12989 = vst [vmem:[#allocation186_spill] sm:$0xff] (%p1384_p6), %v9364_v17  ;;  %v9380_v1 = vld [vmem:[#allocation15 + $0x4c8] sm:$0xff] (%p1384_p6)  ;;  %v9386_v17 = vld [vmem:[#allocation15 + $0x4e0] sm:$0xff] (%p1384_p6) }
 0x534   : > { %v6279_v6 = vpop.eup %6278  ;;  %1386 = sbr.rel (!%p1384_p6) target bundleno = 898 (0x382), region = 223  ;;  %12997 = vst [vmem:[#allocation194_spill] sm:$0xff] (%p1384_p6), %v9380_v1  ;;  %13000 = vst [vmem:[#allocation197_spill] sm:$0xff] (%p1384_p6), %v9386_v17  ;;  %v9402_v1 = vld [vmem:[#allocation15 + $0x520] sm:$0xff] (%p1384_p6)  ;;  %v9408_v17 = vld [vmem:[#allocation15 + $0x538] sm:$0xff] (%p1384_p6) }
 0x535   : > { %v6281_v46 = vpop.eup %6280  ;;  %13008 = vst [vmem:[#allocation205_spill] sm:$0xff] (%p1384_p6), %v9402_v1  ;;  %13011 = vst [vmem:[#allocation208_spill] sm:$0xff] (%p1384_p6), %v9408_v17  ;;  %v9424_v1 = vld [vmem:[#allocation15 + $0x578] sm:$0xff] (%p1384_p6)  ;;  %v9430_v17 = vld [vmem:[#allocation15 + $0x590] sm:$0xff] (%p1384_p6) }
 0x536   : > { %v6283_v4 = vpop.eup %6282  ;;  %13019 = vst [vmem:[#allocation216_spill] sm:$0xff] (%p1384_p6), %v9424_v1  ;;  %13022 = vst [vmem:[#allocation219_spill] sm:$0xff] (%p1384_p6), %v9430_v17  ;;  %v9446_v1 = vld [vmem:[#allocation15 + $0x5d0] sm:$0xff] (%p1384_p6)  ;;  %v9452_v17 = vld [vmem:[#allocation15 + $0x5e8] sm:$0xff] (%p1384_p6) }
 0x537   : > { %v6285_v3 = vpop.eup %6284  ;;  %v2058_v24 = vmul.f32 %v6283_v4, %v6279_v6   ;;  %v9186_v6 = vld [vmem:[#allocation15 + $0x1c0] sm:$0xff] (%p1384_p6)  ;;  %v9190_v4 = vld [vmem:[#allocation15 + $0x1d0] sm:$0xff] (%p1384_p6)  ;;  %13030 = vst [vmem:[#allocation227_spill] sm:$0xff] (%p1384_p6), %v9446_v1  ;;  %13033 = vst [vmem:[#allocation230_spill] sm:$0xff] (%p1384_p6), %v9452_v17 }
 0x538   : > { %v2059_v62 = vmul.f32 %v6285_v3, %v6281_v46   ;;  %12900 = vst [vmem:[#allocation95_spill] sm:$0xff] (%p1384_p6), %v9186_v6  ;;  %12902 = vst [vmem:[#allocation97_spill] sm:$0xff] (%p1384_p6), %v9190_v4  ;;  %v9192_v3 = vld [vmem:[#allocation15 + $0x1d8] sm:$0xff] (%p1384_p6)  ;;  %v9468_v1 = vld [vmem:[#allocation15 + $0x628] sm:$0xff] (%p1384_p6) }
 0x539   : > { %2063 = vst [vmem:[%s2062_s2] sm:$0xff] %v2058_v24  ;;  %v12843_v46 = vmov %v2058_v24  ;;  %12903 = vst [vmem:[#allocation98_spill] sm:$0xff] (%p1384_p6), %v9192_v3  ;;  %v9194_v24 = vld [vmem:[#allocation15 + $0x1e0] sm:$0xff] (%p1384_p6)  ;;  %v9568_v5 = vld [vmem:[#allocation15 + $0x7b8] sm:$0xff] (%p1384_p6) }
 0x53a   : > { %2064 = vst [vmem:[%s2062_s2 + $0x8] sm:$0xff] %v2059_v62  ;;  %v9178_v62 = vld [vmem:[#allocation15 + $0x1a0] sm:$0xff] (%p1384_p6)  ;;  %v9188_v46 = vld [vmem:[#allocation15 + $0x1c8] sm:$0xff] (%p1384_p6)  ;;  %12904 = vst [vmem:[#allocation99_spill] sm:$0xff] (%p1384_p6), %v9194_v24 }
 0x53b   :  { %12896 = vst [vmem:[#allocation91_spill] sm:$0xff] %v9178_v62  ;;  %12901 = vst [vmem:[#allocation96_spill] sm:$0xff] %v9188_v46  ;;  %v9202_v62 = vld [vmem:[#allocation15 + $0x200] sm:$0xff]  ;;  %v9216_v24 = vld [vmem:[#allocation15 + $0x238] sm:$0xff] }
 0x53c   :  { %12908 = vst [vmem:[#allocation103_spill] sm:$0xff] %v9202_v62  ;;  %12915 = vst [vmem:[#allocation110_spill] sm:$0xff] %v9216_v24  ;;  %v9238_v24 = vld [vmem:[#allocation15 + $0x290] sm:$0xff]  ;;  %v9474_v17 = vld [vmem:[#allocation15 + $0x640] sm:$0xff] }
 0x53d   :  { %12926 = vst [vmem:[#allocation121_spill] sm:$0xff] %v9238_v24  ;;  %13041 = vst [vmem:[#allocation238_spill] sm:$0xff] %v9468_v1  ;;  %v9490_v1 = vld [vmem:[#allocation15 + $0x680] sm:$0xff]  ;;  %v9620_v24 = vld [vmem:[#allocation17 + $0x88] sm:$0xff] }
 0x53e   :  { %13044 = vst [vmem:[#allocation241_spill] sm:$0xff] %v9474_v17  ;;  %13052 = vst [vmem:[#allocation249_spill] sm:$0xff] %v9490_v1  ;;  %v9496_v17 = vld [vmem:[#allocation15 + $0x698] sm:$0xff]  ;;  %v9610_v12 = vld [vmem:[#allocation17 + $0x60] sm:$0xff] }
 0x53f   :  { %13055 = vst [vmem:[#allocation252_spill] sm:$0xff] %v9496_v17  ;;  %v9512_v1 = vld [vmem:[#allocation15 + $0x6d8] sm:$0xff]  ;;  %v9518_v17 = vld [vmem:[#allocation15 + $0x6f0] sm:$0xff]  ;;  %13091 = vst [vmem:[#allocation288_spill] sm:$0xff] %v9568_v5 }
 0x540   :  { %13063 = vst [vmem:[#allocation260_spill] sm:$0xff] %v9512_v1  ;;  %13066 = vst [vmem:[#allocation263_spill] sm:$0xff] %v9518_v17  ;;  %v9534_v1 = vld [vmem:[#allocation15 + $0x730] sm:$0xff]  ;;  %v9540_v17 = vld [vmem:[#allocation15 + $0x748] sm:$0xff] }
 0x541   :  { %13074 = vst [vmem:[#allocation271_spill] sm:$0xff] %v9534_v1  ;;  %13077 = vst [vmem:[#allocation274_spill] sm:$0xff] %v9540_v17  ;;  %v9556_v1 = vld [vmem:[#allocation15 + $0x788] sm:$0xff]  ;;  %v9562_v17 = vld [vmem:[#allocation15 + $0x7a0] sm:$0xff] }
 0x542   :  { %13085 = vst [vmem:[#allocation282_spill] sm:$0xff] %v9556_v1  ;;  %13088 = vst [vmem:[#allocation285_spill] sm:$0xff] %v9562_v17  ;;  %v9578_v1 = vld [vmem:[#allocation15 + $0x7e0] sm:$0xff]  ;;  %v9584_v17 = vld [vmem:[#allocation15 + $0x7f8] sm:$0xff] }
 0x543   :  { %13096 = vst [vmem:[#allocation293_spill] sm:$0xff] %v9578_v1  ;;  %13099 = vst [vmem:[#allocation296_spill] sm:$0xff] %v9584_v17  ;;  %v9590_v5 = vld [vmem:[#allocation17 + $0x10] sm:$0xff]  ;;  %v9600_v1 = vld [vmem:[#allocation17 + $0x38] sm:$0xff] }
 0x544   :  { %13100 = vst [vmem:[#allocation297_spill] sm:$0xff] %v9590_v5  ;;  %13105 = vst [vmem:[#allocation302_spill] sm:$0xff] %v9600_v1  ;;  %v9606_v17 = vld [vmem:[#allocation17 + $0x50] sm:$0xff]  ;;  %v9636_v42 = vld [vmem:[#allocation17 + $0xc8] sm:$0xff] }
 0x545   :  { %13107 = vst [vmem:[#allocation304_spill] sm:$0xff] %v9606_v17  ;;  %13108 = vst [vmem:[#allocation305_spill] sm:$0xff] %v9610_v12  ;;  %v9640_v62 = vld [vmem:[#allocation17 + $0xd8] sm:$0xff]  ;;  %v9644_v15 = vld [vmem:[#allocation17 + $0xe8] sm:$0xff] }
 0x546   :  { %13118 = vst [vmem:[#allocation315_spill] sm:$0xff] %v9644_v15  ;;  %v9648_v11 = vld [vmem:[#allocation17 + $0xf8] sm:$0xff]  ;;  %v9650_v4 = vld [vmem:[#allocation17 + $0x100] sm:$0xff]  ;;  %v9652_v26 = vld [vmem:[#allocation17 + $0x108] sm:$0xff] }
 0x547   :  { %13120 = vst [vmem:[#allocation317_spill] sm:$0xff] %v9648_v11  ;;  %13121 = vst [vmem:[#allocation318_spill] sm:$0xff] %v9650_v4  ;;  %v9654_v6 = vld [vmem:[#allocation17 + $0x110] sm:$0xff]  ;;  %v9658_v3 = vld [vmem:[#allocation17 + $0x120] sm:$0xff] }
 0x548   :  { %13122 = vst [vmem:[#allocation319_spill] sm:$0xff] %v9654_v6  ;;  %13124 = vst [vmem:[#allocation321_spill] sm:$0xff] %v9658_v3  ;;  %v9660_v14 = vld [vmem:[#allocation17 + $0x128] sm:$0xff]  ;;  %v9662_v46 = vld [vmem:[#allocation17 + $0x130] sm:$0xff] }
 0x549   :  { %13125 = vst [vmem:[#allocation322_spill] sm:$0xff] %v9660_v14  ;;  %13126 = vst [vmem:[#allocation323_spill] sm:$0xff] %v9662_v46  ;;  %v9664_v8 = vld [vmem:[#allocation17 + $0x138] sm:$0xff]  ;;  %v9708_v20 = vld [vmem:[#allocation17 + $0x1e8] sm:$0xff] }
 0x54a   :  { %13127 = vst [vmem:[#allocation324_spill] sm:$0xff] %v9664_v8  ;;  %13140 = vst [vmem:[#allocation337_spill] sm:$0xff] %v9708_v20  ;;  %v9710_v2 = vld [vmem:[#allocation17 + $0x1f0] sm:$0xff]  ;;  %v9724_v46 = vld [vmem:[#allocation17 + $0x228] sm:$0xff] }
 0x54b   :  { %13141 = vst [vmem:[#allocation338_spill] sm:$0xff] %v9710_v2  ;;  %13144 = vst [vmem:[#allocation341_spill] sm:$0xff] %v9724_v46  ;;  %v9730_v20 = vld [vmem:[#allocation17 + $0x240] sm:$0xff]  ;;  %v9732_v2 = vld [vmem:[#allocation17 + $0x248] sm:$0xff] }
 0x54c   :  { %13147 = vst [vmem:[#allocation344_spill] sm:$0xff] %v9732_v2  ;;  %v9736_v3 = vld [vmem:[#allocation17 + $0x258] sm:$0xff]  ;;  %v9740_v8 = vld [vmem:[#allocation17 + $0x268] sm:$0xff]  ;;  %v9746_v46 = vld [vmem:[#allocation17 + $0x280] sm:$0xff] }
 0x54d   :  { %13148 = vst [vmem:[#allocation345_spill] sm:$0xff] %v9736_v3  ;;  %13150 = vst [vmem:[#allocation347_spill] sm:$0xff] %v9740_v8  ;;  %v9752_v14 = vld [vmem:[#allocation17 + $0x298] sm:$0xff]  ;;  %v9762_v8 = vld [vmem:[#allocation17 + $0x2c0] sm:$0xff] }
 0x54e   :  { %13153 = vst [vmem:[#allocation350_spill] sm:$0xff] %v9752_v14  ;;  %13158 = vst [vmem:[#allocation355_spill] sm:$0xff] %v9762_v8  ;;  %v9770_v11 = vld [vmem:[#allocation17 + $0x2e0] sm:$0xff]  ;;  %v9774_v15 = vld [vmem:[#allocation17 + $0x2f0] sm:$0xff] }
 0x54f   :  { %13159 = vst [vmem:[#allocation356_spill] sm:$0xff] %v9770_v11  ;;  %13161 = vst [vmem:[#allocation358_spill] sm:$0xff] %v9774_v15  ;;  %v9790_v12 = vld [vmem:[#allocation17 + $0x330] sm:$0xff]  ;;  %v9792_v11 = vld [vmem:[#allocation17 + $0x338] sm:$0xff] }
 0x550   :  { %13166 = vst [vmem:[#allocation363_spill] sm:$0xff] %v9790_v12  ;;  %13167 = vst [vmem:[#allocation364_spill] sm:$0xff] %v9792_v11  ;;  %v9796_v15 = vld [vmem:[#allocation17 + $0x348] sm:$0xff]  ;;  %v9814_v11 = vld [vmem:[#allocation17 + $0x390] sm:$0xff] }
 0x551   :  { %13169 = vst [vmem:[#allocation366_spill] sm:$0xff] %v9796_v15  ;;  %v9804_v1 = vld [vmem:[#allocation17 + $0x368] sm:$0xff]  ;;  %13177 = vst [vmem:[#allocation374_spill] sm:$0xff] %v9814_v11 }
 0x552   :  { %13172 = vst [vmem:[#allocation369_spill] sm:$0xff] %v9804_v1  ;;  %v9812_v12 = vld [vmem:[#allocation17 + $0x388] sm:$0xff]  ;;  %v9826_v1 = vld [vmem:[#allocation17 + $0x3c0] sm:$0xff] }
 0x553   :  { %13176 = vst [vmem:[#allocation373_spill] sm:$0xff] %v9812_v12  ;;  %13183 = vst [vmem:[#allocation380_spill] sm:$0xff] %v9826_v1  ;;  %v9834_v12 = vld [vmem:[#allocation17 + $0x3e0] sm:$0xff]  ;;  %v9836_v11 = vld [vmem:[#allocation17 + $0x3e8] sm:$0xff] }
 0x554   :  { %13187 = vst [vmem:[#allocation384_spill] sm:$0xff] %v9834_v12  ;;  %13188 = vst [vmem:[#allocation385_spill] sm:$0xff] %v9836_v11  ;;  %v9848_v1 = vld [vmem:[#allocation17 + $0x418] sm:$0xff]  ;;  %v9858_v11 = vld [vmem:[#allocation17 + $0x440] sm:$0xff] }
 0x555   :  { %13194 = vst [vmem:[#allocation393_spill] sm:$0xff] %v9848_v1  ;;  %v9856_v12 = vld [vmem:[#allocation17 + $0x438] sm:$0xff]  ;;  %13199 = vst [vmem:[#allocation398_spill] sm:$0xff] %v9858_v11  ;;  %v9870_v1 = vld [vmem:[#allocation17 + $0x470] sm:$0xff] }
 0x556   :  { %13198 = vst [vmem:[#allocation397_spill] sm:$0xff] %v9856_v12  ;;  %13205 = vst [vmem:[#allocation404_spill] sm:$0xff] %v9870_v1  ;;  %v9878_v12 = vld [vmem:[#allocation17 + $0x490] sm:$0xff]  ;;  %v9880_v11 = vld [vmem:[#allocation17 + $0x498] sm:$0xff] }
 0x557   :  { %13209 = vst [vmem:[#allocation408_spill] sm:$0xff] %v9878_v12  ;;  %13210 = vst [vmem:[#allocation409_spill] sm:$0xff] %v9880_v11  ;;  %v9892_v1 = vld [vmem:[#allocation17 + $0x4c8] sm:$0xff]  ;;  %v9902_v11 = vld [vmem:[#allocation17 + $0x4f0] sm:$0xff] }
 0x558   :  { %13216 = vst [vmem:[#allocation415_spill] sm:$0xff] %v9892_v1  ;;  %v9900_v12 = vld [vmem:[#allocation17 + $0x4e8] sm:$0xff]  ;;  %13221 = vst [vmem:[#allocation420_spill] sm:$0xff] %v9902_v11  ;;  %v9914_v1 = vld [vmem:[#allocation17 + $0x520] sm:$0xff] }
 0x559   :  { %13220 = vst [vmem:[#allocation419_spill] sm:$0xff] %v9900_v12  ;;  %13227 = vst [vmem:[#allocation426_spill] sm:$0xff] %v9914_v1  ;;  %v9922_v12 = vld [vmem:[#allocation17 + $0x540] sm:$0xff]  ;;  %v9924_v11 = vld [vmem:[#allocation17 + $0x548] sm:$0xff] }
 0x55a   :  { %13231 = vst [vmem:[#allocation430_spill] sm:$0xff] %v9922_v12  ;;  %13232 = vst [vmem:[#allocation431_spill] sm:$0xff] %v9924_v11  ;;  %v9936_v1 = vld [vmem:[#allocation17 + $0x578] sm:$0xff]  ;;  %v9946_v11 = vld [vmem:[#allocation17 + $0x5a0] sm:$0xff] }
 0x55b   :  { %13238 = vst [vmem:[#allocation437_spill] sm:$0xff] %v9936_v1  ;;  %v9944_v12 = vld [vmem:[#allocation17 + $0x598] sm:$0xff]  ;;  %13243 = vst [vmem:[#allocation442_spill] sm:$0xff] %v9946_v11  ;;  %v9958_v1 = vld [vmem:[#allocation17 + $0x5d0] sm:$0xff] }
 0x55c   :  { %13242 = vst [vmem:[#allocation441_spill] sm:$0xff] %v9944_v12  ;;  %13249 = vst [vmem:[#allocation448_spill] sm:$0xff] %v9958_v1  ;;  %v9966_v12 = vld [vmem:[#allocation17 + $0x5f0] sm:$0xff]  ;;  %v9968_v11 = vld [vmem:[#allocation17 + $0x5f8] sm:$0xff] }
 0x55d   :  { %13253 = vst [vmem:[#allocation452_spill] sm:$0xff] %v9966_v12  ;;  %13254 = vst [vmem:[#allocation453_spill] sm:$0xff] %v9968_v11  ;;  %v9980_v1 = vld [vmem:[#allocation17 + $0x628] sm:$0xff]  ;;  %v9990_v11 = vld [vmem:[#allocation17 + $0x650] sm:$0xff] }
 0x55e   :  { %13260 = vst [vmem:[#allocation459_spill] sm:$0xff] %v9980_v1  ;;  %v9988_v12 = vld [vmem:[#allocation17 + $0x648] sm:$0xff]  ;;  %13265 = vst [vmem:[#allocation464_spill] sm:$0xff] %v9990_v11  ;;  %v10002_v1 = vld [vmem:[#allocation17 + $0x680] sm:$0xff] }
 0x55f   :  { %13264 = vst [vmem:[#allocation463_spill] sm:$0xff] %v9988_v12  ;;  %13271 = vst [vmem:[#allocation470_spill] sm:$0xff] %v10002_v1  ;;  %v10010_v12 = vld [vmem:[#allocation17 + $0x6a0] sm:$0xff]  ;;  %v10012_v11 = vld [vmem:[#allocation17 + $0x6a8] sm:$0xff] }
 0x560   :  { %13275 = vst [vmem:[#allocation474_spill] sm:$0xff] %v10010_v12  ;;  %13276 = vst [vmem:[#allocation475_spill] sm:$0xff] %v10012_v11  ;;  %v10024_v1 = vld [vmem:[#allocation17 + $0x6d8] sm:$0xff]  ;;  %v10034_v11 = vld [vmem:[#allocation17 + $0x700] sm:$0xff] }
 0x561   :  { %13282 = vst [vmem:[#allocation481_spill] sm:$0xff] %v10024_v1  ;;  %v10032_v12 = vld [vmem:[#allocation17 + $0x6f8] sm:$0xff]  ;;  %13287 = vst [vmem:[#allocation486_spill] sm:$0xff] %v10034_v11  ;;  %v10046_v1 = vld [vmem:[#allocation17 + $0x730] sm:$0xff] }
 0x562   :  { %13286 = vst [vmem:[#allocation485_spill] sm:$0xff] %v10032_v12  ;;  %13293 = vst [vmem:[#allocation492_spill] sm:$0xff] %v10046_v1  ;;  %v10054_v12 = vld [vmem:[#allocation17 + $0x750] sm:$0xff]  ;;  %v10056_v11 = vld [vmem:[#allocation17 + $0x758] sm:$0xff] }
 0x563   :  { %13297 = vst [vmem:[#allocation496_spill] sm:$0xff] %v10054_v12  ;;  %13298 = vst [vmem:[#allocation497_spill] sm:$0xff] %v10056_v11  ;;  %v10068_v1 = vld [vmem:[#allocation17 + $0x788] sm:$0xff]  ;;  %v10078_v11 = vld [vmem:[#allocation17 + $0x7b0] sm:$0xff] }
 0x564   :  { %13304 = vst [vmem:[#allocation503_spill] sm:$0xff] %v10068_v1  ;;  %v10076_v12 = vld [vmem:[#allocation17 + $0x7a8] sm:$0xff]  ;;  %13309 = vst [vmem:[#allocation508_spill] sm:$0xff] %v10078_v11  ;;  %v10090_v1 = vld [vmem:[#allocation17 + $0x7e0] sm:$0xff] }
 0x565   :  { %13308 = vst [vmem:[#allocation507_spill] sm:$0xff] %v10076_v12  ;;  %13314 = vst [vmem:[#allocation513_spill] sm:$0xff] %v10090_v1  ;;  %v10101_v11 = vld [vmem:[%s11824_s12] sm:$0xff]  ;;  %v10105_v12 = vmov 0.0  }
 0x566   :  { %13317 = vst [vmem:[#allocation516_spill] sm:$0xff] %v10101_v11 }
 0x567 LB: > { %13318 = vst [vmem:[#allocation517_spill] sm:$0xff] %v6762_v37  ;;  %13319 = vst [vmem:[#allocation518_spill] sm:$0xff] %v6766_v12  ;;  %v13320_v28 = vld [vmem:[#allocation303_spill] sm:$0xff]  ;;  %v13321_v27 = vld [vmem:[#allocation298_spill] sm:$0xff]  ;;  %v5138_v37 = vpack.c.bf16 %v9602_v25, %v9586_v58  ;;  %v5140_v1 = vpack.c.bf16 %v9636_v42, %v9620_v24  ;;  %v5204_v29 = vpack.c.bf16 %v9640_v62, %v9624_v54  ;;  %2657 = vmatprep.mubr.f32.mxu0 %v6770_v59  ;;  %s4505_s12 = sshll.u32 %s6778_s0, 4  ;;  %s2583_s0 = sadd.s32 1, %s6778_s0   ;;  %s6778_s0 = sphi %s10111_s0, %s2583_s0   ;;  %v6774_v49 = vphi %v10109_v49, %v3256_v49   ;;  %v6770_v59 = vphi %v10107_v59, %v3257_v59   ;;  %v6766_v12 = vphi %v10105_v12, %v3252_v12   ;;  %v6762_v37 = vphi %v10103_v37, %v3253_v37  }
 0x568   : > { %v5136_v11 = vpack.c.bf16 %v13320_v28, %v9588_v47  ;;  %v5200_v44 = vpack.c.bf16 %v9608_v36, %v13321_v27  ;;  %v13322_v5 = vld [vmem:[#allocation297_spill] sm:$0xff]  ;;  %v13323_v17 = vld [vmem:[#allocation304_spill] sm:$0xff]  ;;  %v5142_v28 = vpack.c.bf16 %v9634_v19, %v9618_v23  ;;  %2728 = vmatprep.mubr.f32.mxu1 %v6770_v59  ;;  %v13326_v4 = vld [vmem:[#allocation318_spill] sm:$0xff]  ;;  %s10407_s17 = scalar_lea.vmem [#allocation4], %s4505_s12  ;;  %s3259_s10 = scalar_lea.vmem [#allocation5], %s4505_s12 }
 0x569   : > { %v5202_v12 = vpack.c.bf16 %v13323_v17, %v13322_v5  ;;  %v13324_v16 = vld [vmem:[#allocation313_spill] sm:$0xff]  ;;  %v5144_v5 = vpack.c.bf16 %v9668_v50, %v9652_v26  ;;  %v13325_v0 = vld [vmem:[#allocation320_spill] sm:$0xff]  ;;  %v13327_v6 = vld [vmem:[#allocation319_spill] sm:$0xff]  ;;  %p2580_p7 = scmp.ge.s32.totalorder %s2583_s0, 16  }
 0x56a   : > { %5137 = vmatprep.subr.bf16.mxu0 %v5136_v11  ;;  %5201 = vmatprep.subr.bf16.mxu1 %v5200_v44  ;;  %v5206_v27 = vpack.c.bf16 %v13324_v16, %v9622_v56  ;;  %v5208_v17 = vpack.c.bf16 %v9672_v48, %v13325_v0  ;;  %v13328_v7 = vld [vmem:[#allocation333_spill] sm:$0xff]  ;;  %v13329_v9 = vld [vmem:[#allocation335_spill] sm:$0xff]  ;;  %v13330_v13 = vld [vmem:[#allocation334_spill] sm:$0xff]  ;;  %v5218_v11 = vpack.c.bf16 %v9734_v18, %v9718_v31  ;;  %s11095_s16 = smov (%p2580_p7), 0  }
 0x56b   : > { %5139 = vmatpush1.bf16.msra.mxu0 %v5138_v37  ;;  %5203 = vmatpush1.bf16.msra.mxu1 %v5202_v12  ;;  %v5146_v12 = vpack.c.bf16 %v9666_v57, %v13326_v4  ;;  %v5210_v37 = vpack.c.bf16 %v9670_v60, %v13327_v6  ;;  %v5214_v44 = vpack.c.bf16 %v13330_v13, %v9686_v38  ;;  %v13331_v2 = vld [vmem:[#allocation344_spill] sm:$0xff]  ;;  %v13332_v3 = vld [vmem:[#allocation345_spill] sm:$0xff]  ;;  %v13333_v14 = vld [vmem:[#allocation350_spill] sm:$0xff] }
 0x56c   : > { %5141 = vmatprep.subr.bf16.mxu0 %v5140_v1  ;;  %5205 = vmatprep.subr.bf16.mxu1 %v5204_v29  ;;  %v5148_v1 = vpack.c.bf16 %v13328_v7, %v9684_v32  ;;  %v5212_v29 = vpack.c.bf16 %v13329_v9, %v9688_v30  ;;  %v13334_v8 = vld [vmem:[#allocation355_spill] sm:$0xff]  ;;  %v13335_v15 = vld [vmem:[#allocation366_spill] sm:$0xff]  ;;  %v13343_v7 = vld [vmem:[#allocation372_spill] sm:$0xff] }
 0x56d   : > { %v13342_v4 = vld [vmem:[#allocation383_spill] sm:$0xff]  ;;  %v13346_v9 = vld [vmem:[#allocation382_spill] sm:$0xff]  ;;  %v13404_v10 = vld [vmem:[#allocation511_spill] sm:$0xff] }
 0x56e   :  { %v10722_v19 = vld [vmem:[#allocation18 + $0x50] sm:$0xff] (%p2580_p7)  ;;  %v10724_v18 = vld [vmem:[#allocation18 + $0x58] sm:$0xff] (%p2580_p7)  ;;  %v10734_v25 = vld [vmem:[#allocation18 + $0x80] sm:$0xff] (%p2580_p7) }
 0x56f   : > { %5143 = vmatpush1.bf16.msra.mxu0 %v5142_v28  ;;  %5207 = vmatpush1.bf16.msra.mxu1 %v5206_v27  ;;  %v5150_v28 = vpack.c.bf16 %v9698_v55, %v9682_v40  ;;  %v5154_v27 = vpack.c.bf16 %v9730_v20, %v9714_v41  ;;  %v10726_v20 = vld [vmem:[#allocation18 + $0x60] sm:$0xff] (%p2580_p7)  ;;  %v10728_v55 = vld [vmem:[#allocation18 + $0x68] sm:$0xff] (%p2580_p7)  ;;  %v10732_v58 = vld [vmem:[#allocation18 + $0x78] sm:$0xff] (%p2580_p7) }
 0x570   : > { %5145 = vmatprep.subr.bf16.mxu0 %v5144_v5  ;;  %5209 = vmatprep.subr.bf16.mxu1 %v5208_v17  ;;  %v5152_v5 = vpack.c.bf16 %v13331_v2, %v9716_v39  ;;  %v5216_v17 = vpack.c.bf16 %v13332_v3, %v9720_v33  ;;  %v13339_v2 = vld [vmem:[#allocation373_spill] sm:$0xff]  ;;  %v10736_v30 = vld [vmem:[#allocation18 + $0x88] sm:$0xff] (%p2580_p7)  ;;  %v10740_v32 = vld [vmem:[#allocation18 + $0x98] sm:$0xff] (%p2580_p7) }
 0x571   : > { %v13340_v3 = vld [vmem:[#allocation381_spill] sm:$0xff]  ;;  %v10742_v33 = vld [vmem:[#allocation18 + $0xa0] sm:$0xff] (%p2580_p7)  ;;  %v10748_v36 = vld [vmem:[#allocation18 + $0xb8] sm:$0xff] (%p2580_p7) }
 0x572   :  { %v10738_v31 = vld [vmem:[#allocation18 + $0x90] sm:$0xff] (%p2580_p7)  ;;  %v10750_v38 = vld [vmem:[#allocation18 + $0xc0] sm:$0xff] (%p2580_p7)  ;;  %v10752_v39 = vld [vmem:[#allocation18 + $0xc8] sm:$0xff] (%p2580_p7) }
 0x573   : > { %5147 = vmatpush1.bf16.msra.mxu0 %v5146_v12  ;;  %5211 = vmatpush1.bf16.msra.mxu1 %v5210_v37  ;;  %v5156_v12 = vpack.c.bf16 %v9764_v51, %v9748_v21  ;;  %v5220_v37 = vpack.c.bf16 %v9768_v34, %v13333_v14  ;;  %v10744_v34 = vld [vmem:[#allocation18 + $0xa8] sm:$0xff] (%p2580_p7)  ;;  %v10754_v40 = vld [vmem:[#allocation18 + $0xd0] sm:$0xff] (%p2580_p7)  ;;  %v10756_v41 = vld [vmem:[#allocation18 + $0xd8] sm:$0xff] (%p2580_p7) }
 0x574   : > { %5149 = vmatprep.subr.bf16.mxu0 %v5148_v1  ;;  %5213 = vmatprep.subr.bf16.mxu1 %v5212_v29  ;;  %v5158_v1 = vpack.c.bf16 %v13334_v8, %v9746_v46  ;;  %v5222_v29 = vpack.c.bf16 %v9766_v61, %v9750_v63  ;;  %v13344_v8 = vld [vmem:[#allocation380_spill] sm:$0xff]  ;;  %v10730_v63 = vld [vmem:[#allocation18 + $0x70] sm:$0xff] (%p2580_p7)  ;;  %v10764_v48 = vld [vmem:[#allocation18 + $0xf8] sm:$0xff] (%p2580_p7) }
 0x575   :  { %v10762_v47 = vld [vmem:[#allocation18 + $0xf0] sm:$0xff] (%p2580_p7)  ;;  %v10766_v50 = vld [vmem:[#allocation18 + $0x100] sm:$0xff] (%p2580_p7)  ;;  %v10768_v51 = vld [vmem:[#allocation18 + $0x108] sm:$0xff] (%p2580_p7) }
 0x576   :  { %v10774_v54 = vld [vmem:[#allocation18 + $0x120] sm:$0xff] (%p2580_p7)  ;;  %v10776_v56 = vld [vmem:[#allocation18 + $0x128] sm:$0xff] (%p2580_p7)  ;;  %v10778_v60 = vld [vmem:[#allocation18 + $0x130] sm:$0xff] (%p2580_p7) }
 0x577   : > { %5151 = vmatpush1.bf16.msra.mxu0 %v5150_v28  ;;  %5215 = vmatpush1.bf16.msra.mxu1 %v5214_v44  ;;  %v5160_v28 = vpack.c.bf16 %v13335_v15, %v9780_v52  ;;  %v5224_v44 = vpack.c.bf16 %v9800_v45, %v9784_v53  ;;  %v10760_v45 = vld [vmem:[#allocation18 + $0xe8] sm:$0xff] (%p2580_p7)  ;;  %v10770_v52 = vld [vmem:[#allocation18 + $0x110] sm:$0xff] (%p2580_p7)  ;;  %v10772_v53 = vld [vmem:[#allocation18 + $0x118] sm:$0xff] (%p2580_p7) }
 0x578   : > { %5153 = vmatprep.subr.bf16.mxu0 %v5152_v5  ;;  %5217 = vmatprep.subr.bf16.mxu1 %v5216_v17  ;;  %v13336_v5 = vld [vmem:[#allocation365_spill] sm:$0xff]  ;;  %v10780_v61 = vld [vmem:[#allocation18 + $0x138] sm:$0xff] (%p2580_p7)  ;;  %v10782_v57 = vld [vmem:[#allocation18 + $0x140] sm:$0xff] (%p2580_p7) }
 0x579   : > { %v5162_v17 = vpack.c.bf16 %v13336_v5, %v9778_v22  ;;  %v13347_v5 = vld [vmem:[#allocation391_spill] sm:$0xff]  ;;  %v10784_v21 = vld [vmem:[#allocation18 + $0x148] sm:$0xff] (%p2580_p7)  ;;  %v10788_v23 = vld [vmem:[#allocation18 + $0x158] sm:$0xff] (%p2580_p7) }
 0x57a   :  { %v10786_v22 = vld [vmem:[#allocation18 + $0x150] sm:$0xff] (%p2580_p7)  ;;  %v10790_v26 = vld [vmem:[#allocation18 + $0x160] sm:$0xff] (%p2580_p7)  ;;  %v10792_v62 = vld [vmem:[#allocation18 + $0x168] sm:$0xff] (%p2580_p7) }
 0x57b   : > { %5155 = vmatpush1.bf16.msra.mxu0 %v5154_v27  ;;  %5219 = vmatpush1.bf16.msra.mxu1 %v5218_v11  ;;  %v13337_v27 = vld [vmem:[#allocation360_spill] sm:$0xff]  ;;  %v13338_v11 = vld [vmem:[#allocation367_spill] sm:$0xff]  ;;  %v10794_v42 = vld [vmem:[#allocation18 + $0x170] sm:$0xff] (%p2580_p7) }
 0x57c   : > { %5157 = vmatprep.subr.bf16.mxu0 %v5156_v12  ;;  %5221 = vmatprep.subr.bf16.mxu1 %v5220_v37  ;;  %v5226_v0 = vpack.c.bf16 %v13338_v11, %v13337_v27  ;;  %v5164_v12 = vpack.c.bf16 %v13340_v3, %v13339_v2  ;;  %v13341_v37 = vld [vmem:[#allocation375_spill] sm:$0xff]  ;;  %v13348_v27 = vld [vmem:[#allocation399_spill] sm:$0xff]  ;;  %v13351_v2 = vld [vmem:[#allocation390_spill] sm:$0xff] }
 0x57d   : > { %v5228_v6 = vpack.c.bf16 %v13342_v4, %v13341_v37  ;;  %v13350_v11 = vld [vmem:[#allocation401_spill] sm:$0xff]  ;;  %v13352_v4 = vld [vmem:[#allocation398_spill] sm:$0xff]  ;;  %v10796_v46 = vld [vmem:[#allocation18 + $0x178] sm:$0xff] (%p2580_p7) }
 0x57e   : > { %v5170_v3 = vpack.c.bf16 %v13352_v4, %v13351_v2  ;;  %v13363_v2 = vld [vmem:[#allocation423_spill] sm:$0xff]  ;;  %v10798_v24 = vld [vmem:[#allocation18 + $0x180] sm:$0xff] (%p2580_p7) }
 0x57f   : > { %5159 = vmatpush1.bf16.msra.mxu0 %v5158_v1  ;;  %5223 = vmatpush1.bf16.msra.mxu1 %v5222_v29  ;;  %v5166_v1 = vpack.c.bf16 %v13344_v8, %v13343_v7  ;;  %v13345_v29 = vld [vmem:[#allocation374_spill] sm:$0xff]  ;;  %v13355_v7 = vld [vmem:[#allocation407_spill] sm:$0xff] }
 0x580   : > { %5161 = vmatprep.subr.bf16.mxu0 %v5160_v28  ;;  %5225 = vmatprep.subr.bf16.mxu1 %v5224_v44  ;;  %v5230_v13 = vpack.c.bf16 %v13346_v9, %v13345_v29  ;;  %v5168_v28 = vpack.c.bf16 %v13348_v27, %v13347_v5  ;;  %v13349_v44 = vld [vmem:[#allocation393_spill] sm:$0xff]  ;;  %v13356_v9 = vld [vmem:[#allocation415_spill] sm:$0xff]  ;;  %v13359_v5 = vld [vmem:[#allocation406_spill] sm:$0xff] }
 0x581   : > { %v5232_v14 = vpack.c.bf16 %v13350_v11, %v13349_v44  ;;  %v5172_v8 = vpack.c.bf16 %v13356_v9, %v13355_v7  ;;  %v13360_v27 = vld [vmem:[#allocation414_spill] sm:$0xff]  ;;  %v13362_v44 = vld [vmem:[#allocation416_spill] sm:$0xff]  ;;  %v13364_v4 = vld [vmem:[#allocation431_spill] sm:$0xff] }
 0x582   : > { %v13367_v7 = vld [vmem:[#allocation422_spill] sm:$0xff] }
 0x583   : > { %5163 = vmatpush1.bf16.msra.mxu0 %v5162_v17  ;;  %5227 = vmatpush1.bf16.msra.mxu1 %v5226_v0  ;;  %v13353_v0 = vld [vmem:[#allocation392_spill] sm:$0xff]  ;;  %v13368_v9 = vld [vmem:[#allocation430_spill] sm:$0xff] }
 0x584   : > { %5165 = vmatprep.subr.bf16.mxu0 %v5164_v12  ;;  %5229 = vmatprep.subr.bf16.mxu1 %v5228_v6  ;;  %v13354_v17 = vld [vmem:[#allocation400_spill] sm:$0xff]  ;;  %v13357_v6 = vld [vmem:[#allocation409_spill] sm:$0xff] }
 0x585   : > { %v5234_v37 = vpack.c.bf16 %v13354_v17, %v13353_v0  ;;  %v13358_v12 = vld [vmem:[#allocation417_spill] sm:$0xff] }
 0x586   : > { %v5236_v29 = vpack.c.bf16 %v13358_v12, %v13357_v6  ;;  %v13366_v0 = vld [vmem:[#allocation433_spill] sm:$0xff]  ;;  %v13370_v6 = vld [vmem:[#allocation432_spill] sm:$0xff] }
 0x587   : > { %5167 = vmatpush1.bf16.msra.mxu0 %v5166_v1  ;;  %5231 = vmatpush1.bf16.msra.mxu1 %v5230_v13  ;;  %v5174_v1 = vpack.c.bf16 %v13360_v27, %v13359_v5  ;;  %v13361_v13 = vld [vmem:[#allocation408_spill] sm:$0xff]  ;;  %v13371_v5 = vld [vmem:[#allocation439_spill] sm:$0xff] }
 0x588   : > { %5169 = vmatprep.subr.bf16.mxu0 %v5168_v28  ;;  %5233 = vmatprep.subr.bf16.mxu1 %v5232_v14  ;;  %v5238_v11 = vpack.c.bf16 %v13362_v44, %v13361_v13  ;;  %v5176_v28 = vpack.c.bf16 %v13364_v4, %v13363_v2  ;;  %v13365_v14 = vld [vmem:[#allocation425_spill] sm:$0xff]  ;;  %v13372_v27 = vld [vmem:[#allocation447_spill] sm:$0xff]  ;;  %v13375_v2 = vld [vmem:[#allocation438_spill] sm:$0xff] }
 0x589   : > { %v5240_v17 = vpack.c.bf16 %v13366_v0, %v13365_v14  ;;  %v13374_v13 = vld [vmem:[#allocation449_spill] sm:$0xff]  ;;  %v13376_v4 = vld [vmem:[#allocation446_spill] sm:$0xff]  ;;  %v13378_v14 = vld [vmem:[#allocation448_spill] sm:$0xff] }
 0x58b   : > { %5171 = vmatpush1.bf16.msra.mxu0 %v5170_v3  ;;  %5235 = vmatpush1.bf16.msra.mxu1 %v5234_v37  ;;  %v5178_v3 = vpack.c.bf16 %v13368_v9, %v13367_v7  ;;  %v13369_v37 = vld [vmem:[#allocation424_spill] sm:$0xff]  ;;  %v13379_v7 = vld [vmem:[#allocation455_spill] sm:$0xff] }
 0x58c   : > { %5173 = vmatprep.subr.bf16.mxu0 %v5172_v8  ;;  %5237 = vmatprep.subr.bf16.mxu1 %v5236_v29  ;;  %v5242_v12 = vpack.c.bf16 %v13370_v6, %v13369_v37  ;;  %v5180_v8 = vpack.c.bf16 %v13372_v27, %v13371_v5  ;;  %v13373_v29 = vld [vmem:[#allocation441_spill] sm:$0xff]  ;;  %v13380_v9 = vld [vmem:[#allocation463_spill] sm:$0xff]  ;;  %v13383_v5 = vld [vmem:[#allocation454_spill] sm:$0xff] }
 0x58d   : > { %v5244_v44 = vpack.c.bf16 %v13374_v13, %v13373_v29  ;;  %v13382_v37 = vld [vmem:[#allocation465_spill] sm:$0xff]  ;;  %v13384_v27 = vld [vmem:[#allocation462_spill] sm:$0xff]  ;;  %v13386_v29 = vld [vmem:[#allocation464_spill] sm:$0xff] }
 0x58f   : > { %5175 = vmatpush1.bf16.msra.mxu0 %v5174_v1  ;;  %5239 = vmatpush1.bf16.msra.mxu1 %v5238_v11  ;;  %v5182_v1 = vpack.c.bf16 %v13376_v4, %v13375_v2  ;;  %v13377_v11 = vld [vmem:[#allocation440_spill] sm:$0xff]  ;;  %v13387_v2 = vld [vmem:[#allocation471_spill] sm:$0xff] }
 0x590   : > { %5177 = vmatprep.subr.bf16.mxu0 %v5176_v28  ;;  %5241 = vmatprep.subr.bf16.mxu1 %v5240_v17  ;;  %v5246_v0 = vpack.c.bf16 %v13378_v14, %v13377_v11  ;;  %v5184_v28 = vpack.c.bf16 %v13380_v9, %v13379_v7  ;;  %v13381_v17 = vld [vmem:[#allocation457_spill] sm:$0xff]  ;;  %v13388_v4 = vld [vmem:[#allocation479_spill] sm:$0xff]  ;;  %v13391_v7 = vld [vmem:[#allocation470_spill] sm:$0xff] }
 0x591   : > { %v5248_v6 = vpack.c.bf16 %v13382_v37, %v13381_v17  ;;  %v13390_v11 = vld [vmem:[#allocation481_spill] sm:$0xff]  ;;  %v13392_v9 = vld [vmem:[#allocation478_spill] sm:$0xff]  ;;  %v13394_v17 = vld [vmem:[#allocation480_spill] sm:$0xff] }
 0x593   : > { %5179 = vmatpush1.bf16.msra.mxu0 %v5178_v3  ;;  %5243 = vmatpush1.bf16.msra.mxu1 %v5242_v12  ;;  %v5186_v3 = vpack.c.bf16 %v13384_v27, %v13383_v5  ;;  %v13385_v12 = vld [vmem:[#allocation456_spill] sm:$0xff]  ;;  %v13395_v5 = vld [vmem:[#allocation487_spill] sm:$0xff] }
 0x594   : > { %5181 = vmatprep.subr.bf16.mxu0 %v5180_v8  ;;  %5245 = vmatprep.subr.bf16.mxu1 %v5244_v44  ;;  %v5250_v13 = vpack.c.bf16 %v13386_v29, %v13385_v12  ;;  %v5188_v8 = vpack.c.bf16 %v13388_v4, %v13387_v2  ;;  %v13389_v44 = vld [vmem:[#allocation473_spill] sm:$0xff]  ;;  %v13396_v27 = vld [vmem:[#allocation495_spill] sm:$0xff]  ;;  %v13399_v2 = vld [vmem:[#allocation486_spill] sm:$0xff] }
 0x595   : > { %v5252_v14 = vpack.c.bf16 %v13390_v11, %v13389_v44  ;;  %v13398_v12 = vld [vmem:[#allocation497_spill] sm:$0xff]  ;;  %v13400_v4 = vld [vmem:[#allocation494_spill] sm:$0xff]  ;;  %v13402_v44 = vld [vmem:[#allocation496_spill] sm:$0xff] }
 0x597   : > { %5183 = vmatpush1.bf16.msra.mxu0 %v5182_v1  ;;  %5247 = vmatpush1.bf16.msra.mxu1 %v5246_v0  ;;  %v5190_v1 = vpack.c.bf16 %v13392_v9, %v13391_v7  ;;  %v13393_v0 = vld [vmem:[#allocation472_spill] sm:$0xff]  ;;  %v13403_v7 = vld [vmem:[#allocation503_spill] sm:$0xff] }
 0x598   : > { %5185 = vmatprep.subr.bf16.mxu0 %v5184_v28  ;;  %5249 = vmatprep.subr.bf16.mxu1 %v5248_v6  ;;  %v5254_v37 = vpack.c.bf16 %v13394_v17, %v13393_v0  ;;  %v5192_v28 = vpack.c.bf16 %v13396_v27, %v13395_v5  ;;  %v13397_v6 = vld [vmem:[#allocation489_spill] sm:$0xff]  ;;  %v13406_v0 = vld [vmem:[#allocation502_spill] sm:$0xff]  ;;  %v13409_v5 = vld [vmem:[#allocation512_spill] sm:$0xff] }
 0x599   : > { %v5256_v29 = vpack.c.bf16 %v13398_v12, %v13397_v6  ;;  %v13407_v17 = vld [vmem:[#allocation510_spill] sm:$0xff]  ;;  %v13411_v12 = vld [vmem:[#allocation306_spill] sm:$0xff] }
 0x59a   : > { %v13410_v6 = vld [vmem:[#allocation300_spill] sm:$0xff] }
 0x59b   : > { %5187 = vmatpush1.bf16.msra.mxu0 %v5186_v3  ;;  %5251 = vmatpush1.bf16.msra.mxu1 %v5250_v13  ;;  %v5194_v3 = vpack.c.bf16 %v13400_v4, %v13399_v2  ;;  %v13401_v13 = vld [vmem:[#allocation488_spill] sm:$0xff]  ;;  %v13413_v2 = vld [vmem:[#allocation308_spill] sm:$0xff] }
 0x59c   : > { %5189 = vmatprep.subr.bf16.mxu0 %v5188_v8  ;;  %5253 = vmatprep.subr.bf16.mxu1 %v5252_v14  ;;  %v5258_v11 = vpack.c.bf16 %v13402_v44, %v13401_v13  ;;  %v5196_v8 = vpack.c.bf16 %v13404_v10, %v13403_v7  ;;  %v13405_v14 = vld [vmem:[#allocation505_spill] sm:$0xff]  ;;  %v13415_v44 = vld [vmem:[#allocation305_spill] sm:$0xff] }
 0x59d   : > { %v5260_v9 = vpack.c.bf16 %v10088_v43, %v13405_v14  ;;  %v13414_v13 = vld [vmem:[#allocation299_spill] sm:$0xff] }
 0x59e   : > { %v13417_v7 = vld [vmem:[#allocation307_spill] sm:$0xff] }
 0x59f   : > { %5191 = vmatpush1.bf16.msra.mxu0 %v5190_v1  ;;  %5255 = vmatpush1.bf16.msra.mxu1 %v5254_v37  ;;  %v5198_v1 = vpack.c.bf16 %v13407_v17, %v13406_v0  ;;  %v13408_v37 = vld [vmem:[#allocation504_spill] sm:$0xff]  ;;  %v13419_v17 = vld [vmem:[#allocation315_spill] sm:$0xff] }
 0x5a0   : > { %5193 = vmatprep.subr.bf16.mxu0 %v5192_v28  ;;  %5257 = vmatprep.subr.bf16.mxu1 %v5256_v29  ;;  %v5262_v27 = vpack.c.bf16 %v13409_v5, %v13408_v37  ;;  %v5264_v28 = vpack.c.bf16 %v13411_v12, %v13410_v6  ;;  %v13412_v29 = vld [vmem:[#allocation302_spill] sm:$0xff]  ;;  %v13421_v37 = vld [vmem:[#allocation317_spill] sm:$0xff]  ;;  %v13424_v12 = vld [vmem:[#allocation311_spill] sm:$0xff] }
 0x5a1   : > { %v5328_v4 = vpack.c.bf16 %v13413_v2, %v13412_v29  ;;  %v13418_v0 = vld [vmem:[#allocation310_spill] sm:$0xff]  ;;  %v13425_v29 = vld [vmem:[#allocation316_spill] sm:$0xff]  ;;  %v10758_v43 = vld [vmem:[#allocation18 + $0xe0] sm:$0xff] (%p2580_p7) }
 0x5a2   : > { %v5334_v2 = vpack.c.bf16 %v13425_v29, %v13424_v12  ;;  %v13437_v12 = vld [vmem:[#allocation339_spill] sm:$0xff] }
 0x5a3   : > { %5195 = vmatpush1.bf16.msra.mxu0 %v5194_v3  ;;  %5259 = vmatpush1.bf16.msra.mxu1 %v5258_v11  ;;  %v5266_v3 = vpack.c.bf16 %v13415_v44, %v13414_v13  ;;  %v13416_v11 = vld [vmem:[#allocation301_spill] sm:$0xff]  ;;  %v13428_v44 = vld [vmem:[#allocation324_spill] sm:$0xff] }
 0x5a4   : > { %5197 = vmatprep.subr.bf16.mxu0 %v5196_v8  ;;  %5261 = vmatprep.subr.bf16.mxu1 %v5260_v9  ;;  %v5330_v14 = vpack.c.bf16 %v13417_v7, %v13416_v11  ;;  %v5268_v8 = vpack.c.bf16 %v13419_v17, %v13418_v0  ;;  %v13420_v9 = vld [vmem:[#allocation312_spill] sm:$0xff]  ;;  %v13432_v17 = vld [vmem:[#allocation323_spill] sm:$0xff] }
 0x5a5   : > { %v5332_v5 = vpack.c.bf16 %v13421_v37, %v13420_v9  ;;  %v13429_v11 = vld [vmem:[#allocation328_spill] sm:$0xff]  ;;  %v13433_v9 = vld [vmem:[#allocation327_spill] sm:$0xff] }
 0x5a6   : > { %v5336_v7 = vpack.c.bf16 %v13429_v11, %v13428_v44  ;;  %v5338_v37 = vpack.c.bf16 %v13433_v9, %v13432_v17  ;;  %v13442_v11 = vld [vmem:[#allocation341_spill] sm:$0xff]  ;;  %v13446_v9 = vld [vmem:[#allocation340_spill] sm:$0xff] }
 0x5a7   : > { %5199 = vmatpush1.bf16.msra.mxu0 %v5198_v1  ;;  %5263 = vmatpush1.bf16.msra.mxu1 %v5262_v27  ;;  %v13422_v1 = vld [vmem:[#allocation309_spill] sm:$0xff]  ;;  %v13423_v27 = vld [vmem:[#allocation314_spill] sm:$0xff] }
 0x5a8   : > { %5265 = vmatprep.subr.bf16.mxu0 %v5264_v28  ;;  %5329 = vmatprep.subr.bf16.mxu1 %v5328_v4  ;;  %v5270_v6 = vpack.c.bf16 %v13423_v27, %v13422_v1  ;;  %v13426_v28 = vld [vmem:[#allocation322_spill] sm:$0xff]  ;;  %v13436_v27 = vld [vmem:[#allocation332_spill] sm:$0xff] }
 0x5a9   : > { %v13427_v4 = vld [vmem:[#allocation326_spill] sm:$0xff]  ;;  %v5340_v29 = vpack.c.bf16 %v13437_v12, %v13436_v27  ;;  %v13450_v12 = vld [vmem:[#allocation352_spill] sm:$0xff] }
 0x5aa   : > { %2658 = vmatmul.mubr.f32.vlgmr.msra.gmra.mrb[0].mxu0 %v6774_v49  ;;  %2729 = vmatmul.mubr.f32.vlgmr.msra.gmra.mrb[0].mxu1 %v6774_v49  ;;  %v5272_v13 = vpack.c.bf16 %v13427_v4, %v13426_v28  ;;  %v13438_v28 = vld [vmem:[#allocation329_spill] sm:$0xff]  ;;  %v13441_v4 = vld [vmem:[#allocation338_spill] sm:$0xff] }
 0x5ab   : > { %5267 = vmatpush1.bf16.msra.mxu0 %v5266_v3  ;;  %5331 = vmatpush1.bf16.msra.mxu1 %v5330_v14  ;;  %v13430_v3 = vld [vmem:[#allocation321_spill] sm:$0xff] }
 0x5ac   : > { %5269 = vmatprep.subr.bf16.mxu0 %v5268_v8  ;;  %5333 = vmatprep.subr.bf16.mxu1 %v5332_v5  ;;  %v13431_v14 = vld [vmem:[#allocation325_spill] sm:$0xff]  ;;  %v13434_v8 = vld [vmem:[#allocation330_spill] sm:$0xff] }
 0x5ad   : > { %2799 = vmatprep.mubr.f32.mxu0 %v6770_v59  ;;  %2870 = vmatprep.mubr.f32.mxu1 %v6770_v59  ;;  %v5274_v0 = vpack.c.bf16 %v13431_v14, %v13430_v3  ;;  %v13435_v5 = vld [vmem:[#allocation337_spill] sm:$0xff]  ;;  %v13439_v59 = vld [vmem:[#allocation336_spill] sm:$0xff]  ;;  %v13443_v3 = vld [vmem:[#allocation347_spill] sm:$0xff] }
 0x5ae   : > { %v5276_v1 = vpack.c.bf16 %v13435_v5, %v13434_v8  ;;  %v13445_v14 = vld [vmem:[#allocation349_spill] sm:$0xff]  ;;  %v13447_v8 = vld [vmem:[#allocation346_spill] sm:$0xff]  ;;  %v13449_v5 = vld [vmem:[#allocation348_spill] sm:$0xff] }
 0x5af   : > { %5271 = vmatpush1.bf16.msra.mxu0 %v5270_v6  ;;  %5335 = vmatpush1.bf16.msra.mxu1 %v5334_v2  ;;  %v5278_v6 = vpack.c.bf16 %v13439_v59, %v13438_v28  ;;  %v13440_v2 = vld [vmem:[#allocation331_spill] sm:$0xff]  ;;  %v13451_v28 = vld [vmem:[#allocation357_spill] sm:$0xff] }
 0x5b0   : > { %5273 = vmatprep.subr.bf16.mxu0 %v5272_v13  ;;  %5337 = vmatprep.subr.bf16.mxu1 %v5336_v7  ;;  %v5342_v44 = vpack.c.bf16 %v13441_v4, %v13440_v2  ;;  %v5280_v13 = vpack.c.bf16 %v13443_v3, %v13442_v11  ;;  %v13444_v7 = vld [vmem:[#allocation343_spill] sm:$0xff]  ;;  %v13455_v11 = vld [vmem:[#allocation356_spill] sm:$0xff]  ;;  %v13457_v3 = vld [vmem:[#allocation358_spill] sm:$0xff] }
 0x5b1   : > { %v5344_v17 = vpack.c.bf16 %v13445_v14, %v13444_v7  ;;  %v13453_v59 = vld [vmem:[#allocation359_spill] sm:$0xff]  ;;  %v13458_v14 = vld [vmem:[#allocation362_spill] sm:$0xff] }
 0x5b2   : > { %v13454_v4 = vld [vmem:[#allocation351_spill] sm:$0xff] }
 0x5b3   : > { %5275 = vmatpush1.bf16.msra.mxu0 %v5274_v0  ;;  %5339 = vmatpush1.bf16.msra.mxu1 %v5338_v37  ;;  %v5282_v0 = vpack.c.bf16 %v13447_v8, %v13446_v9  ;;  %v13448_v37 = vld [vmem:[#allocation342_spill] sm:$0xff]  ;;  %v13459_v9 = vld [vmem:[#allocation369_spill] sm:$0xff]  ;;  %v13461_v8 = vld [vmem:[#allocation371_spill] sm:$0xff] }
 0x5b4   : > { %5277 = vmatprep.subr.bf16.mxu0 %v5276_v1  ;;  %5341 = vmatprep.subr.bf16.mxu1 %v5340_v29  ;;  %v5346_v27 = vpack.c.bf16 %v13449_v5, %v13448_v37  ;;  %v5284_v1 = vpack.c.bf16 %v13451_v28, %v13450_v12  ;;  %v13452_v29 = vld [vmem:[#allocation354_spill] sm:$0xff]  ;;  %v13462_v5 = vld [vmem:[#allocation361_spill] sm:$0xff]  ;;  %v13463_v12 = vld [vmem:[#allocation368_spill] sm:$0xff] }
 0x5b5   : > { %v5348_v2 = vpack.c.bf16 %v13453_v59, %v13452_v29  ;;  %v13465_v28 = vld [vmem:[#allocation370_spill] sm:$0xff]  ;;  %v13466_v59 = vld [vmem:[#allocation377_spill] sm:$0xff] }
 0x5b7   : > { %5279 = vmatpush1.bf16.msra.mxu0 %v5278_v6  ;;  %5343 = vmatpush1.bf16.msra.mxu1 %v5342_v44  ;;  %v5286_v6 = vpack.c.bf16 %v13455_v11, %v13454_v4  ;;  %v13456_v44 = vld [vmem:[#allocation353_spill] sm:$0xff]  ;;  %v13469_v11 = vld [vmem:[#allocation387_spill] sm:$0xff] }
 0x5b8   : > { %5281 = vmatprep.subr.bf16.mxu0 %v5280_v13  ;;  %5345 = vmatprep.subr.bf16.mxu1 %v5344_v17  ;;  %v5350_v7 = vpack.c.bf16 %v13457_v3, %v13456_v44  ;;  %v5288_v13 = vpack.c.bf16 %v13459_v9, %v13458_v14  ;;  %v13460_v17 = vld [vmem:[#allocation364_spill] sm:$0xff]  ;;  %v13467_v4 = vld [vmem:[#allocation385_spill] sm:$0xff]  ;;  %v13473_v9 = vld [vmem:[#allocation386_spill] sm:$0xff] }
 0x5b9   : > { %v5352_v37 = vpack.c.bf16 %v13461_v8, %v13460_v17  ;;  %v13470_v3 = vld [vmem:[#allocation376_spill] sm:$0xff]  ;;  %v13474_v8 = vld [vmem:[#allocation395_spill] sm:$0xff] }
 0x5ba   : > { %v13471_v14 = vld [vmem:[#allocation384_spill] sm:$0xff] }
 0x5bb   : > { %5283 = vmatpush1.bf16.msra.mxu0 %v5282_v0  ;;  %5347 = vmatpush1.bf16.msra.mxu1 %v5346_v27  ;;  %v5290_v0 = vpack.c.bf16 %v13463_v12, %v13462_v5  ;;  %v13464_v27 = vld [vmem:[#allocation363_spill] sm:$0xff]  ;;  %v13475_v5 = vld [vmem:[#allocation403_spill] sm:$0xff] }
 0x5bc   : > { %5285 = vmatprep.subr.bf16.mxu0 %v5284_v1  ;;  %5349 = vmatprep.subr.bf16.mxu1 %v5348_v2  ;;  %v5354_v29 = vpack.c.bf16 %v13465_v28, %v13464_v27  ;;  %v5292_v1 = vpack.c.bf16 %v13467_v4, %v13466_v59  ;;  %v13468_v2 = vld [vmem:[#allocation379_spill] sm:$0xff]  ;;  %v13478_v28 = vld [vmem:[#allocation394_spill] sm:$0xff]  ;;  %v13481_v4 = vld [vmem:[#allocation404_spill] sm:$0xff] }
 0x5bd   : > { %v5356_v44 = vpack.c.bf16 %v13469_v11, %v13468_v2  ;;  %v13477_v12 = vld [vmem:[#allocation405_spill] sm:$0xff]  ;;  %v13479_v59 = vld [vmem:[#allocation402_spill] sm:$0xff]  ;;  %v13482_v11 = vld [vmem:[#allocation411_spill] sm:$0xff] }
 0x5bf   : > { %5287 = vmatpush1.bf16.msra.mxu0 %v5286_v6  ;;  %5351 = vmatpush1.bf16.msra.mxu1 %v5350_v7  ;;  %v5294_v6 = vpack.c.bf16 %v13471_v14, %v13470_v3  ;;  %v13472_v7 = vld [vmem:[#allocation378_spill] sm:$0xff]  ;;  %v13483_v3 = vld [vmem:[#allocation419_spill] sm:$0xff]  ;;  %v13485_v14 = vld [vmem:[#allocation421_spill] sm:$0xff] }
 0x5c0   : > { %5289 = vmatprep.subr.bf16.mxu0 %v5288_v13  ;;  %5353 = vmatprep.subr.bf16.mxu1 %v5352_v37  ;;  %v5358_v17 = vpack.c.bf16 %v13473_v9, %v13472_v7  ;;  %v5296_v13 = vpack.c.bf16 %v13475_v5, %v13474_v8  ;;  %v13476_v37 = vld [vmem:[#allocation397_spill] sm:$0xff]  ;;  %v13486_v9 = vld [vmem:[#allocation410_spill] sm:$0xff]  ;;  %v13489_v5 = vld [vmem:[#allocation420_spill] sm:$0xff] }
 0x5c1   : > { %v5360_v27 = vpack.c.bf16 %v13477_v12, %v13476_v37  ;;  %v13487_v8 = vld [vmem:[#allocation418_spill] sm:$0xff]  ;;  %v13490_v12 = vld [vmem:[#allocation427_spill] sm:$0xff] }
 0x5c3   : > { %5291 = vmatpush1.bf16.msra.mxu0 %v5290_v0  ;;  %5355 = vmatpush1.bf16.msra.mxu1 %v5354_v29  ;;  %v5298_v0 = vpack.c.bf16 %v13479_v59, %v13478_v28  ;;  %v13480_v29 = vld [vmem:[#allocation396_spill] sm:$0xff]  ;;  %v13491_v28 = vld [vmem:[#allocation435_spill] sm:$0xff]  ;;  %v13493_v59 = vld [vmem:[#allocation437_spill] sm:$0xff] }
 0x5c4   : > { %5293 = vmatprep.subr.bf16.mxu0 %v5292_v1  ;;  %5357 = vmatprep.subr.bf16.mxu1 %v5356_v44  ;;  %v5362_v2 = vpack.c.bf16 %v13481_v4, %v13480_v29  ;;  %v5300_v1 = vpack.c.bf16 %v13483_v3, %v13482_v11  ;;  %v13484_v44 = vld [vmem:[#allocation413_spill] sm:$0xff]  ;;  %v13494_v4 = vld [vmem:[#allocation426_spill] sm:$0xff]  ;;  %v13497_v3 = vld [vmem:[#allocation436_spill] sm:$0xff] }
 0x5c5   : > { %v5364_v7 = vpack.c.bf16 %v13485_v14, %v13484_v44  ;;  %v13495_v11 = vld [vmem:[#allocation434_spill] sm:$0xff]  ;;  %v13498_v14 = vld [vmem:[#allocation443_spill] sm:$0xff] }
 0x5c7   : > { %5295 = vmatpush1.bf16.msra.mxu0 %v5294_v6  ;;  %5359 = vmatpush1.bf16.msra.mxu1 %v5358_v17  ;;  %v5302_v6 = vpack.c.bf16 %v13487_v8, %v13486_v9  ;;  %v13488_v17 = vld [vmem:[#allocation412_spill] sm:$0xff]  ;;  %v13499_v9 = vld [vmem:[#allocation451_spill] sm:$0xff]  ;;  %v13501_v8 = vld [vmem:[#allocation453_spill] sm:$0xff] }
 0x5c8   : > { %5297 = vmatprep.subr.bf16.mxu0 %v5296_v13  ;;  %5361 = vmatprep.subr.bf16.mxu1 %v5360_v27  ;;  %v5366_v37 = vpack.c.bf16 %v13489_v5, %v13488_v17  ;;  %v5304_v13 = vpack.c.bf16 %v13491_v28, %v13490_v12  ;;  %v13492_v27 = vld [vmem:[#allocation429_spill] sm:$0xff]  ;;  %v13502_v5 = vld [vmem:[#allocation442_spill] sm:$0xff]  ;;  %v13505_v28 = vld [vmem:[#allocation452_spill] sm:$0xff] }
 0x5c9   : > { %v5368_v29 = vpack.c.bf16 %v13493_v59, %v13492_v27  ;;  %v13503_v12 = vld [vmem:[#allocation450_spill] sm:$0xff]  ;;  %v13506_v59 = vld [vmem:[#allocation459_spill] sm:$0xff] }
 0x5cb   : > { %5299 = vmatpush1.bf16.msra.mxu0 %v5298_v0  ;;  %5363 = vmatpush1.bf16.msra.mxu1 %v5362_v2  ;;  %v5306_v0 = vpack.c.bf16 %v13495_v11, %v13494_v4  ;;  %v13496_v2 = vld [vmem:[#allocation428_spill] sm:$0xff]  ;;  %v13507_v4 = vld [vmem:[#allocation467_spill] sm:$0xff]  ;;  %v13509_v11 = vld [vmem:[#allocation469_spill] sm:$0xff] }
 0x5cc   : > { %5301 = vmatprep.subr.bf16.mxu0 %v5300_v1  ;;  %5365 = vmatprep.subr.bf16.mxu1 %v5364_v7  ;;  %v5370_v44 = vpack.c.bf16 %v13497_v3, %v13496_v2  ;;  %v5308_v1 = vpack.c.bf16 %v13499_v9, %v13498_v14  ;;  %v13500_v7 = vld [vmem:[#allocation445_spill] sm:$0xff]  ;;  %v13510_v3 = vld [vmem:[#allocation458_spill] sm:$0xff]  ;;  %v13513_v9 = vld [vmem:[#allocation468_spill] sm:$0xff] }
 0x5cd   : > { %v5372_v17 = vpack.c.bf16 %v13501_v8, %v13500_v7  ;;  %v13511_v14 = vld [vmem:[#allocation466_spill] sm:$0xff]  ;;  %v13514_v8 = vld [vmem:[#allocation475_spill] sm:$0xff] }
 0x5cf   : > { %5303 = vmatpush1.bf16.msra.mxu0 %v5302_v6  ;;  %5367 = vmatpush1.bf16.msra.mxu1 %v5366_v37  ;;  %v5310_v6 = vpack.c.bf16 %v13503_v12, %v13502_v5  ;;  %v13504_v37 = vld [vmem:[#allocation444_spill] sm:$0xff]  ;;  %v13515_v5 = vld [vmem:[#allocation483_spill] sm:$0xff]  ;;  %v13517_v12 = vld [vmem:[#allocation485_spill] sm:$0xff] }
 0x5d0   : > { %5305 = vmatprep.subr.bf16.mxu0 %v5304_v13  ;;  %5369 = vmatprep.subr.bf16.mxu1 %v5368_v29  ;;  %v5374_v27 = vpack.c.bf16 %v13505_v28, %v13504_v37  ;;  %v5312_v13 = vpack.c.bf16 %v13507_v4, %v13506_v59  ;;  %v13508_v29 = vld [vmem:[#allocation461_spill] sm:$0xff]  ;;  %v13518_v28 = vld [vmem:[#allocation474_spill] sm:$0xff]  ;;  %v13521_v4 = vld [vmem:[#allocation484_spill] sm:$0xff] }
 0x5d1   : > { %v5376_v2 = vpack.c.bf16 %v13509_v11, %v13508_v29  ;;  %v13519_v59 = vld [vmem:[#allocation482_spill] sm:$0xff]  ;;  %v13522_v11 = vld [vmem:[#allocation491_spill] sm:$0xff] }
 0x5d3   : > { %5307 = vmatpush1.bf16.msra.mxu0 %v5306_v0  ;;  %5371 = vmatpush1.bf16.msra.mxu1 %v5370_v44  ;;  %v5314_v0 = vpack.c.bf16 %v13511_v14, %v13510_v3  ;;  %v13512_v44 = vld [vmem:[#allocation460_spill] sm:$0xff]  ;;  %v13523_v3 = vld [vmem:[#allocation499_spill] sm:$0xff]  ;;  %v13525_v14 = vld [vmem:[#allocation501_spill] sm:$0xff] }
 0x5d4   : > { %5309 = vmatprep.subr.bf16.mxu0 %v5308_v1  ;;  %5373 = vmatprep.subr.bf16.mxu1 %v5372_v17  ;;  %v5378_v7 = vpack.c.bf16 %v13513_v9, %v13512_v44  ;;  %v5316_v1 = vpack.c.bf16 %v13515_v5, %v13514_v8  ;;  %v13516_v17 = vld [vmem:[#allocation477_spill] sm:$0xff]  ;;  %v13526_v9 = vld [vmem:[#allocation490_spill] sm:$0xff]  ;;  %v13528_v8 = vld [vmem:[#allocation492_spill] sm:$0xff] }
 0x5d5   : > { %v5380_v37 = vpack.c.bf16 %v13517_v12, %v13516_v17  ;;  %v13529_v5 = vld [vmem:[#allocation500_spill] sm:$0xff]  ;;  %v13530_v12 = vld [vmem:[#allocation507_spill] sm:$0xff] }
 0x5d6   : > { %v5386_v17 = vpack.c.bf16 %v13529_v5, %v13528_v8  ;;  %v13542_v8 = vld [vmem:[#allocation40_spill] sm:$0xff] }
 0x5d7   : > { %5311 = vmatpush1.bf16.msra.mxu0 %v5310_v6  ;;  %5375 = vmatpush1.bf16.msra.mxu1 %v5374_v27  ;;  %v5318_v6 = vpack.c.bf16 %v13519_v59, %v13518_v28  ;;  %v13520_v27 = vld [vmem:[#allocation476_spill] sm:$0xff]  ;;  %v13532_v28 = vld [vmem:[#allocation515_spill] sm:$0xff] }
 0x5d8   : > { %5313 = vmatprep.subr.bf16.mxu0 %v5312_v13  ;;  %5377 = vmatprep.subr.bf16.mxu1 %v5376_v2  ;;  %v5382_v29 = vpack.c.bf16 %v13521_v4, %v13520_v27  ;;  %v5320_v13 = vpack.c.bf16 %v13523_v3, %v13522_v11  ;;  %v13524_v2 = vld [vmem:[#allocation493_spill] sm:$0xff]  ;;  %v13533_v27 = vld [vmem:[#allocation506_spill] sm:$0xff] }
 0x5d9   : > { %v5384_v44 = vpack.c.bf16 %v13525_v14, %v13524_v2  ;;  %v13536_v11 = vld [vmem:[#allocation514_spill] sm:$0xff]  ;;  %v13537_v2 = vld [vmem:[#allocation33_spill] sm:$0xff] }
 0x5db   : > { %5315 = vmatpush1.bf16.msra.mxu0 %v5314_v0  ;;  %5379 = vmatpush1.bf16.msra.mxu1 %v5378_v7  ;;  %v13527_v0 = vld [vmem:[#allocation498_spill] sm:$0xff] }
 0x5dc   : > { %5317 = vmatprep.subr.bf16.mxu0 %v5316_v1  ;;  %5381 = vmatprep.subr.bf16.mxu1 %v5380_v37  ;;  %v5322_v7 = vpack.c.bf16 %v13527_v0, %v13526_v9  ;;  %v5324_v1 = vpack.c.bf16 %v10092_v35, %v13530_v12  ;;  %v13531_v37 = vld [vmem:[#allocation509_spill] sm:$0xff]  ;;  %v13544_v12 = vld [vmem:[#allocation42_spill] sm:$0xff]  ;;  %v10746_v35 = vld [vmem:[#allocation18 + $0xb0] sm:$0xff] (%p2580_p7) }
 0x5dd   : > { %v5388_v59 = vpack.c.bf16 %v13532_v28, %v13531_v37  ;;  %v13540_v9 = vld [vmem:[#allocation43_spill] sm:$0xff]  ;;  %v13545_v28 = vld [vmem:[#allocation49_spill] sm:$0xff]  ;;  %13815 = vst [vmem:[#allocation42_spill] sm:$0xff] (%p2580_p7), %v10722_v19  ;;  %v11056_v19 = vld [vmem:[#allocation20 + $0x188] sm:$0xff] (%p2580_p7) }
 0x5de   :  { %13816 = vst [vmem:[#allocation43_spill] sm:$0xff] (%p2580_p7), %v10724_v18  ;;  %13822 = vst [vmem:[#allocation49_spill] sm:$0xff] (%p2580_p7), %v10736_v30  ;;  %v11052_v30 = vld [vmem:[#allocation20 + $0x178] sm:$0xff] (%p2580_p7)  ;;  %v11064_v18 = vld [vmem:[#allocation20 + $0x1a8] sm:$0xff] (%p2580_p7) }
 0x5df   : > { %5319 = vmatpush1.bf16.msra.mxu0 %v5318_v6  ;;  %5383 = vmatpush1.bf16.msra.mxu1 %v5382_v29  ;;  %v13534_v6 = vld [vmem:[#allocation513_spill] sm:$0xff]  ;;  %v13535_v29 = vld [vmem:[#allocation508_spill] sm:$0xff] }
 0x5e0   : > { %5321 = vmatprep.subr.bf16.mxu0 %v5320_v13  ;;  %5385 = vmatprep.subr.bf16.mxu1 %v5384_v44  ;;  %v5326_v4 = vpack.c.bf16 %v13534_v6, %v13533_v27  ;;  %v5390_v3 = vpack.c.bf16 %v13536_v11, %v13535_v29  ;;  %v13538_v13 = vld [vmem:[#allocation41_spill] sm:$0xff]  ;;  %v13539_v44 = vld [vmem:[#allocation35_spill] sm:$0xff]  ;;  %v13549_v11 = vld [vmem:[#allocation48_spill] sm:$0xff] }
 0x5e1   : > { %v5392_v14 = vpack.c.bf16 %v13538_v13, %v13537_v2  ;;  %v5456_v0 = vpack.c.bf16 %v13540_v9, %v13539_v44  ;;  %v13547_v27 = vld [vmem:[#allocation51_spill] sm:$0xff]  ;;  %v13551_v13 = vld [vmem:[#allocation50_spill] sm:$0xff]  ;;  %13821 = vst [vmem:[#allocation48_spill] sm:$0xff] (%p2580_p7), %v10734_v25 }
 0x5e2   : > { %v13548_v6 = vld [vmem:[#allocation59_spill] sm:$0xff]  ;;  %v13553_v9 = vld [vmem:[#allocation72_spill] sm:$0xff]  ;;  %13823 = vst [vmem:[#allocation50_spill] sm:$0xff] (%p2580_p7), %v10738_v31  ;;  %13824 = vst [vmem:[#allocation51_spill] sm:$0xff] (%p2580_p7), %v10740_v32 }
 0x5e3   : > { %5323 = vmatpush1.bf16.msra.mxu0 %v5322_v7  ;;  %5387 = vmatpush1.bf16.msra.mxu1 %v5386_v17  ;;  %v13541_v7 = vld [vmem:[#allocation32_spill] sm:$0xff]  ;;  %v13543_v17 = vld [vmem:[#allocation34_spill] sm:$0xff]  ;;  %v5460_v29 = vpack.c.bf16 %v13548_v6, %v13547_v27  ;;  %13832 = vst [vmem:[#allocation59_spill] sm:$0xff] (%p2580_p7), %v10756_v41  ;;  %13839 = vst [vmem:[#allocation72_spill] sm:$0xff] (%p2580_p7), %v10770_v52 }
 0x5e4   : > { %5325 = vmatprep.subr.bf16.mxu0 %v5324_v1  ;;  %5389 = vmatprep.subr.bf16.mxu1 %v5388_v59  ;;  %v5394_v5 = vpack.c.bf16 %v13542_v8, %v13541_v7  ;;  %v5458_v37 = vpack.c.bf16 %v13544_v12, %v13543_v17  ;;  %v13546_v1 = vld [vmem:[#allocation57_spill] sm:$0xff]  ;;  %v13556_v8 = vld [vmem:[#allocation82_spill] sm:$0xff]  ;;  %v13562_v6 = vld [vmem:[#allocation96_spill] sm:$0xff] }
 0x5e5   : > { %v5396_v59 = vpack.c.bf16 %v13546_v1, %v13545_v28  ;;  %v13558_v12 = vld [vmem:[#allocation79_spill] sm:$0xff]  ;;  %v13559_v28 = vld [vmem:[#allocation73_spill] sm:$0xff]  ;;  %13830 = vst [vmem:[#allocation57_spill] sm:$0xff] (%p2580_p7), %v10752_v39  ;;  %13849 = vst [vmem:[#allocation82_spill] sm:$0xff] (%p2580_p7), %v10790_v26 }
 0x5e6   : > { %v13560_v1 = vld [vmem:[#allocation81_spill] sm:$0xff]  ;;  %13840 = vst [vmem:[#allocation73_spill] sm:$0xff] (%p2580_p7), %v10772_v53  ;;  %13846 = vst [vmem:[#allocation79_spill] sm:$0xff] (%p2580_p7), %v10784_v21  ;;  %v10994_v26 = vld [vmem:[#allocation20 + $0x90] sm:$0xff] (%p2580_p7) }
 0x5e7   : > { %5327 = vmatpush1.bf16.msra.mxu0 %v5326_v4  ;;  %5391 = vmatpush1.bf16.msra.mxu1 %v5390_v3  ;;  %v10410_v4 = vld [vmem:[%s10407_s17 + $0x8] sm:$0xff]  ;;  %v13550_v3 = vld [vmem:[#allocation56_spill] sm:$0xff]  ;;  %v5466_v27 = vpack.c.bf16 %v13560_v1, %v13559_v28  ;;  %v13573_v1 = vld [vmem:[#allocation103_spill] sm:$0xff]  ;;  %13848 = vst [vmem:[#allocation81_spill] sm:$0xff] (%p2580_p7), %v10788_v23 }
 0x5e8   : > { %5393 = vmatprep.subr.bf16.mxu0 %v5392_v14  ;;  %5457 = vmatprep.subr.bf16.mxu1 %v5456_v0  ;;  %v5398_v2 = vpack.c.bf16 %v13550_v3, %v13549_v11  ;;  %v13552_v14 = vld [vmem:[#allocation58_spill] sm:$0xff]  ;;  %v13563_v11 = vld [vmem:[#allocation90_spill] sm:$0xff]  ;;  %13829 = vst [vmem:[#allocation56_spill] sm:$0xff] (%p2580_p7), %v10750_v38 }
 0x5e9   : > { %v5462_v44 = vpack.c.bf16 %v13552_v14, %v13551_v13  ;;  %v13554_v0 = vld [vmem:[#allocation80_spill] sm:$0xff]  ;;  %v13564_v3 = vld [vmem:[#allocation98_spill] sm:$0xff]  ;;  %v13565_v14 = vld [vmem:[#allocation87_spill] sm:$0xff]  ;;  %13831 = vst [vmem:[#allocation58_spill] sm:$0xff] (%p2580_p7), %v10754_v40 }
 0x5ea   : > { %2800 = vmatmul.mubr.f32.vlgmr.msra.gmra.mrb[2].mxu0 %v6774_v49  ;;  %2871 = vmatmul.mubr.f32.vlgmr.msra.gmra.mrb[2].mxu1 %v6774_v49  ;;  %v5400_v7 = vpack.c.bf16 %v13554_v0, %v13553_v9  ;;  %v13555_v49 = vld [vmem:[#allocation74_spill] sm:$0xff]  ;;  %v5468_v13 = vpack.c.bf16 %v13564_v3, %v13563_v11  ;;  %v13566_v9 = vld [vmem:[#allocation95_spill] sm:$0xff]  ;;  %v13568_v0 = vld [vmem:[#allocation97_spill] sm:$0xff]  ;;  %13847 = vst [vmem:[#allocation80_spill] sm:$0xff] (%p2580_p7), %v10786_v22 }
 0x5eb   : > { %5395 = vmatpush1.bf16.msra.mxu0 %v5394_v5  ;;  %5459 = vmatpush1.bf16.msra.mxu1 %v5458_v37  ;;  %v5464_v17 = vpack.c.bf16 %v13556_v8, %v13555_v49  ;;  %v13557_v5 = vld [vmem:[#allocation71_spill] sm:$0xff]  ;;  %v13569_v8 = vld [vmem:[#allocation104_spill] sm:$0xff]  ;;  %13841 = vst [vmem:[#allocation74_spill] sm:$0xff] (%p2580_p7), %v10774_v54  ;;  %v10992_v22 = vld [vmem:[#allocation20 + $0x88] sm:$0xff] (%p2580_p7) }
 0x5ec   : > { %5397 = vmatprep.subr.bf16.mxu0 %v5396_v59  ;;  %5461 = vmatprep.subr.bf16.mxu1 %v5460_v29  ;;  %v5402_v37 = vpack.c.bf16 %v13558_v12, %v13557_v5  ;;  %v13561_v59 = vld [vmem:[#allocation88_spill] sm:$0xff]  ;;  %v13572_v12 = vld [vmem:[#allocation114_spill] sm:$0xff]  ;;  %13838 = vst [vmem:[#allocation71_spill] sm:$0xff] (%p2580_p7), %v10768_v51  ;;  %v11010_v54 = vld [vmem:[#allocation20 + $0xd0] sm:$0xff] (%p2580_p7) }
 0x5ed   : > { %2941 = vmatprep.mubr.f32.mxu0 %v10410_v4  ;;  %3012 = vmatprep.mubr.f32.mxu1 %v10410_v4  ;;  %v5404_v29 = vpack.c.bf16 %v13562_v6, %v13561_v59  ;;  %v13570_v5 = vld [vmem:[#allocation112_spill] sm:$0xff]  ;;  %v13574_v59 = vld [vmem:[#allocation111_spill] sm:$0xff]  ;;  %v13576_v6 = vld [vmem:[#allocation113_spill] sm:$0xff] }
 0x5ee   : > { %v13577_v3 = vld [vmem:[#allocation120_spill] sm:$0xff]  ;;  %v11000_v23 = vld [vmem:[#allocation20 + $0xa8] sm:$0xff] (%p2580_p7) }
 0x5ef   : > { %5399 = vmatpush1.bf16.msra.mxu0 %v5398_v2  ;;  %5463 = vmatpush1.bf16.msra.mxu1 %v5462_v44  ;;  %v5406_v2 = vpack.c.bf16 %v13566_v9, %v13565_v14  ;;  %v13567_v44 = vld [vmem:[#allocation89_spill] sm:$0xff]  ;;  %v13578_v14 = vld [vmem:[#allocation130_spill] sm:$0xff]  ;;  %v13580_v9 = vld [vmem:[#allocation132_spill] sm:$0xff] }
 0x5f0   : > { %5401 = vmatprep.subr.bf16.mxu0 %v5400_v7  ;;  %5465 = vmatprep.subr.bf16.mxu1 %v5464_v17  ;;  %v5470_v49 = vpack.c.bf16 %v13568_v0, %v13567_v44  ;;  %v5408_v7 = vpack.c.bf16 %v13570_v5, %v13569_v8  ;;  %v13571_v17 = vld [vmem:[#allocation106_spill] sm:$0xff]  ;;  %v13581_v0 = vld [vmem:[#allocation119_spill] sm:$0xff]  ;;  %v13584_v5 = vld [vmem:[#allocation131_spill] sm:$0xff] }
 0x5f1   : > { %v5472_v28 = vpack.c.bf16 %v13572_v12, %v13571_v17  ;;  %v13582_v8 = vld [vmem:[#allocation129_spill] sm:$0xff]  ;;  %v13585_v12 = vld [vmem:[#allocation138_spill] sm:$0xff]  ;;  %v11008_v52 = vld [vmem:[#allocation20 + $0xc8] sm:$0xff] (%p2580_p7) }
 0x5f2   :  { %v11004_v21 = vld [vmem:[#allocation20 + $0xb8] sm:$0xff] (%p2580_p7)  ;;  %v11016_v53 = vld [vmem:[#allocation20 + $0xe8] sm:$0xff] (%p2580_p7) }
 0x5f3   : > { %5403 = vmatpush1.bf16.msra.mxu0 %v5402_v37  ;;  %5467 = vmatpush1.bf16.msra.mxu1 %v5466_v27  ;;  %v5410_v37 = vpack.c.bf16 %v13574_v59, %v13573_v1  ;;  %v13575_v27 = vld [vmem:[#allocation105_spill] sm:$0xff]  ;;  %v13586_v1 = vld [vmem:[#allocation146_spill] sm:$0xff]  ;;  %v13588_v59 = vld [vmem:[#allocation148_spill] sm:$0xff] }
 0x5f4   : > { %5405 = vmatprep.subr.bf16.mxu0 %v5404_v29  ;;  %5469 = vmatprep.subr.bf16.mxu1 %v5468_v13  ;;  %v5474_v11 = vpack.c.bf16 %v13576_v6, %v13575_v27  ;;  %v5412_v29 = vpack.c.bf16 %v13578_v14, %v13577_v3  ;;  %v13579_v13 = vld [vmem:[#allocation122_spill] sm:$0xff]  ;;  %v13589_v6 = vld [vmem:[#allocation137_spill] sm:$0xff]  ;;  %v13592_v14 = vld [vmem:[#allocation147_spill] sm:$0xff] }
 0x5f5   : > { %v5476_v44 = vpack.c.bf16 %v13580_v9, %v13579_v13  ;;  %v13590_v3 = vld [vmem:[#allocation145_spill] sm:$0xff]  ;;  %v13593_v9 = vld [vmem:[#allocation154_spill] sm:$0xff]  ;;  %v11024_v40 = vld [vmem:[#allocation20 + $0x108] sm:$0xff] (%p2580_p7) }
 0x5f6   :  { %v11020_v51 = vld [vmem:[#allocation20 + $0xf8] sm:$0xff] (%p2580_p7)  ;;  %v11032_v41 = vld [vmem:[#allocation20 + $0x128] sm:$0xff] (%p2580_p7) }
 0x5f7   : > { %5407 = vmatpush1.bf16.msra.mxu0 %v5406_v2  ;;  %5471 = vmatpush1.bf16.msra.mxu1 %v5470_v49  ;;  %v5414_v2 = vpack.c.bf16 %v13582_v8, %v13581_v0  ;;  %v13583_v49 = vld [vmem:[#allocation121_spill] sm:$0xff]  ;;  %v13594_v0 = vld [vmem:[#allocation162_spill] sm:$0xff]  ;;  %v13596_v8 = vld [vmem:[#allocation164_spill] sm:$0xff] }
 0x5f8   : > { %5409 = vmatprep.subr.bf16.mxu0 %v5408_v7  ;;  %5473 = vmatprep.subr.bf16.mxu1 %v5472_v28  ;;  %v5478_v17 = vpack.c.bf16 %v13584_v5, %v13583_v49  ;;  %v5416_v7 = vpack.c.bf16 %v13586_v1, %v13585_v12  ;;  %v13587_v28 = vld [vmem:[#allocation140_spill] sm:$0xff]  ;;  %v13597_v5 = vld [vmem:[#allocation153_spill] sm:$0xff]  ;;  %v13600_v1 = vld [vmem:[#allocation163_spill] sm:$0xff] }
 0x5f9   : > { %v5480_v27 = vpack.c.bf16 %v13588_v59, %v13587_v28  ;;  %v13598_v12 = vld [vmem:[#allocation161_spill] sm:$0xff]  ;;  %v13601_v59 = vld [vmem:[#allocation170_spill] sm:$0xff]  ;;  %v11040_v31 = vld [vmem:[#allocation20 + $0x148] sm:$0xff] (%p2580_p7) }
 0x5fa   :  { %v11028_v38 = vld [vmem:[#allocation20 + $0x118] sm:$0xff] (%p2580_p7)  ;;  %v11048_v32 = vld [vmem:[#allocation20 + $0x168] sm:$0xff] (%p2580_p7) }
 0x5fb   : > { %5411 = vmatpush1.bf16.msra.mxu0 %v5410_v37  ;;  %5475 = vmatpush1.bf16.msra.mxu1 %v5474_v11  ;;  %v5418_v37 = vpack.c.bf16 %v13590_v3, %v13589_v6  ;;  %v13591_v11 = vld [vmem:[#allocation139_spill] sm:$0xff]  ;;  %v13602_v6 = vld [vmem:[#allocation178_spill] sm:$0xff]  ;;  %v13604_v3 = vld [vmem:[#allocation180_spill] sm:$0xff] }
 0x5fc   : > { %5413 = vmatprep.subr.bf16.mxu0 %v5412_v29  ;;  %5477 = vmatprep.subr.bf16.mxu1 %v5476_v44  ;;  %v5482_v13 = vpack.c.bf16 %v13592_v14, %v13591_v11  ;;  %v5420_v29 = vpack.c.bf16 %v13594_v0, %v13593_v9  ;;  %v13595_v44 = vld [vmem:[#allocation156_spill] sm:$0xff]  ;;  %v13605_v14 = vld [vmem:[#allocation169_spill] sm:$0xff]  ;;  %v13608_v0 = vld [vmem:[#allocation179_spill] sm:$0xff] }
 0x5fd   : > { %v5484_v49 = vpack.c.bf16 %v13596_v8, %v13595_v44  ;;  %v13606_v9 = vld [vmem:[#allocation177_spill] sm:$0xff]  ;;  %v13609_v8 = vld [vmem:[#allocation186_spill] sm:$0xff]  ;;  %13944 = vst [vmem:[#allocation179_spill] sm:$0xff] (%p2580_p7), %v11064_v18 }
 0x5fe   :  { %v11036_v39 = vld [vmem:[#allocation20 + $0x138] sm:$0xff] (%p2580_p7)  ;;  %13942 = vst [vmem:[#allocation177_spill] sm:$0xff] (%p2580_p7), %v11056_v19 }
 0x5ff   : > { %5415 = vmatpush1.bf16.msra.mxu0 %v5414_v2  ;;  %5479 = vmatpush1.bf16.msra.mxu1 %v5478_v17  ;;  %v5422_v2 = vpack.c.bf16 %v13598_v12, %v13597_v5  ;;  %v13599_v17 = vld [vmem:[#allocation155_spill] sm:$0xff]  ;;  %v13610_v5 = vld [vmem:[#allocation194_spill] sm:$0xff]  ;;  %v13612_v12 = vld [vmem:[#allocation196_spill] sm:$0xff] }
 0x600   : > { %5417 = vmatprep.subr.bf16.mxu0 %v5416_v7  ;;  %5481 = vmatprep.subr.bf16.mxu1 %v5480_v27  ;;  %v5486_v28 = vpack.c.bf16 %v13600_v1, %v13599_v17  ;;  %v5424_v7 = vpack.c.bf16 %v13602_v6, %v13601_v59  ;;  %v13603_v27 = vld [vmem:[#allocation172_spill] sm:$0xff]  ;;  %v13613_v1 = vld [vmem:[#allocation185_spill] sm:$0xff]  ;;  %v13616_v6 = vld [vmem:[#allocation195_spill] sm:$0xff] }
 0x601   : > { %v5488_v11 = vpack.c.bf16 %v13604_v3, %v13603_v27  ;;  %v13614_v59 = vld [vmem:[#allocation193_spill] sm:$0xff]  ;;  %v13617_v3 = vld [vmem:[#allocation202_spill] sm:$0xff] }
 0x602   :  { %v11044_v25 = vld [vmem:[#allocation20 + $0x158] sm:$0xff] (%p2580_p7) }
 0x603   : > { %5419 = vmatpush1.bf16.msra.mxu0 %v5418_v37  ;;  %5483 = vmatpush1.bf16.msra.mxu1 %v5482_v13  ;;  %v5426_v37 = vpack.c.bf16 %v13606_v9, %v13605_v14  ;;  %v13607_v13 = vld [vmem:[#allocation171_spill] sm:$0xff]  ;;  %v13618_v14 = vld [vmem:[#allocation210_spill] sm:$0xff]  ;;  %v13620_v9 = vld [vmem:[#allocation212_spill] sm:$0xff] }
 0x604   : > { %5421 = vmatprep.subr.bf16.mxu0 %v5420_v29  ;;  %5485 = vmatprep.subr.bf16.mxu1 %v5484_v49  ;;  %v5490_v44 = vpack.c.bf16 %v13608_v0, %v13607_v13  ;;  %v5428_v29 = vpack.c.bf16 %v13610_v5, %v13609_v8  ;;  %v13611_v49 = vld [vmem:[#allocation188_spill] sm:$0xff]  ;;  %v13621_v0 = vld [vmem:[#allocation201_spill] sm:$0xff]  ;;  %v13624_v5 = vld [vmem:[#allocation211_spill] sm:$0xff] }
 0x605   : > { %v5492_v17 = vpack.c.bf16 %v13612_v12, %v13611_v49  ;;  %v13622_v8 = vld [vmem:[#allocation209_spill] sm:$0xff]  ;;  %v13625_v12 = vld [vmem:[#allocation218_spill] sm:$0xff] }
 0x607   : > { %5423 = vmatpush1.bf16.msra.mxu0 %v5422_v2  ;;  %5487 = vmatpush1.bf16.msra.mxu1 %v5486_v28  ;;  %v5430_v2 = vpack.c.bf16 %v13614_v59, %v13613_v1  ;;  %v13615_v28 = vld [vmem:[#allocation187_spill] sm:$0xff]  ;;  %v13626_v1 = vld [vmem:[#allocation226_spill] sm:$0xff]  ;;  %v13628_v59 = vld [vmem:[#allocation228_spill] sm:$0xff] }
 0x608   : > { %5425 = vmatprep.subr.bf16.mxu0 %v5424_v7  ;;  %5489 = vmatprep.subr.bf16.mxu1 %v5488_v11  ;;  %v5494_v27 = vpack.c.bf16 %v13616_v6, %v13615_v28  ;;  %v5432_v7 = vpack.c.bf16 %v13618_v14, %v13617_v3  ;;  %v13619_v11 = vld [vmem:[#allocation204_spill] sm:$0xff]  ;;  %v13629_v6 = vld [vmem:[#allocation217_spill] sm:$0xff]  ;;  %v13632_v14 = vld [vmem:[#allocation227_spill] sm:$0xff] }
 0x609   : > { %v5496_v13 = vpack.c.bf16 %v13620_v9, %v13619_v11  ;;  %v13630_v3 = vld [vmem:[#allocation225_spill] sm:$0xff]  ;;  %v13633_v9 = vld [vmem:[#allocation234_spill] sm:$0xff] }
 0x60b   : > { %5427 = vmatpush1.bf16.msra.mxu0 %v5426_v37  ;;  %5491 = vmatpush1.bf16.msra.mxu1 %v5490_v44  ;;  %v5434_v37 = vpack.c.bf16 %v13622_v8, %v13621_v0  ;;  %v13623_v44 = vld [vmem:[#allocation203_spill] sm:$0xff]  ;;  %v13634_v0 = vld [vmem:[#allocation242_spill] sm:$0xff]  ;;  %v13636_v8 = vld [vmem:[#allocation244_spill] sm:$0xff] }
 0x60c   : > { %5429 = vmatprep.subr.bf16.mxu0 %v5428_v29  ;;  %5493 = vmatprep.subr.bf16.mxu1 %v5492_v17  ;;  %v5498_v49 = vpack.c.bf16 %v13624_v5, %v13623_v44  ;;  %v5436_v29 = vpack.c.bf16 %v13626_v1, %v13625_v12  ;;  %v13627_v17 = vld [vmem:[#allocation220_spill] sm:$0xff]  ;;  %v13637_v5 = vld [vmem:[#allocation233_spill] sm:$0xff]  ;;  %v13640_v1 = vld [vmem:[#allocation243_spill] sm:$0xff] }
 0x60d   : > { %v5500_v28 = vpack.c.bf16 %v13628_v59, %v13627_v17  ;;  %v13638_v12 = vld [vmem:[#allocation241_spill] sm:$0xff]  ;;  %v13641_v59 = vld [vmem:[#allocation250_spill] sm:$0xff] }
 0x60f   : > { %5431 = vmatpush1.bf16.msra.mxu0 %v5430_v2  ;;  %5495 = vmatpush1.bf16.msra.mxu1 %v5494_v27  ;;  %v5438_v2 = vpack.c.bf16 %v13630_v3, %v13629_v6  ;;  %v13631_v27 = vld [vmem:[#allocation219_spill] sm:$0xff]  ;;  %v13642_v6 = vld [vmem:[#allocation258_spill] sm:$0xff]  ;;  %v13644_v3 = vld [vmem:[#allocation260_spill] sm:$0xff] }
 0x610   : > { %5433 = vmatprep.subr.bf16.mxu0 %v5432_v7  ;;  %5497 = vmatprep.subr.bf16.mxu1 %v5496_v13  ;;  %v5502_v11 = vpack.c.bf16 %v13632_v14, %v13631_v27  ;;  %v5440_v7 = vpack.c.bf16 %v13634_v0, %v13633_v9  ;;  %v13635_v13 = vld [vmem:[#allocation236_spill] sm:$0xff]  ;;  %v13645_v14 = vld [vmem:[#allocation249_spill] sm:$0xff]  ;;  %v13648_v0 = vld [vmem:[#allocation259_spill] sm:$0xff] }
 0x611   : > { %v5504_v44 = vpack.c.bf16 %v13636_v8, %v13635_v13  ;;  %v13646_v9 = vld [vmem:[#allocation257_spill] sm:$0xff]  ;;  %v13649_v8 = vld [vmem:[#allocation266_spill] sm:$0xff] }
 0x613   : > { %5435 = vmatpush1.bf16.msra.mxu0 %v5434_v37  ;;  %5499 = vmatpush1.bf16.msra.mxu1 %v5498_v49  ;;  %v5442_v37 = vpack.c.bf16 %v13638_v12, %v13637_v5  ;;  %v13639_v49 = vld [vmem:[#allocation235_spill] sm:$0xff]  ;;  %v13650_v5 = vld [vmem:[#allocation274_spill] sm:$0xff]  ;;  %v13652_v12 = vld [vmem:[#allocation276_spill] sm:$0xff] }
 0x614   : > { %5437 = vmatprep.subr.bf16.mxu0 %v5436_v29  ;;  %5501 = vmatprep.subr.bf16.mxu1 %v5500_v28  ;;  %v5506_v17 = vpack.c.bf16 %v13640_v1, %v13639_v49  ;;  %v5444_v29 = vpack.c.bf16 %v13642_v6, %v13641_v59  ;;  %v13643_v28 = vld [vmem:[#allocation252_spill] sm:$0xff]  ;;  %v13653_v1 = vld [vmem:[#allocation265_spill] sm:$0xff]  ;;  %v13656_v6 = vld [vmem:[#allocation275_spill] sm:$0xff] }
 0x615   : > { %v5508_v27 = vpack.c.bf16 %v13644_v3, %v13643_v28  ;;  %v13654_v59 = vld [vmem:[#allocation273_spill] sm:$0xff]  ;;  %v13657_v3 = vld [vmem:[#allocation282_spill] sm:$0xff] }
 0x617   : > { %5439 = vmatpush1.bf16.msra.mxu0 %v5438_v2  ;;  %5503 = vmatpush1.bf16.msra.mxu1 %v5502_v11  ;;  %v5446_v2 = vpack.c.bf16 %v13646_v9, %v13645_v14  ;;  %v13647_v11 = vld [vmem:[#allocation251_spill] sm:$0xff]  ;;  %v13659_v14 = vld [vmem:[#allocation284_spill] sm:$0xff] }
 0x618   : > { %5441 = vmatprep.subr.bf16.mxu0 %v5440_v7  ;;  %5505 = vmatprep.subr.bf16.mxu1 %v5504_v44  ;;  %v5510_v13 = vpack.c.bf16 %v13648_v0, %v13647_v11  ;;  %v5448_v7 = vpack.c.bf16 %v13650_v5, %v13649_v8  ;;  %v13651_v44 = vld [vmem:[#allocation268_spill] sm:$0xff]  ;;  %v13661_v0 = vld [vmem:[#allocation281_spill] sm:$0xff]  ;;  %v13663_v8 = vld [vmem:[#allocation283_spill] sm:$0xff] }
 0x619   : > { %v5512_v49 = vpack.c.bf16 %v13652_v12, %v13651_v44  ;;  %v13660_v9 = vld [vmem:[#allocation292_spill] sm:$0xff]  ;;  %v13664_v5 = vld [vmem:[#allocation291_spill] sm:$0xff]  ;;  %v13665_v12 = vld [vmem:[#allocation37_spill] sm:$0xff] }
 0x61a   : > { %v5516_v11 = vpack.c.bf16 %v13660_v9, %v13659_v14  ;;  %v5518_v44 = vpack.c.bf16 %v13664_v5, %v13663_v8  ;;  %v13672_v14 = vld [vmem:[#allocation46_spill] sm:$0xff]  ;;  %v13676_v8 = vld [vmem:[#allocation63_spill] sm:$0xff] }
 0x61b   : > { %5443 = vmatpush1.bf16.msra.mxu0 %v5442_v37  ;;  %5507 = vmatpush1.bf16.msra.mxu1 %v5506_v17  ;;  %v5450_v37 = vpack.c.bf16 %v13654_v59, %v13653_v1  ;;  %v13655_v17 = vld [vmem:[#allocation267_spill] sm:$0xff]  ;;  %v13666_v1 = vld [vmem:[#allocation45_spill] sm:$0xff]  ;;  %13819 = vst [vmem:[#allocation46_spill] sm:$0xff] (%p2580_p7), %v10730_v63  ;;  %13836 = vst [vmem:[#allocation63_spill] sm:$0xff] (%p2580_p7), %v10764_v48 }
 0x61c   : > { %5445 = vmatprep.subr.bf16.mxu0 %v5444_v29  ;;  %5509 = vmatprep.subr.bf16.mxu1 %v5508_v27  ;;  %v5514_v28 = vpack.c.bf16 %v13656_v6, %v13655_v17  ;;  %v13658_v29 = vld [vmem:[#allocation290_spill] sm:$0xff]  ;;  %v13668_v59 = vld [vmem:[#allocation47_spill] sm:$0xff]  ;;  %v10535_v6 = vld [vmem:[%s10407_s17] sm:$0xff]  ;;  %13818 = vst [vmem:[#allocation45_spill] sm:$0xff] (%p2580_p7), %v10728_v55 }
 0x61d   : > { %v5452_v27 = vpack.c.bf16 %v13658_v29, %v13657_v3  ;;  %v13671_v29 = vld [vmem:[#allocation38_spill] sm:$0xff]  ;;  %13820 = vst [vmem:[#allocation47_spill] sm:$0xff] (%p2580_p7), %v10732_v58  ;;  %v11030_v48 = vld [vmem:[#allocation20 + $0x120] sm:$0xff] (%p2580_p7)  ;;  %v11066_v55 = vld [vmem:[#allocation20 + $0x1b0] sm:$0xff] (%p2580_p7) }
 0x61e   : > { %v5586_v9 = vpack.c.bf16 %v13672_v14, %v13671_v29  ;;  %v13684_v29 = vld [vmem:[#allocation86_spill] sm:$0xff]  ;;  %v11054_v63 = vld [vmem:[#allocation20 + $0x180] sm:$0xff] (%p2580_p7)  ;;  %13945 = vst [vmem:[#allocation180_spill] sm:$0xff] (%p2580_p7), %v11066_v55  ;;  %v11089_v55 = vld [vmem:[%s11827_s15] sm:$0xf] (%p2580_p7) }
 0x61f   : > { %5447 = vmatpush1.bf16.msra.mxu0 %v5446_v2  ;;  %5511 = vmatpush1.bf16.msra.mxu1 %v5510_v13  ;;  %v13662_v2 = vld [vmem:[#allocation289_spill] sm:$0xff]  ;;  %13853 = vst [vmem:[#allocation86_spill] sm:$0xff] (%p2580_p7), %v10798_v24  ;;  %v10980_v24 = vld [vmem:[#allocation20 + $0x58] sm:$0xff] (%p2580_p7)  ;;  %v11062_v58 = vld [vmem:[#allocation20 + $0x1a0] sm:$0xff] (%p2580_p7) }
 0x620   : > { %5449 = vmatprep.subr.bf16.mxu0 %v5448_v7  ;;  %5513 = vmatprep.subr.bf16.mxu1 %v5512_v49  ;;  %v5454_v13 = vpack.c.bf16 %v13662_v2, %v13661_v0  ;;  %v5520_v7 = vpack.c.bf16 %v13666_v1, %v13665_v12  ;;  %v13667_v49 = vld [vmem:[#allocation39_spill] sm:$0xff]  ;;  %v13679_v1 = vld [vmem:[#allocation54_spill] sm:$0xff] }
 0x621   : > { %v5584_v17 = vpack.c.bf16 %v13668_v59, %v13667_v49  ;;  %v13675_v2 = vld [vmem:[#allocation55_spill] sm:$0xff]  ;;  %v13680_v49 = vld [vmem:[#allocation62_spill] sm:$0xff]  ;;  %13827 = vst [vmem:[#allocation54_spill] sm:$0xff] (%p2580_p7), %v10746_v35 }
 0x622   : > { %v5588_v5 = vpack.c.bf16 %v13676_v8, %v13675_v2  ;;  %v5590_v59 = vpack.c.bf16 %v13680_v49, %v13679_v1  ;;  %v13688_v2 = vld [vmem:[#allocation85_spill] sm:$0xff]  ;;  %v13692_v1 = vld [vmem:[#allocation102_spill] sm:$0xff]  ;;  %13828 = vst [vmem:[#allocation55_spill] sm:$0xff] (%p2580_p7), %v10748_v36  ;;  %13835 = vst [vmem:[#allocation62_spill] sm:$0xff] (%p2580_p7), %v10762_v47 }
 0x623   : > { %5451 = vmatpush1.bf16.msra.mxu0 %v5450_v37  ;;  %5515 = vmatpush1.bf16.msra.mxu1 %v5514_v28  ;;  %v13669_v37 = vld [vmem:[#allocation36_spill] sm:$0xff]  ;;  %13852 = vst [vmem:[#allocation85_spill] sm:$0xff] (%p2580_p7), %v10796_v46  ;;  %v10998_v46 = vld [vmem:[#allocation20 + $0xa0] sm:$0xff] (%p2580_p7) }
 0x624   : > { %5453 = vmatprep.subr.bf16.mxu0 %v5452_v27  ;;  %5517 = vmatprep.subr.bf16.mxu1 %v5516_v11  ;;  %v13670_v28 = vld [vmem:[#allocation44_spill] sm:$0xff]  ;;  %v13673_v27 = vld [vmem:[#allocation53_spill] sm:$0xff]  ;;  %v11022_v47 = vld [vmem:[#allocation20 + $0x100] sm:$0xff] (%p2580_p7) }
 0x625   : > { %v5522_v3 = vpack.c.bf16 %v13670_v28, %v13669_v37  ;;  %v13674_v11 = vld [vmem:[#allocation61_spill] sm:$0xff]  ;;  %v13683_v28 = vld [vmem:[#allocation78_spill] sm:$0xff]  ;;  %13817 = vst [vmem:[#allocation44_spill] sm:$0xff] (%p2580_p7), %v10726_v20  ;;  %13826 = vst [vmem:[#allocation53_spill] sm:$0xff] (%p2580_p7), %v10744_v34 }
 0x626   : > { %v5524_v0 = vpack.c.bf16 %v13674_v11, %v13673_v27  ;;  %v5592_v14 = vpack.c.bf16 %v13684_v29, %v13683_v28  ;;  %v13687_v11 = vld [vmem:[#allocation77_spill] sm:$0xff]  ;;  %v13697_v29 = vld [vmem:[#allocation108_spill] sm:$0xff]  ;;  %13834 = vst [vmem:[#allocation61_spill] sm:$0xff] (%p2580_p7), %v10760_v45  ;;  %13845 = vst [vmem:[#allocation78_spill] sm:$0xff] (%p2580_p7), %v10782_v57 }
 0x627   : > { %5455 = vmatpush1.bf16.msra.mxu0 %v5454_v13  ;;  %5519 = vmatpush1.bf16.msra.mxu1 %v5518_v44  ;;  %v13677_v13 = vld [vmem:[#allocation52_spill] sm:$0xff]  ;;  %v5594_v8 = vpack.c.bf16 %v13688_v2, %v13687_v11  ;;  %v13701_v2 = vld [vmem:[#allocation107_spill] sm:$0xff]  ;;  %13844 = vst [vmem:[#allocation77_spill] sm:$0xff] (%p2580_p7), %v10780_v61  ;;  %v10996_v57 = vld [vmem:[#allocation20 + $0x98] sm:$0xff] (%p2580_p7) }
 0x628   : > { %5521 = vmatprep.subr.bf16.mxu0 %v5520_v7  ;;  %5585 = vmatprep.subr.bf16.mxu1 %v5584_v17  ;;  %v13678_v44 = vld [vmem:[#allocation60_spill] sm:$0xff]  ;;  %v13681_v7 = vld [vmem:[#allocation76_spill] sm:$0xff]  ;;  %13825 = vst [vmem:[#allocation52_spill] sm:$0xff] (%p2580_p7), %v10742_v33  ;;  %v11014_v61 = vld [vmem:[#allocation20 + $0xe0] sm:$0xff] (%p2580_p7) }
 0x629   : > { %v5526_v12 = vpack.c.bf16 %v13678_v44, %v13677_v13  ;;  %v13682_v17 = vld [vmem:[#allocation84_spill] sm:$0xff]  ;;  %v13691_v44 = vld [vmem:[#allocation94_spill] sm:$0xff]  ;;  %13833 = vst [vmem:[#allocation60_spill] sm:$0xff] (%p2580_p7), %v10758_v43  ;;  %13843 = vst [vmem:[#allocation76_spill] sm:$0xff] (%p2580_p7), %v10778_v60 }
 0x62a   : > { %2942 = vmatmul.mubr.f32.vlgmr.msra.gmra.mrb[0].mxu0 %v10535_v6  ;;  %3013 = vmatmul.mubr.f32.vlgmr.msra.gmra.mrb[0].mxu1 %v10535_v6  ;;  %v5528_v37 = vpack.c.bf16 %v13682_v17, %v13681_v7  ;;  %v5596_v49 = vpack.c.bf16 %v13692_v1, %v13691_v44  ;;  %v13693_v7 = vld [vmem:[#allocation91_spill] sm:$0xff]  ;;  %v13696_v17 = vld [vmem:[#allocation101_spill] sm:$0xff]  ;;  %v13705_v1 = vld [vmem:[#allocation124_spill] sm:$0xff]  ;;  %13851 = vst [vmem:[#allocation84_spill] sm:$0xff] (%p2580_p7), %v10794_v42 }
 0x62b   : > { %5523 = vmatpush1.bf16.msra.mxu0 %v5522_v3  ;;  %5587 = vmatpush1.bf16.msra.mxu1 %v5586_v9  ;;  %v13685_v3 = vld [vmem:[#allocation75_spill] sm:$0xff]  ;;  %v10990_v42 = vld [vmem:[#allocation20 + $0x80] sm:$0xff] (%p2580_p7) }
 0x62c   : > { %5525 = vmatprep.subr.bf16.mxu0 %v5524_v0  ;;  %5589 = vmatprep.subr.bf16.mxu1 %v5588_v5  ;;  %v13686_v9 = vld [vmem:[#allocation83_spill] sm:$0xff]  ;;  %v13689_v0 = vld [vmem:[#allocation92_spill] sm:$0xff]  ;;  %13842 = vst [vmem:[#allocation75_spill] sm:$0xff] (%p2580_p7), %v10776_v56  ;;  %v11006_v60 = vld [vmem:[#allocation20 + $0xc0] sm:$0xff] (%p2580_p7) }
 0x62d   : > { %3083 = vmatprep.mubr.f32.mxu0 %v10410_v4  ;;  %3154 = vmatprep.mubr.f32.mxu1 %v10410_v4  ;;  %v5530_v27 = vpack.c.bf16 %v13686_v9, %v13685_v3  ;;  %v13690_v5 = vld [vmem:[#allocation100_spill] sm:$0xff]  ;;  %v13694_v4 = vld [vmem:[#allocation99_spill] sm:$0xff]  ;;  %v13700_v9 = vld [vmem:[#allocation118_spill] sm:$0xff]  ;;  %13850 = vst [vmem:[#allocation83_spill] sm:$0xff] (%p2580_p7), %v10792_v62 }
 0x62e   : > { %v5532_v13 = vpack.c.bf16 %v13690_v5, %v13689_v0  ;;  %v13698_v3 = vld [vmem:[#allocation116_spill] sm:$0xff]  ;;  %v13702_v0 = vld [vmem:[#allocation115_spill] sm:$0xff]  ;;  %v13704_v5 = vld [vmem:[#allocation117_spill] sm:$0xff] }
 0x62f   : > { %5527 = vmatpush1.bf16.msra.mxu0 %v5526_v12  ;;  %5591 = vmatpush1.bf16.msra.mxu1 %v5590_v59  ;;  %v5534_v12 = vpack.c.bf16 %v13694_v4, %v13693_v7  ;;  %v13695_v59 = vld [vmem:[#allocation93_spill] sm:$0xff]  ;;  %v13706_v7 = vld [vmem:[#allocation134_spill] sm:$0xff]  ;;  %v13708_v4 = vld [vmem:[#allocation136_spill] sm:$0xff] }
 0x630   : > { %5529 = vmatprep.subr.bf16.mxu0 %v5528_v37  ;;  %5593 = vmatprep.subr.bf16.mxu1 %v5592_v14  ;;  %v5598_v28 = vpack.c.bf16 %v13696_v17, %v13695_v59  ;;  %v5536_v37 = vpack.c.bf16 %v13698_v3, %v13697_v29  ;;  %v13699_v14 = vld [vmem:[#allocation110_spill] sm:$0xff]  ;;  %v13709_v17 = vld [vmem:[#allocation123_spill] sm:$0xff]  ;;  %v13712_v3 = vld [vmem:[#allocation135_spill] sm:$0xff] }
 0x631   : > { %v5600_v11 = vpack.c.bf16 %v13700_v9, %v13699_v14  ;;  %v13710_v29 = vld [vmem:[#allocation133_spill] sm:$0xff]  ;;  %v13713_v9 = vld [vmem:[#allocation142_spill] sm:$0xff]  ;;  %v11038_v35 = vld [vmem:[#allocation20 + $0x140] sm:$0xff] (%p2580_p7) }
 0x632   :  { %v11002_v62 = vld [vmem:[#allocation20 + $0xb0] sm:$0xff] (%p2580_p7)  ;;  %v11046_v36 = vld [vmem:[#allocation20 + $0x160] sm:$0xff] (%p2580_p7) }
 0x633   : > { %5531 = vmatpush1.bf16.msra.mxu0 %v5530_v27  ;;  %5595 = vmatpush1.bf16.msra.mxu1 %v5594_v8  ;;  %v5538_v27 = vpack.c.bf16 %v13702_v0, %v13701_v2  ;;  %v13703_v8 = vld [vmem:[#allocation109_spill] sm:$0xff]  ;;  %v13714_v2 = vld [vmem:[#allocation150_spill] sm:$0xff]  ;;  %v13716_v0 = vld [vmem:[#allocation152_spill] sm:$0xff] }
 0x634   : > { %5533 = vmatprep.subr.bf16.mxu0 %v5532_v13  ;;  %5597 = vmatprep.subr.bf16.mxu1 %v5596_v49  ;;  %v5602_v44 = vpack.c.bf16 %v13704_v5, %v13703_v8  ;;  %v5540_v13 = vpack.c.bf16 %v13706_v7, %v13705_v1  ;;  %v13707_v49 = vld [vmem:[#allocation128_spill] sm:$0xff]  ;;  %v13717_v5 = vld [vmem:[#allocation141_spill] sm:$0xff]  ;;  %v13720_v7 = vld [vmem:[#allocation151_spill] sm:$0xff] }
 0x635   : > { %v5604_v59 = vpack.c.bf16 %v13708_v4, %v13707_v49  ;;  %v13718_v1 = vld [vmem:[#allocation149_spill] sm:$0xff]  ;;  %v13721_v4 = vld [vmem:[#allocation158_spill] sm:$0xff] }
 0x636   :  { %v11018_v56 = vld [vmem:[#allocation20 + $0xf0] sm:$0xff] (%p2580_p7) }
 0x637   : > { %5535 = vmatpush1.bf16.msra.mxu0 %v5534_v12  ;;  %5599 = vmatpush1.bf16.msra.mxu1 %v5598_v28  ;;  %v5542_v12 = vpack.c.bf16 %v13710_v29, %v13709_v17  ;;  %v13711_v28 = vld [vmem:[#allocation125_spill] sm:$0xff]  ;;  %v13722_v17 = vld [vmem:[#allocation166_spill] sm:$0xff]  ;;  %v13724_v29 = vld [vmem:[#allocation168_spill] sm:$0xff] }
 0x638   : > { %5537 = vmatprep.subr.bf16.mxu0 %v5536_v37  ;;  %5601 = vmatprep.subr.bf16.mxu1 %v5600_v11  ;;  %v5606_v14 = vpack.c.bf16 %v13712_v3, %v13711_v28  ;;  %v5544_v37 = vpack.c.bf16 %v13714_v2, %v13713_v9  ;;  %v13715_v11 = vld [vmem:[#allocation144_spill] sm:$0xff]  ;;  %v13725_v3 = vld [vmem:[#allocation157_spill] sm:$0xff]  ;;  %v13728_v2 = vld [vmem:[#allocation167_spill] sm:$0xff] }
 0x639   : > { %v5608_v8 = vpack.c.bf16 %v13716_v0, %v13715_v11  ;;  %v13726_v9 = vld [vmem:[#allocation165_spill] sm:$0xff]  ;;  %v13729_v0 = vld [vmem:[#allocation174_spill] sm:$0xff] }
 0x63a   :  { %v11026_v43 = vld [vmem:[#allocation20 + $0x110] sm:$0xff] (%p2580_p7) }
 0x63b   : > { %5539 = vmatpush1.bf16.msra.mxu0 %v5538_v27  ;;  %5603 = vmatpush1.bf16.msra.mxu1 %v5602_v44  ;;  %v5546_v27 = vpack.c.bf16 %v13718_v1, %v13717_v5  ;;  %v13719_v44 = vld [vmem:[#allocation143_spill] sm:$0xff]  ;;  %v13730_v5 = vld [vmem:[#allocation182_spill] sm:$0xff]  ;;  %v13732_v1 = vld [vmem:[#allocation184_spill] sm:$0xff] }
 0x63c   : > { %5541 = vmatprep.subr.bf16.mxu0 %v5540_v13  ;;  %5605 = vmatprep.subr.bf16.mxu1 %v5604_v59  ;;  %v5610_v49 = vpack.c.bf16 %v13720_v7, %v13719_v44  ;;  %v5548_v13 = vpack.c.bf16 %v13722_v17, %v13721_v4  ;;  %v13723_v59 = vld [vmem:[#allocation160_spill] sm:$0xff]  ;;  %v13733_v7 = vld [vmem:[#allocation173_spill] sm:$0xff]  ;;  %v13736_v17 = vld [vmem:[#allocation183_spill] sm:$0xff] }
 0x63d   : > { %v5612_v28 = vpack.c.bf16 %v13724_v29, %v13723_v59  ;;  %v13734_v4 = vld [vmem:[#allocation181_spill] sm:$0xff]  ;;  %v13737_v29 = vld [vmem:[#allocation190_spill] sm:$0xff] }
 0x63e   :  { %v11034_v45 = vld [vmem:[#allocation20 + $0x130] sm:$0xff] (%p2580_p7)  ;;  %13955 = vst [vmem:[#allocation190_spill] sm:$0xff] (%p2580_p7), %v11089_v55 }
 0x63f   : > { %5543 = vmatpush1.bf16.msra.mxu0 %v5542_v12  ;;  %5607 = vmatpush1.bf16.msra.mxu1 %v5606_v14  ;;  %v5550_v12 = vpack.c.bf16 %v13726_v9, %v13725_v3  ;;  %v13727_v14 = vld [vmem:[#allocation159_spill] sm:$0xff]  ;;  %v13738_v3 = vld [vmem:[#allocation198_spill] sm:$0xff]  ;;  %v13740_v9 = vld [vmem:[#allocation200_spill] sm:$0xff] }
 0x640   : > { %5545 = vmatprep.subr.bf16.mxu0 %v5544_v37  ;;  %5609 = vmatprep.subr.bf16.mxu1 %v5608_v8  ;;  %v5614_v11 = vpack.c.bf16 %v13728_v2, %v13727_v14  ;;  %v5552_v37 = vpack.c.bf16 %v13730_v5, %v13729_v0  ;;  %v13731_v8 = vld [vmem:[#allocation176_spill] sm:$0xff]  ;;  %v13741_v2 = vld [vmem:[#allocation189_spill] sm:$0xff]  ;;  %v13744_v5 = vld [vmem:[#allocation199_spill] sm:$0xff] }
 0x641   : > { %v5616_v44 = vpack.c.bf16 %v13732_v1, %v13731_v8  ;;  %v13742_v0 = vld [vmem:[#allocation197_spill] sm:$0xff]  ;;  %v13745_v1 = vld [vmem:[#allocation206_spill] sm:$0xff] }
 0x642   :  { %v11042_v33 = vld [vmem:[#allocation20 + $0x150] sm:$0xff] (%p2580_p7) }
 0x643   : > { %5547 = vmatpush1.bf16.msra.mxu0 %v5546_v27  ;;  %5611 = vmatpush1.bf16.msra.mxu1 %v5610_v49  ;;  %v5554_v27 = vpack.c.bf16 %v13734_v4, %v13733_v7  ;;  %v13735_v49 = vld [vmem:[#allocation175_spill] sm:$0xff]  ;;  %v13746_v7 = vld [vmem:[#allocation214_spill] sm:$0xff]  ;;  %v13748_v4 = vld [vmem:[#allocation216_spill] sm:$0xff] }
 0x644   : > { %5549 = vmatprep.subr.bf16.mxu0 %v5548_v13  ;;  %5613 = vmatprep.subr.bf16.mxu1 %v5612_v28  ;;  %v5618_v59 = vpack.c.bf16 %v13736_v17, %v13735_v49  ;;  %v5556_v13 = vpack.c.bf16 %v13738_v3, %v13737_v29  ;;  %v13739_v28 = vld [vmem:[#allocation192_spill] sm:$0xff]  ;;  %v13749_v17 = vld [vmem:[#allocation205_spill] sm:$0xff]  ;;  %v13752_v3 = vld [vmem:[#allocation215_spill] sm:$0xff] }
 0x645   : > { %v5620_v14 = vpack.c.bf16 %v13740_v9, %v13739_v28  ;;  %v13750_v29 = vld [vmem:[#allocation213_spill] sm:$0xff]  ;;  %v13753_v9 = vld [vmem:[#allocation222_spill] sm:$0xff] }
 0x646   :  { %v11050_v34 = vld [vmem:[#allocation20 + $0x170] sm:$0xff] (%p2580_p7) }
 0x647   : > { %5551 = vmatpush1.bf16.msra.mxu0 %v5550_v12  ;;  %5615 = vmatpush1.bf16.msra.mxu1 %v5614_v11  ;;  %v5558_v12 = vpack.c.bf16 %v13742_v0, %v13741_v2  ;;  %v13743_v11 = vld [vmem:[#allocation191_spill] sm:$0xff]  ;;  %v13754_v2 = vld [vmem:[#allocation230_spill] sm:$0xff]  ;;  %v13756_v0 = vld [vmem:[#allocation232_spill] sm:$0xff] }
 0x648   : > { %5553 = vmatprep.subr.bf16.mxu0 %v5552_v37  ;;  %5617 = vmatprep.subr.bf16.mxu1 %v5616_v44  ;;  %v5622_v8 = vpack.c.bf16 %v13744_v5, %v13743_v11  ;;  %v5560_v37 = vpack.c.bf16 %v13746_v7, %v13745_v1  ;;  %v13747_v44 = vld [vmem:[#allocation208_spill] sm:$0xff]  ;;  %v13757_v5 = vld [vmem:[#allocation221_spill] sm:$0xff]  ;;  %v13760_v7 = vld [vmem:[#allocation231_spill] sm:$0xff] }
 0x649   : > { %v5624_v49 = vpack.c.bf16 %v13748_v4, %v13747_v44  ;;  %v13758_v1 = vld [vmem:[#allocation229_spill] sm:$0xff]  ;;  %v13761_v4 = vld [vmem:[#allocation238_spill] sm:$0xff] }
 0x64a   :  { %v11058_v20 = vld [vmem:[#allocation20 + $0x190] sm:$0xff] (%p2580_p7) }
 0x64b   : > { %5555 = vmatpush1.bf16.msra.mxu0 %v5554_v27  ;;  %5619 = vmatpush1.bf16.msra.mxu1 %v5618_v59  ;;  %v5562_v27 = vpack.c.bf16 %v13750_v29, %v13749_v17  ;;  %v13751_v59 = vld [vmem:[#allocation207_spill] sm:$0xff]  ;;  %v13762_v17 = vld [vmem:[#allocation246_spill] sm:$0xff]  ;;  %v13764_v29 = vld [vmem:[#allocation248_spill] sm:$0xff] }
 0x64c   : > { %5557 = vmatprep.subr.bf16.mxu0 %v5556_v13  ;;  %5621 = vmatprep.subr.bf16.mxu1 %v5620_v14  ;;  %v5626_v28 = vpack.c.bf16 %v13752_v3, %v13751_v59  ;;  %v5564_v13 = vpack.c.bf16 %v13754_v2, %v13753_v9  ;;  %v13755_v14 = vld [vmem:[#allocation224_spill] sm:$0xff]  ;;  %v13765_v3 = vld [vmem:[#allocation237_spill] sm:$0xff]  ;;  %v13768_v2 = vld [vmem:[#allocation247_spill] sm:$0xff] }
 0x64d   : > { %v5628_v11 = vpack.c.bf16 %v13756_v0, %v13755_v14  ;;  %v13766_v9 = vld [vmem:[#allocation245_spill] sm:$0xff]  ;;  %v13769_v0 = vld [vmem:[#allocation254_spill] sm:$0xff] }
 0x64f   : > { %5559 = vmatpush1.bf16.msra.mxu0 %v5558_v12  ;;  %5623 = vmatpush1.bf16.msra.mxu1 %v5622_v8  ;;  %v5566_v12 = vpack.c.bf16 %v13758_v1, %v13757_v5  ;;  %v13759_v8 = vld [vmem:[#allocation223_spill] sm:$0xff]  ;;  %v13770_v5 = vld [vmem:[#allocation262_spill] sm:$0xff]  ;;  %v13772_v1 = vld [vmem:[#allocation264_spill] sm:$0xff] }
 0x650   : > { %5561 = vmatprep.subr.bf16.mxu0 %v5560_v37  ;;  %5625 = vmatprep.subr.bf16.mxu1 %v5624_v49  ;;  %v5630_v44 = vpack.c.bf16 %v13760_v7, %v13759_v8  ;;  %v5568_v37 = vpack.c.bf16 %v13762_v17, %v13761_v4  ;;  %v13763_v49 = vld [vmem:[#allocation240_spill] sm:$0xff]  ;;  %v13773_v7 = vld [vmem:[#allocation253_spill] sm:$0xff]  ;;  %v13776_v17 = vld [vmem:[#allocation263_spill] sm:$0xff] }
 0x651   : > { %v5632_v59 = vpack.c.bf16 %v13764_v29, %v13763_v49  ;;  %v13774_v4 = vld [vmem:[#allocation261_spill] sm:$0xff]  ;;  %v13777_v29 = vld [vmem:[#allocation270_spill] sm:$0xff] }
 0x653   : > { %5563 = vmatpush1.bf16.msra.mxu0 %v5562_v27  ;;  %5627 = vmatpush1.bf16.msra.mxu1 %v5626_v28  ;;  %v5570_v27 = vpack.c.bf16 %v13766_v9, %v13765_v3  ;;  %v13767_v28 = vld [vmem:[#allocation239_spill] sm:$0xff]  ;;  %v13778_v3 = vld [vmem:[#allocation278_spill] sm:$0xff]  ;;  %v13780_v9 = vld [vmem:[#allocation280_spill] sm:$0xff] }
 0x654   : > { %5565 = vmatprep.subr.bf16.mxu0 %v5564_v13  ;;  %5629 = vmatprep.subr.bf16.mxu1 %v5628_v11  ;;  %v5634_v14 = vpack.c.bf16 %v13768_v2, %v13767_v28  ;;  %v5572_v13 = vpack.c.bf16 %v13770_v5, %v13769_v0  ;;  %v13771_v11 = vld [vmem:[#allocation256_spill] sm:$0xff]  ;;  %v13781_v2 = vld [vmem:[#allocation269_spill] sm:$0xff]  ;;  %v13784_v5 = vld [vmem:[#allocation279_spill] sm:$0xff] }
 0x655   : > { %v5636_v8 = vpack.c.bf16 %v13772_v1, %v13771_v11  ;;  %v13782_v0 = vld [vmem:[#allocation277_spill] sm:$0xff]  ;;  %v13785_v1 = vld [vmem:[#allocation286_spill] sm:$0xff] }
 0x657   : > { %5567 = vmatpush1.bf16.msra.mxu0 %v5566_v12  ;;  %5631 = vmatpush1.bf16.msra.mxu1 %v5630_v44  ;;  %v5574_v12 = vpack.c.bf16 %v13774_v4, %v13773_v7  ;;  %v13775_v44 = vld [vmem:[#allocation255_spill] sm:$0xff]  ;;  %v13786_v7 = vld [vmem:[#allocation294_spill] sm:$0xff]  ;;  %v13788_v4 = vld [vmem:[#allocation296_spill] sm:$0xff] }
 0x658   : > { %5569 = vmatprep.subr.bf16.mxu0 %v5568_v37  ;;  %5633 = vmatprep.subr.bf16.mxu1 %v5632_v59  ;;  %v5638_v49 = vpack.c.bf16 %v13776_v17, %v13775_v44  ;;  %v5576_v37 = vpack.c.bf16 %v13778_v3, %v13777_v29  ;;  %v13779_v59 = vld [vmem:[#allocation272_spill] sm:$0xff]  ;;  %v13789_v17 = vld [vmem:[#allocation285_spill] sm:$0xff]  ;;  %v13792_v3 = vld [vmem:[#allocation295_spill] sm:$0xff] }
 0x659   : > { %v5640_v28 = vpack.c.bf16 %v13780_v9, %v13779_v59  ;;  %v13790_v29 = vld [vmem:[#allocation293_spill] sm:$0xff] }
 0x65b   : > { %5571 = vmatpush1.bf16.msra.mxu0 %v5570_v27  ;;  %5635 = vmatpush1.bf16.msra.mxu1 %v5634_v14  ;;  %v5578_v27 = vpack.c.bf16 %v13782_v0, %v13781_v2  ;;  %v13783_v14 = vld [vmem:[#allocation271_spill] sm:$0xff]  ;;  %v13793_v0 = vld [vmem:[#allocation67_spill] sm:$0xff] }
 0x65c   : > { %5573 = vmatprep.subr.bf16.mxu0 %v5572_v13  ;;  %5637 = vmatprep.subr.bf16.mxu1 %v5636_v8  ;;  %v5642_v11 = vpack.c.bf16 %v13784_v5, %v13783_v14  ;;  %v5580_v13 = vpack.c.bf16 %v13786_v7, %v13785_v1  ;;  %v13787_v8 = vld [vmem:[#allocation288_spill] sm:$0xff]  ;;  %v13796_v1 = vld [vmem:[#allocation68_spill] sm:$0xff] }
 0x65d   : > { %v5644_v44 = vpack.c.bf16 %v13788_v4, %v13787_v8  ;;  %v13795_v5 = vld [vmem:[#allocation70_spill] sm:$0xff] }
 0x65f   : > { %5575 = vmatpush1.bf16.msra.mxu0 %v5574_v12  ;;  %5639 = vmatpush1.bf16.msra.mxu1 %v5638_v49  ;;  %v5582_v12 = vpack.c.bf16 %v13790_v29, %v13789_v17  ;;  %v13791_v49 = vld [vmem:[#allocation287_spill] sm:$0xff] }
 0x660   : > { %5577 = vmatprep.subr.bf16.mxu0 %v5576_v37  ;;  %5641 = vmatprep.subr.bf16.mxu1 %v5640_v28  ;;  %v5646_v59 = vpack.c.bf16 %v13792_v3, %v13791_v49 }
 0x663   : > { %5579 = vmatpush1.bf16.msra.mxu0 %v5578_v27  ;;  %5643 = vmatpush1.bf16.msra.mxu1 %v5642_v11  ;;  %v13794_v27 = vld [vmem:[#allocation516_spill] sm:$0xff] }
 0x664   : > { %5581 = vmatprep.subr.bf16.mxu0 %v5580_v13  ;;  %5645 = vmatprep.subr.bf16.mxu1 %v5644_v44  ;;  %v3165_v14 = vrot.slane %v13794_v27, %v13793_v0  ;;  %v3173_v11 = vrot.slane %v13794_v27, %v13795_v5  ;;  %v3169_v7 = vrot.slane %v13794_v27, %v13796_v1  ;;  %v13797_v13 = vld [vmem:[#allocation69_spill] sm:$0xff] }
 0x665   : > { %v3177_v8 = vrot.slane %v13794_v27, %v13797_v13 }
 0x667   : > { %5583 = vmatpush1.bf16.msra.mxu0 %v5582_v12  ;;  %5647 = vmatpush1.bf16.msra.mxu1 %v5646_v59 }
 0x66a   : > { %3084 = vmatmul.mubr.f32.vlgmr.msra.gmra.mrb[2].mxu0 %v10535_v6  ;;  %3155 = vmatmul.mubr.f32.vlgmr.msra.gmra.mrb[2].mxu1 %v10535_v6 }
 0x6fd   : > { %v2943_v37 = vpop.f32.mrb[0].mxu0  ;;  %v3014_v9 = vpop.f32.mrb[0].mxu1 }
 0x6fe   : > { %v2945_v28 = vpop.f32.mrb[1].mxu0  ;;  %v3016_v2 = vpop.f32.mrb[1].mxu1  ;;  %v3202_v4 = vadd.f32 %v3165_v14, %v2943_v37  ;;  %v3204_v44 = vadd.f32 %v3173_v11, %v3014_v9 }
 0x6ff   : > { %v3203_v17 = vadd.f32 %v3169_v7, %v2945_v28  ;;  %v3205_v6 = vadd.f32 %v3177_v8, %v3016_v2  ;;  %v13798_v2 = vld [vmem:[#allocation66_spill] sm:$0xff] }
 0x700   : > { %v3210_v29 = vsub.f32 0.0, %v3202_v4  ;;  %v3222_v12 = vsub.f32 0.0, %v3204_v44  ;;  %v13799_v14 = vsub.s32 4, %v13798_v2  ;;  %v13800_v7 = vsub.s32 6, %v13798_v2  ;;  %13837 = vst [vmem:[#allocation66_spill] sm:$0xff] (%p2580_p7), %v10766_v50  ;;  %v11012_v50 = vld [vmem:[#allocation20 + $0xd8] sm:$0xff] (%p2580_p7) }
 0x701   : > { %v3211_v49 = vsub.f32 0.0, %v3203_v17  ;;  %v3223_v3 = vsub.f32 0.0, %v3205_v6  ;;  %v13802_v44 = vsub.s32 7, %v13798_v2 }
 0x702   : > { %v3212_v59 = vmul.f32 1.442695, %v3210_v29  ;;  %v3224_v10 = vmul.f32 1.442695, %v3222_v12  ;;  %v3181_v11 = vrot.slane %v13794_v27, %v13799_v14  ;;  %v3189_v8 = vrot.slane %v13794_v27, %v13800_v7 }
 0x703   : > { %v3214_v0 = vmul.f32 1.442695, %v3211_v49  ;;  %v3226_v15 = vmul.f32 1.442695, %v3223_v3  ;;  %v3193_v17 = vrot.slane %v13794_v27, %v13802_v44 }
 0x704   : > { %6286 = vpow2.f32 %v3212_v59 }
 0x705   : > { %6288 = vpow2.f32 %v3224_v10  ;;  %v13801_v10 = vsub.s32 5, %v13798_v2 }
 0x706   : > { %6290 = vpow2.f32 %v3214_v0 }
 0x707   : > { %6292 = vpow2.f32 %v3226_v15  ;;  %v3185_v15 = vrot.slane %v13794_v27, %v13801_v10  ;;  %v10800_v27 = vld [vmem:[#allocation18 + $0x188] sm:$0xff] (%p2580_p7) }
 0x708   :  { %13854 = vst [vmem:[#allocation87_spill] sm:$0xff] (%p2580_p7), %v10800_v27  ;;  %v10988_v27 = vld [vmem:[#allocation20 + $0x78] sm:$0xff] (%p2580_p7) }
 0x70e   : > { %v6287_v5 = vpop.eup %6286 }
 0x70f   : > { %v6289_v1 = vpop.eup %6288  ;;  %v3216_v37 = vadd.f32 1.0, %v6287_v5 }
 0x710   : > { %v6291_v16 = vpop.eup %6290  ;;  %v3228_v9 = vadd.f32 1.0, %v6289_v1 }
 0x711   : > { %v6293_v13 = vpop.eup %6292  ;;  %v3217_v28 = vadd.f32 1.0, %v6291_v16  ;;  %6294 = vrcp.f32 %v3216_v37 }
 0x712   : > { %v3229_v4 = vadd.f32 1.0, %v6293_v13  ;;  %6296 = vrcp.f32 %v3228_v9 }
 0x713   : > { %6298 = vrcp.f32 %v3217_v28 }
 0x714   : > { %6300 = vrcp.f32 %v3229_v4  ;;  %v13804_v4 = vld [vmem:[#allocation517_spill] sm:$0xff] }
 0x71b   : > { %v6295_v37 = vpop.eup %6294 }
 0x71c   : > { %v6297_v9 = vpop.eup %6296 }
 0x71d   : > { %v6299_v14 = vpop.eup %6298 }
 0x71e   : > { %v6301_v7 = vpop.eup %6300 }
 0x73d   : > { %v3085_v16 = vpop.f32.mrb[2].mxu0  ;;  %v3156_v6 = vpop.f32.mrb[2].mxu1 }
 0x73e   : > { %v3206_v29 = vadd.f32 %v3181_v11, %v3085_v16  ;;  %v3208_v12 = vadd.f32 %v3189_v8, %v3156_v6  ;;  %v3087_v49 = vpop.f32.mrb[3].mxu0  ;;  %v3158_v3 = vpop.f32.mrb[3].mxu1  ;;  %v13803_v8 = vld [vmem:[#allocation518_spill] sm:$0xff] }
 0x73f   : > { %v3207_v59 = vadd.f32 %v3185_v15, %v3087_v49  ;;  %v3209_v0 = vadd.f32 %v3193_v17, %v3158_v3  ;;  %v3248_v10 = vmul.f32 %v13803_v8, %v6297_v9  ;;  %v3249_v15 = vmul.f32 %v13804_v4, %v6301_v7  ;;  %v10708_v9 = vld [vmem:[#allocation18 + $0x18] sm:$0xff] (%p2580_p7)  ;;  %v10712_v7 = vld [vmem:[#allocation18 + $0x28] sm:$0xff] (%p2580_p7)  ;;  %v10718_v8 = vld [vmem:[#allocation18 + $0x40] sm:$0xff] (%p2580_p7) }
 0x740   : > { %6302 = vtanh.f32 %v3206_v29  ;;  %v3236_v5 = vsub.f32 0.0, %v3208_v12  ;;  %13808 = vst [vmem:[#allocation35_spill] sm:$0xff] (%p2580_p7), %v10708_v9  ;;  %13810 = vst [vmem:[#allocation37_spill] sm:$0xff] (%p2580_p7), %v10712_v7  ;;  %v10808_v4 = vld [vmem:[#allocation18 + $0x1a8] sm:$0xff] (%p2580_p7)  ;;  %v11082_v7 = vld [vmem:[#allocation20 + $0x1f0] sm:$0xff] (%p2580_p7) }
 0x741   : > { %6304 = vtanh.f32 %v3207_v59  ;;  %v3237_v1 = vsub.f32 0.0, %v3209_v0  ;;  %13813 = vst [vmem:[#allocation40_spill] sm:$0xff] (%p2580_p7), %v10718_v8  ;;  %13858 = vst [vmem:[#allocation91_spill] sm:$0xff] (%p2580_p7), %v10808_v4  ;;  %v10986_v4 = vld [vmem:[#allocation20 + $0x70] sm:$0xff] (%p2580_p7)  ;;  %v11060_v8 = vld [vmem:[#allocation20 + $0x198] sm:$0xff] (%p2580_p7) }
 0x742   : > { %v3238_v13 = vmul.f32 1.442695, %v3236_v5  ;;  %13941 = vst [vmem:[#allocation176_spill] sm:$0xff] (%p2580_p7), %v10986_v4  ;;  %13943 = vst [vmem:[#allocation178_spill] sm:$0xff] (%p2580_p7), %v11060_v8  ;;  %v11080_v9 = vld [vmem:[#allocation20 + $0x1e8] sm:$0xff] (%p2580_p7) }
 0x743   : > { %v3240_v2 = vmul.f32 1.442695, %v3237_v1  ;;  %v10702_v1 = vld [vmem:[#allocation18] sm:$0xff] (%p2580_p7)  ;;  %13952 = vst [vmem:[#allocation187_spill] sm:$0xff] (%p2580_p7), %v11080_v9  ;;  %13953 = vst [vmem:[#allocation188_spill] sm:$0xff] (%p2580_p7), %v11082_v7 }
 0x744   : > { %6306 = vpow2.f32 %v3238_v13  ;;  %13805 = vst [vmem:[#allocation32_spill] sm:$0xff] (%p2580_p7), %v10702_v1  ;;  %v10704_v13 = vld [vmem:[#allocation18 + $0x8] sm:$0xff] (%p2580_p7)  ;;  %v11076_v1 = vld [vmem:[#allocation20 + $0x1d8] sm:$0xff] (%p2580_p7) }
 0x745   : > { %6308 = vpow2.f32 %v3240_v2  ;;  %13806 = vst [vmem:[#allocation33_spill] sm:$0xff] (%p2580_p7), %v10704_v13  ;;  %v10706_v2 = vld [vmem:[#allocation18 + $0x10] sm:$0xff] (%p2580_p7)  ;;  %13950 = vst [vmem:[#allocation185_spill] sm:$0xff] (%p2580_p7), %v11076_v1  ;;  %v11084_v13 = vld [vmem:[#allocation20 + $0x1f8] sm:$0xff] (%p2580_p7) }
 0x746   :  { %13807 = vst [vmem:[#allocation34_spill] sm:$0xff] (%p2580_p7), %v10706_v2  ;;  %v11072_v2 = vld [vmem:[#allocation20 + $0x1c8] sm:$0xff] (%p2580_p7)  ;;  %13954 = vst [vmem:[#allocation189_spill] sm:$0xff] (%p2580_p7), %v11084_v13 }
 0x747   :  { %13948 = vst [vmem:[#allocation183_spill] sm:$0xff] (%p2580_p7), %v11072_v2  ;;  %v11093_v2 = vmov (%p2580_p7), 0.0  }
 0x74a   : > { %v6303_v28 = vpop.eup %6302 }
 0x74b   : > { %v6305_v11 = vpop.eup %6304  ;;  %v3250_v44 = vmul.f32 %v6303_v28, %v6295_v37  ;;  %v10714_v28 = vld [vmem:[#allocation18 + $0x30] sm:$0xff] (%p2580_p7) }
 0x74c   : > { %v3251_v17 = vmul.f32 %v6305_v11, %v6299_v14  ;;  %v10710_v14 = vld [vmem:[#allocation18 + $0x20] sm:$0xff] (%p2580_p7)  ;;  %13811 = vst [vmem:[#allocation38_spill] sm:$0xff] (%p2580_p7), %v10714_v28  ;;  %v10716_v11 = vld [vmem:[#allocation18 + $0x38] sm:$0xff] (%p2580_p7) }
 0x74d   : > { %v3252_v12 = vadd.f32 %v3250_v44, %v3248_v10   ;;  %13809 = vst [vmem:[#allocation36_spill] sm:$0xff] (%p2580_p7), %v10710_v14  ;;  %13812 = vst [vmem:[#allocation39_spill] sm:$0xff] (%p2580_p7), %v10716_v11  ;;  %v10720_v10 = vld [vmem:[#allocation18 + $0x48] sm:$0xff] (%p2580_p7)  ;;  %v10806_v44 = vld [vmem:[#allocation18 + $0x1a0] sm:$0xff] (%p2580_p7) }
 0x74e   : > { %v6307_v16 = vpop.eup %6306  ;;  %v3253_v37 = vadd.f32 %v3251_v17, %v3249_v15   ;;  %13814 = vst [vmem:[#allocation41_spill] sm:$0xff] (%p2580_p7), %v10720_v10  ;;  %13857 = vst [vmem:[#allocation90_spill] sm:$0xff] (%p2580_p7), %v10806_v44  ;;  %v10810_v15 = vld [vmem:[#allocation18 + $0x1b0] sm:$0xff] (%p2580_p7)  ;;  %v10812_v17 = vld [vmem:[#allocation18 + $0x1b8] sm:$0xff] (%p2580_p7) }
 0x74f   : > { %v6309_v6 = vpop.eup %6308  ;;  %6310 = vtanh.f32 %v3252_v12  ;;  %v3242_v29 = vadd.f32 1.0, %v6307_v16  ;;  %v10802_v12 = vld [vmem:[#allocation18 + $0x190] sm:$0xff] (%p2580_p7)  ;;  %13859 = vst [vmem:[#allocation92_spill] sm:$0xff] (%p2580_p7), %v10810_v15  ;;  %13860 = vst [vmem:[#allocation93_spill] sm:$0xff] (%p2580_p7), %v10812_v17  ;;  %v10814_v16 = vld [vmem:[#allocation18 + $0x1c0] sm:$0xff] (%p2580_p7) }
 0x750   : > { %6312 = vtanh.f32 %v3253_v37  ;;  %v3243_v49 = vadd.f32 1.0, %v6309_v6  ;;  %13855 = vst [vmem:[#allocation88_spill] sm:$0xff] (%p2580_p7), %v10802_v12  ;;  %v10804_v37 = vld [vmem:[#allocation18 + $0x198] sm:$0xff] (%p2580_p7)  ;;  %13861 = vst [vmem:[#allocation94_spill] sm:$0xff] (%p2580_p7), %v10814_v16  ;;  %v10816_v6 = vld [vmem:[#allocation18 + $0x1c8] sm:$0xff] (%p2580_p7) }
 0x751   : > { %6314 = vrcp.f32 %v3242_v29  ;;  %13856 = vst [vmem:[#allocation89_spill] sm:$0xff] (%p2580_p7), %v10804_v37  ;;  %13862 = vst [vmem:[#allocation95_spill] sm:$0xff] (%p2580_p7), %v10816_v6  ;;  %v10818_v29 = vld [vmem:[#allocation18 + $0x1d0] sm:$0xff] (%p2580_p7)  ;;  %v10830_v12 = vld [vmem:[#allocation18 + $0x200] sm:$0xff] (%p2580_p7) }
 0x752   : > { %6316 = vrcp.f32 %v3243_v49  ;;  %13863 = vst [vmem:[#allocation96_spill] sm:$0xff] (%p2580_p7), %v10818_v29  ;;  %13869 = vst [vmem:[#allocation102_spill] sm:$0xff] (%p2580_p7), %v10830_v12  ;;  %v10832_v15 = vld [vmem:[#allocation18 + $0x208] sm:$0xff] (%p2580_p7)  ;;  %v10834_v44 = vld [vmem:[#allocation18 + $0x210] sm:$0xff] (%p2580_p7) }
 0x753   :  { %13870 = vst [vmem:[#allocation103_spill] sm:$0xff] (%p2580_p7), %v10832_v15  ;;  %13871 = vst [vmem:[#allocation104_spill] sm:$0xff] (%p2580_p7), %v10834_v44  ;;  %v10836_v16 = vld [vmem:[#allocation18 + $0x218] sm:$0xff] (%p2580_p7)  ;;  %v10838_v6 = vld [vmem:[#allocation18 + $0x220] sm:$0xff] (%p2580_p7) }
 0x754   :  { %13872 = vst [vmem:[#allocation105_spill] sm:$0xff] (%p2580_p7), %v10836_v16  ;;  %13873 = vst [vmem:[#allocation106_spill] sm:$0xff] (%p2580_p7), %v10838_v6  ;;  %v10840_v29 = vld [vmem:[#allocation18 + $0x228] sm:$0xff] (%p2580_p7)  ;;  %v10852_v12 = vld [vmem:[#allocation18 + $0x258] sm:$0xff] (%p2580_p7) }
 0x755   :  { %13874 = vst [vmem:[#allocation107_spill] sm:$0xff] (%p2580_p7), %v10840_v29  ;;  %13880 = vst [vmem:[#allocation113_spill] sm:$0xff] (%p2580_p7), %v10852_v12  ;;  %v10854_v15 = vld [vmem:[#allocation18 + $0x260] sm:$0xff] (%p2580_p7)  ;;  %v10856_v44 = vld [vmem:[#allocation18 + $0x268] sm:$0xff] (%p2580_p7) }
 0x756   :  { %13881 = vst [vmem:[#allocation114_spill] sm:$0xff] (%p2580_p7), %v10854_v15  ;;  %13882 = vst [vmem:[#allocation115_spill] sm:$0xff] (%p2580_p7), %v10856_v44  ;;  %v10858_v16 = vld [vmem:[#allocation18 + $0x270] sm:$0xff] (%p2580_p7)  ;;  %v10860_v6 = vld [vmem:[#allocation18 + $0x278] sm:$0xff] (%p2580_p7) }
 0x757   :  { %13883 = vst [vmem:[#allocation116_spill] sm:$0xff] (%p2580_p7), %v10858_v16  ;;  %13884 = vst [vmem:[#allocation117_spill] sm:$0xff] (%p2580_p7), %v10860_v6  ;;  %v10862_v29 = vld [vmem:[#allocation18 + $0x280] sm:$0xff] (%p2580_p7)  ;;  %v10874_v12 = vld [vmem:[#allocation18 + $0x2b0] sm:$0xff] (%p2580_p7) }
 0x758   :  { %13885 = vst [vmem:[#allocation118_spill] sm:$0xff] (%p2580_p7), %v10862_v29  ;;  %13891 = vst [vmem:[#allocation124_spill] sm:$0xff] (%p2580_p7), %v10874_v12  ;;  %v10876_v15 = vld [vmem:[#allocation18 + $0x2b8] sm:$0xff] (%p2580_p7)  ;;  %v10878_v44 = vld [vmem:[#allocation18 + $0x2c0] sm:$0xff] (%p2580_p7) }
 0x759   : > { %v6311_v3 = vpop.eup %6310  ;;  %2582 = sbr.rel (!%p2580_p7) target bundleno = 1383 (0x567), region = 234  ;;  %13892 = vst [vmem:[#allocation125_spill] sm:$0xff] (%p2580_p7), %v10876_v15  ;;  %13893 = vst [vmem:[#allocation128_spill] sm:$0xff] (%p2580_p7), %v10878_v44  ;;  %v10880_v16 = vld [vmem:[#allocation18 + $0x2c8] sm:$0xff] (%p2580_p7)  ;;  %v10882_v6 = vld [vmem:[#allocation18 + $0x2d0] sm:$0xff] (%p2580_p7) }
 0x75a   : > { %v6313_v59 = vpop.eup %6312  ;;  %13894 = vst [vmem:[#allocation129_spill] sm:$0xff] (%p2580_p7), %v10880_v16  ;;  %13895 = vst [vmem:[#allocation130_spill] sm:$0xff] (%p2580_p7), %v10882_v6  ;;  %v10884_v29 = vld [vmem:[#allocation18 + $0x2d8] sm:$0xff] (%p2580_p7)  ;;  %v10896_v12 = vld [vmem:[#allocation18 + $0x308] sm:$0xff] (%p2580_p7) }
 0x75b   : > { %v6315_v0 = vpop.eup %6314  ;;  %13896 = vst [vmem:[#allocation131_spill] sm:$0xff] (%p2580_p7), %v10884_v29  ;;  %13902 = vst [vmem:[#allocation137_spill] sm:$0xff] (%p2580_p7), %v10896_v12  ;;  %v10898_v15 = vld [vmem:[#allocation18 + $0x310] sm:$0xff] (%p2580_p7)  ;;  %v10900_v44 = vld [vmem:[#allocation18 + $0x318] sm:$0xff] (%p2580_p7) }
 0x75c   : > { %v6317_v5 = vpop.eup %6316  ;;  %v3256_v49 = vmul.f32 %v6315_v0, %v6311_v3   ;;  %v10822_v3 = vld [vmem:[#allocation18 + $0x1e0] sm:$0xff] (%p2580_p7)  ;;  %v10826_v0 = vld [vmem:[#allocation18 + $0x1f0] sm:$0xff] (%p2580_p7)  ;;  %13903 = vst [vmem:[#allocation138_spill] sm:$0xff] (%p2580_p7), %v10898_v15  ;;  %13904 = vst [vmem:[#allocation139_spill] sm:$0xff] (%p2580_p7), %v10900_v44 }
 0x75d   : > { %v3257_v59 = vmul.f32 %v6317_v5, %v6313_v59   ;;  %13865 = vst [vmem:[#allocation98_spill] sm:$0xff] (%p2580_p7), %v10822_v3  ;;  %13867 = vst [vmem:[#allocation100_spill] sm:$0xff] (%p2580_p7), %v10826_v0  ;;  %v10828_v5 = vld [vmem:[#allocation18 + $0x1f8] sm:$0xff] (%p2580_p7)  ;;  %v10848_v0 = vld [vmem:[#allocation18 + $0x248] sm:$0xff] (%p2580_p7) }
 0x75e   : > { %3260 = vst [vmem:[%s3259_s10] sm:$0xff] %v3256_v49  ;;  %v10820_v49 = vld [vmem:[#allocation18 + $0x1d8] sm:$0xff] (%p2580_p7)  ;;  %13868 = vst [vmem:[#allocation101_spill] sm:$0xff] (%p2580_p7), %v10828_v5  ;;  %v10850_v5 = vld [vmem:[#allocation18 + $0x250] sm:$0xff] (%p2580_p7) }
 0x75f   : > { %3261 = vst [vmem:[%s3259_s10 + $0x8] sm:$0xff] %v3257_v59  ;;  %13864 = vst [vmem:[#allocation97_spill] sm:$0xff] (%p2580_p7), %v10820_v49  ;;  %v10824_v59 = vld [vmem:[#allocation18 + $0x1e8] sm:$0xff] (%p2580_p7)  ;;  %v10842_v49 = vld [vmem:[#allocation18 + $0x230] sm:$0xff] (%p2580_p7) }
 0x760   :  { %13866 = vst [vmem:[#allocation99_spill] sm:$0xff] %v10824_v59  ;;  %13875 = vst [vmem:[#allocation108_spill] sm:$0xff] %v10842_v49  ;;  %v10844_v3 = vld [vmem:[#allocation18 + $0x238] sm:$0xff]  ;;  %v10846_v59 = vld [vmem:[#allocation18 + $0x240] sm:$0xff] }
 0x761   :  { %13876 = vst [vmem:[#allocation109_spill] sm:$0xff] %v10844_v3  ;;  %13877 = vst [vmem:[#allocation110_spill] sm:$0xff] %v10846_v59  ;;  %v10864_v49 = vld [vmem:[#allocation18 + $0x288] sm:$0xff]  ;;  %v10866_v3 = vld [vmem:[#allocation18 + $0x290] sm:$0xff] }
 0x762   :  { %13878 = vst [vmem:[#allocation111_spill] sm:$0xff] %v10848_v0  ;;  %13879 = vst [vmem:[#allocation112_spill] sm:$0xff] %v10850_v5  ;;  %v10868_v59 = vld [vmem:[#allocation18 + $0x298] sm:$0xff]  ;;  %v10870_v0 = vld [vmem:[#allocation18 + $0x2a0] sm:$0xff] }
 0x763   :  { %13886 = vst [vmem:[#allocation119_spill] sm:$0xff] %v10864_v49  ;;  %13887 = vst [vmem:[#allocation120_spill] sm:$0xff] %v10866_v3  ;;  %v10872_v5 = vld [vmem:[#allocation18 + $0x2a8] sm:$0xff]  ;;  %v10886_v49 = vld [vmem:[#allocation18 + $0x2e0] sm:$0xff] }
 0x764   :  { %13888 = vst [vmem:[#allocation121_spill] sm:$0xff] %v10868_v59  ;;  %13889 = vst [vmem:[#allocation122_spill] sm:$0xff] %v10870_v0  ;;  %v10888_v3 = vld [vmem:[#allocation18 + $0x2e8] sm:$0xff]  ;;  %v10890_v59 = vld [vmem:[#allocation18 + $0x2f0] sm:$0xff] }
 0x765   :  { %13890 = vst [vmem:[#allocation123_spill] sm:$0xff] %v10872_v5  ;;  %13897 = vst [vmem:[#allocation132_spill] sm:$0xff] %v10886_v49  ;;  %v10892_v0 = vld [vmem:[#allocation18 + $0x2f8] sm:$0xff]  ;;  %v10894_v5 = vld [vmem:[#allocation18 + $0x300] sm:$0xff] }
 0x766   :  { %13898 = vst [vmem:[#allocation133_spill] sm:$0xff] %v10888_v3  ;;  %13899 = vst [vmem:[#allocation134_spill] sm:$0xff] %v10890_v59  ;;  %v10902_v16 = vld [vmem:[#allocation18 + $0x320] sm:$0xff]  ;;  %v10904_v6 = vld [vmem:[#allocation18 + $0x328] sm:$0xff] }
 0x767   :  { %13900 = vst [vmem:[#allocation135_spill] sm:$0xff] %v10892_v0  ;;  %13901 = vst [vmem:[#allocation136_spill] sm:$0xff] %v10894_v5  ;;  %v10906_v29 = vld [vmem:[#allocation18 + $0x330] sm:$0xff]  ;;  %v10908_v49 = vld [vmem:[#allocation18 + $0x338] sm:$0xff] }
 0x768   :  { %13905 = vst [vmem:[#allocation140_spill] sm:$0xff] %v10902_v16  ;;  %13906 = vst [vmem:[#allocation141_spill] sm:$0xff] %v10904_v6  ;;  %v10910_v3 = vld [vmem:[#allocation18 + $0x340] sm:$0xff]  ;;  %v10912_v59 = vld [vmem:[#allocation18 + $0x348] sm:$0xff] }
 0x769   :  { %13907 = vst [vmem:[#allocation142_spill] sm:$0xff] %v10906_v29  ;;  %13908 = vst [vmem:[#allocation143_spill] sm:$0xff] %v10908_v49  ;;  %v10914_v0 = vld [vmem:[#allocation18 + $0x350] sm:$0xff]  ;;  %v10916_v5 = vld [vmem:[#allocation18 + $0x358] sm:$0xff] }
 0x76a   :  { %13909 = vst [vmem:[#allocation144_spill] sm:$0xff] %v10910_v3  ;;  %13910 = vst [vmem:[#allocation145_spill] sm:$0xff] %v10912_v59  ;;  %v10918_v12 = vld [vmem:[#allocation18 + $0x360] sm:$0xff]  ;;  %v10920_v15 = vld [vmem:[#allocation18 + $0x368] sm:$0xff] }
 0x76b   :  { %13911 = vst [vmem:[#allocation146_spill] sm:$0xff] %v10914_v0  ;;  %13912 = vst [vmem:[#allocation147_spill] sm:$0xff] %v10916_v5  ;;  %v10922_v44 = vld [vmem:[#allocation18 + $0x370] sm:$0xff]  ;;  %v10924_v16 = vld [vmem:[#allocation18 + $0x378] sm:$0xff] }
 0x76c   :  { %13913 = vst [vmem:[#allocation148_spill] sm:$0xff] %v10918_v12  ;;  %13914 = vst [vmem:[#allocation149_spill] sm:$0xff] %v10920_v15  ;;  %v10926_v6 = vld [vmem:[#allocation18 + $0x380] sm:$0xff]  ;;  %v10928_v29 = vld [vmem:[#allocation18 + $0x388] sm:$0xff] }
 0x76d   :  { %13915 = vst [vmem:[#allocation150_spill] sm:$0xff] %v10922_v44  ;;  %13916 = vst [vmem:[#allocation151_spill] sm:$0xff] %v10924_v16  ;;  %v10930_v49 = vld [vmem:[#allocation18 + $0x390] sm:$0xff]  ;;  %v10932_v3 = vld [vmem:[#allocation18 + $0x398] sm:$0xff] }
 0x76e   :  { %13917 = vst [vmem:[#allocation152_spill] sm:$0xff] %v10926_v6  ;;  %13918 = vst [vmem:[#allocation153_spill] sm:$0xff] %v10928_v29  ;;  %v10934_v59 = vld [vmem:[#allocation18 + $0x3a0] sm:$0xff]  ;;  %v10936_v0 = vld [vmem:[#allocation18 + $0x3a8] sm:$0xff] }
 0x76f   :  { %13919 = vst [vmem:[#allocation154_spill] sm:$0xff] %v10930_v49  ;;  %13920 = vst [vmem:[#allocation155_spill] sm:$0xff] %v10932_v3  ;;  %v10938_v5 = vld [vmem:[#allocation18 + $0x3b0] sm:$0xff]  ;;  %v10940_v12 = vld [vmem:[#allocation18 + $0x3b8] sm:$0xff] }
 0x770   :  { %13921 = vst [vmem:[#allocation156_spill] sm:$0xff] %v10934_v59  ;;  %13922 = vst [vmem:[#allocation157_spill] sm:$0xff] %v10936_v0  ;;  %v10942_v15 = vld [vmem:[#allocation18 + $0x3c0] sm:$0xff]  ;;  %v10944_v44 = vld [vmem:[#allocation18 + $0x3c8] sm:$0xff] }
 0x771   :  { %13923 = vst [vmem:[#allocation158_spill] sm:$0xff] %v10938_v5  ;;  %13924 = vst [vmem:[#allocation159_spill] sm:$0xff] %v10940_v12  ;;  %v10946_v16 = vld [vmem:[#allocation18 + $0x3d0] sm:$0xff]  ;;  %v10948_v6 = vld [vmem:[#allocation18 + $0x3d8] sm:$0xff] }
 0x772   :  { %13925 = vst [vmem:[#allocation160_spill] sm:$0xff] %v10942_v15  ;;  %13926 = vst [vmem:[#allocation161_spill] sm:$0xff] %v10944_v44  ;;  %v10950_v29 = vld [vmem:[#allocation18 + $0x3e0] sm:$0xff]  ;;  %v10952_v49 = vld [vmem:[#allocation18 + $0x3e8] sm:$0xff] }
 0x773   :  { %13927 = vst [vmem:[#allocation162_spill] sm:$0xff] %v10946_v16  ;;  %13928 = vst [vmem:[#allocation163_spill] sm:$0xff] %v10948_v6  ;;  %v10954_v3 = vld [vmem:[#allocation18 + $0x3f0] sm:$0xff]  ;;  %v10956_v59 = vld [vmem:[#allocation18 + $0x3f8] sm:$0xff] }
 0x774   :  { %13929 = vst [vmem:[#allocation164_spill] sm:$0xff] %v10950_v29  ;;  %13930 = vst [vmem:[#allocation165_spill] sm:$0xff] %v10952_v49  ;;  %v10958_v0 = vld [vmem:[#allocation20] sm:$0xff]  ;;  %v10960_v5 = vld [vmem:[#allocation20 + $0x8] sm:$0xff] }
 0x775   :  { %13931 = vst [vmem:[#allocation166_spill] sm:$0xff] %v10954_v3  ;;  %13932 = vst [vmem:[#allocation167_spill] sm:$0xff] %v10956_v59  ;;  %v10962_v12 = vld [vmem:[#allocation20 + $0x10] sm:$0xff]  ;;  %v10964_v15 = vld [vmem:[#allocation20 + $0x18] sm:$0xff] }
 0x776   :  { %13933 = vst [vmem:[#allocation168_spill] sm:$0xff] %v10958_v0  ;;  %13934 = vst [vmem:[#allocation169_spill] sm:$0xff] %v10960_v5  ;;  %v10966_v44 = vld [vmem:[#allocation20 + $0x20] sm:$0xff]  ;;  %v10968_v16 = vld [vmem:[#allocation20 + $0x28] sm:$0xff] }
 0x777   :  { %13935 = vst [vmem:[#allocation170_spill] sm:$0xff] %v10962_v12  ;;  %13936 = vst [vmem:[#allocation171_spill] sm:$0xff] %v10964_v15  ;;  %v10970_v6 = vld [vmem:[#allocation20 + $0x30] sm:$0xff]  ;;  %v10972_v29 = vld [vmem:[#allocation20 + $0x38] sm:$0xff] }
 0x778   :  { %13937 = vst [vmem:[#allocation172_spill] sm:$0xff] %v10968_v16  ;;  %13938 = vst [vmem:[#allocation173_spill] sm:$0xff] %v10970_v6  ;;  %v10974_v49 = vld [vmem:[#allocation20 + $0x40] sm:$0xff]  ;;  %v10976_v3 = vld [vmem:[#allocation20 + $0x48] sm:$0xff] }
 0x779   :  { %13939 = vst [vmem:[#allocation174_spill] sm:$0xff] %v10976_v3  ;;  %v10978_v59 = vld [vmem:[#allocation20 + $0x50] sm:$0xff]  ;;  %v10982_v17 = vld [vmem:[#allocation20 + $0x60] sm:$0xff]  ;;  %v10984_v37 = vld [vmem:[#allocation20 + $0x68] sm:$0xff] }
 0x77a   :  { %13940 = vst [vmem:[#allocation175_spill] sm:$0xff] %v10982_v17  ;;  %v11068_v10 = vld [vmem:[#allocation20 + $0x1b8] sm:$0xff]  ;;  %v11070_v28 = vld [vmem:[#allocation20 + $0x1c0] sm:$0xff]  ;;  %v11074_v14 = vld [vmem:[#allocation20 + $0x1d0] sm:$0xff] }
 0x77b   :  { %13946 = vst [vmem:[#allocation181_spill] sm:$0xff] %v11068_v10  ;;  %13947 = vst [vmem:[#allocation182_spill] sm:$0xff] %v11070_v28  ;;  %v11078_v11 = vld [vmem:[#allocation20 + $0x1e0] sm:$0xff]  ;;  %v11091_v28 = vmov 0.0  }
 0x77c   :  { %13949 = vst [vmem:[#allocation184_spill] sm:$0xff] %v11074_v14  ;;  %13951 = vst [vmem:[#allocation186_spill] sm:$0xff] %v11078_v11 }
 0x77d LB: > { %13956 = vst [vmem:[#allocation519_spill] sm:$0xff] %v6782_v28  ;;  %13957 = vst [vmem:[#allocation520_spill] sm:$0xff] %v6786_v2  ;;  %v13958_v5 = vld [vmem:[#allocation169_spill] sm:$0xff]  ;;  %v13961_v0 = vld [vmem:[#allocation168_spill] sm:$0xff]  ;;  %v5684_v2 = vpack.c.bf16 %v10988_v27, %v10980_v24  ;;  %s4507_s15 = sshll.u32 %s6790_s16, 4  ;;  %s4501_s5 = sshll.u32 %s6790_s16, 3  ;;  %s6790_s16 = sphi %s11095_s16, %s3460_s16   ;;  %v6786_v2 = vphi %v11093_v2, %v3800_v2   ;;  %v6782_v28 = vphi %v11091_v28, %v3798_v28  }
 0x77e   : > { %v13960_v15 = vld [vmem:[#allocation171_spill] sm:$0xff]  ;;  %v5650_v14 = vpack.c.bf16 %v10966_v44, %v13961_v0  ;;  %v13962_v12 = vld [vmem:[#allocation170_spill] sm:$0xff]  ;;  %v13966_v4 = vld [vmem:[#allocation176_spill] sm:$0xff]  ;;  %v5656_v0 = vpack.c.bf16 %v11000_v23, %v10992_v22  ;;  %s11185_s27 = scalar_lea.vmem [#allocation5], %s4507_s15  ;;  %s3802_s11 = scalar_lea.vmem [#allocation2], %s4501_s5 }
 0x77f   : > { %v13959_v16 = vld [vmem:[#allocation172_spill] sm:$0xff]  ;;  %v5680_v7 = vpack.c.bf16 %v10972_v29, %v13960_v15  ;;  %v13963_v6 = vld [vmem:[#allocation173_spill] sm:$0xff]  ;;  %v5686_v15 = vpack.c.bf16 %v13966_v4, %v10978_v59  ;;  %v13968_v18 = vld [vmem:[#allocation179_spill] sm:$0xff]  ;;  %s3460_s16 = sadd.s32 1, %s6790_s16  }
 0x780   : > { %v5648_v55 = vpack.c.bf16 %v13959_v16, %v13958_v5  ;;  %v5682_v11 = vpack.c.bf16 %v13963_v6, %v13962_v12  ;;  %v13964_v3 = vld [vmem:[#allocation174_spill] sm:$0xff]  ;;  %v6823_v6 = vmov 0.0   ;;  %v13967_v19 = vld [vmem:[#allocation177_spill] sm:$0xff]  ;;  %v13973_v9 = vld [vmem:[#allocation187_spill] sm:$0xff]  ;;  %p3457_p8 = scmp.ge.s32.totalorder %s3460_s16, 16  }
 0x781   : > { %v5652_v28 = vpack.c.bf16 %v10984_v37, %v13964_v3  ;;  %5681 = vmatprep.subr.bf16.mxu1 %v5680_v7  ;;  %v13965_v17 = vld [vmem:[#allocation175_spill] sm:$0xff]  ;;  %v5688_v3 = vpack.c.bf16 %v11004_v21, %v10996_v57  ;;  %3532 = vmatprep.mubr.f32.mxu0 %v6823_v6  ;;  %v5690_v7 = vpack.c.bf16 %v11002_v62, %v10994_v26  ;;  %v13969_v8 = vld [vmem:[#allocation178_spill] sm:$0xff]  ;;  %v13974_v1 = vld [vmem:[#allocation185_spill] sm:$0xff]  ;;  %s11587_s30 = smov (%p3457_p8), 0  }
 0x782   : > { %5649 = vmatprep.subr.bf16.mxu0 %v5648_v55  ;;  %5683 = vmatpush1.bf16.msra.mxu1 %v5682_v11  ;;  %v5654_v5 = vpack.c.bf16 %v13965_v17, %v10974_v49  ;;  %v5662_v11 = vpack.c.bf16 %v11014_v61, %v11006_v60  ;;  %v5694_v55 = vpack.c.bf16 %v11018_v56, %v11010_v54  ;;  %v13970_v10 = vld [vmem:[#allocation181_spill] sm:$0xff]  ;;  %v13983_v16 = vld [vmem:[#allocation39_spill] sm:$0xff]  ;;  %v11388_v54 = vld [vmem:[#allocation21 + $0x108] sm:$0xff] (%p3457_p8) }
 0x783   : > { %5651 = vmatpush1.bf16.msra.mxu0 %v5650_v14  ;;  %5685 = vmatprep.subr.bf16.mxu1 %v5684_v2  ;;  %v5658_v14 = vpack.c.bf16 %v10998_v46, %v10990_v42  ;;  %v5660_v2 = vpack.c.bf16 %v11016_v53, %v11008_v52  ;;  %v13975_v13 = vld [vmem:[#allocation189_spill] sm:$0xff]  ;;  %v11384_v52 = vld [vmem:[#allocation21 + $0xf8] sm:$0xff] (%p3457_p8)  ;;  %v11386_v53 = vld [vmem:[#allocation21 + $0x100] sm:$0xff] (%p3457_p8)  ;;  %14148 = vst [vmem:[#allocation224_spill] sm:$0xff] (%p3457_p8), %v11388_v54 }
 0x784   : > { %5653 = vmatprep.subr.bf16.mxu0 %v5652_v28  ;;  %3603 = vmatprep.mubr.f32.mxu1 %v6823_v6  ;;  %v5692_v28 = vpack.c.bf16 %v11020_v51, %v11012_v50  ;;  %v5696_v6 = vpack.c.bf16 %v11036_v39, %v11028_v38  ;;  %v13980_v12 = vld [vmem:[#allocation33_spill] sm:$0xff]  ;;  %v11364_v38 = vld [vmem:[#allocation21 + $0xa8] sm:$0xff] (%p3457_p8)  ;;  %14146 = vst [vmem:[#allocation222_spill] sm:$0xff] (%p3457_p8), %v11384_v52  ;;  %14147 = vst [vmem:[#allocation223_spill] sm:$0xff] (%p3457_p8), %v11386_v53 }
 0x785   :  { %14136 = vst [vmem:[#allocation212_spill] sm:$0xff] (%p3457_p8), %v11364_v38  ;;  %v11366_v39 = vld [vmem:[#allocation21 + $0xb0] sm:$0xff] (%p3457_p8)  ;;  %v11380_v50 = vld [vmem:[#allocation21 + $0xe8] sm:$0xff] (%p3457_p8)  ;;  %v11392_v60 = vld [vmem:[#allocation21 + $0x118] sm:$0xff] (%p3457_p8) }
 0x786   : > { %5687 = vmatpush1.bf16.msra.mxu1 %v5686_v15  ;;  %v5664_v15 = vpack.c.bf16 %v11032_v41, %v11024_v40  ;;  %14137 = vst [vmem:[#allocation213_spill] sm:$0xff] (%p3457_p8), %v11366_v39  ;;  %v11368_v40 = vld [vmem:[#allocation21 + $0xb8] sm:$0xff] (%p3457_p8)  ;;  %v11370_v41 = vld [vmem:[#allocation21 + $0xc0] sm:$0xff] (%p3457_p8)  ;;  %14144 = vst [vmem:[#allocation220_spill] sm:$0xff] (%p3457_p8), %v11380_v50 }
 0x787   : > { %5655 = vmatpush1.bf16.msra.mxu0 %v5654_v5  ;;  %5689 = vmatprep.subr.bf16.mxu1 %v5688_v3  ;;  %v5666_v3 = vpack.c.bf16 %v11030_v48, %v11022_v47  ;;  %v5668_v5 = vpack.c.bf16 %v11048_v32, %v11040_v31  ;;  %v11352_v31 = vld [vmem:[#allocation21 + $0x78] sm:$0xff] (%p3457_p8)  ;;  %v11354_v32 = vld [vmem:[#allocation21 + $0x80] sm:$0xff] (%p3457_p8)  ;;  %14138 = vst [vmem:[#allocation214_spill] sm:$0xff] (%p3457_p8), %v11368_v40  ;;  %14139 = vst [vmem:[#allocation215_spill] sm:$0xff] (%p3457_p8), %v11370_v41 }
 0x788   : > { %5657 = vmatprep.subr.bf16.mxu0 %v5656_v0  ;;  %v5698_v0 = vpack.c.bf16 %v11034_v45, %v11026_v43  ;;  %14130 = vst [vmem:[#allocation206_spill] sm:$0xff] (%p3457_p8), %v11352_v31  ;;  %14131 = vst [vmem:[#allocation207_spill] sm:$0xff] (%p3457_p8), %v11354_v32  ;;  %v11372_v43 = vld [vmem:[#allocation21 + $0xc8] sm:$0xff] (%p3457_p8)  ;;  %v11374_v45 = vld [vmem:[#allocation21 + $0xd0] sm:$0xff] (%p3457_p8) }
 0x789   :  { %14140 = vst [vmem:[#allocation216_spill] sm:$0xff] (%p3457_p8), %v11372_v43  ;;  %14141 = vst [vmem:[#allocation217_spill] sm:$0xff] (%p3457_p8), %v11374_v45  ;;  %v11376_v47 = vld [vmem:[#allocation21 + $0xd8] sm:$0xff] (%p3457_p8)  ;;  %v11378_v48 = vld [vmem:[#allocation21 + $0xe0] sm:$0xff] (%p3457_p8) }
 0x78a   : > { %5691 = vmatpush1.bf16.msra.mxu1 %v5690_v7  ;;  %v5670_v7 = vpack.c.bf16 %v11046_v36, %v11038_v35  ;;  %v11360_v35 = vld [vmem:[#allocation21 + $0x98] sm:$0xff] (%p3457_p8)  ;;  %v11362_v36 = vld [vmem:[#allocation21 + $0xa0] sm:$0xff] (%p3457_p8)  ;;  %14142 = vst [vmem:[#allocation218_spill] sm:$0xff] (%p3457_p8), %v11376_v47  ;;  %14143 = vst [vmem:[#allocation219_spill] sm:$0xff] (%p3457_p8), %v11378_v48 }
 0x78b   : > { %5659 = vmatpush1.bf16.msra.mxu0 %v5658_v14  ;;  %5693 = vmatprep.subr.bf16.mxu1 %v5692_v28  ;;  %v5700_v14 = vpack.c.bf16 %v11052_v30, %v11044_v25  ;;  %v5672_v28 = vpack.c.bf16 %v13968_v18, %v13967_v19  ;;  %v11348_v25 = vld [vmem:[#allocation21 + $0x68] sm:$0xff] (%p3457_p8)  ;;  %v11350_v30 = vld [vmem:[#allocation21 + $0x70] sm:$0xff] (%p3457_p8)  ;;  %14134 = vst [vmem:[#allocation210_spill] sm:$0xff] (%p3457_p8), %v11360_v35  ;;  %14135 = vst [vmem:[#allocation211_spill] sm:$0xff] (%p3457_p8), %v11362_v36 }
 0x78c   : > { %5661 = vmatprep.subr.bf16.mxu0 %v5660_v2  ;;  %v5702_v2 = vpack.c.bf16 %v11050_v34, %v11042_v33  ;;  %14128 = vst [vmem:[#allocation204_spill] sm:$0xff] (%p3457_p8), %v11348_v25  ;;  %14129 = vst [vmem:[#allocation205_spill] sm:$0xff] (%p3457_p8), %v11350_v30  ;;  %v11356_v33 = vld [vmem:[#allocation21 + $0x88] sm:$0xff] (%p3457_p8)  ;;  %v11358_v34 = vld [vmem:[#allocation21 + $0x90] sm:$0xff] (%p3457_p8) }
 0x78d   :  { %14132 = vst [vmem:[#allocation208_spill] sm:$0xff] (%p3457_p8), %v11356_v33  ;;  %14133 = vst [vmem:[#allocation209_spill] sm:$0xff] (%p3457_p8), %v11358_v34  ;;  %v11382_v51 = vld [vmem:[#allocation21 + $0xf0] sm:$0xff] (%p3457_p8)  ;;  %v11394_v61 = vld [vmem:[#allocation21 + $0x120] sm:$0xff] (%p3457_p8) }
 0x78e   : > { %5695 = vmatpush1.bf16.msra.mxu1 %v5694_v55  ;;  %v5674_v55 = vpack.c.bf16 %v11062_v58, %v11054_v63  ;;  %v11344_v63 = vld [vmem:[#allocation21 + $0x58] sm:$0xff] (%p3457_p8)  ;;  %v11346_v58 = vld [vmem:[#allocation21 + $0x60] sm:$0xff] (%p3457_p8)  ;;  %14145 = vst [vmem:[#allocation221_spill] sm:$0xff] (%p3457_p8), %v11382_v51  ;;  %v11390_v56 = vld [vmem:[#allocation21 + $0x110] sm:$0xff] (%p3457_p8) }
 0x78f   : > { %5663 = vmatpush1.bf16.msra.mxu0 %v5662_v11  ;;  %5697 = vmatprep.subr.bf16.mxu1 %v5696_v6  ;;  %v5704_v11 = vpack.c.bf16 %v13970_v10, %v13969_v8  ;;  %v13979_v8 = vld [vmem:[#allocation188_spill] sm:$0xff]  ;;  %14126 = vst [vmem:[#allocation202_spill] sm:$0xff] (%p3457_p8), %v11344_v63  ;;  %14127 = vst [vmem:[#allocation203_spill] sm:$0xff] (%p3457_p8), %v11346_v58  ;;  %v11398_v21 = vld [vmem:[#allocation21 + $0x130] sm:$0xff] (%p3457_p8) }
 0x790   : > { %5665 = vmatprep.subr.bf16.mxu0 %v5664_v15  ;;  %v13971_v15 = vld [vmem:[#allocation180_spill] sm:$0xff]  ;;  %14149 = vst [vmem:[#allocation225_spill] sm:$0xff] (%p3457_p8), %v11390_v56  ;;  %14150 = vst [vmem:[#allocation226_spill] sm:$0xff] (%p3457_p8), %v11392_v60  ;;  %v11400_v22 = vld [vmem:[#allocation21 + $0x138] sm:$0xff] (%p3457_p8) }
 0x791   : > { %v5706_v6 = vpack.c.bf16 %v13971_v15, %v11058_v20  ;;  %v13981_v15 = vld [vmem:[#allocation37_spill] sm:$0xff]  ;;  %14151 = vst [vmem:[#allocation227_spill] sm:$0xff] (%p3457_p8), %v11394_v61  ;;  %v11396_v57 = vld [vmem:[#allocation21 + $0x128] sm:$0xff] (%p3457_p8)  ;;  %14153 = vst [vmem:[#allocation229_spill] sm:$0xff] (%p3457_p8), %v11398_v21 }
 0x792   : > { %5699 = vmatpush1.bf16.msra.mxu1 %v5698_v0  ;;  %v11342_v20 = vld [vmem:[#allocation21 + $0x50] sm:$0xff] (%p3457_p8)  ;;  %14152 = vst [vmem:[#allocation228_spill] sm:$0xff] (%p3457_p8), %v11396_v57  ;;  %14154 = vst [vmem:[#allocation230_spill] sm:$0xff] (%p3457_p8), %v11400_v22  ;;  %v11402_v23 = vld [vmem:[#allocation21 + $0x140] sm:$0xff] (%p3457_p8) }
 0x793   : > { %5667 = vmatpush1.bf16.msra.mxu0 %v5666_v3  ;;  %5701 = vmatprep.subr.bf16.mxu1 %v5700_v14  ;;  %v13972_v3 = vld [vmem:[#allocation183_spill] sm:$0xff]  ;;  %v13976_v14 = vld [vmem:[#allocation182_spill] sm:$0xff]  ;;  %14125 = vst [vmem:[#allocation201_spill] sm:$0xff] (%p3457_p8), %v11342_v20  ;;  %14155 = vst [vmem:[#allocation231_spill] sm:$0xff] (%p3457_p8), %v11402_v23 }
 0x794   : > { %5669 = vmatprep.subr.bf16.mxu0 %v5668_v5  ;;  %v5676_v0 = vpack.c.bf16 %v13973_v9, %v13972_v3  ;;  %v5708_v5 = vpack.c.bf16 %v13975_v13, %v13974_v1  ;;  %v13984_v3 = vld [vmem:[#allocation32_spill] sm:$0xff]  ;;  %v13986_v1 = vld [vmem:[#allocation34_spill] sm:$0xff]  ;;  %v11406_v62 = vld [vmem:[#allocation21 + $0x150] sm:$0xff] (%p3457_p8) }
 0x795   : > { %v13987_v9 = vld [vmem:[#allocation38_spill] sm:$0xff]  ;;  %v11404_v26 = vld [vmem:[#allocation21 + $0x148] sm:$0xff] (%p3457_p8)  ;;  %14157 = vst [vmem:[#allocation233_spill] sm:$0xff] (%p3457_p8), %v11406_v62  ;;  %v11410_v46 = vld [vmem:[#allocation21 + $0x160] sm:$0xff] (%p3457_p8) }
 0x796   : > { %5703 = vmatpush1.bf16.msra.mxu1 %v5702_v2  ;;  %v13978_v2 = vld [vmem:[#allocation184_spill] sm:$0xff]  ;;  %14156 = vst [vmem:[#allocation232_spill] sm:$0xff] (%p3457_p8), %v11404_v26  ;;  %v11408_v42 = vld [vmem:[#allocation21 + $0x158] sm:$0xff] (%p3457_p8)  ;;  %14159 = vst [vmem:[#allocation235_spill] sm:$0xff] (%p3457_p8), %v11410_v46 }
 0x797   : > { %5671 = vmatpush1.bf16.msra.mxu0 %v5670_v7  ;;  %5705 = vmatprep.subr.bf16.mxu1 %v5704_v11  ;;  %v13977_v7 = vld [vmem:[#allocation186_spill] sm:$0xff]  ;;  %v5710_v10 = vpack.c.bf16 %v13979_v8, %v13978_v2  ;;  %v13982_v11 = vld [vmem:[#allocation35_spill] sm:$0xff]  ;;  %v13988_v8 = vld [vmem:[#allocation41_spill] sm:$0xff]  ;;  %14158 = vst [vmem:[#allocation234_spill] sm:$0xff] (%p3457_p8), %v11408_v42 }
 0x798   : > { %5673 = vmatprep.subr.bf16.mxu0 %v5672_v28  ;;  %v5678_v4 = vpack.c.bf16 %v13977_v7, %v13976_v14  ;;  %v5712_v28 = vpack.c.bf16 %v13981_v15, %v13980_v12  ;;  %v5776_v17 = vpack.c.bf16 %v13983_v16, %v13982_v11  ;;  %v5778_v14 = vpack.c.bf16 %v13987_v9, %v13986_v1  ;;  %v13990_v7 = vld [vmem:[#allocation43_spill] sm:$0xff]  ;;  %v13992_v15 = vld [vmem:[#allocation520_spill] sm:$0xff]  ;;  %v13996_v16 = vld [vmem:[#allocation46_spill] sm:$0xff] }
 0x799   : > { %v13991_v2 = vld [vmem:[#allocation47_spill] sm:$0xff]  ;;  %v13994_v1 = vld [vmem:[#allocation44_spill] sm:$0xff]  ;;  %v13997_v11 = vld [vmem:[#allocation49_spill] sm:$0xff] }
 0x79a   : > { %5707 = vmatpush1.bf16.msra.mxu1 %v5706_v6  ;;  %v5780_v12 = vpack.c.bf16 %v13991_v2, %v13990_v7  ;;  %v11412_v24 = vld [vmem:[#allocation21 + $0x168] sm:$0xff] (%p3457_p8)  ;;  %v11414_v27 = vld [vmem:[#allocation21 + $0x170] sm:$0xff] (%p3457_p8)  ;;  %v11416_v37 = vld [vmem:[#allocation21 + $0x178] sm:$0xff] (%p3457_p8) }
 0x79b   : > { %5675 = vmatpush1.bf16.msra.mxu0 %v5674_v55  ;;  %5709 = vmatprep.subr.bf16.mxu1 %v5708_v5  ;;  %v13985_v55 = vld [vmem:[#allocation36_spill] sm:$0xff]  ;;  %14160 = vst [vmem:[#allocation236_spill] sm:$0xff] (%p3457_p8), %v11412_v24  ;;  %14161 = vst [vmem:[#allocation237_spill] sm:$0xff] (%p3457_p8), %v11414_v27  ;;  %v11418_v44 = vld [vmem:[#allocation21 + $0x180] sm:$0xff] (%p3457_p8) }
 0x79c   : > { %5677 = vmatprep.subr.bf16.mxu0 %v5676_v0  ;;  %v5714_v6 = vpack.c.bf16 %v13985_v55, %v13984_v3  ;;  %v13989_v0 = vld [vmem:[#allocation45_spill] sm:$0xff]  ;;  %14162 = vst [vmem:[#allocation238_spill] sm:$0xff] (%p3457_p8), %v11416_v37  ;;  %14163 = vst [vmem:[#allocation239_spill] sm:$0xff] (%p3457_p8), %v11418_v44  ;;  %v11420_v29 = vld [vmem:[#allocation21 + $0x188] sm:$0xff] (%p3457_p8) }
 0x79d   : > { %v5716_v5 = vpack.c.bf16 %v13989_v0, %v13988_v8  ;;  %v13998_v3 = vld [vmem:[#allocation53_spill] sm:$0xff]  ;;  %v13999_v8 = vld [vmem:[#allocation51_spill] sm:$0xff]  ;;  %14164 = vst [vmem:[#allocation240_spill] sm:$0xff] (%p3457_p8), %v11420_v29  ;;  %v11424_v59 = vld [vmem:[#allocation21 + $0x198] sm:$0xff] (%p3457_p8) }
 0x79e   : > { %5711 = vmatpush1.bf16.msra.mxu1 %v5710_v10  ;;  %v3467_v10 = vld [vmem:[%s11185_s27 + $0x8] sm:$0xff]  ;;  %v5720_v55 = vpack.c.bf16 %v13998_v3, %v13997_v11  ;;  %v14000_v0 = vld [vmem:[#allocation55_spill] sm:$0xff]  ;;  %v11422_v49 = vld [vmem:[#allocation21 + $0x190] sm:$0xff] (%p3457_p8)  ;;  %14166 = vst [vmem:[#allocation242_spill] sm:$0xff] (%p3457_p8), %v11424_v59 }
 0x79f   : > { %5679 = vmatpush1.bf16.msra.mxu0 %v5678_v4  ;;  %5777 = vmatprep.subr.bf16.mxu1 %v5776_v17  ;;  %v13993_v4 = vld [vmem:[#allocation40_spill] sm:$0xff]  ;;  %v13995_v17 = vld [vmem:[#allocation42_spill] sm:$0xff]  ;;  %v5784_v7 = vpack.c.bf16 %v14000_v0, %v13999_v8  ;;  %v14008_v11 = vld [vmem:[#allocation63_spill] sm:$0xff]  ;;  %14165 = vst [vmem:[#allocation241_spill] sm:$0xff] (%p3457_p8), %v11422_v49 }
 0x7a0   : > { %5713 = vmatprep.subr.bf16.mxu0 %v5712_v28  ;;  %v5718_v9 = vpack.c.bf16 %v13994_v1, %v13993_v4  ;;  %v5782_v28 = vpack.c.bf16 %v13996_v16, %v13995_v17  ;;  %v14004_v4 = vld [vmem:[#allocation54_spill] sm:$0xff]  ;;  %v14007_v16 = vld [vmem:[#allocation59_spill] sm:$0xff]  ;;  %v14009_v8 = vld [vmem:[#allocation56_spill] sm:$0xff] }
 0x7a1   : > { %3604 = vmatmul.mubr.f32.vlgmr.msra.gmra.mrb[0].mxu1 %v13992_v15  ;;  %v5788_v3 = vpack.c.bf16 %v14008_v11, %v14007_v16  ;;  %v14012_v0 = vld [vmem:[#allocation62_spill] sm:$0xff]  ;;  %v11450_v49 = vld [vmem:[#allocation23] sm:$0xff] (%p3457_p8)  ;;  %v11476_v59 = vld [vmem:[#allocation23 + $0x68] sm:$0xff] (%p3457_p8) }
 0x7a2   : > { %3533 = vmatmul.mubr.f32.vlgmr.msra.gmra.mrb[0].mxu0 %v13992_v15  ;;  %5779 = vmatpush1.bf16.msra.mxu1 %v5778_v14  ;;  %v14002_v14 = vld [vmem:[#allocation52_spill] sm:$0xff]  ;;  %v14003_v15 = vld [vmem:[#allocation50_spill] sm:$0xff]  ;;  %v11482_v27 = vld [vmem:[#allocation23 + $0x80] sm:$0xff] (%p3457_p8) }
 0x7a3   : > { %5715 = vmatpush1.bf16.msra.mxu0 %v5714_v6  ;;  %5781 = vmatprep.subr.bf16.mxu1 %v5780_v12  ;;  %v14001_v6 = vld [vmem:[#allocation48_spill] sm:$0xff]  ;;  %v5786_v1 = vpack.c.bf16 %v14004_v4, %v14003_v15  ;;  %v14006_v12 = vld [vmem:[#allocation61_spill] sm:$0xff]  ;;  %v14016_v15 = vld [vmem:[#allocation77_spill] sm:$0xff] }
 0x7a4   : > { %5717 = vmatprep.subr.bf16.mxu0 %v5716_v5  ;;  %3674 = vmatprep.mubr.f32.mxu0 %v3467_v10  ;;  %v5722_v2 = vpack.c.bf16 %v14002_v14, %v14001_v6  ;;  %v14005_v5 = vld [vmem:[#allocation57_spill] sm:$0xff]  ;;  %v14020_v16 = vld [vmem:[#allocation76_spill] sm:$0xff]  ;;  %v11484_v62 = vld [vmem:[#allocation23 + $0x88] sm:$0xff] (%p3457_p8) }
 0x7a5   : > { %3745 = vmatprep.mubr.f32.mxu1 %v3467_v10  ;;  %v5724_v17 = vpack.c.bf16 %v14006_v12, %v14005_v5  ;;  %v14010_v10 = vld [vmem:[#allocation60_spill] sm:$0xff]  ;;  %v14013_v6 = vld [vmem:[#allocation71_spill] sm:$0xff]  ;;  %v11472_v44 = vld [vmem:[#allocation23 + $0x58] sm:$0xff] (%p3457_p8) }
 0x7a6   : > { %5783 = vmatpush1.bf16.msra.mxu1 %v5782_v28  ;;  %v14011_v28 = vld [vmem:[#allocation58_spill] sm:$0xff]  ;;  %v14014_v14 = vld [vmem:[#allocation75_spill] sm:$0xff]  ;;  %v14017_v5 = vld [vmem:[#allocation66_spill] sm:$0xff] }
 0x7a7   : > { %5719 = vmatpush1.bf16.msra.mxu0 %v5718_v9  ;;  %5785 = vmatprep.subr.bf16.mxu1 %v5784_v7  ;;  %v5726_v9 = vpack.c.bf16 %v14010_v10, %v14009_v8  ;;  %v5790_v13 = vpack.c.bf16 %v14012_v0, %v14011_v28  ;;  %v14015_v7 = vld [vmem:[#allocation73_spill] sm:$0xff]  ;;  %v14018_v12 = vld [vmem:[#allocation74_spill] sm:$0xff]  ;;  %v14021_v8 = vld [vmem:[#allocation79_spill] sm:$0xff] }
 0x7a8   : > { %5721 = vmatprep.subr.bf16.mxu0 %v5720_v55  ;;  %v5728_v55 = vpack.c.bf16 %v14014_v14, %v14013_v6  ;;  %v5792_v4 = vpack.c.bf16 %v14016_v15, %v14015_v7  ;;  %v14022_v10 = vld [vmem:[#allocation83_spill] sm:$0xff]  ;;  %v14024_v28 = vld [vmem:[#allocation85_spill] sm:$0xff]  ;;  %v14025_v6 = vld [vmem:[#allocation78_spill] sm:$0xff] }
 0x7a9   : > { %v14026_v14 = vld [vmem:[#allocation82_spill] sm:$0xff]  ;;  %v14028_v7 = vld [vmem:[#allocation84_spill] sm:$0xff]  ;;  %v11486_v46 = vld [vmem:[#allocation23 + $0x90] sm:$0xff] (%p3457_p8) }
 0x7aa   : > { %5787 = vmatpush1.bf16.msra.mxu1 %v5786_v1  ;;  %v14019_v1 = vld [vmem:[#allocation72_spill] sm:$0xff]  ;;  %v11490_v37 = vld [vmem:[#allocation23 + $0xa0] sm:$0xff] (%p3457_p8)  ;;  %v11492_v42 = vld [vmem:[#allocation23 + $0xa8] sm:$0xff] (%p3457_p8) }
 0x7ab   : > { %5723 = vmatpush1.bf16.msra.mxu0 %v5722_v2  ;;  %5789 = vmatprep.subr.bf16.mxu1 %v5788_v3  ;;  %v5730_v2 = vpack.c.bf16 %v14018_v12, %v14017_v5  ;;  %v5794_v11 = vpack.c.bf16 %v14020_v16, %v14019_v1  ;;  %v14023_v3 = vld [vmem:[#allocation81_spill] sm:$0xff]  ;;  %v14029_v5 = vld [vmem:[#allocation87_spill] sm:$0xff]  ;;  %v11480_v29 = vld [vmem:[#allocation23 + $0x78] sm:$0xff] (%p3457_p8) }
 0x7ac   : > { %5725 = vmatprep.subr.bf16.mxu0 %v5724_v17  ;;  %v5732_v17 = vpack.c.bf16 %v14022_v10, %v14021_v8  ;;  %v5796_v0 = vpack.c.bf16 %v14024_v28, %v14023_v3  ;;  %v14030_v12 = vld [vmem:[#allocation91_spill] sm:$0xff]  ;;  %v14032_v1 = vld [vmem:[#allocation93_spill] sm:$0xff]  ;;  %v14033_v8 = vld [vmem:[#allocation86_spill] sm:$0xff] }
 0x7ad   : > { %v14034_v10 = vld [vmem:[#allocation90_spill] sm:$0xff]  ;;  %v14036_v3 = vld [vmem:[#allocation92_spill] sm:$0xff]  ;;  %v11494_v24 = vld [vmem:[#allocation23 + $0xb0] sm:$0xff] (%p3457_p8) }
 0x7ae   : > { %5791 = vmatpush1.bf16.msra.mxu1 %v5790_v13  ;;  %v14027_v13 = vld [vmem:[#allocation80_spill] sm:$0xff]  ;;  %v11498_v21 = vld [vmem:[#allocation23 + $0xc0] sm:$0xff] (%p3457_p8)  ;;  %v11500_v56 = vld [vmem:[#allocation23 + $0xc8] sm:$0xff] (%p3457_p8) }
 0x7af   : > { %5727 = vmatpush1.bf16.msra.mxu0 %v5726_v9  ;;  %5793 = vmatprep.subr.bf16.mxu1 %v5792_v4  ;;  %v5734_v9 = vpack.c.bf16 %v14026_v14, %v14025_v6  ;;  %v5798_v15 = vpack.c.bf16 %v14028_v7, %v14027_v13  ;;  %v14031_v4 = vld [vmem:[#allocation89_spill] sm:$0xff]  ;;  %v14037_v6 = vld [vmem:[#allocation95_spill] sm:$0xff]  ;;  %v11488_v23 = vld [vmem:[#allocation23 + $0x98] sm:$0xff] (%p3457_p8) }
 0x7b0   : > { %5729 = vmatprep.subr.bf16.mxu0 %v5728_v55  ;;  %v5736_v55 = vpack.c.bf16 %v14030_v12, %v14029_v5  ;;  %v5800_v16 = vpack.c.bf16 %v14032_v1, %v14031_v4  ;;  %v14038_v14 = vld [vmem:[#allocation99_spill] sm:$0xff]  ;;  %v14040_v13 = vld [vmem:[#allocation101_spill] sm:$0xff]  ;;  %v14041_v5 = vld [vmem:[#allocation94_spill] sm:$0xff] }
 0x7b1   : > { %v14042_v12 = vld [vmem:[#allocation98_spill] sm:$0xff]  ;;  %v14044_v4 = vld [vmem:[#allocation100_spill] sm:$0xff]  ;;  %v11502_v61 = vld [vmem:[#allocation23 + $0xd0] sm:$0xff] (%p3457_p8) }
 0x7b2   : > { %5795 = vmatpush1.bf16.msra.mxu1 %v5794_v11  ;;  %v14035_v11 = vld [vmem:[#allocation88_spill] sm:$0xff]  ;;  %v11506_v22 = vld [vmem:[#allocation23 + $0xe0] sm:$0xff] (%p3457_p8)  ;;  %v11508_v60 = vld [vmem:[#allocation23 + $0xe8] sm:$0xff] (%p3457_p8) }
 0x7b3   : > { %5731 = vmatpush1.bf16.msra.mxu0 %v5730_v2  ;;  %5797 = vmatprep.subr.bf16.mxu1 %v5796_v0  ;;  %v5738_v2 = vpack.c.bf16 %v14034_v10, %v14033_v8  ;;  %v5802_v28 = vpack.c.bf16 %v14036_v3, %v14035_v11  ;;  %v14039_v0 = vld [vmem:[#allocation97_spill] sm:$0xff]  ;;  %v14045_v8 = vld [vmem:[#allocation103_spill] sm:$0xff]  ;;  %v11496_v26 = vld [vmem:[#allocation23 + $0xb8] sm:$0xff] (%p3457_p8) }
 0x7b4   : > { %5733 = vmatprep.subr.bf16.mxu0 %v5732_v17  ;;  %v5740_v17 = vpack.c.bf16 %v14038_v14, %v14037_v6  ;;  %v5804_v7 = vpack.c.bf16 %v14040_v13, %v14039_v0  ;;  %v14046_v10 = vld [vmem:[#allocation107_spill] sm:$0xff]  ;;  %v14048_v11 = vld [vmem:[#allocation109_spill] sm:$0xff]  ;;  %v14049_v6 = vld [vmem:[#allocation102_spill] sm:$0xff] }
 0x7b5   : > { %v14050_v14 = vld [vmem:[#allocation106_spill] sm:$0xff]  ;;  %v14052_v0 = vld [vmem:[#allocation108_spill] sm:$0xff]  ;;  %v11510_v57 = vld [vmem:[#allocation23 + $0xf0] sm:$0xff] (%p3457_p8) }
 0x7b6   : > { %5799 = vmatpush1.bf16.msra.mxu1 %v5798_v15  ;;  %v14043_v15 = vld [vmem:[#allocation96_spill] sm:$0xff]  ;;  %v11514_v51 = vld [vmem:[#allocation23 + $0x100] sm:$0xff] (%p3457_p8)  ;;  %v11516_v45 = vld [vmem:[#allocation23 + $0x108] sm:$0xff] (%p3457_p8) }
 0x7b7   : > { %5735 = vmatpush1.bf16.msra.mxu0 %v5734_v9  ;;  %5801 = vmatprep.subr.bf16.mxu1 %v5800_v16  ;;  %v5742_v9 = vpack.c.bf16 %v14042_v12, %v14041_v5  ;;  %v5806_v1 = vpack.c.bf16 %v14044_v4, %v14043_v15  ;;  %v14047_v16 = vld [vmem:[#allocation105_spill] sm:$0xff]  ;;  %v14053_v5 = vld [vmem:[#allocation111_spill] sm:$0xff]  ;;  %v11504_v53 = vld [vmem:[#allocation23 + $0xd8] sm:$0xff] (%p3457_p8) }
 0x7b8   : > { %5737 = vmatprep.subr.bf16.mxu0 %v5736_v55  ;;  %v5744_v55 = vpack.c.bf16 %v14046_v10, %v14045_v8  ;;  %v5808_v3 = vpack.c.bf16 %v14048_v11, %v14047_v16  ;;  %v14054_v12 = vld [vmem:[#allocation115_spill] sm:$0xff]  ;;  %v14056_v15 = vld [vmem:[#allocation117_spill] sm:$0xff]  ;;  %v14057_v8 = vld [vmem:[#allocation110_spill] sm:$0xff] }
 0x7b9   : > { %v14058_v10 = vld [vmem:[#allocation114_spill] sm:$0xff]  ;;  %v14060_v16 = vld [vmem:[#allocation116_spill] sm:$0xff]  ;;  %v11518_v48 = vld [vmem:[#allocation23 + $0x110] sm:$0xff] (%p3457_p8) }
 0x7ba   : > { %5803 = vmatpush1.bf16.msra.mxu1 %v5802_v28  ;;  %v14051_v28 = vld [vmem:[#allocation104_spill] sm:$0xff]  ;;  %v11522_v52 = vld [vmem:[#allocation23 + $0x120] sm:$0xff] (%p3457_p8)  ;;  %v11524_v47 = vld [vmem:[#allocation23 + $0x128] sm:$0xff] (%p3457_p8) }
 0x7bb   : > { %5739 = vmatpush1.bf16.msra.mxu0 %v5738_v2  ;;  %5805 = vmatprep.subr.bf16.mxu1 %v5804_v7  ;;  %v5746_v2 = vpack.c.bf16 %v14050_v14, %v14049_v6  ;;  %v5810_v13 = vpack.c.bf16 %v14052_v0, %v14051_v28  ;;  %v14055_v7 = vld [vmem:[#allocation113_spill] sm:$0xff]  ;;  %v14061_v6 = vld [vmem:[#allocation119_spill] sm:$0xff]  ;;  %v11512_v54 = vld [vmem:[#allocation23 + $0xf8] sm:$0xff] (%p3457_p8) }
 0x7bc   : > { %5741 = vmatprep.subr.bf16.mxu0 %v5740_v17  ;;  %v5748_v17 = vpack.c.bf16 %v14054_v12, %v14053_v5  ;;  %v5812_v4 = vpack.c.bf16 %v14056_v15, %v14055_v7  ;;  %v14062_v14 = vld [vmem:[#allocation123_spill] sm:$0xff]  ;;  %v14064_v28 = vld [vmem:[#allocation125_spill] sm:$0xff]  ;;  %v14065_v5 = vld [vmem:[#allocation118_spill] sm:$0xff] }
 0x7bd   : > { %v14066_v12 = vld [vmem:[#allocation122_spill] sm:$0xff]  ;;  %v14068_v7 = vld [vmem:[#allocation124_spill] sm:$0xff]  ;;  %v11526_v50 = vld [vmem:[#allocation23 + $0x130] sm:$0xff] (%p3457_p8) }
 0x7be   : > { %5807 = vmatpush1.bf16.msra.mxu1 %v5806_v1  ;;  %v14059_v1 = vld [vmem:[#allocation112_spill] sm:$0xff]  ;;  %v11530_v39 = vld [vmem:[#allocation23 + $0x140] sm:$0xff] (%p3457_p8)  ;;  %v11532_v34 = vld [vmem:[#allocation23 + $0x148] sm:$0xff] (%p3457_p8) }
 0x7bf   : > { %5743 = vmatpush1.bf16.msra.mxu0 %v5742_v9  ;;  %5809 = vmatprep.subr.bf16.mxu1 %v5808_v3  ;;  %v5750_v9 = vpack.c.bf16 %v14058_v10, %v14057_v8  ;;  %v5814_v11 = vpack.c.bf16 %v14060_v16, %v14059_v1  ;;  %v14063_v3 = vld [vmem:[#allocation121_spill] sm:$0xff]  ;;  %v14069_v8 = vld [vmem:[#allocation129_spill] sm:$0xff]  ;;  %v11520_v41 = vld [vmem:[#allocation23 + $0x118] sm:$0xff] (%p3457_p8) }
 0x7c0   : > { %5745 = vmatprep.subr.bf16.mxu0 %v5744_v55  ;;  %v5752_v55 = vpack.c.bf16 %v14062_v14, %v14061_v6  ;;  %v5816_v0 = vpack.c.bf16 %v14064_v28, %v14063_v3  ;;  %v14070_v10 = vld [vmem:[#allocation133_spill] sm:$0xff]  ;;  %v14072_v1 = vld [vmem:[#allocation135_spill] sm:$0xff]  ;;  %v14073_v6 = vld [vmem:[#allocation128_spill] sm:$0xff] }
 0x7c1   : > { %v14074_v14 = vld [vmem:[#allocation132_spill] sm:$0xff]  ;;  %v14076_v3 = vld [vmem:[#allocation134_spill] sm:$0xff]  ;;  %v11534_v36 = vld [vmem:[#allocation23 + $0x150] sm:$0xff] (%p3457_p8) }
 0x7c2   : > { %5811 = vmatpush1.bf16.msra.mxu1 %v5810_v13  ;;  %v14067_v13 = vld [vmem:[#allocation120_spill] sm:$0xff]  ;;  %v11538_v40 = vld [vmem:[#allocation23 + $0x160] sm:$0xff] (%p3457_p8)  ;;  %v11540_v35 = vld [vmem:[#allocation23 + $0x168] sm:$0xff] (%p3457_p8) }
 0x7c3   : > { %5747 = vmatpush1.bf16.msra.mxu0 %v5746_v2  ;;  %5813 = vmatprep.subr.bf16.mxu1 %v5812_v4  ;;  %v5754_v2 = vpack.c.bf16 %v14066_v12, %v14065_v5  ;;  %v5818_v15 = vpack.c.bf16 %v14068_v7, %v14067_v13  ;;  %v14071_v4 = vld [vmem:[#allocation131_spill] sm:$0xff]  ;;  %v14077_v5 = vld [vmem:[#allocation137_spill] sm:$0xff]  ;;  %v11528_v43 = vld [vmem:[#allocation23 + $0x138] sm:$0xff] (%p3457_p8) }
 0x7c4   : > { %5749 = vmatprep.subr.bf16.mxu0 %v5748_v17  ;;  %v5756_v17 = vpack.c.bf16 %v14070_v10, %v14069_v8  ;;  %v5820_v16 = vpack.c.bf16 %v14072_v1, %v14071_v4  ;;  %v14078_v12 = vld [vmem:[#allocation141_spill] sm:$0xff]  ;;  %v14080_v13 = vld [vmem:[#allocation143_spill] sm:$0xff]  ;;  %v14081_v8 = vld [vmem:[#allocation136_spill] sm:$0xff] }
 0x7c5   : > { %v14082_v10 = vld [vmem:[#allocation140_spill] sm:$0xff]  ;;  %v14084_v4 = vld [vmem:[#allocation142_spill] sm:$0xff]  ;;  %v11542_v38 = vld [vmem:[#allocation23 + $0x170] sm:$0xff] (%p3457_p8) }
 0x7c6   : > { %5815 = vmatpush1.bf16.msra.mxu1 %v5814_v11  ;;  %v14075_v11 = vld [vmem:[#allocation130_spill] sm:$0xff]  ;;  %v11546_v30 = vld [vmem:[#allocation23 + $0x180] sm:$0xff] (%p3457_p8)  ;;  %v11548_v20 = vld [vmem:[#allocation23 + $0x188] sm:$0xff] (%p3457_p8) }
 0x7c7   : > { %5751 = vmatpush1.bf16.msra.mxu0 %v5750_v9  ;;  %5817 = vmatprep.subr.bf16.mxu1 %v5816_v0  ;;  %v5758_v9 = vpack.c.bf16 %v14074_v14, %v14073_v6  ;;  %v5822_v28 = vpack.c.bf16 %v14076_v3, %v14075_v11  ;;  %v14079_v0 = vld [vmem:[#allocation139_spill] sm:$0xff]  ;;  %v14085_v6 = vld [vmem:[#allocation145_spill] sm:$0xff]  ;;  %v11536_v32 = vld [vmem:[#allocation23 + $0x158] sm:$0xff] (%p3457_p8) }
 0x7c8   : > { %5753 = vmatprep.subr.bf16.mxu0 %v5752_v55  ;;  %v5760_v55 = vpack.c.bf16 %v14078_v12, %v14077_v5  ;;  %v5824_v7 = vpack.c.bf16 %v14080_v13, %v14079_v0  ;;  %v14086_v14 = vld [vmem:[#allocation149_spill] sm:$0xff]  ;;  %v14088_v11 = vld [vmem:[#allocation151_spill] sm:$0xff]  ;;  %v14089_v5 = vld [vmem:[#allocation144_spill] sm:$0xff] }
 0x7c9   : > { %v14090_v12 = vld [vmem:[#allocation148_spill] sm:$0xff]  ;;  %v14092_v0 = vld [vmem:[#allocation150_spill] sm:$0xff]  ;;  %v11550_v58 = vld [vmem:[#allocation23 + $0x190] sm:$0xff] (%p3457_p8) }
 0x7ca   : > { %5819 = vmatpush1.bf16.msra.mxu1 %v5818_v15  ;;  %v14083_v15 = vld [vmem:[#allocation138_spill] sm:$0xff]  ;;  %v11554_v31 = vld [vmem:[#allocation23 + $0x1a0] sm:$0xff] (%p3457_p8)  ;;  %v11556_v63 = vld [vmem:[#allocation23 + $0x1a8] sm:$0xff] (%p3457_p8) }
 0x7cb   : > { %5755 = vmatpush1.bf16.msra.mxu0 %v5754_v2  ;;  %5821 = vmatprep.subr.bf16.mxu1 %v5820_v16  ;;  %v5762_v2 = vpack.c.bf16 %v14082_v10, %v14081_v8  ;;  %v5826_v1 = vpack.c.bf16 %v14084_v4, %v14083_v15  ;;  %v14087_v16 = vld [vmem:[#allocation147_spill] sm:$0xff]  ;;  %v14093_v8 = vld [vmem:[#allocation153_spill] sm:$0xff]  ;;  %v11544_v33 = vld [vmem:[#allocation23 + $0x178] sm:$0xff] (%p3457_p8) }
 0x7cc   : > { %5757 = vmatprep.subr.bf16.mxu0 %v5756_v17  ;;  %v5764_v17 = vpack.c.bf16 %v14086_v14, %v14085_v6  ;;  %v5828_v3 = vpack.c.bf16 %v14088_v11, %v14087_v16  ;;  %v14094_v10 = vld [vmem:[#allocation157_spill] sm:$0xff]  ;;  %v14096_v15 = vld [vmem:[#allocation159_spill] sm:$0xff]  ;;  %v14097_v6 = vld [vmem:[#allocation152_spill] sm:$0xff] }
 0x7cd   : > { %v14099_v14 = vld [vmem:[#allocation154_spill] sm:$0xff]  ;;  %v11558_v25 = vld [vmem:[#allocation23 + $0x1b0] sm:$0xff] (%p3457_p8) }
 0x7ce   : > { %5823 = vmatpush1.bf16.msra.mxu1 %v5822_v28  ;;  %v14091_v28 = vld [vmem:[#allocation146_spill] sm:$0xff]  ;;  %14191 = vst [vmem:[#allocation267_spill] sm:$0xff] (%p3457_p8), %v11558_v25  ;;  %v11581_v25 = vld [vmem:[%s11830_s18] sm:$0xf] (%p3457_p8) }
 0x7cf   : > { %5759 = vmatpush1.bf16.msra.mxu0 %v5758_v9  ;;  %5825 = vmatprep.subr.bf16.mxu1 %v5824_v7  ;;  %v5766_v9 = vpack.c.bf16 %v14090_v12, %v14089_v5  ;;  %v5830_v13 = vpack.c.bf16 %v14092_v0, %v14091_v28  ;;  %v14095_v7 = vld [vmem:[#allocation155_spill] sm:$0xff]  ;;  %v14100_v16 = vld [vmem:[#allocation158_spill] sm:$0xff]  ;;  %v14101_v5 = vld [vmem:[#allocation161_spill] sm:$0xff]  ;;  %14201 = vst [vmem:[#allocation277_spill] sm:$0xff] (%p3457_p8), %v11581_v25 }
 0x7d0   : > { %5761 = vmatprep.subr.bf16.mxu0 %v5760_v55  ;;  %v5768_v55 = vpack.c.bf16 %v14094_v10, %v14093_v8  ;;  %v5832_v4 = vpack.c.bf16 %v14096_v15, %v14095_v7  ;;  %v5834_v11 = vpack.c.bf16 %v14100_v16, %v14099_v14  ;;  %v14103_v12 = vld [vmem:[#allocation163_spill] sm:$0xff]  ;;  %v14105_v8 = vld [vmem:[#allocation160_spill] sm:$0xff]  ;;  %v14108_v7 = vld [vmem:[#allocation166_spill] sm:$0xff] }
 0x7d1   : > { %v14104_v28 = vld [vmem:[#allocation167_spill] sm:$0xff]  ;;  %v14111_v14 = vld [vmem:[#allocation68_spill] sm:$0xff] }
 0x7d2   : > { %5827 = vmatpush1.bf16.msra.mxu1 %v5826_v1  ;;  %v5836_v0 = vpack.c.bf16 %v14104_v28, %v14103_v12 }
 0x7d3   : > { %5763 = vmatpush1.bf16.msra.mxu0 %v5762_v2  ;;  %5829 = vmatprep.subr.bf16.mxu1 %v5828_v3  ;;  %v14098_v2 = vld [vmem:[#allocation156_spill] sm:$0xff] }
 0x7d4   : > { %5765 = vmatprep.subr.bf16.mxu0 %v5764_v17  ;;  %v5770_v1 = vpack.c.bf16 %v14098_v2, %v14097_v6  ;;  %v14102_v17 = vld [vmem:[#allocation165_spill] sm:$0xff]  ;;  %v14110_v6 = vld [vmem:[#allocation190_spill] sm:$0xff] }
 0x7d5   : > { %v5772_v3 = vpack.c.bf16 %v14102_v17, %v14101_v5 }
 0x7d6   : > { %5831 = vmatpush1.bf16.msra.mxu1 %v5830_v13  ;;  %v14107_v13 = vld [vmem:[#allocation162_spill] sm:$0xff] }
 0x7d7   : > { %5767 = vmatpush1.bf16.msra.mxu0 %v5766_v9  ;;  %5833 = vmatprep.subr.bf16.mxu1 %v5832_v4  ;;  %v14106_v9 = vld [vmem:[#allocation164_spill] sm:$0xff]  ;;  %v5838_v15 = vpack.c.bf16 %v14108_v7, %v14107_v13  ;;  %v14109_v4 = vld [vmem:[#allocation67_spill] sm:$0xff] }
 0x7d8   : > { %5769 = vmatprep.subr.bf16.mxu0 %v5768_v55  ;;  %v5774_v10 = vpack.c.bf16 %v14106_v9, %v14105_v8  ;;  %v3466_v55 = vld [vmem:[%s11185_s27] sm:$0xff]  ;;  %v3756_v2 = vrot.slane %v14110_v6, %v14109_v4  ;;  %v14112_v8 = vld [vmem:[#allocation69_spill] sm:$0xff] }
 0x7da   : > { %5835 = vmatpush1.bf16.msra.mxu1 %v5834_v11 }
 0x7db   : > { %5771 = vmatpush1.bf16.msra.mxu0 %v5770_v1  ;;  %5837 = vmatprep.subr.bf16.mxu1 %v5836_v0  ;;  %v3760_v1 = vrot.slane %v14110_v6, %v14111_v14 }
 0x7dc   : > { %5773 = vmatprep.subr.bf16.mxu0 %v5772_v3  ;;  %v3768_v3 = vrot.slane %v14110_v6, %v14112_v8 }
 0x7de   : > { %5839 = vmatpush1.bf16.msra.mxu1 %v5838_v15 }
 0x7df   : > { %5775 = vmatpush1.bf16.msra.mxu0 %v5774_v10 }
 0x7e1   : > { %3746 = vmatmul.mubr.f32.vlgmr.msra.gmra.mrb[0].mxu1 %v3466_v55 }
 0x7e2   : > { %3675 = vmatmul.mubr.f32.vlgmr.msra.gmra.mrb[0].mxu0 %v3466_v55  ;;  %v14113_v55 = vld [vmem:[#allocation70_spill] sm:$0xff] }
 0x7e3   : > { %v3764_v4 = vrot.slane %v14110_v6, %v14113_v55  ;;  %v11332_v55 = vld [vmem:[#allocation21 + $0x28] sm:$0xff] (%p3457_p8)  ;;  %v11426_v6 = vld [vmem:[#allocation21 + $0x1a0] sm:$0xff] (%p3457_p8) }
 0x7e4   :  { %14120 = vst [vmem:[#allocation196_spill] sm:$0xff] (%p3457_p8), %v11332_v55  ;;  %14167 = vst [vmem:[#allocation243_spill] sm:$0xff] (%p3457_p8), %v11426_v6  ;;  %v11454_v6 = vld [vmem:[#allocation23 + $0x10] sm:$0xff] (%p3457_p8) }
 0x7e5   :  { %14180 = vst [vmem:[#allocation256_spill] sm:$0xff] (%p3457_p8), %v11454_v6  ;;  %v11574_v55 = vld [vmem:[#allocation23 + $0x1f0] sm:$0xff] (%p3457_p8) }
 0x7e6   :  { %14199 = vst [vmem:[#allocation275_spill] sm:$0xff] (%p3457_p8), %v11574_v55 }
 0x8b4   : > { %v3747_v11 = vpop.f32.mrb[0].mxu1 }
 0x8b5   : > { %v3676_v16 = vpop.f32.mrb[0].mxu0  ;;  %v3749_v12 = vpop.f32.mrb[1].mxu1  ;;  %v3775_v18 = vadd.f32 %v3764_v4, %v3747_v11  ;;  %v11334_v4 = vld [vmem:[#allocation21 + $0x30] sm:$0xff] (%p3457_p8) }
 0x8b6   : > { %v3773_v5 = vadd.f32 %v3756_v2, %v3676_v16  ;;  %v3678_v17 = vpop.f32.mrb[1].mxu0  ;;  %v3776_v7 = vadd.f32 %v3768_v3, %v3749_v12  ;;  %14121 = vst [vmem:[#allocation197_spill] sm:$0xff] (%p3457_p8), %v11334_v4  ;;  %v11562_v4 = vld [vmem:[#allocation23 + $0x1c0] sm:$0xff] (%p3457_p8) }
 0x8b7   : > { %v3774_v28 = vadd.f32 %v3760_v1, %v3678_v17  ;;  %14193 = vst [vmem:[#allocation269_spill] sm:$0xff] (%p3457_p8), %v11562_v4  ;;  %v11583_v4 = vmov (%p3457_p8), 0.0  }
 0x8b8   : > { %v3777_v0 = vsub.f32 0.0, %v3773_v5  ;;  %v3790_v15 = vsub.f32 0.0, %v3776_v7  ;;  %v11328_v7 = vld [vmem:[#allocation21 + $0x18] sm:$0xff] (%p3457_p8) }
 0x8b9   : > { %v3783_v9 = vsub.f32 0.0, %v3774_v28  ;;  %14118 = vst [vmem:[#allocation194_spill] sm:$0xff] (%p3457_p8), %v11328_v7  ;;  %v11572_v7 = vld [vmem:[#allocation23 + $0x1e8] sm:$0xff] (%p3457_p8) }
 0x8ba   : > { %v3778_v10 = vmul.f32 1.442695, %v3777_v0  ;;  %v3791_v14 = vmul.f32 1.442695, %v3790_v15  ;;  %v14114_v0 = vld [vmem:[#allocation519_spill] sm:$0xff]  ;;  %14198 = vst [vmem:[#allocation274_spill] sm:$0xff] (%p3457_p8), %v11572_v7 }
 0x8bb   : > { %v3784_v13 = vmul.f32 1.442695, %v3783_v9  ;;  %v11330_v15 = vld [vmem:[#allocation21 + $0x20] sm:$0xff] (%p3457_p8) }
 0x8bc   : > { %6318 = vpow2.f32 %v3778_v10  ;;  %14119 = vst [vmem:[#allocation195_spill] sm:$0xff] (%p3457_p8), %v11330_v15  ;;  %v11566_v15 = vld [vmem:[#allocation23 + $0x1d0] sm:$0xff] (%p3457_p8) }
 0x8bd   : > { %6320 = vpow2.f32 %v3784_v13  ;;  %v11326_v13 = vld [vmem:[#allocation21 + $0x10] sm:$0xff] (%p3457_p8)  ;;  %14195 = vst [vmem:[#allocation271_spill] sm:$0xff] (%p3457_p8), %v11566_v15 }
 0x8be   : > { %6322 = vpow2.f32 %v3791_v14  ;;  %14117 = vst [vmem:[#allocation193_spill] sm:$0xff] (%p3457_p8), %v11326_v13  ;;  %v11336_v14 = vld [vmem:[#allocation21 + $0x38] sm:$0xff] (%p3457_p8)  ;;  %v11564_v13 = vld [vmem:[#allocation23 + $0x1c8] sm:$0xff] (%p3457_p8) }
 0x8bf   : > { %6324 = vtanh.f32 %v3775_v18  ;;  %v11324_v18 = vld [vmem:[#allocation21 + $0x8] sm:$0xff] (%p3457_p8)  ;;  %14122 = vst [vmem:[#allocation198_spill] sm:$0xff] (%p3457_p8), %v11336_v14  ;;  %14194 = vst [vmem:[#allocation270_spill] sm:$0xff] (%p3457_p8), %v11564_v13  ;;  %v11570_v14 = vld [vmem:[#allocation23 + $0x1e0] sm:$0xff] (%p3457_p8)  ;;  %v11585_v13 = vmov (%p3457_p8), 0.0  }
 0x8c0   :  { %14116 = vst [vmem:[#allocation192_spill] sm:$0xff] (%p3457_p8), %v11324_v18  ;;  %14197 = vst [vmem:[#allocation273_spill] sm:$0xff] (%p3457_p8), %v11570_v14  ;;  %v11576_v18 = vld [vmem:[#allocation23 + $0x1f8] sm:$0xff] (%p3457_p8) }
 0x8c1   :  { %14200 = vst [vmem:[#allocation276_spill] sm:$0xff] (%p3457_p8), %v11576_v18 }
 0x8c6   : > { %v6319_v2 = vpop.eup %6318 }
 0x8c7   : > { %v6321_v16 = vpop.eup %6320  ;;  %v3780_v19 = vadd.f32 1.0, %v6319_v2 }
 0x8c8   : > { %v3786_v1 = vadd.f32 1.0, %v6321_v16  ;;  %v6323_v5 = vpop.eup %6322  ;;  %v11340_v16 = vld [vmem:[#allocation21 + $0x48] sm:$0xff] (%p3457_p8) }
 0x8c9   : > { %6326 = vrcp.f32 %v3780_v19  ;;  %v6325_v17 = vpop.eup %6324  ;;  %v3793_v3 = vadd.f32 1.0, %v6323_v5  ;;  %v11322_v19 = vld [vmem:[#allocation21] sm:$0xff] (%p3457_p8)  ;;  %14124 = vst [vmem:[#allocation200_spill] sm:$0xff] (%p3457_p8), %v11340_v16  ;;  %v11430_v5 = vld [vmem:[#allocation21 + $0x1b0] sm:$0xff] (%p3457_p8)  ;;  %v11560_v16 = vld [vmem:[#allocation23 + $0x1b8] sm:$0xff] (%p3457_p8) }
 0x8ca   : > { %6328 = vrcp.f32 %v3786_v1  ;;  %14115 = vst [vmem:[#allocation191_spill] sm:$0xff] (%p3457_p8), %v11322_v19  ;;  %v11428_v1 = vld [vmem:[#allocation21 + $0x1a8] sm:$0xff] (%p3457_p8)  ;;  %14169 = vst [vmem:[#allocation245_spill] sm:$0xff] (%p3457_p8), %v11430_v5  ;;  %v11568_v19 = vld [vmem:[#allocation23 + $0x1d8] sm:$0xff] (%p3457_p8) }
 0x8cb   : > { %6330 = vrcp.f32 %v3793_v3  ;;  %14168 = vst [vmem:[#allocation244_spill] sm:$0xff] (%p3457_p8), %v11428_v1  ;;  %v11440_v3 = vld [vmem:[#allocation21 + $0x1d8] sm:$0xff] (%p3457_p8)  ;;  %v11452_v5 = vld [vmem:[#allocation23 + $0x8] sm:$0xff] (%p3457_p8)  ;;  %v11478_v1 = vld [vmem:[#allocation23 + $0x70] sm:$0xff] (%p3457_p8) }
 0x8cc   :  { %14174 = vst [vmem:[#allocation250_spill] sm:$0xff] (%p3457_p8), %v11440_v3  ;;  %14179 = vst [vmem:[#allocation255_spill] sm:$0xff] (%p3457_p8), %v11452_v5  ;;  %v11462_v3 = vld [vmem:[#allocation23 + $0x30] sm:$0xff] (%p3457_p8) }
 0x8cd   :  { %14183 = vst [vmem:[#allocation259_spill] sm:$0xff] (%p3457_p8), %v11462_v3  ;;  %14189 = vst [vmem:[#allocation265_spill] sm:$0xff] (%p3457_p8), %v11478_v1 }
 0x8ce   :  { %14192 = vst [vmem:[#allocation268_spill] sm:$0xff] (%p3457_p8), %v11560_v16  ;;  %14196 = vst [vmem:[#allocation272_spill] sm:$0xff] (%p3457_p8), %v11568_v19 }
 0x8d3   : > { %v6327_v12 = vpop.eup %6326 }
 0x8d4   : > { %v6329_v28 = vpop.eup %6328  ;;  %v3797_v8 = vmul.f32 %v6327_v12, %v6325_v17  ;;  %v11432_v17 = vld [vmem:[#allocation21 + $0x1b8] sm:$0xff] (%p3457_p8)  ;;  %v11434_v12 = vld [vmem:[#allocation21 + $0x1c0] sm:$0xff] (%p3457_p8) }
 0x8d5   : > { %v3796_v9 = vmul.f32 %v14114_v0, %v6329_v28  ;;  %v6331_v11 = vpop.eup %6330  ;;  %14170 = vst [vmem:[#allocation246_spill] sm:$0xff] (%p3457_p8), %v11432_v17  ;;  %14171 = vst [vmem:[#allocation247_spill] sm:$0xff] (%p3457_p8), %v11434_v12  ;;  %v11442_v0 = vld [vmem:[#allocation21 + $0x1e0] sm:$0xff] (%p3457_p8)  ;;  %v11456_v12 = vld [vmem:[#allocation23 + $0x18] sm:$0xff] (%p3457_p8) }
 0x8d6   :  { %14175 = vst [vmem:[#allocation251_spill] sm:$0xff] (%p3457_p8), %v11442_v0  ;;  %14181 = vst [vmem:[#allocation257_spill] sm:$0xff] (%p3457_p8), %v11456_v12  ;;  %v11464_v0 = vld [vmem:[#allocation23 + $0x38] sm:$0xff] (%p3457_p8)  ;;  %v11474_v17 = vld [vmem:[#allocation23 + $0x60] sm:$0xff] (%p3457_p8) }
 0x8d7   : > { %v3798_v28 = vadd.f32 %v3797_v8, %v3796_v9   ;;  %v11438_v8 = vld [vmem:[#allocation21 + $0x1d0] sm:$0xff] (%p3457_p8)  ;;  %v11444_v9 = vld [vmem:[#allocation21 + $0x1e8] sm:$0xff] (%p3457_p8)  ;;  %14184 = vst [vmem:[#allocation260_spill] sm:$0xff] (%p3457_p8), %v11464_v0  ;;  %14188 = vst [vmem:[#allocation264_spill] sm:$0xff] (%p3457_p8), %v11474_v17 }
 0x8d8   :  { %14173 = vst [vmem:[#allocation249_spill] sm:$0xff] (%p3457_p8), %v11438_v8  ;;  %14176 = vst [vmem:[#allocation252_spill] sm:$0xff] (%p3457_p8), %v11444_v9  ;;  %v11460_v8 = vld [vmem:[#allocation23 + $0x28] sm:$0xff] (%p3457_p8)  ;;  %v11466_v9 = vld [vmem:[#allocation23 + $0x40] sm:$0xff] (%p3457_p8) }
 0x8d9   : > { %6332 = vtanh.f32 %v3798_v28  ;;  %v11436_v28 = vld [vmem:[#allocation21 + $0x1c8] sm:$0xff] (%p3457_p8)  ;;  %14182 = vst [vmem:[#allocation258_spill] sm:$0xff] (%p3457_p8), %v11460_v8  ;;  %14185 = vst [vmem:[#allocation261_spill] sm:$0xff] (%p3457_p8), %v11466_v9 }
 0x8da   :  { %14172 = vst [vmem:[#allocation248_spill] sm:$0xff] (%p3457_p8), %v11436_v28  ;;  %v11458_v28 = vld [vmem:[#allocation23 + $0x20] sm:$0xff] (%p3457_p8) }
 0x8e0   :  { %3459 = sbr.rel (!%p3457_p8) target bundleno = 1917 (0x77d), region = 245 }
 0x8e3   : > { %v6333_v10 = vpop.eup %6332 }
 0x8e4   : > { %v3800_v2 = vmul.f32 %v6333_v10, %v6331_v11   ;;  %v11446_v11 = vld [vmem:[#allocation21 + $0x1f0] sm:$0xff] (%p3457_p8)  ;;  %v11448_v10 = vld [vmem:[#allocation21 + $0x1f8] sm:$0xff] (%p3457_p8) }
 0x8e5   :  { %14177 = vst [vmem:[#allocation253_spill] sm:$0xff] (%p3457_p8), %v11446_v11  ;;  %14178 = vst [vmem:[#allocation254_spill] sm:$0xff] (%p3457_p8), %v11448_v10  ;;  %v11468_v11 = vld [vmem:[#allocation23 + $0x48] sm:$0xff] (%p3457_p8)  ;;  %v11470_v10 = vld [vmem:[#allocation23 + $0x50] sm:$0xff] (%p3457_p8) }
 0x8e6   : > { %3803 = vst [vmem:[%s3802_s11] sm:$0xff] %v3800_v2  ;;  %v11338_v2 = vld [vmem:[#allocation21 + $0x40] sm:$0xff] (%p3457_p8)  ;;  %14186 = vst [vmem:[#allocation262_spill] sm:$0xff] (%p3457_p8), %v11468_v11 }
 0x8e7   :  { %14123 = vst [vmem:[#allocation199_spill] sm:$0xff] %v11338_v2  ;;  %14187 = vst [vmem:[#allocation263_spill] sm:$0xff] %v11470_v10  ;;  %v11552_v2 = vld [vmem:[#allocation23 + $0x198] sm:$0xff] }
 0x8e8   :  { %14190 = vst [vmem:[#allocation266_spill] sm:$0xff] %v11552_v2 }
 0x8e9 LB: > { %14202 = vst [vmem:[#allocation521_spill] sm:$0xff] %v6794_v4  ;;  %14203 = vst [vmem:[#allocation522_spill] sm:$0xff] %v6798_v13  ;;  %v14204_v5 = vld [vmem:[#allocation255_spill] sm:$0xff]  ;;  %v14205_v8 = vld [vmem:[#allocation258_spill] sm:$0xff]  ;;  %v5842_v15 = vpack.c.bf16 %v11458_v28, %v11450_v49  ;;  %v5876_v13 = vpack.c.bf16 %v11480_v29, %v11472_v44  ;;  %s4502_s18 = sshll.u32 %s6802_s30, 3  ;;  %s3938_s30 = sadd.s32 1, %s6802_s30   ;;  %s6802_s30 = sphi %s11587_s30, %s3938_s30   ;;  %v6798_v13 = vphi %v11585_v13, %v14298_v13   ;;  %v6794_v4 = vphi %v11583_v4, %v4274_v4  }
 0x8ea   : > { %v5840_v25 = vpack.c.bf16 %v14205_v8, %v14204_v5  ;;  %v14206_v12 = vld [vmem:[#allocation257_spill] sm:$0xff]  ;;  %v14207_v0 = vld [vmem:[#allocation260_spill] sm:$0xff]  ;;  %v14209_v3 = vld [vmem:[#allocation259_spill] sm:$0xff]  ;;  %v11866_v8 = vmov 0.0   ;;  %s3942_s4 = scalar_lea.vmem [#allocation2], %s4502_s18  ;;  %p3935_p9 = scmp.ge.s32.totalorder %s3938_s30, 16  }
 0x8eb   : > { %v5872_v55 = vpack.c.bf16 %v14207_v0, %v14206_v12  ;;  %v14208_v6 = vld [vmem:[#allocation256_spill] sm:$0xff]  ;;  %v14211_v9 = vld [vmem:[#allocation261_spill] sm:$0xff]  ;;  %4008 = vmatprep.mubr.f32.mxu0 %v11866_v8  ;;  %4079 = vmatprep.mubr.f32.mxu1 %v11866_v8  ;;  %v14219_v7 = vld [vmem:[#allocation274_spill] sm:$0xff]  ;;  %vm6826_vm0 = vmmov (%p3935_p9), 0   ;;  %s6828_s22 = smov (%p3935_p9), [#allocation24]  }
 0x8ec   : > { %v5874_v14 = vpack.c.bf16 %v14209_v3, %v14208_v6  ;;  %5841 = vmatprep.subr.bf16.mxu0 %v5840_v25  ;;  %v14212_v17 = vld [vmem:[#allocation264_spill] sm:$0xff]  ;;  %v14214_v1 = vld [vmem:[#allocation265_spill] sm:$0xff]  ;;  %v5848_v3 = vpack.c.bf16 %v11492_v42, %v11484_v62  ;;  %v5880_v6 = vpack.c.bf16 %v11496_v26, %v11488_v23  ;;  %v5886_v25 = vpack.c.bf16 %v11510_v57, %v11502_v61  ;;  %s4377_s24 = sshll.u32 (%p3935_p9), %s6828_s22, 4  ;;  %s4378_s24 = int_to_ptr.vmem [resolvable:$true] %s4377_s24 }
 0x8ed   : > { %v14210_v11 = vld [vmem:[#allocation262_spill] sm:$0xff]  ;;  %5873 = vmatprep.subr.bf16.mxu1 %v5872_v55  ;;  %5843 = vmatpush1.bf16.msra.mxu0 %v5842_v15  ;;  %v5846_v5 = vpack.c.bf16 %v14212_v17, %v14211_v9  ;;  %v5850_v15 = vpack.c.bf16 %v11490_v37, %v11482_v27  ;;  %v5882_v55 = vpack.c.bf16 %v11494_v24, %v11486_v46  ;;  %v14216_v16 = vld [vmem:[#allocation268_spill] sm:$0xff]  ;;  %v14222_v8 = vld [vmem:[#allocation269_spill] sm:$0xff]  ;;  %s6592_s9 = scalar_lea.vmem (%p3935_p9), %s4378_s24, 128  ;;  %p6597_p11 = scmp.lt.s32.totalorder (%p3935_p9), %s4378_s24, %s4378_s24 }
 0x8ee   : > { %v5844_v4 = vpack.c.bf16 %v11476_v59, %v14210_v11  ;;  %5875 = vmatpush1.bf16.msra.mxu1 %v5874_v14  ;;  %v14213_v10 = vld [vmem:[#allocation263_spill] sm:$0xff]  ;;  %v5854_v14 = vpack.c.bf16 %v11506_v22, %v11498_v21  ;;  %v14220_v19 = vld [vmem:[#allocation272_spill] sm:$0xff]  ;;  %v14229_v11 = vld [vmem:[#allocation198_spill] sm:$0xff]  ;;  %p6593_p10 = scmp.ne.s32.totalorder (%p3935_p9), %s4378_s24, %s6592_s9  ;;  %p6598_p12 = scmp.lt.s32.totalorder (%p3935_p9), %s6592_s9, %s6592_s9 }
 0x8ef   : > { %v5878_v0 = vpack.c.bf16 %v14214_v1, %v14213_v10  ;;  %5877 = vmatprep.subr.bf16.mxu1 %v5876_v13  ;;  %v5852_v13 = vpack.c.bf16 %v11508_v60, %v11500_v56  ;;  %v14215_v2 = vld [vmem:[#allocation266_spill] sm:$0xff]  ;;  %v14221_v18 = vld [vmem:[#allocation276_spill] sm:$0xff]  ;;  %v14223_v1 = vld [vmem:[#allocation273_spill] sm:$0xff] }
 0x8f0   : > { %5845 = vmatprep.subr.bf16.mxu0 %v5844_v4  ;;  %v5884_v4 = vpack.c.bf16 %v11512_v54, %v11504_v53  ;;  %v14226_v10 = vld [vmem:[#allocation192_spill] sm:$0xff]  ;;  %p6599_p13 = por (%p3935_p9), %p6598_p12, %p6597_p11 }
 0x8f1   : > { %5847 = vmatpush1.bf16.msra.mxu0 %v5846_v5  ;;  %v5856_v5 = vpack.c.bf16 %v11524_v47, %v11516_v45  ;;  %v4290_v45 = vld [vmem:[%s11831_s19 + $0x68] sm:$0xff] (%p3935_p9) }
 0x8f2   : > { %5879 = vmatpush1.bf16.msra.mxu1 %v5878_v0  ;;  %5849 = vmatprep.subr.bf16.mxu0 %v5848_v3  ;;  %v5858_v3 = vpack.c.bf16 %v11522_v52, %v11514_v51  ;;  %v5890_v0 = vpack.c.bf16 %v11526_v50, %v11518_v48  ;;  %v4291_v48 = vld [vmem:[%s11831_s19 + $0x70] sm:$0xff] (%p3935_p9)  ;;  %v4292_v50 = vld [vmem:[%s11831_s19 + $0x78] sm:$0xff] (%p3935_p9)  ;;  %v4503_v52 = vld [vmem:[%s11832_s20] ss:$0 sm:$0xff] (%p3935_p9)  ;;  %p6600_p0 = pnand (%p3935_p9), %p6599_p13, %p6593_p10 }
 0x8f3   : > { %5881 = vmatprep.subr.bf16.mxu1 %v5880_v6  ;;  %v5888_v6 = vpack.c.bf16 %v11528_v43, %v11520_v41  ;;  %v4289_v43 = vld [vmem:[%s11831_s19 + $0x60] sm:$0xff] (%p3935_p9)  ;;  %v5990_v51 = vpack.c.bf16 (%p3935_p9), %v4292_v50, %v4291_v48 }
 0x8f4   :  { %v5987_v47 = vpack.c.bf16 (%p3935_p9), %v4290_v45, %v4289_v43 }
 0x8f5   : > { %5851 = vmatpush1.bf16.msra.mxu0 %v5850_v15  ;;  %v5860_v15 = vpack.c.bf16 %v11540_v35, %v11532_v34  ;;  %v4285_v35 = vld [vmem:[%s11831_s19 + $0x40] sm:$0xff] (%p3935_p9) }
 0x8f6   : > { %5883 = vmatpush1.bf16.msra.mxu1 %v5882_v55  ;;  %5853 = vmatprep.subr.bf16.mxu0 %v5852_v13  ;;  %v5892_v55 = vpack.c.bf16 %v11544_v33, %v11536_v32  ;;  %v5862_v13 = vpack.c.bf16 %v11538_v40, %v11530_v39  ;;  %v4283_v32 = vld [vmem:[%s11831_s19 + $0x30] sm:$0xff] (%p3935_p9)  ;;  %v4284_v33 = vld [vmem:[%s11831_s19 + $0x38] sm:$0xff] (%p3935_p9) }
 0x8f7   : > { %5885 = vmatprep.subr.bf16.mxu1 %v5884_v4  ;;  %v5894_v4 = vpack.c.bf16 %v11542_v38, %v11534_v36  ;;  %v5978_v34 = vpack.c.bf16 (%p3935_p9), %v4284_v33, %v4283_v32  ;;  %v4286_v36 = vld [vmem:[%s11831_s19 + $0x48] sm:$0xff] (%p3935_p9)  ;;  %v4287_v39 = vld [vmem:[%s11831_s19 + $0x50] sm:$0xff] (%p3935_p9)  ;;  %v4288_v40 = vld [vmem:[%s11831_s19 + $0x58] sm:$0xff] (%p3935_p9) }
 0x8f8   :  { %v5981_v38 = vpack.c.bf16 (%p3935_p9), %v4286_v36, %v4285_v35  ;;  %v5984_v41 = vpack.c.bf16 (%p3935_p9), %v4288_v40, %v4287_v39 }
 0x8f9   : > { %5855 = vmatpush1.bf16.msra.mxu0 %v5854_v14  ;;  %v5864_v14 = vpack.c.bf16 %v11556_v63, %v11548_v20  ;;  %v6827_v20 = vmov (%p3935_p9), 0.0  }
 0x8fa   : > { %5887 = vmatpush1.bf16.msra.mxu1 %v5886_v25  ;;  %5857 = vmatprep.subr.bf16.mxu0 %v5856_v5  ;;  %v5896_v25 = vpack.c.bf16 %v14216_v16, %v14215_v2  ;;  %v5866_v5 = vpack.c.bf16 %v11554_v31, %v11546_v30  ;;  %v14225_v2 = vld [vmem:[#allocation275_spill] sm:$0xff]  ;;  %v14233_v16 = vld [vmem:[#allocation197_spill] sm:$0xff]  ;;  %v4282_v30 = vld [vmem:[%s11831_s19 + $0x28] sm:$0xff] (%p3935_p9) }
 0x8fb   : > { %5889 = vmatprep.subr.bf16.mxu1 %v5888_v6  ;;  %v14217_v6 = vld [vmem:[#allocation267_spill] sm:$0xff] }
 0x8fd   : > { %5859 = vmatpush1.bf16.msra.mxu0 %v5858_v3  ;;  %v5898_v3 = vpack.c.bf16 %v14217_v6, %v11550_v58  ;;  %v14227_v6 = vld [vmem:[#allocation196_spill] sm:$0xff]  ;;  %v4281_v58 = vld [vmem:[%s11831_s19 + $0x20] sm:$0xff] (%p3935_p9) }
 0x8fe   : > { %5891 = vmatpush1.bf16.msra.mxu1 %v5890_v0  ;;  %5861 = vmatprep.subr.bf16.mxu0 %v5860_v15  ;;  %v14218_v0 = vld [vmem:[#allocation270_spill] sm:$0xff]  ;;  %v5975_v31 = vpack.c.bf16 (%p3935_p9), %v4282_v30, %v4281_v58 }
 0x8ff   : > { %5893 = vmatprep.subr.bf16.mxu1 %v5892_v55  ;;  %v5868_v15 = vpack.c.bf16 %v14219_v7, %v14218_v0  ;;  %v5900_v55 = vpack.c.bf16 %v14221_v18, %v14220_v19  ;;  %v14230_v0 = vld [vmem:[#allocation191_spill] sm:$0xff] }
 0x900   : > { %v14231_v7 = vld [vmem:[#allocation195_spill] sm:$0xff] }
 0x901   : > { %5863 = vmatpush1.bf16.msra.mxu0 %v5862_v13  ;;  %v5870_v13 = vpack.c.bf16 %v14223_v1, %v14222_v8  ;;  %v14234_v1 = vld [vmem:[#allocation200_spill] sm:$0xff] }
 0x902   : > { %5895 = vmatpush1.bf16.msra.mxu1 %v5894_v4  ;;  %5865 = vmatprep.subr.bf16.mxu0 %v5864_v14  ;;  %v14224_v4 = vld [vmem:[#allocation271_spill] sm:$0xff]  ;;  %v5904_v14 = vpack.c.bf16 %v14227_v6, %v14226_v10  ;;  %v14238_v10 = vld [vmem:[#allocation522_spill] sm:$0xff]  ;;  %v14242_v6 = vld [vmem:[#allocation205_spill] sm:$0xff] }
 0x903   : > { %5897 = vmatprep.subr.bf16.mxu1 %v5896_v25  ;;  %v5902_v9 = vpack.c.bf16 %v14225_v2, %v14224_v4  ;;  %v14228_v25 = vld [vmem:[#allocation194_spill] sm:$0xff]  ;;  %v14235_v2 = vld [vmem:[#allocation204_spill] sm:$0xff] }
 0x904   : > { %v5936_v12 = vpack.c.bf16 %v14229_v11, %v14228_v25  ;;  %v5908_v8 = vpack.c.bf16 %v14235_v2, %v14234_v1  ;;  %v14240_v11 = vld [vmem:[#allocation203_spill] sm:$0xff]  ;;  %v14247_v2 = vmov 0.0  }
 0x905   : > { %5867 = vmatpush1.bf16.msra.mxu0 %v5866_v5  ;;  %v5906_v5 = vpack.c.bf16 %v14231_v7, %v14230_v0  ;;  %v14245_v0 = vld [vmem:[#allocation210_spill] sm:$0xff] }
 0x906   : > { %5899 = vmatpush1.bf16.msra.mxu1 %v5898_v3  ;;  %5869 = vmatprep.subr.bf16.mxu0 %v5868_v15  ;;  %v14232_v3 = vld [vmem:[#allocation193_spill] sm:$0xff]  ;;  %v14236_v15 = vld [vmem:[#allocation202_spill] sm:$0xff] }
 0x907   : > { %5901 = vmatprep.subr.bf16.mxu1 %v5900_v55  ;;  %v5938_v17 = vpack.c.bf16 %v14233_v16, %v14232_v3  ;;  %v14237_v55 = vld [vmem:[#allocation206_spill] sm:$0xff] }
 0x908   : > { %v5940_v4 = vpack.c.bf16 %v14237_v55, %v14236_v15  ;;  %v14246_v3 = vld [vmem:[#allocation214_spill] sm:$0xff]  ;;  %v14250_v55 = vld [vmem:[#allocation209_spill] sm:$0xff] }
 0x909   : > { %5871 = vmatpush1.bf16.msra.mxu0 %v5870_v13  ;;  %v14241_v13 = vld [vmem:[#allocation201_spill] sm:$0xff]  ;;  %v5944_v1 = vpack.c.bf16 %v14246_v3, %v14245_v0  ;;  %v14257_v0 = vld [vmem:[#allocation219_spill] sm:$0xff] }
 0x90a   : > { %5903 = vmatpush1.bf16.msra.mxu1 %v5902_v9  ;;  %5905 = vmatprep.subr.bf16.mxu0 %v5904_v14  ;;  %v14239_v9 = vld [vmem:[#allocation199_spill] sm:$0xff]  ;;  %v5942_v16 = vpack.c.bf16 %v14242_v6, %v14241_v13  ;;  %v14244_v14 = vld [vmem:[#allocation212_spill] sm:$0xff]  ;;  %v14254_v13 = vld [vmem:[#allocation218_spill] sm:$0xff] }
 0x90b   : > { %5937 = vmatprep.subr.bf16.mxu1 %v5936_v12  ;;  %v5910_v7 = vpack.c.bf16 %v14240_v11, %v14239_v9  ;;  %v14243_v12 = vld [vmem:[#allocation208_spill] sm:$0xff]  ;;  %v14255_v6 = vld [vmem:[#allocation222_spill] sm:$0xff]  ;;  %v14259_v3 = vld [vmem:[#allocation221_spill] sm:$0xff] }
 0x90c   : > { %4009 = vmatmul.mubr.f32.vlgmr.msra.gmra.mrb[0].mxu0 %v14238_v10  ;;  %v5912_v25 = vpack.c.bf16 %v14244_v14, %v14243_v12  ;;  %v5948_v12 = vpack.c.bf16 %v14255_v6, %v14254_v13  ;;  %v14256_v14 = vld [vmem:[#allocation215_spill] sm:$0xff]  ;;  %v14267_v13 = vld [vmem:[#allocation229_spill] sm:$0xff] }
 0x90d   : > { %4080 = vmatmul.mubr.f32.vlgmr.msra.gmra.mrb[0].mxu1 %v14238_v10  ;;  %5907 = vmatpush1.bf16.msra.mxu0 %v5906_v5  ;;  %v14249_v5 = vld [vmem:[#allocation211_spill] sm:$0xff]  ;;  %v14251_v10 = vld [vmem:[#allocation213_spill] sm:$0xff] }
 0x90e   : > { %5939 = vmatpush1.bf16.msra.mxu1 %v5938_v17  ;;  %5909 = vmatprep.subr.bf16.mxu0 %v5908_v8  ;;  %v14248_v17 = vld [vmem:[#allocation207_spill] sm:$0xff]  ;;  %v5946_v9 = vpack.c.bf16 %v14251_v10, %v14250_v55  ;;  %v14252_v8 = vld [vmem:[#allocation216_spill] sm:$0xff]  ;;  %v14263_v55 = vld [vmem:[#allocation230_spill] sm:$0xff] }
 0x90f   : > { %5941 = vmatprep.subr.bf16.mxu1 %v5940_v4  ;;  %4150 = vmatprep.mubr.f32.mxu0 %v14247_v2  ;;  %v5914_v15 = vpack.c.bf16 %v14249_v5, %v14248_v17  ;;  %v14253_v4 = vld [vmem:[#allocation220_spill] sm:$0xff] }
 0x910   : > { %4221 = vmatprep.mubr.f32.mxu1 %v14247_v2  ;;  %v5916_v11 = vpack.c.bf16 %v14253_v4, %v14252_v8  ;;  %v14260_v17 = vld [vmem:[#allocation224_spill] sm:$0xff]  ;;  %v14264_v8 = vld [vmem:[#allocation223_spill] sm:$0xff] }
 0x911   : > { %5911 = vmatpush1.bf16.msra.mxu0 %v5910_v7  ;;  %v5918_v7 = vpack.c.bf16 %v14257_v0, %v14256_v14  ;;  %v14261_v5 = vld [vmem:[#allocation228_spill] sm:$0xff]  ;;  %v14265_v4 = vld [vmem:[#allocation227_spill] sm:$0xff] }
 0x912   : > { %5943 = vmatpush1.bf16.msra.mxu1 %v5942_v16  ;;  %5913 = vmatprep.subr.bf16.mxu0 %v5912_v25  ;;  %v14258_v16 = vld [vmem:[#allocation217_spill] sm:$0xff]  ;;  %v5920_v25 = vpack.c.bf16 %v14261_v5, %v14260_v17  ;;  %v14268_v14 = vld [vmem:[#allocation232_spill] sm:$0xff]  ;;  %v14272_v17 = vld [vmem:[#allocation231_spill] sm:$0xff] }
 0x913   : > { %5945 = vmatprep.subr.bf16.mxu1 %v5944_v1  ;;  %v5950_v2 = vpack.c.bf16 %v14259_v3, %v14258_v16  ;;  %v14262_v1 = vld [vmem:[#allocation226_spill] sm:$0xff]  ;;  %v14269_v0 = vld [vmem:[#allocation236_spill] sm:$0xff]  ;;  %v14274_v5 = vld [vmem:[#allocation233_spill] sm:$0xff] }
 0x914   : > { %v5952_v10 = vpack.c.bf16 %v14263_v55, %v14262_v1  ;;  %v14271_v16 = vld [vmem:[#allocation238_spill] sm:$0xff]  ;;  %v14275_v1 = vld [vmem:[#allocation237_spill] sm:$0xff] }
 0x915   : > { %5915 = vmatpush1.bf16.msra.mxu0 %v5914_v15  ;;  %v5922_v15 = vpack.c.bf16 %v14265_v4, %v14264_v8  ;;  %v5958_v55 = vpack.c.bf16 %v14275_v1, %v14274_v5  ;;  %v14276_v8 = vld [vmem:[#allocation240_spill] sm:$0xff]  ;;  %v14278_v4 = vld [vmem:[#allocation242_spill] sm:$0xff] }
 0x916   : > { %5947 = vmatpush1.bf16.msra.mxu1 %v5946_v9  ;;  %5917 = vmatprep.subr.bf16.mxu0 %v5916_v11  ;;  %v14266_v9 = vld [vmem:[#allocation225_spill] sm:$0xff]  ;;  %v5924_v11 = vpack.c.bf16 %v14269_v0, %v14268_v14  ;;  %v14280_v14 = vld [vmem:[#allocation239_spill] sm:$0xff]  ;;  %v14287_v5 = vld [vmem:[#allocation254_spill] sm:$0xff] }
 0x917   : > { %5949 = vmatprep.subr.bf16.mxu1 %v5948_v12  ;;  %v5954_v6 = vpack.c.bf16 %v14267_v13, %v14266_v9  ;;  %v14270_v12 = vld [vmem:[#allocation234_spill] sm:$0xff] }
 0x918   : > { %v5956_v3 = vpack.c.bf16 %v14271_v16, %v14270_v12  ;;  %v14279_v9 = vld [vmem:[#allocation246_spill] sm:$0xff]  ;;  %v14283_v12 = vld [vmem:[#allocation245_spill] sm:$0xff] }
 0x919   : > { %5919 = vmatpush1.bf16.msra.mxu0 %v5918_v7  ;;  %v14273_v7 = vld [vmem:[#allocation235_spill] sm:$0xff]  ;;  %v5960_v13 = vpack.c.bf16 %v14279_v9, %v14278_v4  ;;  %v14291_v4 = vld [vmem:[#allocation253_spill] sm:$0xff] }
 0x91a   : > { %5951 = vmatpush1.bf16.msra.mxu1 %v5950_v2  ;;  %5921 = vmatprep.subr.bf16.mxu0 %v5920_v25  ;;  %v5926_v2 = vpack.c.bf16 %v14273_v7, %v14272_v17  ;;  %v14277_v25 = vld [vmem:[#allocation244_spill] sm:$0xff] }
 0x91b   : > { %5953 = vmatprep.subr.bf16.mxu1 %v5952_v10  ;;  %v5928_v10 = vpack.c.bf16 %v14277_v25, %v14276_v8  ;;  %v14284_v17 = vld [vmem:[#allocation248_spill] sm:$0xff]  ;;  %v14288_v8 = vld [vmem:[#allocation247_spill] sm:$0xff]  ;;  %v14290_v25 = vld [vmem:[#allocation249_spill] sm:$0xff] }
 0x91c   : > { %v14285_v7 = vld [vmem:[#allocation252_spill] sm:$0xff]  ;;  %v5966_v9 = vpack.c.bf16 %v14291_v4, %v14290_v25 }
 0x91d   : > { %5923 = vmatpush1.bf16.msra.mxu0 %v5922_v15  ;;  %v14281_v15 = vld [vmem:[#allocation243_spill] sm:$0xff] }
 0x91e   : > { %5955 = vmatpush1.bf16.msra.mxu1 %v5954_v6  ;;  %5925 = vmatprep.subr.bf16.mxu0 %v5924_v11  ;;  %v5930_v0 = vpack.c.bf16 %v14281_v15, %v14280_v14  ;;  %v14282_v6 = vld [vmem:[#allocation241_spill] sm:$0xff]  ;;  %v5932_v11 = vpack.c.bf16 %v14285_v7, %v14284_v17 }
 0x91f   : > { %5957 = vmatprep.subr.bf16.mxu1 %v5956_v3  ;;  %v5962_v16 = vpack.c.bf16 %v14283_v12, %v14282_v6  ;;  %v14286_v3 = vld [vmem:[#allocation250_spill] sm:$0xff]  ;;  %v14293_v14 = vld [vmem:[#allocation277_spill] sm:$0xff] }
 0x920   : > { %v5964_v1 = vpack.c.bf16 %v14287_v5, %v14286_v3  ;;  %v14294_v6 = vld [vmem:[#allocation68_spill] sm:$0xff] }
 0x921   : > { %5927 = vmatpush1.bf16.msra.mxu0 %v5926_v2  ;;  %v14289_v2 = vld [vmem:[#allocation251_spill] sm:$0xff] }
 0x922   : > { %5959 = vmatpush1.bf16.msra.mxu1 %v5958_v55  ;;  %5929 = vmatprep.subr.bf16.mxu0 %v5928_v10  ;;  %v5934_v55 = vpack.c.bf16 %v14289_v2, %v14288_v8  ;;  %v3943_v10 = vld [vmem:[%s3942_s4] sm:$0xff] }
 0x923   : > { %5961 = vmatprep.subr.bf16.mxu1 %v5960_v13  ;;  %v14292_v13 = vld [vmem:[#allocation67_spill] sm:$0xff] }
 0x924   : > { %v4232_v15 = vrot.slane %v14293_v14, %v14292_v13 }
 0x925   : > { %5931 = vmatpush1.bf16.msra.mxu0 %v5930_v0  ;;  %v4236_v0 = vrot.slane %v14293_v14, %v14294_v6 }
 0x926   : > { %5963 = vmatpush1.bf16.msra.mxu1 %v5962_v16  ;;  %5933 = vmatprep.subr.bf16.mxu0 %v5932_v11  ;;  %v14295_v11 = vld [vmem:[#allocation69_spill] sm:$0xff] }
 0x927   : > { %5965 = vmatprep.subr.bf16.mxu1 %v5964_v1  ;;  %v4244_v1 = vrot.slane %v14293_v14, %v14295_v11 }
 0x929   : > { %5935 = vmatpush1.bf16.msra.mxu0 %v5934_v55 }
 0x92a   : > { %5967 = vmatpush1.bf16.msra.mxu1 %v5966_v9 }
 0x92c   : > { %4151 = vmatmul.mubr.f32.vlgmr.msra.gmra.mrb[0].mxu0 %v3943_v10 }
 0x92d   : > { %4222 = vmatmul.mubr.f32.vlgmr.msra.gmra.mrb[0].mxu1 %v3943_v10  ;;  %v14296_v10 = vld [vmem:[#allocation70_spill] sm:$0xff]  ;;  %4557 = vmatprep.mubr.msk.f32.mxu0 (%p3935_p9), %vm6826_vm0, %v6827_v20 }
 0x92e   : > { %v4240_v13 = vrot.slane %v14293_v14, %v14296_v10  ;;  %v6825_v10 = vmov (%p3935_p9), 0.0|0.0  }
 0x92f   :  { %5968 = vmatprep.subr.bf16.mxu0 (%p3935_p9), %v6825_v10 }
 0x9ff   : > { %v4152_v12 = vpop.f32.mrb[0].mxu0 }
 0xa00   : > { %v4223_v16 = vpop.f32.mrb[0].mxu1  ;;  %v4249_v17 = vadd.f32 %v4232_v15, %v4152_v12  ;;  %v4154_v7 = vpop.f32.mrb[1].mxu0 }
 0xa01   : > { %v4225_v3 = vpop.f32.mrb[1].mxu1  ;;  %v4250_v5 = vadd.f32 %v4236_v0, %v4154_v7  ;;  %v4251_v18 = vadd.f32 %v4240_v13, %v4223_v16 }
 0xa02   : > { %v4253_v8 = vsub.f32 0.0, %v4249_v17  ;;  %v4252_v4 = vadd.f32 %v4244_v1, %v4225_v3 }
 0xa03   : > { %v4259_v2 = vsub.f32 0.0, %v4250_v5 }
 0xa04   : > { %v4254_v55 = vmul.f32 1.442695, %v4253_v8  ;;  %v4266_v9 = vsub.f32 0.0, %v4252_v4  ;;  %v14297_v8 = vld [vmem:[#allocation521_spill] sm:$0xff] }
 0xa05   : > { %v4260_v25 = vmul.f32 1.442695, %v4259_v2 }
 0xa06   : > { %6334 = vpow2.f32 %v4254_v55  ;;  %v4267_v6 = vmul.f32 1.442695, %v4266_v9  ;;  %v4279_v9 = vld [vmem:[%s11831_s19 + $0x10] sm:$0xff] (%p3935_p9) }
 0xa07   : > { %6336 = vpow2.f32 %v4260_v25 }
 0xa08   : > { %6338 = vpow2.f32 %v4267_v6  ;;  %v4280_v6 = vld [vmem:[%s11831_s19 + $0x18] sm:$0xff] (%p3935_p9) }
 0xa09   : > { %6340 = vtanh.f32 %v4251_v18  ;;  %v4278_v18 = vld [vmem:[%s11831_s19 + $0x8] sm:$0xff] (%p3935_p9)  ;;  %v5972_v63 = vpack.c.bf16 (%p3935_p9), %v4280_v6, %v4279_v9 }
 0xa10   : > { %v6335_v15 = vpop.eup %6334 }
 0xa11   : > { %v6337_v12 = vpop.eup %6336  ;;  %v4256_v19 = vadd.f32 1.0, %v6335_v15 }
 0xa12   : > { %v4262_v0 = vadd.f32 1.0, %v6337_v12  ;;  %v6339_v17 = vpop.eup %6338 }
 0xa13   : > { %6342 = vrcp.f32 %v4256_v19  ;;  %v6341_v7 = vpop.eup %6340  ;;  %v4269_v1 = vadd.f32 1.0, %v6339_v17  ;;  %v4277_v19 = vld [vmem:[%s11831_s19] sm:$0xff] (%p3935_p9) }
 0xa14   : > { %6344 = vrcp.f32 %v4262_v0 }
 0xa15   : > { %6346 = vrcp.f32 %v4269_v1 }
 0xa1d   : > { %v6343_v5 = vpop.eup %6342 }
 0xa1e   : > { %v6345_v3 = vpop.eup %6344  ;;  %v4273_v11 = vmul.f32 %v6343_v5, %v6341_v7 }
 0xa1f   : > { %v4272_v2 = vmul.f32 %v14297_v8, %v6345_v3  ;;  %v6347_v16 = vpop.eup %6346 }
 0xa21   : > { %v4274_v4 = vadd.f32 %v4273_v11, %v4272_v2  }
 0xa23   : > { %6348 = vtanh.f32 %v4274_v4 }
 0xa2a   :  { %3937 = sbr.rel (!%p3935_p9) target bundleno = 2281 (0x8e9), region = 256 }
 0xa2d   : > { %v6349_v55 = vpop.eup %6348 }
 0xa2e   : > { %v4276_v25 = vmul.f32 %v6349_v55, %v6347_v16  }
 0xa30   : > { %v14298_v13 = vmov %v4276_v25 }
 0xa31   :  { %v5969_v13 = vpack.c.bf16 %v4278_v18, %v4277_v19 }
 0xa33   :  { %5970 = vmatpush3.bf16.msra.mxu0 %v5969_v13 }
 0xa34   :  { %5971 = vmatprep.subr.bf16.mxu0 %v6825_v10 }
 0xa37   :  { %5973 = vmatpush3.bf16.msra.mxu0 %v5972_v63 }
 0xa38   :  { %5974 = vmatprep.subr.bf16.mxu0 %v6825_v10 }
 0xa3b   :  { %5976 = vmatpush3.bf16.msra.mxu0 %v5975_v31 }
 0xa3c   :  { %5977 = vmatprep.subr.bf16.mxu0 %v6825_v10 }
 0xa3f   :  { %5979 = vmatpush3.bf16.msra.mxu0 %v5978_v34 }
 0xa40   :  { %5980 = vmatprep.subr.bf16.mxu0 %v6825_v10 }
 0xa43   :  { %5982 = vmatpush3.bf16.msra.mxu0 %v5981_v38 }
 0xa44   :  { %5983 = vmatprep.subr.bf16.mxu0 %v6825_v10 }
 0xa47   :  { %5985 = vmatpush3.bf16.msra.mxu0 %v5984_v41 }
 0xa48   :  { %5986 = vmatprep.subr.bf16.mxu0 %v6825_v10 }
 0xa4b   :  { %5988 = vmatpush3.bf16.msra.mxu0 %v5987_v47 }
 0xa4c   :  { %5989 = vmatprep.subr.bf16.mxu0 %v6825_v10 }
 0xa4f   :  { %5991 = vmatpush3.bf16.msra.mxu0 %v5990_v51 }
 0xa52   :  { %4558 = vmatmul.mubr.f32.vlgmr.msra.gmra.mrb[0].mxu0 %v4276_v25 }
 0xb25   :  { %v4366_v53 = vpop.f32.mrb[0].mxu0 }
 0xb26   :  { %v4367_v54 = vadd.f32 %v4503_v52, %v4366_v53  ;;  %v4559_v56 = vpop.f32.mrb[1].mxu0 }
 0xb28   :  { %4370 = vst [vmem:[#allocation24] sm:$0xff] %v4367_v54 }
 0xb29   :  { %6603 = shalt.err (!%p6600_p0)
}
 0xb2a   :  { %s14299_s14 = sld [smem:[#allocation529_spill]] }
 0xb30   :  { %s6604_s2 = scalar_lea.hbm %s14299_s14, 128 }
 0xb31   :  { %p6605_p1 = scmp.ne.s32.totalorder %s14299_s14, %s6604_s2  ;;  %p6608_p2 = scmp.lt.u32.totalorder %s6604_s2, %s14299_s14 }
 0xb33   :  { %p6610_p3 = pnand %p6608_p2, %p6605_p1 }
 0xb35   :  { %6613 = shalt.err (!%p6610_p3)
}
 0xb36   :  { %4380 = dma.vmem_to_hbm [thread:$0]  %s4378_s24, 128, %s14299_s14, [#allocation8]  }
 0xb37   :  { %6714 = dma.done.wait [#allocation8], 128  }
 0xb38   :  { %6715 = vsyncadd [#allocation8], 4294967168 }
 0xb39   :  { %4384 = vsyncpa [#allocation7], 1 }
 0xb3a   :  { %4385 = vsyncpa [#allocation10], 1 }
 0xb3b   :  { %4386 = vsyncpa [#allocation13], 1 }
 0xb3c   :  { %4387 = vsyncpa [#allocation16], 1 }
 0xb3d   :  { %4388 = vsyncpa [#allocation19], 1 }
 0xb3e   :  { %4389 = vsyncpa [#allocation22], 1 }
 0xb3f   :  { %4390 = vsyncpa [#allocation8], 1 }

</bundles_post_ra>
